<compile_context>
chip_gen: v7x
topology: tpu7x:2x2x1
jax: 0.10.0
libtpu: 0.0.40
codegen_flags: <defaults>
</compile_context>

<pallas_src>
import functools

import jax
import jax.numpy as jnp
from jax.experimental import pallas as pl
from jax.experimental.pallas import tpu as pltpu


# ----------------------------------------------------------------------------
# In-kernel helpers
# ----------------------------------------------------------------------------
def _dwunit(x2d, H, W, w1_bf16, k9, bi, pad_ref):
    """relu(depthwise3x3(conv1x1(x)) * bn_scale + bn_bias) for one tile.

    x2d     : (H*W, C)       bf16 input, spatial dims pre-flattened
    w1_bf16 : (C, C)         bf16 1x1-conv weight, (Cin, Cout) layout
    k9      : (9, C)         f32 depthwise taps with BN scale pre-folded,
                             row index = dh * 3 + dw
    bi      : (1, C)         f32 folded BN bias
    pad_ref : (H+2, W+16, C) f32 VMEM scratch; the 1x1 output lives at rows
                             [1, H+1) and cols [8, W+8) so the interior store
                             and the centre tap loads are sublane-aligned.
    """
    HW, C = x2d.shape
    assert HW == H * W

    # 1x1 conv: one MXU matmul (bf16 operands, f32 accumulation).  The f32
    # result reshape (H*W, C) -> (H, W, C) is layout-free since W % 8 == 0.
    y = jnp.dot(x2d, w1_bf16, preferred_element_type=jnp.float32)
    y = y.reshape(H, W, C)

    Wp = W + 16
    # Zero borders with aligned stores: top/bottom rows + 8-wide side bands
    # (only cols 7 and W+8 are ever read as padding; the rest is slack).
    zrow = jnp.zeros((1, Wp, C), jnp.float32)
    pad_ref[pl.ds(0, 1), :, :] = zrow
    pad_ref[pl.ds(H + 1, 1), :, :] = zrow
    zcol = jnp.zeros((H + 2, 8, C), jnp.float32)
    pad_ref[:, pl.ds(0, 8), :] = zcol
    pad_ref[:, pl.ds(W + 8, 8), :] = zcol
    # Aligned interior store (sublane offset 8, width W is a multiple of 8).
    pad_ref[pl.ds(1, H), pl.ds(8, W), :] = y

    # 3x3 depthwise conv (padding=1) + folded BN + ReLU, f32 on the VPU.
    acc = None
    for dh in range(3):
        for dw in range(3):
            tap = pad_ref[pl.ds(dh, H), pl.ds(7 + dw, W), :]
            term = tap * k9[dh * 3 + dw][None, None, :]
            acc = term if acc is None else acc + term
    return jnp.maximum(acc + bi[None], 0.0)


def _upsample2x_into(x, dst_ref):
    """Nearest-neighbour 2x upsample of x (S, S, C) into dst_ref (2S, 2S, C).

    Rows are duplicated via an outer-dim broadcast+merge (layout free);
    columns are duplicated with two sublane-strided stores (stride 2) instead
    of a per-column masked-store loop.
    """
    S, _, C = x.shape
    xh = jnp.broadcast_to(x[:, None, :, :], (S, 2, S, C)).reshape(2 * S, S, C)
    dst_ref[:, pl.ds(0, S, stride=2), :] = xh
    dst_ref[:, pl.ds(1, S, stride=2), :] = xh


def _tfpn_kernel(c3_ref, c4_ref, c5_ref, w1s_ref, k9s_ref, bis_ref,
                 p3_ref, p4_ref, p5_ref, pad5_ref, pad4_ref, pad3_ref):
    S5, S4, S3 = p5_ref.shape[0], p4_ref.shape[0], p3_ref.shape[0]

    # Level 5: p5 = DWUnit_1(c5)
    p5 = _dwunit(c5_ref[...], S5, S5, w1s_ref[0], k9s_ref[0], bis_ref[0],
                 pad5_ref)
    p5_ref[...] = p5
    _upsample2x_into(p5, p4_ref)            # p4 <- upsample2x(p5)

    # Level 4: p4 = upsample2x(p5) + DWUnit_2(c4)
    d4 = _dwunit(c4_ref[...], S4, S4, w1s_ref[1], k9s_ref[1], bis_ref[1],
                 pad4_ref)
    p4 = p4_ref[...] + d4
    p4_ref[...] = p4                        # p4 value reused below, no reload
    _upsample2x_into(p4, p3_ref)            # p3 <- upsample2x(p4)

    # Level 3: p3 = upsample2x(p4) + DWUnit_3(c3)
    d3 = _dwunit(c3_ref[...], S3, S3, w1s_ref[2], k9s_ref[2], bis_ref[2],
                 pad3_ref)
    p3_ref[...] = p3_ref[...] + d3


# ----------------------------------------------------------------------------
# Wrapper (NCHW boundary, channel packing, one fused pallas_call)
# ----------------------------------------------------------------------------
def tfpn_forward(c3, c4, c5, params):
    """c3/c4/c5: NCHW f32, spatial sizes (4S, 2S, S) with S % 8 == 0."""
    w1s, k9s, scs, bis = params
    N, C, S3, _ = c3.shape
    S4, S5 = S3 // 2, S3 // 4
    assert c4.shape == (N, C, S4, S4) and c5.shape == (N, C, S5, S5)
    assert S5 % 8 == 0, "smallest level's spatial dim must be a multiple of 8"

    # --- batch-pair channel packing: (N, C, H, W) -> (N/2, H*W, 2C) bf16 ----
    Np = (N + 1) // 2
    if N % 2:
        zpad = lambda t: jnp.concatenate([t, jnp.zeros_like(t[:1])], axis=0)
        c3, c4, c5 = zpad(c3), zpad(c4), zpad(c5)

    def pack(x):
        n2, cc, h, w = x.shape
        x = x.astype(jnp.bfloat16).reshape(n2 // 2, 2, cc, h, w)
        x = jnp.transpose(x, (0, 3, 4, 1, 2))        # (N/2, h, w, 2, C)
        return x.reshape(n2 // 2, h * w, 2 * cc)     # spatial pre-flattened

    def unpack(y):                                    # (N/2, h, w, 2C) -> NCHW
        np_, h, w, c2 = y.shape
        y = y.reshape(np_, h, w, 2, c2 // 2)
        y = jnp.transpose(y, (0, 3, 4, 1, 2))         # (N/2, 2, C, h, w)
        return y.reshape(2 * np_, c2 // 2, h, w)[:N]

    c3p, c4p, c5p = pack(c3), pack(c4), pack(c5)
    C2 = 2 * C

    # --- parameter prep: block-diagonal bf16 1x1 weight, BN scale folded into
    #     the depthwise taps, everything tiled to the packed channel axis. ---
    zblk = jnp.zeros_like(w1s)
    w1p = jnp.concatenate([jnp.concatenate([w1s, zblk], axis=2),
                           jnp.concatenate([zblk, w1s], axis=2)],
                          axis=1).astype(jnp.bfloat16)           # (3, 2C, 2C)
    k9f = k9s * scs                                               # fold scale
    k9p = jnp.concatenate([k9f, k9f], axis=-1)                    # (3, 9, 2C)
    bip = jnp.concatenate([bis, bis], axis=-1)                    # (3, 1, 2C)

    p3p, p4p, p5p = pl.pallas_call(
        _tfpn_kernel,
        out_shape=(
            jax.ShapeDtypeStruct((Np, S3, S3, C2), jnp.float32),
            jax.ShapeDtypeStruct((Np, S4, S4, C2), jnp.float32),
            jax.ShapeDtypeStruct((Np, S5, S5, C2), jnp.float32),
        ),
        grid=(Np,),
        in_specs=[
            pl.BlockSpec((None, S3 * S3, C2), lambda n: (n, 0, 0)),
            pl.BlockSpec((None, S4 * S4, C2), lambda n: (n, 0, 0)),
            pl.BlockSpec((None, S5 * S5, C2), lambda n: (n, 0, 0)),
            pl.BlockSpec((3, C2, C2), lambda n: (0, 0, 0)),
            pl.BlockSpec((3, 9, C2), lambda n: (0, 0, 0)),
            pl.BlockSpec((3, 1, C2), lambda n: (0, 0, 0)),
        ],
        out_specs=(
            pl.BlockSpec((None, S3, S3, C2), lambda n: (n, 0, 0, 0)),
            pl.BlockSpec((None, S4, S4, C2), lambda n: (n, 0, 0, 0)),
            pl.BlockSpec((None, S5, S5, C2), lambda n: (n, 0, 0, 0)),
        ),
        scratch_shapes=[
            pltpu.VMEM((S5 + 2, S5 + 16, C2), jnp.float32),
            pltpu.VMEM((S4 + 2, S4 + 16, C2), jnp.float32),
            pltpu.VMEM((S3 + 2, S3 + 16, C2), jnp.float32),
        ],
        compiler_params=pltpu.CompilerParams(
            dimension_semantics=("parallel",),
            vmem_limit_bytes=32 * 1024 * 1024,
        ),
    )(c3p, c4p, c5p, w1p, k9p, bip)
    return unpack(p3p), unpack(p4p), unpack(p5p)


# ----------------------------------------------------------------------------
# Deterministic parameters (BN eval-mode stats folded into scale/bias), stacked
# over the three DWUnits: index 0 -> fpn1 (c5), 1 -> fpn2 (c4), 2 -> fpn3 (c3).
# ----------------------------------------------------------------------------
def init_tfpn_params(key, c=64):
    w1s, k9s, scs, bis = [], [], [], []
    for sub in jax.random.split(key, 3):
        k1, k2, k3, k4, k5, k6 = jax.random.split(sub, 6)
        w1 = jax.random.normal(k1, (c, c), jnp.float32) / jnp.sqrt(c)  # (Cout, Cin)
        wd = jax.random.normal(k2, (c, 3, 3), jnp.float32) / 3.0       # depthwise
        gamma = jax.random.uniform(k3, (c,), jnp.float32, 0.5, 1.5)
        beta = 0.1 * jax.random.normal(k4, (c,), jnp.float32)
        mean = 0.1 * jax.random.normal(k5, (c,), jnp.float32)
        var = jax.random.uniform(k6, (c,), jnp.float32, 0.5, 1.5)
        scale = gamma / jnp.sqrt(var + 1e-5)
        bias = beta - mean * scale
        w1s.append(w1.T)                    # (Cin, Cout)
        k9s.append(wd.reshape(c, 9).T)      # (9, C), row = dh * 3 + dw
        scs.append(scale.reshape(1, c))
        bis.append(bias.reshape(1, c))
    return (jnp.stack(w1s), jnp.stack(k9s), jnp.stack(scs), jnp.stack(bis))


# ----------------------------------------------------------------------------
# Pure-JAX reference
# ----------------------------------------------------------------------------
def _dwunit_ref(x, w1t, k9, sc, bi, quantize_matmul):
    N, H, W, C = x.shape
    if quantize_matmul:  # model the kernel's bf16 matmul operands exactly
        x = x.astype(jnp.bfloat16).astype(jnp.float32)
        w1t = w1t.astype(jnp.bfloat16).astype(jnp.float32)
    y = jnp.einsum("nhwi,io->nhwo", x, w1t, precision=jax.lax.Precision.HIGHEST)
    yp = jnp.pad(y, ((0, 0), (1, 1), (1, 1), (0, 0)))
    acc = jnp.zeros_like(y)
    for dh in range(3):
        for dw in range(3):
            acc = acc + yp[:, dh:dh + H, dw:dw + W, :] * k9[dh * 3 + dw]
    return jnp.maximum(acc * sc + bi, 0.0)


def _upsample2x_ref(x):  # NHWC nearest 2x
    return jnp.repeat(jnp.repeat(x, 2, axis=1), 2, axis=2)


def _tfpn_ref(c3, c4, c5, params, quantize_matmul=False):
    w1s, k9s, scs, bis = params
    t = lambda v: jnp.transpose(v, (0, 2, 3, 1))
    inv = lambda v: jnp.transpose(v, (0, 3, 1, 2))
    c3, c4, c5 = t(c3), t(c4), t(c5)
    dw = lambda x, l: _dwunit_ref(x, w1s[l], k9s[l], scs[l], bis[l], quantize_matmul)
    p5 = dw(c5, 0)
    p4 = _upsample2x_ref(p5) + dw(c4, 1)
    p3 = _upsample2x_ref(p4) + dw(c3, 2)
    return inv(p3), inv(p4), inv(p5)


# ----------------------------------------------------------------------------
if __name__ == "__main__":
    key = jax.random.PRNGKey(0)
    kc3, kc4, kc5, kp = jax.random.split(key, 4)

    N, C, S = 2, 64, 8  # c5: 8x8, c4: 16x16, c3: 32x32 (C fixed at 64 by the module)
    c5 = jax.random.normal(kc5, (N, C, S, S), jnp.float32)
    c4 = jax.random.normal(kc4, (N, C, 2 * S, 2 * S), jnp.float32)
    c3 = jax.random.normal(kc3, (N, C, 4 * S, 4 * S), jnp.float32)
    params = init_tfpn_params(kp, C)

    fwd = jax.jit(functools.partial(tfpn_forward, params=params))
    p3, p4, p5 = fwd(c3, c4, c5)
    jax.block_until_ready((p3, p4, p5))

    # (1) Tight check against a reference that models the kernel's bf16 matmul
    #     operands -> catches indexing / weight-layout / packing / fusion bugs.
    q3, q4, q5 = _tfpn_ref(c3, c4, c5, params, quantize_matmul=True)
    for name, got, want in zip(("p3", "p4", "p5"), (p3, p4, p5), (q3, q4, q5)):
        assert got.shape == want.shape, (name, got.shape, want.shape)
        err = float(jnp.max(jnp.abs(got - want)))
        if not err < 2e-3:
            raise AssertionError(f"{name}: kernel vs bf16-modelled ref, max abs err {err}")

    # (2) Drift check against the exact f32 module math -> bounds the bf16
    #     matmul error budget.
    r3, r4, r5 = _tfpn_ref(c3, c4, c5, params, quantize_matmul=False)
    for name, got, want in zip(("p3", "p4", "p5"), (p3, p4, p5), (r3, r4, r5)):
        drift = float(jnp.max(jnp.abs(got - want) / (1.0 + jnp.abs(want))))
        if not drift < 5e-2:
            raise AssertionError(f"{name}: bf16 drift vs f32 reference {drift}")

    print("KERNEL_OK")
</pallas_src>

<mosaic_0001>
module attributes {stable_mosaic.version = 11 : i64} {
  func.func @_tfpn_kernel(%arg0: i32, %arg1: memref<1x1024x128xbf16, #tpu.memory_space<vmem>>, %arg2: memref<1x256x128xbf16, #tpu.memory_space<vmem>>, %arg3: memref<1x64x128xbf16, #tpu.memory_space<vmem>>, %arg4: memref<3x128x128xbf16, #tpu.memory_space<vmem>>, %arg5: memref<3x9x128xf32, #tpu.memory_space<vmem>>, %arg6: memref<3x1x128xf32, #tpu.memory_space<vmem>>, %arg7: memref<1x32x32x128xf32, #tpu.memory_space<vmem>>, %arg8: memref<1x16x16x128xf32, #tpu.memory_space<vmem>>, %arg9: memref<1x8x8x128xf32, #tpu.memory_space<vmem>>, %arg10: memref<10x24x128xf32, #tpu.memory_space<vmem>>, %arg11: memref<18x32x128xf32, #tpu.memory_space<vmem>>, %arg12: memref<34x48x128xf32, #tpu.memory_space<vmem>>) attributes {dimension_semantics = [#tpu.dimension_semantics<parallel>], iteration_bounds = array<i64: 1>, scalar_prefetch = 0 : i64, scratch_operands = 3 : i64, tpu.core_type = #tpu.core_type<tc>, window_params = [{transform_indices = @transform_0, window_bounds = array<i64: 1, 1024, 128>}, {transform_indices = @transform_1, window_bounds = array<i64: 1, 256, 128>}, {transform_indices = @transform_2, window_bounds = array<i64: 1, 64, 128>}, {pipeline_mode = #tpu.pipeline_mode<synchronous>, transform_indices = @transform_3, window_bounds = array<i64: 3, 128, 128>}, {pipeline_mode = #tpu.pipeline_mode<synchronous>, transform_indices = @transform_4, window_bounds = array<i64: 3, 9, 128>}, {pipeline_mode = #tpu.pipeline_mode<synchronous>, transform_indices = @transform_5, window_bounds = array<i64: 3, 1, 128>}, {transform_indices = @transform_6, window_bounds = array<i64: 1, 32, 32, 128>}, {transform_indices = @transform_7, window_bounds = array<i64: 1, 16, 16, 128>}, {transform_indices = @transform_8, window_bounds = array<i64: 1, 8, 8, 128>}]} {
    %c0 = arith.constant 0 : index
    %c0_0 = arith.constant 0 : index
    %c0_1 = arith.constant 0 : index
    %0 = vector.load %arg3[%c0, %c0_0, %c0_1] : memref<1x64x128xbf16, #tpu.memory_space<vmem>>, vector<1x64x128xbf16>
    %1 = vector.shape_cast %0 : vector<1x64x128xbf16> to vector<64x128xbf16>
    %c0_2 = arith.constant 0 : index
    %c0_3 = arith.constant 0 : index
    %c0_4 = arith.constant 0 : index
    %2 = vector.load %arg4[%c0_2, %c0_3, %c0_4] : memref<3x128x128xbf16, #tpu.memory_space<vmem>>, vector<1x128x128xbf16>
    %3 = vector.shape_cast %2 : vector<1x128x128xbf16> to vector<128x128xbf16>
    %c0_5 = arith.constant 0 : index
    %c0_6 = arith.constant 0 : index
    %c0_7 = arith.constant 0 : index
    %4 = vector.load %arg5[%c0_5, %c0_6, %c0_7] : memref<3x9x128xf32, #tpu.memory_space<vmem>>, vector<1x9x128xf32>
    %5 = vector.shape_cast %4 : vector<1x9x128xf32> to vector<9x128xf32>
    %c0_8 = arith.constant 0 : index
    %c0_9 = arith.constant 0 : index
    %c0_10 = arith.constant 0 : index
    %6 = vector.load %arg6[%c0_8, %c0_9, %c0_10] : memref<3x1x128xf32, #tpu.memory_space<vmem>>, vector<1x1x128xf32>
    %7 = vector.shape_cast %6 : vector<1x1x128xf32> to vector<1x128xf32>
    %cst = arith.constant dense<0.000000e+00> : vector<64x128xf32>
    %8 = tpu.matmul %1, %3, %cst {dimension_numbers = #tpu.dot_dimension_numbers<[1], [0], [0], [1], [0, 0, 1, 1], [], []>} : vector<64x128xbf16>, vector<128x128xbf16>, vector<64x128xf32> -> vector<64x128xf32>
    %9 = vector.shape_cast %8 : vector<64x128xf32> to vector<8x8x128xf32>
    %cst_11 = arith.constant 0.000000e+00 : f32
    %10 = vector.broadcast %cst_11 : f32 to vector<1x24x128xf32>
    %c0_12 = arith.constant 0 : index
    %c0_13 = arith.constant 0 : index
    %c0_14 = arith.constant 0 : index
    %11 = vector.load %arg10[%c0_12, %c0_13, %c0_14] : memref<10x24x128xf32, #tpu.memory_space<vmem>>, vector<1x24x128xf32>
    tpu.vector_store %arg10[%c0_12, %c0_13, %c0_14], %10 {strides = array<i32>} : memref<10x24x128xf32, #tpu.memory_space<vmem>>, vector<1x24x128xf32>,
    %c9 = arith.constant 9 : index
    %c0_15 = arith.constant 0 : index
    %c0_16 = arith.constant 0 : index
    %12 = vector.load %arg10[%c9, %c0_15, %c0_16] : memref<10x24x128xf32, #tpu.memory_space<vmem>>, vector<1x24x128xf32>
    tpu.vector_store %arg10[%c9, %c0_15, %c0_16], %10 {strides = array<i32>} : memref<10x24x128xf32, #tpu.memory_space<vmem>>, vector<1x24x128xf32>,
    %cst_17 = arith.constant 0.000000e+00 : f32
    %13 = vector.broadcast %cst_17 : f32 to vector<10x8x128xf32>
    %c0_18 = arith.constant 0 : index
    %c0_19 = arith.constant 0 : index
    %c0_20 = arith.constant 0 : index
    %14 = vector.load %arg10[%c0_18, %c0_19, %c0_20] : memref<10x24x128xf32, #tpu.memory_space<vmem>>, vector<10x8x128xf32>
    tpu.vector_store %arg10[%c0_18, %c0_19, %c0_20], %13 {strides = array<i32>} : memref<10x24x128xf32, #tpu.memory_space<vmem>>, vector<10x8x128xf32>,
    %c0_21 = arith.constant 0 : index
    %c16 = arith.constant 16 : index
    %c0_22 = arith.constant 0 : index
    %15 = vector.load %arg10[%c0_21, %c16, %c0_22] : memref<10x24x128xf32, #tpu.memory_space<vmem>>, vector<10x8x128xf32>
    tpu.vector_store %arg10[%c0_21, %c16, %c0_22], %13 {strides = array<i32>} : memref<10x24x128xf32, #tpu.memory_space<vmem>>, vector<10x8x128xf32>,
    %c1 = arith.constant 1 : index
    %c8 = arith.constant 8 : index
    %c0_23 = arith.constant 0 : index
    %16 = vector.load %arg10[%c1, %c8, %c0_23] : memref<10x24x128xf32, #tpu.memory_space<vmem>>, vector<8x8x128xf32>
    tpu.vector_store %arg10[%c1, %c8, %c0_23], %9 {strides = array<i32>} : memref<10x24x128xf32, #tpu.memory_space<vmem>>, vector<8x8x128xf32>,
    %c0_24 = arith.constant 0 : index
    %c7 = arith.constant 7 : index
    %c0_25 = arith.constant 0 : index
    %17 = vector.load %arg10[%c0_24, %c7, %c0_25] : memref<10x24x128xf32, #tpu.memory_space<vmem>>, vector<8x8x128xf32>
    %18 = vector.extract_strided_slice %5 {offsets = [0, 0], sizes = [1, 128], strides = [1, 1]} : vector<9x128xf32> to vector<1x128xf32>
    %19 = vector.shape_cast %18 : vector<1x128xf32> to vector<128xf32>
    %20 = vector.shape_cast %19 : vector<128xf32> to vector<1x1x128xf32>
    %21 = vector.broadcast %20 : vector<1x1x128xf32> to vector<8x8x128xf32>
    %22 = arith.mulf %17, %21 : vector<8x8x128xf32>
    %c0_26 = arith.constant 0 : index
    %c8_27 = arith.constant 8 : index
    %c0_28 = arith.constant 0 : index
    %23 = vector.load %arg10[%c0_26, %c8_27, %c0_28] : memref<10x24x128xf32, #tpu.memory_space<vmem>>, vector<8x8x128xf32>
    %24 = vector.extract_strided_slice %5 {offsets = [1, 0], sizes = [1, 128], strides = [1, 1]} : vector<9x128xf32> to vector<1x128xf32>
    %25 = vector.shape_cast %24 : vector<1x128xf32> to vector<128xf32>
    %26 = vector.shape_cast %25 : vector<128xf32> to vector<1x1x128xf32>
    %27 = vector.broadcast %26 : vector<1x1x128xf32> to vector<8x8x128xf32>
    %28 = arith.mulf %23, %27 : vector<8x8x128xf32>
    %29 = arith.addf %22, %28 : vector<8x8x128xf32>
    %c0_29 = arith.constant 0 : index
    %c9_30 = arith.constant 9 : index
    %c0_31 = arith.constant 0 : index
    %30 = vector.load %arg10[%c0_29, %c9_30, %c0_31] : memref<10x24x128xf32, #tpu.memory_space<vmem>>, vector<8x8x128xf32>
    %31 = vector.extract_strided_slice %5 {offsets = [2, 0], sizes = [1, 128], strides = [1, 1]} : vector<9x128xf32> to vector<1x128xf32>
    %32 = vector.shape_cast %31 : vector<1x128xf32> to vector<128xf32>
    %33 = vector.shape_cast %32 : vector<128xf32> to vector<1x1x128xf32>
    %34 = vector.broadcast %33 : vector<1x1x128xf32> to vector<8x8x128xf32>
    %35 = arith.mulf %30, %34 : vector<8x8x128xf32>
    %36 = arith.addf %29, %35 : vector<8x8x128xf32>
    %c1_32 = arith.constant 1 : index
    %c7_33 = arith.constant 7 : index
    %c0_34 = arith.constant 0 : index
    %37 = vector.load %arg10[%c1_32, %c7_33, %c0_34] : memref<10x24x128xf32, #tpu.memory_space<vmem>>, vector<8x8x128xf32>
    %38 = vector.extract_strided_slice %5 {offsets = [3, 0], sizes = [1, 128], strides = [1, 1]} : vector<9x128xf32> to vector<1x128xf32>
    %39 = vector.shape_cast %38 : vector<1x128xf32> to vector<128xf32>
    %40 = vector.shape_cast %39 : vector<128xf32> to vector<1x1x128xf32>
    %41 = vector.broadcast %40 : vector<1x1x128xf32> to vector<8x8x128xf32>
    %42 = arith.mulf %37, %41 : vector<8x8x128xf32>
    %43 = arith.addf %36, %42 : vector<8x8x128xf32>
    %c1_35 = arith.constant 1 : index
    %c8_36 = arith.constant 8 : index
    %c0_37 = arith.constant 0 : index
    %44 = vector.load %arg10[%c1_35, %c8_36, %c0_37] : memref<10x24x128xf32, #tpu.memory_space<vmem>>, vector<8x8x128xf32>
    %45 = vector.extract_strided_slice %5 {offsets = [4, 0], sizes = [1, 128], strides = [1, 1]} : vector<9x128xf32> to vector<1x128xf32>
    %46 = vector.shape_cast %45 : vector<1x128xf32> to vector<128xf32>
    %47 = vector.shape_cast %46 : vector<128xf32> to vector<1x1x128xf32>
    %48 = vector.broadcast %47 : vector<1x1x128xf32> to vector<8x8x128xf32>
    %49 = arith.mulf %44, %48 : vector<8x8x128xf32>
    %50 = arith.addf %43, %49 : vector<8x8x128xf32>
    %c1_38 = arith.constant 1 : index
    %c9_39 = arith.constant 9 : index
    %c0_40 = arith.constant 0 : index
    %51 = vector.load %arg10[%c1_38, %c9_39, %c0_40] : memref<10x24x128xf32, #tpu.memory_space<vmem>>, vector<8x8x128xf32>
    %52 = vector.extract_strided_slice %5 {offsets = [5, 0], sizes = [1, 128], strides = [1, 1]} : vector<9x128xf32> to vector<1x128xf32>
    %53 = vector.shape_cast %52 : vector<1x128xf32> to vector<128xf32>
    %54 = vector.shape_cast %53 : vector<128xf32> to vector<1x1x128xf32>
    %55 = vector.broadcast %54 : vector<1x1x128xf32> to vector<8x8x128xf32>
    %56 = arith.mulf %51, %55 : vector<8x8x128xf32>
    %57 = arith.addf %50, %56 : vector<8x8x128xf32>
    %c2 = arith.constant 2 : index
    %c7_41 = arith.constant 7 : index
    %c0_42 = arith.constant 0 : index
    %58 = vector.load %arg10[%c2, %c7_41, %c0_42] : memref<10x24x128xf32, #tpu.memory_space<vmem>>, vector<8x8x128xf32>
    %59 = vector.extract_strided_slice %5 {offsets = [6, 0], sizes = [1, 128], strides = [1, 1]} : vector<9x128xf32> to vector<1x128xf32>
    %60 = vector.shape_cast %59 : vector<1x128xf32> to vector<128xf32>
    %61 = vector.shape_cast %60 : vector<128xf32> to vector<1x1x128xf32>
    %62 = vector.broadcast %61 : vector<1x1x128xf32> to vector<8x8x128xf32>
    %63 = arith.mulf %58, %62 : vector<8x8x128xf32>
    %64 = arith.addf %57, %63 : vector<8x8x128xf32>
    %c2_43 = arith.constant 2 : index
    %c8_44 = arith.constant 8 : index
    %c0_45 = arith.constant 0 : index
    %65 = vector.load %arg10[%c2_43, %c8_44, %c0_45] : memref<10x24x128xf32, #tpu.memory_space<vmem>>, vector<8x8x128xf32>
    %66 = vector.extract_strided_slice %5 {offsets = [7, 0], sizes = [1, 128], strides = [1, 1]} : vector<9x128xf32> to vector<1x128xf32>
    %67 = vector.shape_cast %66 : vector<1x128xf32> to vector<128xf32>
    %68 = vector.shape_cast %67 : vector<128xf32> to vector<1x1x128xf32>
    %69 = vector.broadcast %68 : vector<1x1x128xf32> to vector<8x8x128xf32>
    %70 = arith.mulf %65, %69 : vector<8x8x128xf32>
    %71 = arith.addf %64, %70 : vector<8x8x128xf32>
    %c2_46 = arith.constant 2 : index
    %c9_47 = arith.constant 9 : index
    %c0_48 = arith.constant 0 : index
    %72 = vector.load %arg10[%c2_46, %c9_47, %c0_48] : memref<10x24x128xf32, #tpu.memory_space<vmem>>, vector<8x8x128xf32>
    %73 = vector.extract_strided_slice %5 {offsets = [8, 0], sizes = [1, 128], strides = [1, 1]} : vector<9x128xf32> to vector<1x128xf32>
    %74 = vector.shape_cast %73 : vector<1x128xf32> to vector<128xf32>
    %75 = vector.shape_cast %74 : vector<128xf32> to vector<1x1x128xf32>
    %76 = vector.broadcast %75 : vector<1x1x128xf32> to vector<8x8x128xf32>
    %77 = arith.mulf %72, %76 : vector<8x8x128xf32>
    %78 = arith.addf %71, %77 : vector<8x8x128xf32>
    %79 = vector.shape_cast %7 : vector<1x128xf32> to vector<1x1x128xf32>
    %80 = vector.broadcast %79 : vector<1x1x128xf32> to vector<8x8x128xf32>
    %81 = arith.addf %78, %80 : vector<8x8x128xf32>
    %cst_49 = arith.constant 0.000000e+00 : f32
    %82 = vector.broadcast %cst_49 : f32 to vector<8x8x128xf32>
    %83 = arith.maximumf %81, %82 : vector<8x8x128xf32>
    %c0_50 = arith.constant 0 : index
    %c0_51 = arith.constant 0 : index
    %c0_52 = arith.constant 0 : index
    %c0_53 = arith.constant 0 : index
    %84 = vector.load %arg9[%c0_50, %c0_51, %c0_52, %c0_53] : memref<1x8x8x128xf32, #tpu.memory_space<vmem>>, vector<1x8x8x128xf32>
    %85 = vector.shape_cast %84 : vector<1x8x8x128xf32> to vector<8x8x128xf32>
    %86 = vector.shape_cast %83 : vector<8x8x128xf32> to vector<1x8x8x128xf32>
    tpu.vector_store %arg9[%c0_50, %c0_51, %c0_52, %c0_53], %86 {strides = array<i32>} : memref<1x8x8x128xf32, #tpu.memory_space<vmem>>, vector<1x8x8x128xf32>,
    %87 = vector.shape_cast %83 : vector<8x8x128xf32> to vector<8x1x8x128xf32>
    %88 = vector.shape_cast %87 : vector<8x1x8x128xf32> to vector<8x1x8x128xf32>
    %89 = vector.broadcast %88 : vector<8x1x8x128xf32> to vector<8x2x8x128xf32>
    %90 = vector.shape_cast %89 : vector<8x2x8x128xf32> to vector<16x8x128xf32>
    %c0_54 = arith.constant 0 : index
    %c0_55 = arith.constant 0 : index
    %c0_56 = arith.constant 0 : index
    %c0_57 = arith.constant 0 : index
    %91 = tpu.strided_load %arg8[%c0_54, %c0_55, %c0_56, %c0_57] {strides = array<i32: 1, 1, 2, 1>} : memref<1x16x16x128xf32, #tpu.memory_space<vmem>>, vector<1x16x8x128xf32>
    %92 = vector.shape_cast %91 : vector<1x16x8x128xf32> to vector<16x8x128xf32>
    %93 = vector.shape_cast %90 : vector<16x8x128xf32> to vector<1x16x8x128xf32>
    tpu.strided_store %arg8[%c0_54, %c0_55, %c0_56, %c0_57], %93 {strides = array<i32: 1, 1, 2, 1>} : memref<1x16x16x128xf32, #tpu.memory_space<vmem>>, vector<1x16x8x128xf32>
    %c0_58 = arith.constant 0 : index
    %c0_59 = arith.constant 0 : index
    %c1_60 = arith.constant 1 : index
    %c0_61 = arith.constant 0 : index
    %94 = tpu.strided_load %arg8[%c0_58, %c0_59, %c1_60, %c0_61] {strides = array<i32: 1, 1, 2, 1>} : memref<1x16x16x128xf32, #tpu.memory_space<vmem>>, vector<1x16x8x128xf32>
    %95 = vector.shape_cast %94 : vector<1x16x8x128xf32> to vector<16x8x128xf32>
    %96 = vector.shape_cast %90 : vector<16x8x128xf32> to vector<1x16x8x128xf32>
    tpu.strided_store %arg8[%c0_58, %c0_59, %c1_60, %c0_61], %96 {strides = array<i32: 1, 1, 2, 1>} : memref<1x16x16x128xf32, #tpu.memory_space<vmem>>, vector<1x16x8x128xf32>
    %c0_62 = arith.constant 0 : index
    %c0_63 = arith.constant 0 : index
    %c0_64 = arith.constant 0 : index
    %97 = vector.load %arg2[%c0_62, %c0_63, %c0_64] : memref<1x256x128xbf16, #tpu.memory_space<vmem>>, vector<1x256x128xbf16>
    %98 = vector.shape_cast %97 : vector<1x256x128xbf16> to vector<256x128xbf16>
    %c1_65 = arith.constant 1 : index
    %c0_66 = arith.constant 0 : index
    %c0_67 = arith.constant 0 : index
    %99 = vector.load %arg4[%c1_65, %c0_66, %c0_67] : memref<3x128x128xbf16, #tpu.memory_space<vmem>>, vector<1x128x128xbf16>
    %100 = vector.shape_cast %99 : vector<1x128x128xbf16> to vector<128x128xbf16>
    %c1_68 = arith.constant 1 : index
    %c0_69 = arith.constant 0 : index
    %c0_70 = arith.constant 0 : index
    %101 = vector.load %arg5[%c1_68, %c0_69, %c0_70] : memref<3x9x128xf32, #tpu.memory_space<vmem>>, vector<1x9x128xf32>
    %102 = vector.shape_cast %101 : vector<1x9x128xf32> to vector<9x128xf32>
    %c1_71 = arith.constant 1 : index
    %c0_72 = arith.constant 0 : index
    %c0_73 = arith.constant 0 : index
    %103 = vector.load %arg6[%c1_71, %c0_72, %c0_73] : memref<3x1x128xf32, #tpu.memory_space<vmem>>, vector<1x1x128xf32>
    %104 = vector.shape_cast %103 : vector<1x1x128xf32> to vector<1x128xf32>
    %cst_74 = arith.constant dense<0.000000e+00> : vector<256x128xf32>
    %105 = tpu.matmul %98, %100, %cst_74 {dimension_numbers = #tpu.dot_dimension_numbers<[1], [0], [0], [1], [0, 0, 1, 1], [], []>} : vector<256x128xbf16>, vector<128x128xbf16>, vector<256x128xf32> -> vector<256x128xf32>
    %106 = vector.shape_cast %105 : vector<256x128xf32> to vector<16x16x128xf32>
    %cst_75 = arith.constant 0.000000e+00 : f32
    %107 = vector.broadcast %cst_75 : f32 to vector<1x32x128xf32>
    %c0_76 = arith.constant 0 : index
    %c0_77 = arith.constant 0 : index
    %c0_78 = arith.constant 0 : index
    %108 = vector.load %arg11[%c0_76, %c0_77, %c0_78] : memref<18x32x128xf32, #tpu.memory_space<vmem>>, vector<1x32x128xf32>
    tpu.vector_store %arg11[%c0_76, %c0_77, %c0_78], %107 {strides = array<i32>} : memref<18x32x128xf32, #tpu.memory_space<vmem>>, vector<1x32x128xf32>,
    %c17 = arith.constant 17 : index
    %c0_79 = arith.constant 0 : index
    %c0_80 = arith.constant 0 : index
    %109 = vector.load %arg11[%c17, %c0_79, %c0_80] : memref<18x32x128xf32, #tpu.memory_space<vmem>>, vector<1x32x128xf32>
    tpu.vector_store %arg11[%c17, %c0_79, %c0_80], %107 {strides = array<i32>} : memref<18x32x128xf32, #tpu.memory_space<vmem>>, vector<1x32x128xf32>,
    %cst_81 = arith.constant 0.000000e+00 : f32
    %110 = vector.broadcast %cst_81 : f32 to vector<18x8x128xf32>
    %c0_82 = arith.constant 0 : index
    %c0_83 = arith.constant 0 : index
    %c0_84 = arith.constant 0 : index
    %111 = vector.load %arg11[%c0_82, %c0_83, %c0_84] : memref<18x32x128xf32, #tpu.memory_space<vmem>>, vector<18x8x128xf32>
    tpu.vector_store %arg11[%c0_82, %c0_83, %c0_84], %110 {strides = array<i32>} : memref<18x32x128xf32, #tpu.memory_space<vmem>>, vector<18x8x128xf32>,
    %c0_85 = arith.constant 0 : index
    %c24 = arith.constant 24 : index
    %c0_86 = arith.constant 0 : index
    %112 = vector.load %arg11[%c0_85, %c24, %c0_86] : memref<18x32x128xf32, #tpu.memory_space<vmem>>, vector<18x8x128xf32>
    tpu.vector_store %arg11[%c0_85, %c24, %c0_86], %110 {strides = array<i32>} : memref<18x32x128xf32, #tpu.memory_space<vmem>>, vector<18x8x128xf32>,
    %c1_87 = arith.constant 1 : index
    %c8_88 = arith.constant 8 : index
    %c0_89 = arith.constant 0 : index
    %113 = vector.load %arg11[%c1_87, %c8_88, %c0_89] : memref<18x32x128xf32, #tpu.memory_space<vmem>>, vector<16x16x128xf32>
    tpu.vector_store %arg11[%c1_87, %c8_88, %c0_89], %106 {strides = array<i32>} : memref<18x32x128xf32, #tpu.memory_space<vmem>>, vector<16x16x128xf32>,
    %c0_90 = arith.constant 0 : index
    %c7_91 = arith.constant 7 : index
    %c0_92 = arith.constant 0 : index
    %114 = vector.load %arg11[%c0_90, %c7_91, %c0_92] : memref<18x32x128xf32, #tpu.memory_space<vmem>>, vector<16x16x128xf32>
    %115 = vector.extract_strided_slice %102 {offsets = [0, 0], sizes = [1, 128], strides = [1, 1]} : vector<9x128xf32> to vector<1x128xf32>
    %116 = vector.shape_cast %115 : vector<1x128xf32> to vector<128xf32>
    %117 = vector.shape_cast %116 : vector<128xf32> to vector<1x1x128xf32>
    %118 = vector.broadcast %117 : vector<1x1x128xf32> to vector<16x16x128xf32>
    %119 = arith.mulf %114, %118 : vector<16x16x128xf32>
    %c0_93 = arith.constant 0 : index
    %c8_94 = arith.constant 8 : index
    %c0_95 = arith.constant 0 : index
    %120 = vector.load %arg11[%c0_93, %c8_94, %c0_95] : memref<18x32x128xf32, #tpu.memory_space<vmem>>, vector<16x16x128xf32>
    %121 = vector.extract_strided_slice %102 {offsets = [1, 0], sizes = [1, 128], strides = [1, 1]} : vector<9x128xf32> to vector<1x128xf32>
    %122 = vector.shape_cast %121 : vector<1x128xf32> to vector<128xf32>
    %123 = vector.shape_cast %122 : vector<128xf32> to vector<1x1x128xf32>
    %124 = vector.broadcast %123 : vector<1x1x128xf32> to vector<16x16x128xf32>
    %125 = arith.mulf %120, %124 : vector<16x16x128xf32>
    %126 = arith.addf %119, %125 : vector<16x16x128xf32>
    %c0_96 = arith.constant 0 : index
    %c9_97 = arith.constant 9 : index
    %c0_98 = arith.constant 0 : index
    %127 = vector.load %arg11[%c0_96, %c9_97, %c0_98] : memref<18x32x128xf32, #tpu.memory_space<vmem>>, vector<16x16x128xf32>
    %128 = vector.extract_strided_slice %102 {offsets = [2, 0], sizes = [1, 128], strides = [1, 1]} : vector<9x128xf32> to vector<1x128xf32>
    %129 = vector.shape_cast %128 : vector<1x128xf32> to vector<128xf32>
    %130 = vector.shape_cast %129 : vector<128xf32> to vector<1x1x128xf32>
    %131 = vector.broadcast %130 : vector<1x1x128xf32> to vector<16x16x128xf32>
    %132 = arith.mulf %127, %131 : vector<16x16x128xf32>
    %133 = arith.addf %126, %132 : vector<16x16x128xf32>
    %c1_99 = arith.constant 1 : index
    %c7_100 = arith.constant 7 : index
    %c0_101 = arith.constant 0 : index
    %134 = vector.load %arg11[%c1_99, %c7_100, %c0_101] : memref<18x32x128xf32, #tpu.memory_space<vmem>>, vector<16x16x128xf32>
    %135 = vector.extract_strided_slice %102 {offsets = [3, 0], sizes = [1, 128], strides = [1, 1]} : vector<9x128xf32> to vector<1x128xf32>
    %136 = vector.shape_cast %135 : vector<1x128xf32> to vector<128xf32>
    %137 = vector.shape_cast %136 : vector<128xf32> to vector<1x1x128xf32>
    %138 = vector.broadcast %137 : vector<1x1x128xf32> to vector<16x16x128xf32>
    %139 = arith.mulf %134, %138 : vector<16x16x128xf32>
    %140 = arith.addf %133, %139 : vector<16x16x128xf32>
    %c1_102 = arith.constant 1 : index
    %c8_103 = arith.constant 8 : index
    %c0_104 = arith.constant 0 : index
    %141 = vector.load %arg11[%c1_102, %c8_103, %c0_104] : memref<18x32x128xf32, #tpu.memory_space<vmem>>, vector<16x16x128xf32>
    %142 = vector.extract_strided_slice %102 {offsets = [4, 0], sizes = [1, 128], strides = [1, 1]} : vector<9x128xf32> to vector<1x128xf32>
    %143 = vector.shape_cast %142 : vector<1x128xf32> to vector<128xf32>
    %144 = vector.shape_cast %143 : vector<128xf32> to vector<1x1x128xf32>
    %145 = vector.broadcast %144 : vector<1x1x128xf32> to vector<16x16x128xf32>
    %146 = arith.mulf %141, %145 : vector<16x16x128xf32>
    %147 = arith.addf %140, %146 : vector<16x16x128xf32>
    %c1_105 = arith.constant 1 : index
    %c9_106 = arith.constant 9 : index
    %c0_107 = arith.constant 0 : index
    %148 = vector.load %arg11[%c1_105, %c9_106, %c0_107] : memref<18x32x128xf32, #tpu.memory_space<vmem>>, vector<16x16x128xf32>
    %149 = vector.extract_strided_slice %102 {offsets = [5, 0], sizes = [1, 128], strides = [1, 1]} : vector<9x128xf32> to vector<1x128xf32>
    %150 = vector.shape_cast %149 : vector<1x128xf32> to vector<128xf32>
    %151 = vector.shape_cast %150 : vector<128xf32> to vector<1x1x128xf32>
    %152 = vector.broadcast %151 : vector<1x1x128xf32> to vector<16x16x128xf32>
    %153 = arith.mulf %148, %152 : vector<16x16x128xf32>
    %154 = arith.addf %147, %153 : vector<16x16x128xf32>
    %c2_108 = arith.constant 2 : index
    %c7_109 = arith.constant 7 : index
    %c0_110 = arith.constant 0 : index
    %155 = vector.load %arg11[%c2_108, %c7_109, %c0_110] : memref<18x32x128xf32, #tpu.memory_space<vmem>>, vector<16x16x128xf32>
    %156 = vector.extract_strided_slice %102 {offsets = [6, 0], sizes = [1, 128], strides = [1, 1]} : vector<9x128xf32> to vector<1x128xf32>
    %157 = vector.shape_cast %156 : vector<1x128xf32> to vector<128xf32>
    %158 = vector.shape_cast %157 : vector<128xf32> to vector<1x1x128xf32>
    %159 = vector.broadcast %158 : vector<1x1x128xf32> to vector<16x16x128xf32>
    %160 = arith.mulf %155, %159 : vector<16x16x128xf32>
    %161 = arith.addf %154, %160 : vector<16x16x128xf32>
    %c2_111 = arith.constant 2 : index
    %c8_112 = arith.constant 8 : index
    %c0_113 = arith.constant 0 : index
    %162 = vector.load %arg11[%c2_111, %c8_112, %c0_113] : memref<18x32x128xf32, #tpu.memory_space<vmem>>, vector<16x16x128xf32>
    %163 = vector.extract_strided_slice %102 {offsets = [7, 0], sizes = [1, 128], strides = [1, 1]} : vector<9x128xf32> to vector<1x128xf32>
    %164 = vector.shape_cast %163 : vector<1x128xf32> to vector<128xf32>
    %165 = vector.shape_cast %164 : vector<128xf32> to vector<1x1x128xf32>
    %166 = vector.broadcast %165 : vector<1x1x128xf32> to vector<16x16x128xf32>
    %167 = arith.mulf %162, %166 : vector<16x16x128xf32>
    %168 = arith.addf %161, %167 : vector<16x16x128xf32>
    %c2_114 = arith.constant 2 : index
    %c9_115 = arith.constant 9 : index
    %c0_116 = arith.constant 0 : index
    %169 = vector.load %arg11[%c2_114, %c9_115, %c0_116] : memref<18x32x128xf32, #tpu.memory_space<vmem>>, vector<16x16x128xf32>
    %170 = vector.extract_strided_slice %102 {offsets = [8, 0], sizes = [1, 128], strides = [1, 1]} : vector<9x128xf32> to vector<1x128xf32>
    %171 = vector.shape_cast %170 : vector<1x128xf32> to vector<128xf32>
    %172 = vector.shape_cast %171 : vector<128xf32> to vector<1x1x128xf32>
    %173 = vector.broadcast %172 : vector<1x1x128xf32> to vector<16x16x128xf32>
    %174 = arith.mulf %169, %173 : vector<16x16x128xf32>
    %175 = arith.addf %168, %174 : vector<16x16x128xf32>
    %176 = vector.shape_cast %104 : vector<1x128xf32> to vector<1x1x128xf32>
    %177 = vector.broadcast %176 : vector<1x1x128xf32> to vector<16x16x128xf32>
    %178 = arith.addf %175, %177 : vector<16x16x128xf32>
    %cst_117 = arith.constant 0.000000e+00 : f32
    %179 = vector.broadcast %cst_117 : f32 to vector<16x16x128xf32>
    %180 = arith.maximumf %178, %179 : vector<16x16x128xf32>
    %c0_118 = arith.constant 0 : index
    %c0_119 = arith.constant 0 : index
    %c0_120 = arith.constant 0 : index
    %c0_121 = arith.constant 0 : index
    %181 = vector.load %arg8[%c0_118, %c0_119, %c0_120, %c0_121] : memref<1x16x16x128xf32, #tpu.memory_space<vmem>>, vector<1x16x16x128xf32>
    %182 = vector.shape_cast %181 : vector<1x16x16x128xf32> to vector<16x16x128xf32>
    %183 = arith.addf %182, %180 : vector<16x16x128xf32>
    %c0_122 = arith.constant 0 : index
    %c0_123 = arith.constant 0 : index
    %c0_124 = arith.constant 0 : index
    %c0_125 = arith.constant 0 : index
    %184 = vector.load %arg8[%c0_122, %c0_123, %c0_124, %c0_125] : memref<1x16x16x128xf32, #tpu.memory_space<vmem>>, vector<1x16x16x128xf32>
    %185 = vector.shape_cast %184 : vector<1x16x16x128xf32> to vector<16x16x128xf32>
    %186 = vector.shape_cast %183 : vector<16x16x128xf32> to vector<1x16x16x128xf32>
    tpu.vector_store %arg8[%c0_122, %c0_123, %c0_124, %c0_125], %186 {strides = array<i32>} : memref<1x16x16x128xf32, #tpu.memory_space<vmem>>, vector<1x16x16x128xf32>,
    %187 = vector.shape_cast %183 : vector<16x16x128xf32> to vector<16x1x16x128xf32>
    %188 = vector.shape_cast %187 : vector<16x1x16x128xf32> to vector<16x1x16x128xf32>
    %189 = vector.broadcast %188 : vector<16x1x16x128xf32> to vector<16x2x16x128xf32>
    %190 = vector.shape_cast %189 : vector<16x2x16x128xf32> to vector<32x16x128xf32>
    %c0_126 = arith.constant 0 : index
    %c0_127 = arith.constant 0 : index
    %c0_128 = arith.constant 0 : index
    %c0_129 = arith.constant 0 : index
    %191 = tpu.strided_load %arg7[%c0_126, %c0_127, %c0_128, %c0_129] {strides = array<i32: 1, 1, 2, 1>} : memref<1x32x32x128xf32, #tpu.memory_space<vmem>>, vector<1x32x16x128xf32>
    %192 = vector.shape_cast %191 : vector<1x32x16x128xf32> to vector<32x16x128xf32>
    %193 = vector.shape_cast %190 : vector<32x16x128xf32> to vector<1x32x16x128xf32>
    tpu.strided_store %arg7[%c0_126, %c0_127, %c0_128, %c0_129], %193 {strides = array<i32: 1, 1, 2, 1>} : memref<1x32x32x128xf32, #tpu.memory_space<vmem>>, vector<1x32x16x128xf32>
    %c0_130 = arith.constant 0 : index
    %c0_131 = arith.constant 0 : index
    %c1_132 = arith.constant 1 : index
    %c0_133 = arith.constant 0 : index
    %194 = tpu.strided_load %arg7[%c0_130, %c0_131, %c1_132, %c0_133] {strides = array<i32: 1, 1, 2, 1>} : memref<1x32x32x128xf32, #tpu.memory_space<vmem>>, vector<1x32x16x128xf32>
    %195 = vector.shape_cast %194 : vector<1x32x16x128xf32> to vector<32x16x128xf32>
    %196 = vector.shape_cast %190 : vector<32x16x128xf32> to vector<1x32x16x128xf32>
    tpu.strided_store %arg7[%c0_130, %c0_131, %c1_132, %c0_133], %196 {strides = array<i32: 1, 1, 2, 1>} : memref<1x32x32x128xf32, #tpu.memory_space<vmem>>, vector<1x32x16x128xf32>
    %c0_134 = arith.constant 0 : index
    %c0_135 = arith.constant 0 : index
    %c0_136 = arith.constant 0 : index
    %197 = vector.load %arg1[%c0_134, %c0_135, %c0_136] : memref<1x1024x128xbf16, #tpu.memory_space<vmem>>, vector<1x1024x128xbf16>
    %198 = vector.shape_cast %197 : vector<1x1024x128xbf16> to vector<1024x128xbf16>
    %c2_137 = arith.constant 2 : index
    %c0_138 = arith.constant 0 : index
    %c0_139 = arith.constant 0 : index
    %199 = vector.load %arg4[%c2_137, %c0_138, %c0_139] : memref<3x128x128xbf16, #tpu.memory_space<vmem>>, vector<1x128x128xbf16>
    %200 = vector.shape_cast %199 : vector<1x128x128xbf16> to vector<128x128xbf16>
    %c2_140 = arith.constant 2 : index
    %c0_141 = arith.constant 0 : index
    %c0_142 = arith.constant 0 : index
    %201 = vector.load %arg5[%c2_140, %c0_141, %c0_142] : memref<3x9x128xf32, #tpu.memory_space<vmem>>, vector<1x9x128xf32>
    %202 = vector.shape_cast %201 : vector<1x9x128xf32> to vector<9x128xf32>
    %c2_143 = arith.constant 2 : index
    %c0_144 = arith.constant 0 : index
    %c0_145 = arith.constant 0 : index
    %203 = vector.load %arg6[%c2_143, %c0_144, %c0_145] : memref<3x1x128xf32, #tpu.memory_space<vmem>>, vector<1x1x128xf32>
    %204 = vector.shape_cast %203 : vector<1x1x128xf32> to vector<1x128xf32>
    %cst_146 = arith.constant dense<0.000000e+00> : vector<1024x128xf32>
    %205 = tpu.matmul %198, %200, %cst_146 {dimension_numbers = #tpu.dot_dimension_numbers<[1], [0], [0], [1], [0, 0, 1, 1], [], []>} : vector<1024x128xbf16>, vector<128x128xbf16>, vector<1024x128xf32> -> vector<1024x128xf32>
    %206 = vector.shape_cast %205 : vector<1024x128xf32> to vector<32x32x128xf32>
    %cst_147 = arith.constant 0.000000e+00 : f32
    %207 = vector.broadcast %cst_147 : f32 to vector<1x48x128xf32>
    %c0_148 = arith.constant 0 : index
    %c0_149 = arith.constant 0 : index
    %c0_150 = arith.constant 0 : index
    %208 = vector.load %arg12[%c0_148, %c0_149, %c0_150] : memref<34x48x128xf32, #tpu.memory_space<vmem>>, vector<1x48x128xf32>
    tpu.vector_store %arg12[%c0_148, %c0_149, %c0_150], %207 {strides = array<i32>} : memref<34x48x128xf32, #tpu.memory_space<vmem>>, vector<1x48x128xf32>,
    %c33 = arith.constant 33 : index
    %c0_151 = arith.constant 0 : index
    %c0_152 = arith.constant 0 : index
    %209 = vector.load %arg12[%c33, %c0_151, %c0_152] : memref<34x48x128xf32, #tpu.memory_space<vmem>>, vector<1x48x128xf32>
    tpu.vector_store %arg12[%c33, %c0_151, %c0_152], %207 {strides = array<i32>} : memref<34x48x128xf32, #tpu.memory_space<vmem>>, vector<1x48x128xf32>,
    %cst_153 = arith.constant 0.000000e+00 : f32
    %210 = vector.broadcast %cst_153 : f32 to vector<34x8x128xf32>
    %c0_154 = arith.constant 0 : index
    %c0_155 = arith.constant 0 : index
    %c0_156 = arith.constant 0 : index
    %211 = vector.load %arg12[%c0_154, %c0_155, %c0_156] : memref<34x48x128xf32, #tpu.memory_space<vmem>>, vector<34x8x128xf32>
    tpu.vector_store %arg12[%c0_154, %c0_155, %c0_156], %210 {strides = array<i32>} : memref<34x48x128xf32, #tpu.memory_space<vmem>>, vector<34x8x128xf32>,
    %c0_157 = arith.constant 0 : index
    %c40 = arith.constant 40 : index
    %c0_158 = arith.constant 0 : index
    %212 = vector.load %arg12[%c0_157, %c40, %c0_158] : memref<34x48x128xf32, #tpu.memory_space<vmem>>, vector<34x8x128xf32>
    tpu.vector_store %arg12[%c0_157, %c40, %c0_158], %210 {strides = array<i32>} : memref<34x48x128xf32, #tpu.memory_space<vmem>>, vector<34x8x128xf32>,
    %c1_159 = arith.constant 1 : index
    %c8_160 = arith.constant 8 : index
    %c0_161 = arith.constant 0 : index
    %213 = vector.load %arg12[%c1_159, %c8_160, %c0_161] : memref<34x48x128xf32, #tpu.memory_space<vmem>>, vector<32x32x128xf32>
    tpu.vector_store %arg12[%c1_159, %c8_160, %c0_161], %206 {strides = array<i32>} : memref<34x48x128xf32, #tpu.memory_space<vmem>>, vector<32x32x128xf32>,
    %c0_162 = arith.constant 0 : index
    %c7_163 = arith.constant 7 : index
    %c0_164 = arith.constant 0 : index
    %214 = vector.load %arg12[%c0_162, %c7_163, %c0_164] : memref<34x48x128xf32, #tpu.memory_space<vmem>>, vector<32x32x128xf32>
    %215 = vector.extract_strided_slice %202 {offsets = [0, 0], sizes = [1, 128], strides = [1, 1]} : vector<9x128xf32> to vector<1x128xf32>
    %216 = vector.shape_cast %215 : vector<1x128xf32> to vector<128xf32>
    %217 = vector.shape_cast %216 : vector<128xf32> to vector<1x1x128xf32>
    %218 = vector.broadcast %217 : vector<1x1x128xf32> to vector<32x32x128xf32>
    %219 = arith.mulf %214, %218 : vector<32x32x128xf32>
    %c0_165 = arith.constant 0 : index
    %c8_166 = arith.constant 8 : index
    %c0_167 = arith.constant 0 : index
    %220 = vector.load %arg12[%c0_165, %c8_166, %c0_167] : memref<34x48x128xf32, #tpu.memory_space<vmem>>, vector<32x32x128xf32>
    %221 = vector.extract_strided_slice %202 {offsets = [1, 0], sizes = [1, 128], strides = [1, 1]} : vector<9x128xf32> to vector<1x128xf32>
    %222 = vector.shape_cast %221 : vector<1x128xf32> to vector<128xf32>
    %223 = vector.shape_cast %222 : vector<128xf32> to vector<1x1x128xf32>
    %224 = vector.broadcast %223 : vector<1x1x128xf32> to vector<32x32x128xf32>
    %225 = arith.mulf %220, %224 : vector<32x32x128xf32>
    %226 = arith.addf %219, %225 : vector<32x32x128xf32>
    %c0_168 = arith.constant 0 : index
    %c9_169 = arith.constant 9 : index
    %c0_170 = arith.constant 0 : index
    %227 = vector.load %arg12[%c0_168, %c9_169, %c0_170] : memref<34x48x128xf32, #tpu.memory_space<vmem>>, vector<32x32x128xf32>
    %228 = vector.extract_strided_slice %202 {offsets = [2, 0], sizes = [1, 128], strides = [1, 1]} : vector<9x128xf32> to vector<1x128xf32>
    %229 = vector.shape_cast %228 : vector<1x128xf32> to vector<128xf32>
    %230 = vector.shape_cast %229 : vector<128xf32> to vector<1x1x128xf32>
    %231 = vector.broadcast %230 : vector<1x1x128xf32> to vector<32x32x128xf32>
    %232 = arith.mulf %227, %231 : vector<32x32x128xf32>
    %233 = arith.addf %226, %232 : vector<32x32x128xf32>
    %c1_171 = arith.constant 1 : index
    %c7_172 = arith.constant 7 : index
    %c0_173 = arith.constant 0 : index
    %234 = vector.load %arg12[%c1_171, %c7_172, %c0_173] : memref<34x48x128xf32, #tpu.memory_space<vmem>>, vector<32x32x128xf32>
    %235 = vector.extract_strided_slice %202 {offsets = [3, 0], sizes = [1, 128], strides = [1, 1]} : vector<9x128xf32> to vector<1x128xf32>
    %236 = vector.shape_cast %235 : vector<1x128xf32> to vector<128xf32>
    %237 = vector.shape_cast %236 : vector<128xf32> to vector<1x1x128xf32>
    %238 = vector.broadcast %237 : vector<1x1x128xf32> to vector<32x32x128xf32>
    %239 = arith.mulf %234, %238 : vector<32x32x128xf32>
    %240 = arith.addf %233, %239 : vector<32x32x128xf32>
    %c1_174 = arith.constant 1 : index
    %c8_175 = arith.constant 8 : index
    %c0_176 = arith.constant 0 : index
    %241 = vector.load %arg12[%c1_174, %c8_175, %c0_176] : memref<34x48x128xf32, #tpu.memory_space<vmem>>, vector<32x32x128xf32>
    %242 = vector.extract_strided_slice %202 {offsets = [4, 0], sizes = [1, 128], strides = [1, 1]} : vector<9x128xf32> to vector<1x128xf32>
    %243 = vector.shape_cast %242 : vector<1x128xf32> to vector<128xf32>
    %244 = vector.shape_cast %243 : vector<128xf32> to vector<1x1x128xf32>
    %245 = vector.broadcast %244 : vector<1x1x128xf32> to vector<32x32x128xf32>
    %246 = arith.mulf %241, %245 : vector<32x32x128xf32>
    %247 = arith.addf %240, %246 : vector<32x32x128xf32>
    %c1_177 = arith.constant 1 : index
    %c9_178 = arith.constant 9 : index
    %c0_179 = arith.constant 0 : index
    %248 = vector.load %arg12[%c1_177, %c9_178, %c0_179] : memref<34x48x128xf32, #tpu.memory_space<vmem>>, vector<32x32x128xf32>
    %249 = vector.extract_strided_slice %202 {offsets = [5, 0], sizes = [1, 128], strides = [1, 1]} : vector<9x128xf32> to vector<1x128xf32>
    %250 = vector.shape_cast %249 : vector<1x128xf32> to vector<128xf32>
    %251 = vector.shape_cast %250 : vector<128xf32> to vector<1x1x128xf32>
    %252 = vector.broadcast %251 : vector<1x1x128xf32> to vector<32x32x128xf32>
    %253 = arith.mulf %248, %252 : vector<32x32x128xf32>
    %254 = arith.addf %247, %253 : vector<32x32x128xf32>
    %c2_180 = arith.constant 2 : index
    %c7_181 = arith.constant 7 : index
    %c0_182 = arith.constant 0 : index
    %255 = vector.load %arg12[%c2_180, %c7_181, %c0_182] : memref<34x48x128xf32, #tpu.memory_space<vmem>>, vector<32x32x128xf32>
    %256 = vector.extract_strided_slice %202 {offsets = [6, 0], sizes = [1, 128], strides = [1, 1]} : vector<9x128xf32> to vector<1x128xf32>
    %257 = vector.shape_cast %256 : vector<1x128xf32> to vector<128xf32>
    %258 = vector.shape_cast %257 : vector<128xf32> to vector<1x1x128xf32>
    %259 = vector.broadcast %258 : vector<1x1x128xf32> to vector<32x32x128xf32>
    %260 = arith.mulf %255, %259 : vector<32x32x128xf32>
    %261 = arith.addf %254, %260 : vector<32x32x128xf32>
    %c2_183 = arith.constant 2 : index
    %c8_184 = arith.constant 8 : index
    %c0_185 = arith.constant 0 : index
    %262 = vector.load %arg12[%c2_183, %c8_184, %c0_185] : memref<34x48x128xf32, #tpu.memory_space<vmem>>, vector<32x32x128xf32>
    %263 = vector.extract_strided_slice %202 {offsets = [7, 0], sizes = [1, 128], strides = [1, 1]} : vector<9x128xf32> to vector<1x128xf32>
    %264 = vector.shape_cast %263 : vector<1x128xf32> to vector<128xf32>
    %265 = vector.shape_cast %264 : vector<128xf32> to vector<1x1x128xf32>
    %266 = vector.broadcast %265 : vector<1x1x128xf32> to vector<32x32x128xf32>
    %267 = arith.mulf %262, %266 : vector<32x32x128xf32>
    %268 = arith.addf %261, %267 : vector<32x32x128xf32>
    %c2_186 = arith.constant 2 : index
    %c9_187 = arith.constant 9 : index
    %c0_188 = arith.constant 0 : index
    %269 = vector.load %arg12[%c2_186, %c9_187, %c0_188] : memref<34x48x128xf32, #tpu.memory_space<vmem>>, vector<32x32x128xf32>
    %270 = vector.extract_strided_slice %202 {offsets = [8, 0], sizes = [1, 128], strides = [1, 1]} : vector<9x128xf32> to vector<1x128xf32>
    %271 = vector.shape_cast %270 : vector<1x128xf32> to vector<128xf32>
    %272 = vector.shape_cast %271 : vector<128xf32> to vector<1x1x128xf32>
    %273 = vector.broadcast %272 : vector<1x1x128xf32> to vector<32x32x128xf32>
    %274 = arith.mulf %269, %273 : vector<32x32x128xf32>
    %275 = arith.addf %268, %274 : vector<32x32x128xf32>
    %276 = vector.shape_cast %204 : vector<1x128xf32> to vector<1x1x128xf32>
    %277 = vector.broadcast %276 : vector<1x1x128xf32> to vector<32x32x128xf32>
    %278 = arith.addf %275, %277 : vector<32x32x128xf32>
    %cst_189 = arith.constant 0.000000e+00 : f32
    %279 = vector.broadcast %cst_189 : f32 to vector<32x32x128xf32>
    %280 = arith.maximumf %278, %279 : vector<32x32x128xf32>
    %c0_190 = arith.constant 0 : index
    %c0_191 = arith.constant 0 : index
    %c0_192 = arith.constant 0 : index
    %c0_193 = arith.constant 0 : index
    %281 = vector.load %arg7[%c0_190, %c0_191, %c0_192, %c0_193] : memref<1x32x32x128xf32, #tpu.memory_space<vmem>>, vector<1x32x32x128xf32>
    %282 = vector.shape_cast %281 : vector<1x32x32x128xf32> to vector<32x32x128xf32>
    %283 = arith.addf %282, %280 : vector<32x32x128xf32>
    %c0_194 = arith.constant 0 : index
    %c0_195 = arith.constant 0 : index
    %c0_196 = arith.constant 0 : index
    %c0_197 = arith.constant 0 : index
    %284 = vector.load %arg7[%c0_194, %c0_195, %c0_196, %c0_197] : memref<1x32x32x128xf32, #tpu.memory_space<vmem>>, vector<1x32x32x128xf32>
    %285 = vector.shape_cast %284 : vector<1x32x32x128xf32> to vector<32x32x128xf32>
    %286 = vector.shape_cast %283 : vector<32x32x128xf32> to vector<1x32x32x128xf32>
    tpu.vector_store %arg7[%c0_194, %c0_195, %c0_196, %c0_197], %286 {strides = array<i32>} : memref<1x32x32x128xf32, #tpu.memory_space<vmem>>, vector<1x32x32x128xf32>,
    return
  }
  func.func @transform_0(%arg0: i32) -> (i32, i32, i32) {
    %c0_i32 = arith.constant 0 : i32
    %c0_i32_0 = arith.constant 0 : i32
    %c0_i32_1 = arith.constant 0 : i32
    return %arg0, %c0_i32, %c0_i32_0 : i32, i32, i32
  }
  func.func @transform_1(%arg0: i32) -> (i32, i32, i32) {
    %c0_i32 = arith.constant 0 : i32
    %c0_i32_0 = arith.constant 0 : i32
    %c0_i32_1 = arith.constant 0 : i32
    return %arg0, %c0_i32, %c0_i32_0 : i32, i32, i32
  }
  func.func @transform_2(%arg0: i32) -> (i32, i32, i32) {
    %c0_i32 = arith.constant 0 : i32
    %c0_i32_0 = arith.constant 0 : i32
    %c0_i32_1 = arith.constant 0 : i32
    return %arg0, %c0_i32, %c0_i32_0 : i32, i32, i32
  }
  func.func @transform_3(%arg0: i32) -> (i32, i32, i32) {
    %c0_i32 = arith.constant 0 : i32
    %c0_i32_0 = arith.constant 0 : i32
    %c0_i32_1 = arith.constant 0 : i32
    %c0_i32_2 = arith.constant 0 : i32
    return %c0_i32, %c0_i32_0, %c0_i32_1 : i32, i32, i32
  }
  func.func @transform_4(%arg0: i32) -> (i32, i32, i32) {
    %c0_i32 = arith.constant 0 : i32
    %c0_i32_0 = arith.constant 0 : i32
    %c0_i32_1 = arith.constant 0 : i32
    %c0_i32_2 = arith.constant 0 : i32
    return %c0_i32, %c0_i32_0, %c0_i32_1 : i32, i32, i32
  }
  func.func @transform_5(%arg0: i32) -> (i32, i32, i32) {
    %c0_i32 = arith.constant 0 : i32
    %c0_i32_0 = arith.constant 0 : i32
    %c0_i32_1 = arith.constant 0 : i32
    %c0_i32_2 = arith.constant 0 : i32
    return %c0_i32, %c0_i32_0, %c0_i32_1 : i32, i32, i32
  }
  func.func @transform_6(%arg0: i32) -> (i32, i32, i32, i32) {
    %c0_i32 = arith.constant 0 : i32
    %c0_i32_0 = arith.constant 0 : i32
    %c0_i32_1 = arith.constant 0 : i32
    %c0_i32_2 = arith.constant 0 : i32
    return %arg0, %c0_i32, %c0_i32_0, %c0_i32_1 : i32, i32, i32, i32
  }
  func.func @transform_7(%arg0: i32) -> (i32, i32, i32, i32) {
    %c0_i32 = arith.constant 0 : i32
    %c0_i32_0 = arith.constant 0 : i32
    %c0_i32_1 = arith.constant 0 : i32
    %c0_i32_2 = arith.constant 0 : i32
    return %arg0, %c0_i32, %c0_i32_0, %c0_i32_1 : i32, i32, i32, i32
  }
  func.func @transform_8(%arg0: i32) -> (i32, i32, i32, i32) {
    %c0_i32 = arith.constant 0 : i32
    %c0_i32_0 = arith.constant 0 : i32
    %c0_i32_1 = arith.constant 0 : i32
    %c0_i32_2 = arith.constant 0 : i32
    return %arg0, %c0_i32, %c0_i32_0, %c0_i32_1 : i32, i32, i32, i32
  }
}

</mosaic_0001>

<bundles_post_ra>
// kernel: tfpn_forward.1
= control target key start
LH: loop header
LB: loop body
LE: loop exit
PB: predicated region body
PF: predicated region fallthrough
CT: control target
= control target key end

     0   :  { %s14934_s3 = inlined_call_operand.vmem [shape: bf16[3,128,128], index: 3, kind: input, shape index: {}]   ;;  %s14935_s2 = inlined_call_operand.vmem [shape: bf16[1,64,128], index: 2, kind: input, shape index: {}]   ;;  %s14936_s1 = inlined_call_operand.vmem [shape: bf16[1,256,128], index: 1, kind: input, shape index: {}]   ;;  %s14937_s0 = inlined_call_operand.vmem [shape: bf16[1,1024,128], index: 0, kind: input, shape index: {}]   ;;  %s14938_s4 = inlined_call_operand.vmem [shape: f32[3,9,128], index: 4, kind: input, shape index: {}]   ;;  %s14939_s5 = inlined_call_operand.vmem [shape: f32[3,1,128], index: 5, kind: input, shape index: {}]   ;;  %s14940_s7 = inlined_call_operand.vmem [shape: f32[1,16,16,128], index: 7, kind: output, shape index: {1}]   ;;  %s14941_s8 = inlined_call_operand.vmem [shape: f32[1,8,8,128], index: 8, kind: output, shape index: {2}]   ;;  %s14942_s6 = inlined_call_operand.vmem [shape: f32[1,32,32,128], index: 6, kind: output, shape index: {0}]  }
   0x1   :  { %v8303_v0 = vld [vmem:[%s14934_s3] sm:$0xff]   ;;  %v8305_v2 = vld [vmem:[%s14934_s3 + $0x8] sm:$0xff]   ;;  %v8307_v4 = vld [vmem:[%s14934_s3 + $0x10] sm:$0xff]  }
   0x2   :  { %v8304_v1 = vld [vmem:[%s14934_s3 + $0x40] sm:$0xff]   ;;  %8070 = vmatprep.subr.bf16.mxu0 %v8303_v0  ;;  %v8306_v3 = vld [vmem:[%s14934_s3 + $0x48] sm:$0xff]   ;;  %v8308_v5 = vld [vmem:[%s14934_s3 + $0x50] sm:$0xff]  }
   0x3   :  { %8094 = vmatprep.subr.bf16.mxu1 %v8304_v1  ;;  %8071 = vmatpush3.bf16.msra.mxu0 %v8303_v0  ;;  %v8309_v6 = vld [vmem:[%s14934_s3 + $0x18] sm:$0xff]   ;;  %v8311_v8 = vld [vmem:[%s14934_s3 + $0x20] sm:$0xff]   ;;  %v8313_v10 = vld [vmem:[%s14934_s3 + $0x28] sm:$0xff]  }
   0x4   :  { %8095 = vmatpush3.bf16.msra.mxu1 %v8304_v1  ;;  %8072 = vmatprep.subr.bf16.mxu0 %v8305_v2  ;;  %v8310_v7 = vld [vmem:[%s14934_s3 + $0x58] sm:$0xff]   ;;  %v8312_v9 = vld [vmem:[%s14934_s3 + $0x60] sm:$0xff]   ;;  %v8314_v11 = vld [vmem:[%s14934_s3 + $0x68] sm:$0xff]  }
   0x5   :  { %8096 = vmatprep.subr.bf16.mxu1 %v8306_v3  ;;  %v8319_v12 = vld [vmem:[%s14935_s2] sm:$0xff]   ;;  %v8315_v14 = vld [vmem:[%s14934_s3 + $0x30] sm:$0xff]   ;;  %v8317_v16 = vld [vmem:[%s14934_s3 + $0x38] sm:$0xff]  }
   0x6   :  { %v8320_v13 = vld [vmem:[%s14936_s1] sm:$0xff]   ;;  %8086 = vmatprep.mubr.bf16.mxu0 %v8319_v12  ;;  %v8316_v15 = vld [vmem:[%s14934_s3 + $0x70] sm:$0xff]   ;;  %v8318_v17 = vld [vmem:[%s14934_s3 + $0x78] sm:$0xff]  }
   0x7   :  { %8073 = vmatpush3.bf16.msra.mxu0 %v8305_v2  ;;  %8110 = vmatprep.mubr.bf16.mxu1 %v8320_v13  ;;  %v8323_v18 = vld [vmem:[%s14934_s3 + $0x80] sm:$0xff]   ;;  %v8321_v19 = vld [vmem:[%s14935_s2 + $0x8] sm:$0xff]   ;;  %v8325_v22 = vld [vmem:[%s14935_s2 + $0x10] sm:$0xff]   ;;  %v8572_v2 = vmov 0.0  }
   0x8   :  { %8097 = vmatpush3.bf16.msra.mxu1 %v8306_v3  ;;  %8074 = vmatprep.subr.bf16.mxu0 %v8307_v4  ;;  %v8322_v20 = vld [vmem:[%s14936_s1 + $0x8] sm:$0xff]   ;;  %v8326_v23 = vld [vmem:[%s14936_s1 + $0x10] sm:$0xff]   ;;  %v8327_v25 = vld [vmem:[%s14935_s2 + $0x18] sm:$0xff]   ;;  %201 = vst [vmem:[#allocation2 + $0x48] sm:$0xff] %v8572_v2 }
   0x9   :  { %8098 = vmatprep.subr.bf16.mxu1 %v8308_v5  ;;  %v8324_v21 = vld [vmem:[%s14934_s3 + $0x88] sm:$0xff]   ;;  %v8329_v24 = vld [vmem:[%s14934_s3 + $0x90] sm:$0xff]   ;;  %v8328_v26 = vld [vmem:[%s14936_s1 + $0x18] sm:$0xff]   ;;  %211 = vst [vmem:[#allocation2 + $0x58] sm:$0xff] %v8572_v2 }
   0xa   :  { %v8330_v27 = vld [vmem:[%s14934_s3 + $0x98] sm:$0xff]   ;;  %v8331_v28 = vld [vmem:[%s14936_s1 + $0x20] sm:$0xff]   ;;  %v8332_v31 = vld [vmem:[%s14936_s1 + $0x28] sm:$0xff]   ;;  %192 = vst [vmem:[#allocation2 + $0x8] sm:$0xff] %v8572_v2 }
   0xb   :  { %8075 = vmatpush3.bf16.msra.mxu0 %v8307_v4  ;;  %v8340_v29 = vld [vmem:[%s14937_s0] sm:$0xff]   ;;  %v8334_v32 = vld [vmem:[%s14934_s3 + $0xa8] sm:$0xff]   ;;  %v8335_v33 = vld [vmem:[%s14936_s1 + $0x30] sm:$0xff]   ;;  %196 = vst [vmem:[#allocation2 + $0xe0] sm:$0xff] %v8572_v2 }
   0xc   :  { %8099 = vmatpush3.bf16.msra.mxu1 %v8308_v5  ;;  %8076 = vmatprep.subr.bf16.mxu0 %v8309_v6  ;;  %v8333_v30 = vld [vmem:[%s14934_s3 + $0xa0] sm:$0xff]   ;;  %v8337_v34 = vld [vmem:[%s14934_s3 + $0xb0] sm:$0xff]   ;;  %v8336_v35 = vld [vmem:[%s14936_s1 + $0x38] sm:$0xff]   ;;  %199 = vst [vmem:[#allocation2 + $0x18] sm:$0xff] %v8572_v2 }
   0xd   :  { %8100 = vmatprep.subr.bf16.mxu1 %v8310_v7  ;;  %v8338_v36 = vld [vmem:[%s14934_s3 + $0xb8] sm:$0xff]   ;;  %v8339_v37 = vld [vmem:[%s14936_s1 + $0x40] sm:$0xff]   ;;  %v8341_v38 = vld [vmem:[%s14936_s1 + $0x48] sm:$0xff]   ;;  %200 = vst [vmem:[#allocation2 + $0x30] sm:$0xff] %v8572_v2 }
   0xe   :  { %v8342_v39 = vld [vmem:[%s14937_s0 + $0x8] sm:$0xff]   ;;  %v8344_v40 = vld [vmem:[%s14937_s0 + $0x10] sm:$0xff]   ;;  %v8345_v42 = vld [vmem:[%s14936_s1 + $0x58] sm:$0xff]   ;;  %202 = vst [vmem:[#allocation2 + $0x60] sm:$0xff] %v8572_v2 }
   0xf   :  { %8077 = vmatpush3.bf16.msra.mxu0 %v8309_v6  ;;  %v8343_v41 = vld [vmem:[%s14936_s1 + $0x50] sm:$0xff]   ;;  %v8346_v43 = vld [vmem:[%s14937_s0 + $0x18] sm:$0xff]   ;;  %v8348_v44 = vld [vmem:[%s14937_s0 + $0x20] sm:$0xff]   ;;  %203 = vst [vmem:[#allocation2 + $0x78] sm:$0xff] %v8572_v2 }
  0x10   :  { %8101 = vmatpush3.bf16.msra.mxu1 %v8310_v7  ;;  %8078 = vmatprep.subr.bf16.mxu0 %v8311_v8  ;;  %v8347_v45 = vld [vmem:[%s14936_s1 + $0x60] sm:$0xff]   ;;  %v8349_v46 = vld [vmem:[%s14936_s1 + $0x68] sm:$0xff]   ;;  %v8352_v48 = vld [vmem:[%s14937_s0 + $0x30] sm:$0xff]   ;;  %204 = vst [vmem:[#allocation2 + $0x90] sm:$0xff] %v8572_v2 }
  0x11   :  { %8102 = vmatprep.subr.bf16.mxu1 %v8312_v9  ;;  %v8350_v47 = vld [vmem:[%s14937_s0 + $0x28] sm:$0xff]   ;;  %v8351_v49 = vld [vmem:[%s14936_s1 + $0x70] sm:$0xff]   ;;  %v8353_v50 = vld [vmem:[%s14936_s1 + $0x78] sm:$0xff]   ;;  %205 = vst [vmem:[#allocation2 + $0xa8] sm:$0xff] %v8572_v2 }
  0x12   :  { %v8354_v51 = vld [vmem:[%s14937_s0 + $0x38] sm:$0xff]   ;;  %v8355_v52 = vld [vmem:[%s14937_s0 + $0x40] sm:$0xff]   ;;  %v8357_v54 = vld [vmem:[%s14937_s0 + $0x48] sm:$0xff]   ;;  %206 = vst [vmem:[#allocation2 + $0xc0] sm:$0xff] %v8572_v2 }
  0x13   :  { %8079 = vmatpush3.bf16.msra.mxu0 %v8311_v8  ;;  %v8356_v53 = vld [vmem:[%s14937_s0 + $0x120] sm:$0xff]   ;;  %v8358_v55 = vld [vmem:[%s14937_s0 + $0x128] sm:$0xff]   ;;  %v8359_v56 = vld [vmem:[%s14937_s0 + $0x50] sm:$0xff]   ;;  %209 = vst [vmem:[#allocation2 + $0x28] sm:$0xff] %v8572_v2 }
  0x14   :  { %8103 = vmatpush3.bf16.msra.mxu1 %v8312_v9  ;;  %8080 = vmatprep.subr.bf16.mxu0 %v8313_v10  ;;  %v8360_v57 = vld [vmem:[%s14937_s0 + $0x130] sm:$0xff]   ;;  %v8361_v58 = vld [vmem:[%s14937_s0 + $0x58] sm:$0xff]   ;;  %v8363_v60 = vld [vmem:[%s14937_s0 + $0x60] sm:$0xff]   ;;  %210 = vst [vmem:[#allocation2 + $0x40] sm:$0xff] %v8572_v2 }
  0x15   :  { %8104 = vmatprep.subr.bf16.mxu1 %v8314_v11  ;;  %v8362_v59 = vld [vmem:[%s14937_s0 + $0x138] sm:$0xff]   ;;  %v8364_v61 = vld [vmem:[%s14937_s0 + $0x140] sm:$0xff]   ;;  %v8365_v62 = vld [vmem:[%s14937_s0 + $0x68] sm:$0xff]   ;;  %212 = vst [vmem:[#allocation2 + $0x70] sm:$0xff] %v8572_v2 }
  0x16   :  { %v8366_v63 = vld [vmem:[%s14937_s0 + $0x148] sm:$0xff]   ;;  %v8367_v0 = vld [vmem:[%s14937_s0 + $0x70] sm:$0xff]   ;;  %213 = vst [vmem:[#allocation2 + $0x88] sm:$0xff] %v8572_v2  ;;  %214 = vst [vmem:[#allocation2 + $0xa0] sm:$0xff] %v8572_v2 }
  0x17   :  { %8081 = vmatpush3.bf16.msra.mxu0 %v8313_v10  ;;  %v8368_v1 = vld [vmem:[%s14937_s0 + $0x150] sm:$0xff]   ;;  %215 = vst [vmem:[#allocation2 + $0xb8] sm:$0xff] %v8572_v2  ;;  %216 = vst [vmem:[#allocation2 + $0xd0] sm:$0xff] %v8572_v2  ;;  %v8369_v3 = vld [vmem:[%s14937_s0 + $0x78] sm:$0xff]  }
  0x18   :  { %8105 = vmatpush3.bf16.msra.mxu1 %v8314_v11  ;;  %8082 = vmatprep.subr.bf16.mxu0 %v8315_v14  ;;  %925 = vst [vmem:[#allocation3 + $0x8] sm:$0xff] %v8572_v2  ;;  %926 = vst [vmem:[#allocation3 + $0x10] sm:$0xff] %v8572_v2  ;;  %v8370_v4 = vld [vmem:[%s14937_s0 + $0x158] sm:$0xff]   ;;  %v8371_v5 = vld [vmem:[%s14937_s0 + $0x80] sm:$0xff]  }
  0x19   :  { %8106 = vmatprep.subr.bf16.mxu1 %v8316_v15  ;;  %930 = vst [vmem:[#allocation3 + $0x228] sm:$0xff] %v8572_v2  ;;  %931 = vst [vmem:[#allocation3 + $0x230] sm:$0xff] %v8572_v2  ;;  %v8372_v6 = vld [vmem:[%s14937_s0 + $0x160] sm:$0xff]   ;;  %v8373_v7 = vld [vmem:[%s14937_s0 + $0x88] sm:$0xff]  }
  0x1a   :  { %934 = vst [vmem:[#allocation3 + $0x20] sm:$0xff] %v8572_v2  ;;  %935 = vst [vmem:[#allocation3 + $0x40] sm:$0xff] %v8572_v2  ;;  %v8374_v8 = vld [vmem:[%s14937_s0 + $0x168] sm:$0xff]   ;;  %v8375_v9 = vld [vmem:[%s14937_s0 + $0x90] sm:$0xff]  }
  0x1b   :  { %8083 = vmatpush3.bf16.msra.mxu0 %v8315_v14  ;;  %936 = vst [vmem:[#allocation3 + $0x60] sm:$0xff] %v8572_v2  ;;  %937 = vst [vmem:[#allocation3 + $0x80] sm:$0xff] %v8572_v2  ;;  %v8376_v10 = vld [vmem:[%s14937_s0 + $0x170] sm:$0xff]   ;;  %v8377_v11 = vld [vmem:[%s14937_s0 + $0x98] sm:$0xff]  }
  0x1c   :  { %8107 = vmatpush3.bf16.msra.mxu1 %v8316_v15  ;;  %8084 = vmatprep.subr.bf16.mxu0 %v8317_v16  ;;  %938 = vst [vmem:[#allocation3 + $0xa0] sm:$0xff] %v8572_v2  ;;  %939 = vst [vmem:[#allocation3 + $0xc0] sm:$0xff] %v8572_v2  ;;  %v8378_v12 = vld [vmem:[%s14937_s0 + $0x178] sm:$0xff]   ;;  %v8379_v13 = vld [vmem:[%s14937_s0 + $0xa0] sm:$0xff]  }
  0x1d   :  { %8108 = vmatprep.subr.bf16.mxu1 %v8318_v17  ;;  %940 = vst [vmem:[#allocation3 + $0xe0] sm:$0xff] %v8572_v2  ;;  %941 = vst [vmem:[#allocation3 + $0x100] sm:$0xff] %v8572_v2  ;;  %v8380_v14 = vld [vmem:[%s14937_s0 + $0x180] sm:$0xff]   ;;  %v8381_v15 = vld [vmem:[%s14937_s0 + $0xa8] sm:$0xff]  }
  0x1e   :  { %942 = vst [vmem:[#allocation3 + $0x120] sm:$0xff] %v8572_v2  ;;  %943 = vst [vmem:[#allocation3 + $0x140] sm:$0xff] %v8572_v2 }
  0x1f   :  { %8085 = vmatpush3.bf16.msra.mxu0 %v8317_v16  ;;  %944 = vst [vmem:[#allocation3 + $0x160] sm:$0xff] %v8572_v2  ;;  %945 = vst [vmem:[#allocation3 + $0x180] sm:$0xff] %v8572_v2  ;;  %v8382_v16 = vld [vmem:[%s14937_s0 + $0x188] sm:$0xff]  }
  0x20   :  { %8109 = vmatpush3.bf16.msra.mxu1 %v8318_v17  ;;  %8142 = vmatprep.subr.bf16.mxu0 %v8323_v18  ;;  %946 = vst [vmem:[#allocation3 + $0x1a0] sm:$0xff] %v8572_v2  ;;  %947 = vst [vmem:[#allocation3 + $0x1c0] sm:$0xff] %v8572_v2  ;;  %v8383_v17 = vld [vmem:[%s14937_s0 + $0xb0] sm:$0xff]  }
  0x21   :  { %8286 = vmatprep.subr.bf16.mxu1 %v8323_v18  ;;  %948 = vst [vmem:[#allocation3 + $0x1e0] sm:$0xff] %v8572_v2  ;;  %949 = vst [vmem:[#allocation3 + $0x200] sm:$0xff] %v8572_v2 }
  0x22   :  { %8087 = vmatmul.mubr.bf16.vlgmr.msra.gmra.mrb[0].mxu0 %v8321_v19  ;;  %952 = vst [vmem:[#allocation3 + $0x38] sm:$0xff] %v8572_v2  ;;  %953 = vst [vmem:[#allocation3 + $0x58] sm:$0xff] %v8572_v2  ;;  %v8385_v19 = vld [vmem:[%s14937_s0 + $0xb8] sm:$0xff]  }
  0x23   :  { %8111 = vmatmul.mubr.bf16.vlgmr.msra.gmra.mrb[0].mxu1 %v8322_v20  ;;  %8143 = vmatpush3.bf16.msra.mxu0 %v8323_v18  ;;  %954 = vst [vmem:[#allocation3 + $0x78] sm:$0xff] %v8572_v2  ;;  %955 = vst [vmem:[#allocation3 + $0x98] sm:$0xff] %v8572_v2  ;;  %v8386_v20 = vld [vmem:[%s14937_s0 + $0x198] sm:$0xff]  }
  0x24   :  { %8294 = vmatpush3.bf16.msra.mxu1 %v8323_v18  ;;  %8144 = vmatprep.subr.bf16.mxu0 %v8324_v21  ;;  %956 = vst [vmem:[#allocation3 + $0xb8] sm:$0xff] %v8572_v2  ;;  %957 = vst [vmem:[#allocation3 + $0xd8] sm:$0xff] %v8572_v2  ;;  %v8384_v18 = vld [vmem:[%s14937_s0 + $0x190] sm:$0xff]  }
  0x25   :  { %8090 = vmatprep.mubr.bf16.mxu0 %v8325_v22  ;;  %8114 = vmatprep.mubr.bf16.mxu1 %v8326_v23  ;;  %958 = vst [vmem:[#allocation3 + $0xf8] sm:$0xff] %v8572_v2  ;;  %959 = vst [vmem:[#allocation3 + $0x118] sm:$0xff] %v8572_v2  ;;  %v8388_v22 = vld [vmem:[%s14937_s0 + $0x1a0] sm:$0xff]   ;;  %v8389_v23 = vld [vmem:[%s14937_s0 + $0xc8] sm:$0xff]  }
  0x26   :  { %8287 = vmatprep.subr.bf16.mxu1 %v8324_v21  ;;  %960 = vst [vmem:[#allocation3 + $0x138] sm:$0xff] %v8572_v2  ;;  %961 = vst [vmem:[#allocation3 + $0x158] sm:$0xff] %v8572_v2 }
  0x27   :  { %8145 = vmatpush3.bf16.msra.mxu0 %v8324_v21  ;;  %962 = vst [vmem:[#allocation3 + $0x178] sm:$0xff] %v8572_v2  ;;  %963 = vst [vmem:[#allocation3 + $0x198] sm:$0xff] %v8572_v2 }
  0x28   :  { %8146 = vmatprep.subr.bf16.mxu0 %v8329_v24  ;;  %8295 = vmatpush3.bf16.msra.mxu1 %v8324_v21  ;;  %964 = vst [vmem:[#allocation3 + $0x1b8] sm:$0xff] %v8572_v2  ;;  %965 = vst [vmem:[#allocation3 + $0x1d8] sm:$0xff] %v8572_v2  ;;  %v8387_v21 = vld [vmem:[%s14937_s0 + $0xc0] sm:$0xff]  }
  0x29   :  { %8288 = vmatprep.subr.bf16.mxu1 %v8329_v24  ;;  %966 = vst [vmem:[#allocation3 + $0x1f8] sm:$0xff] %v8572_v2  ;;  %967 = vst [vmem:[#allocation3 + $0x218] sm:$0xff] %v8572_v2 }
  0x2a   :  { %8091 = vmatmul.mubr.bf16.gmra.mrb[4].mxu0 %v8327_v25  ;;  %3420 = vst [vmem:[#allocation4 + $0x8] sm:$0xff] %v8572_v2  ;;  %3421 = vst [vmem:[#allocation4 + $0x10] sm:$0xff] %v8572_v2  ;;  %v8391_v25 = vld [vmem:[%s14937_s0 + $0xd0] sm:$0xff]  }
  0x2b   :  { %8115 = vmatmul.mubr.bf16.gmra.mrb[4].mxu1 %v8328_v26  ;;  %8147 = vmatpush3.bf16.msra.mxu0 %v8329_v24  ;;  %3422 = vst [vmem:[#allocation4 + $0x18] sm:$0xff] %v8572_v2  ;;  %3423 = vst [vmem:[#allocation4 + $0x20] sm:$0xff] %v8572_v2  ;;  %v8392_v26 = vld [vmem:[%s14937_s0 + $0x1b0] sm:$0xff]  }
  0x2c   :  { %8148 = vmatprep.subr.bf16.mxu0 %v8330_v27  ;;  %8118 = vmatprep.mubr.bf16.mxu1 %v8331_v28  ;;  %3427 = vst [vmem:[#allocation4 + $0x638] sm:$0xff] %v8572_v2  ;;  %3428 = vst [vmem:[#allocation4 + $0x640] sm:$0xff] %v8572_v2  ;;  %v8394_v28 = vld [vmem:[%s14937_s0 + $0x1b8] sm:$0xff]  }
  0x2d   :  { %8296 = vmatpush3.bf16.msra.mxu1 %v8329_v24  ;;  %8158 = vmatprep.mubr.bf16.mxu0 %v8340_v29  ;;  %3429 = vst [vmem:[#allocation4 + $0x648] sm:$0xff] %v8572_v2  ;;  %3430 = vst [vmem:[#allocation4 + $0x650] sm:$0xff] %v8572_v2  ;;  %v8390_v24 = vld [vmem:[%s14937_s0 + $0x1a8] sm:$0xff]   ;;  %v8395_v29 = vld [vmem:[%s14937_s0 + $0xe0] sm:$0xff]  }
  0x2e   :  { %8289 = vmatprep.subr.bf16.mxu1 %v8330_v27  ;;  %3433 = vst [vmem:[#allocation4 + $0x30] sm:$0xff] %v8572_v2  ;;  %3434 = vst [vmem:[#allocation4 + $0x60] sm:$0xff] %v8572_v2 }
  0x2f   :  { %8149 = vmatpush3.bf16.msra.mxu0 %v8330_v27  ;;  %3435 = vst [vmem:[#allocation4 + $0x90] sm:$0xff] %v8572_v2  ;;  %3436 = vst [vmem:[#allocation4 + $0xc0] sm:$0xff] %v8572_v2 }
  0x30   :  { %8150 = vmatprep.subr.bf16.mxu0 %v8333_v30  ;;  %3437 = vst [vmem:[#allocation4 + $0xf0] sm:$0xff] %v8572_v2  ;;  %3438 = vst [vmem:[#allocation4 + $0x120] sm:$0xff] %v8572_v2 }
  0x31   :  { %8297 = vmatpush3.bf16.msra.mxu1 %v8330_v27  ;;  %3439 = vst [vmem:[#allocation4 + $0x150] sm:$0xff] %v8572_v2  ;;  %3440 = vst [vmem:[#allocation4 + $0x180] sm:$0xff] %v8572_v2  ;;  %v8393_v27 = vld [vmem:[%s14937_s0 + $0xd8] sm:$0xff]  }
  0x32   :  { %8290 = vmatprep.subr.bf16.mxu1 %v8333_v30  ;;  %3441 = vst [vmem:[#allocation4 + $0x1b0] sm:$0xff] %v8572_v2  ;;  %3442 = vst [vmem:[#allocation4 + $0x1e0] sm:$0xff] %v8572_v2 }
  0x33   :  { %8119 = vmatmul.mubr.bf16.gmra.mrb[8].mxu1 %v8332_v31  ;;  %8151 = vmatpush3.bf16.msra.mxu0 %v8333_v30  ;;  %3443 = vst [vmem:[#allocation4 + $0x210] sm:$0xff] %v8572_v2  ;;  %3444 = vst [vmem:[#allocation4 + $0x240] sm:$0xff] %v8572_v2  ;;  %v8397_v31 = vld [vmem:[%s14937_s0 + $0xe8] sm:$0xff]  }
  0x34   :  { %8152 = vmatprep.subr.bf16.mxu0 %v8334_v32  ;;  %8122 = vmatprep.mubr.bf16.mxu1 %v8335_v33  ;;  %3445 = vst [vmem:[#allocation4 + $0x270] sm:$0xff] %v8572_v2  ;;  %3446 = vst [vmem:[#allocation4 + $0x2a0] sm:$0xff] %v8572_v2  ;;  %v8399_v33 = vld [vmem:[%s14937_s0 + $0xf0] sm:$0xff]  }
  0x35   :  { %8298 = vmatpush3.bf16.msra.mxu1 %v8333_v30  ;;  %3447 = vst [vmem:[#allocation4 + $0x2d0] sm:$0xff] %v8572_v2  ;;  %3448 = vst [vmem:[#allocation4 + $0x300] sm:$0xff] %v8572_v2  ;;  %v8396_v30 = vld [vmem:[%s14937_s0 + $0x1c0] sm:$0xff]  }
  0x36   :  { %8291 = vmatprep.subr.bf16.mxu1 %v8334_v32  ;;  %3449 = vst [vmem:[#allocation4 + $0x330] sm:$0xff] %v8572_v2  ;;  %3450 = vst [vmem:[#allocation4 + $0x360] sm:$0xff] %v8572_v2 }
  0x37   :  { %8153 = vmatpush3.bf16.msra.mxu0 %v8334_v32  ;;  %3451 = vst [vmem:[#allocation4 + $0x390] sm:$0xff] %v8572_v2  ;;  %3452 = vst [vmem:[#allocation4 + $0x3c0] sm:$0xff] %v8572_v2 }
  0x38   :  { %8154 = vmatprep.subr.bf16.mxu0 %v8337_v34  ;;  %3453 = vst [vmem:[#allocation4 + $0x3f0] sm:$0xff] %v8572_v2  ;;  %3454 = vst [vmem:[#allocation4 + $0x420] sm:$0xff] %v8572_v2 }
  0x39   :  { %8299 = vmatpush3.bf16.msra.mxu1 %v8334_v32  ;;  %3455 = vst [vmem:[#allocation4 + $0x450] sm:$0xff] %v8572_v2  ;;  %3456 = vst [vmem:[#allocation4 + $0x480] sm:$0xff] %v8572_v2  ;;  %v8398_v32 = vld [vmem:[%s14937_s0 + $0x1c8] sm:$0xff]  }
  0x3a   :  { %8292 = vmatprep.subr.bf16.mxu1 %v8337_v34  ;;  %3457 = vst [vmem:[#allocation4 + $0x4b0] sm:$0xff] %v8572_v2  ;;  %3458 = vst [vmem:[#allocation4 + $0x4e0] sm:$0xff] %v8572_v2 }
  0x3b   :  { %8123 = vmatmul.mubr.bf16.gmra.mrb[12].mxu1 %v8336_v35  ;;  %8155 = vmatpush3.bf16.msra.mxu0 %v8337_v34  ;;  %3459 = vst [vmem:[#allocation4 + $0x510] sm:$0xff] %v8572_v2  ;;  %3460 = vst [vmem:[#allocation4 + $0x540] sm:$0xff] %v8572_v2  ;;  %v8401_v35 = vld [vmem:[%s14937_s0 + $0xf8] sm:$0xff]  }
  0x3c   :  { %8156 = vmatprep.subr.bf16.mxu0 %v8338_v36  ;;  %8126 = vmatprep.mubr.bf16.mxu1 %v8339_v37  ;;  %3461 = vst [vmem:[#allocation4 + $0x570] sm:$0xff] %v8572_v2  ;;  %3462 = vst [vmem:[#allocation4 + $0x5a0] sm:$0xff] %v8572_v2  ;;  %v8403_v37 = vld [vmem:[%s14937_s0 + $0x100] sm:$0xff]  }
  0x3d   :  { %8300 = vmatpush3.bf16.msra.mxu1 %v8337_v34  ;;  %3463 = vst [vmem:[#allocation4 + $0x5d0] sm:$0xff] %v8572_v2  ;;  %3464 = vst [vmem:[#allocation4 + $0x600] sm:$0xff] %v8572_v2  ;;  %v8400_v34 = vld [vmem:[%s14937_s0 + $0x1d0] sm:$0xff]  }
  0x3e   :  { %8293 = vmatprep.subr.bf16.mxu1 %v8338_v36  ;;  %3467 = vst [vmem:[#allocation4 + $0x58] sm:$0xff] %v8572_v2  ;;  %3468 = vst [vmem:[#allocation4 + $0x88] sm:$0xff] %v8572_v2 }
  0x3f   :  { %8157 = vmatpush3.bf16.msra.mxu0 %v8338_v36  ;;  %3469 = vst [vmem:[#allocation4 + $0xb8] sm:$0xff] %v8572_v2  ;;  %3470 = vst [vmem:[#allocation4 + $0xe8] sm:$0xff] %v8572_v2 }
  0x40   :  { %3471 = vst [vmem:[#allocation4 + $0x118] sm:$0xff] %v8572_v2  ;;  %3472 = vst [vmem:[#allocation4 + $0x148] sm:$0xff] %v8572_v2 }
  0x41   :  { %8301 = vmatpush3.bf16.msra.mxu1 %v8338_v36  ;;  %3473 = vst [vmem:[#allocation4 + $0x178] sm:$0xff] %v8572_v2  ;;  %3474 = vst [vmem:[#allocation4 + $0x1a8] sm:$0xff] %v8572_v2  ;;  %v8402_v36 = vld [vmem:[%s14937_s0 + $0x1d8] sm:$0xff]  }
  0x42   :  { %8159 = vmatmul.mubr.bf16.vlgmr.msra.gmra.mrb[8].mxu0 %v8342_v39  ;;  %3475 = vst [vmem:[#allocation4 + $0x1d8] sm:$0xff] %v8572_v2  ;;  %3476 = vst [vmem:[#allocation4 + $0x208] sm:$0xff] %v8572_v2  ;;  %v8405_v39 = vld [vmem:[%s14937_s0 + $0x108] sm:$0xff]  }
  0x43   :  { %8127 = vmatmul.mubr.bf16.gmra.mrb[16].mxu1 %v8341_v38  ;;  %8162 = vmatprep.mubr.bf16.mxu0 %v8344_v40  ;;  %3477 = vst [vmem:[#allocation4 + $0x238] sm:$0xff] %v8572_v2  ;;  %3478 = vst [vmem:[#allocation4 + $0x268] sm:$0xff] %v8572_v2  ;;  %v8404_v38 = vld [vmem:[%s14937_s0 + $0x1e0] sm:$0xff]   ;;  %v8406_v40 = vld [vmem:[%s14937_s0 + $0x1e8] sm:$0xff]  }
  0x44   :  { %8130 = vmatprep.mubr.bf16.mxu1 %v8343_v41  ;;  %3479 = vst [vmem:[#allocation4 + $0x298] sm:$0xff] %v8572_v2  ;;  %3480 = vst [vmem:[#allocation4 + $0x2c8] sm:$0xff] %v8572_v2  ;;  %v8407_v41 = vld [vmem:[%s14937_s0 + $0x110] sm:$0xff]  }
  0x45   :  { %3481 = vst [vmem:[#allocation4 + $0x2f8] sm:$0xff] %v8572_v2  ;;  %3482 = vst [vmem:[#allocation4 + $0x328] sm:$0xff] %v8572_v2 }
  0x46   :  { %3483 = vst [vmem:[#allocation4 + $0x358] sm:$0xff] %v8572_v2  ;;  %3484 = vst [vmem:[#allocation4 + $0x388] sm:$0xff] %v8572_v2 }
  0x47   :  { %3485 = vst [vmem:[#allocation4 + $0x3b8] sm:$0xff] %v8572_v2  ;;  %3486 = vst [vmem:[#allocation4 + $0x3e8] sm:$0xff] %v8572_v2 }
  0x48   :  { %3487 = vst [vmem:[#allocation4 + $0x418] sm:$0xff] %v8572_v2  ;;  %3488 = vst [vmem:[#allocation4 + $0x448] sm:$0xff] %v8572_v2 }
  0x49   :  { %3489 = vst [vmem:[#allocation4 + $0x478] sm:$0xff] %v8572_v2  ;;  %3490 = vst [vmem:[#allocation4 + $0x4a8] sm:$0xff] %v8572_v2 }
  0x4a   :  { %8163 = vmatmul.mubr.bf16.gmra.mrb[12].mxu0 %v8346_v43  ;;  %3491 = vst [vmem:[#allocation4 + $0x4d8] sm:$0xff] %v8572_v2  ;;  %3492 = vst [vmem:[#allocation4 + $0x508] sm:$0xff] %v8572_v2  ;;  %v8409_v43 = vld [vmem:[%s14937_s0 + $0x118] sm:$0xff]  }
  0x4b   :  { %8131 = vmatmul.mubr.bf16.gmra.mrb[20].mxu1 %v8345_v42  ;;  %8166 = vmatprep.mubr.bf16.mxu0 %v8348_v44  ;;  %3493 = vst [vmem:[#allocation4 + $0x538] sm:$0xff] %v8572_v2  ;;  %3494 = vst [vmem:[#allocation4 + $0x568] sm:$0xff] %v8572_v2  ;;  %v8408_v42 = vld [vmem:[%s14937_s0 + $0x1f0] sm:$0xff]   ;;  %v8410_v44 = vld [vmem:[%s14937_s0 + $0x1f8] sm:$0xff]  }
  0x4c   :  { %8134 = vmatprep.mubr.bf16.mxu1 %v8347_v45  ;;  %3495 = vst [vmem:[#allocation4 + $0x598] sm:$0xff] %v8572_v2  ;;  %3496 = vst [vmem:[#allocation4 + $0x5c8] sm:$0xff] %v8572_v2  ;;  %v235_v45 = vlaneseq }
  0x4d   :  { %3497 = vst [vmem:[#allocation4 + $0x5f8] sm:$0xff] %v8572_v2  ;;  %3498 = vst [vmem:[#allocation4 + $0x628] sm:$0xff] %v8572_v2 }
  0x4e   :  { %198 = vst [vmem:[#allocation2] sm:$0xff] %v8572_v2  ;;  %207 = vst [vmem:[#allocation2 + $0xd8] sm:$0xff] %v8572_v2 }
  0x4f   :  { %208 = vst [vmem:[#allocation2 + $0x10] sm:$0xff] %v8572_v2  ;;  %217 = vst [vmem:[#allocation2 + $0xe8] sm:$0xff] %v8572_v2 }
  0x50   :  { %933 = vst [vmem:[#allocation3] sm:$0xff] %v8572_v2  ;;  %950 = vst [vmem:[#allocation3 + $0x220] sm:$0xff] %v8572_v2 }
  0x51   :  { %951 = vst [vmem:[#allocation3 + $0x18] sm:$0xff] %v8572_v2  ;;  %968 = vst [vmem:[#allocation3 + $0x238] sm:$0xff] %v8572_v2 }
  0x52   :  { %8167 = vmatmul.mubr.bf16.gmra.mrb[16].mxu0 %v8350_v47  ;;  %3432 = vst [vmem:[#allocation4] sm:$0xff] %v8572_v2  ;;  %3465 = vst [vmem:[#allocation4 + $0x630] sm:$0xff] %v8572_v2 }
  0x53   :  { %8135 = vmatmul.mubr.bf16.gmra.mrb[24].mxu1 %v8349_v46  ;;  %8170 = vmatprep.mubr.bf16.mxu0 %v8352_v48  ;;  %3466 = vst [vmem:[#allocation4 + $0x28] sm:$0xff] %v8572_v2  ;;  %3499 = vst [vmem:[#allocation4 + $0x658] sm:$0xff] %v8572_v2  ;;  %v236_v46 = vshrl.u32 %v235_v45, 7  ;;  %v7713_v48 = vld [vmem:[%s14938_s4 + $0x10] sm:$0xff] }
  0x54   :  { %8138 = vmatprep.mubr.bf16.mxu1 %v8351_v49  ;;  %v51_v49 = vld [vmem:[%s14938_s4] sm:$0xff] }
  0x55   :  { %v237_v47 = vsub.s32 0, %v236_v46 }
  0x59   :  { %v3629_v2 = vld [vmem:[#allocation4 + $0x7] sm:$0xff] }
  0x5a   :  { %8171 = vmatmul.mubr.bf16.gmra.mrb[20].mxu0 %v8354_v51  ;;  %v9086_v51 = vrot.slane %v51_v49, %v237_v47  ;;  %v4280_v45 = vld [vmem:[#allocation4 + $0x21] sm:$0xff] }
  0x5b   :  { %8139 = vmatmul.mubr.bf16.gmra.mrb[28].mxu1 %v8353_v50  ;;  %8174 = vmatprep.mubr.bf16.mxu0 %v8355_v52  ;;  %v257_v50 = vsub.s32 1, %v236_v46  ;;  %v285_v52 = vsub.s32 2, %v236_v46 }
  0x5c   :  { %8230 = vmatprep.mubr.bf16.mxu1 %v8356_v53  ;;  %v9088_v53 = vrot.slane %v7713_v48, %v237_v47 }
  0x5e   :  { %15009 = vst [vmem:[#allocation5_spill] sm:$0xff] %v9088_v53 }
  0x62   :  { %8175 = vmatmul.mubr.bf16.gmra.mrb[24].mxu0 %v8357_v54  ;;  %v9090_v54 = vrot.slane %v7713_v48, %v257_v50 }
  0x63   :  { %8231 = vmatmul.mubr.bf16.vlgmr.msra.gmra.mrb[32].mxu1 %v8358_v55  ;;  %8178 = vmatprep.mubr.bf16.mxu0 %v8359_v56  ;;  %v227_v55 = vld [vmem:[#allocation2 + $0x7] sm:$0xff] }
  0x64   :  { %8234 = vmatprep.mubr.bf16.mxu1 %v8360_v57  ;;  %15010 = vst [vmem:[#allocation6_spill] sm:$0xff] %v9090_v54  ;;  %v9095_v56 = vld [vmem:[%s14938_s4 + $0x20] sm:$0xff]  ;;  %v1002_v57 = vld [vmem:[#allocation3 + $0x7] sm:$0xff] }
  0x6a   :  { %8179 = vmatmul.mubr.bf16.gmra.mrb[28].mxu0 %v8361_v58  ;;  %v9097_v58 = vrot.slane %v51_v49, %v257_v50 }
  0x6b   :  { %8235 = vmatmul.mubr.bf16.gmra.mrb[36].mxu1 %v8362_v59  ;;  %8182 = vmatprep.mubr.bf16.mxu0 %v8363_v60  ;;  %v341_v59 = vsub.s32 4, %v236_v46  ;;  %v1003_v60 = vld [vmem:[#allocation3 + $0xf] sm:$0xff] }
  0x6c   :  { %8238 = vmatprep.mubr.bf16.mxu1 %v8364_v61  ;;  %v9100_v61 = vrot.slane %v9095_v56, %v237_v47 }
  0x6e   :  { %15011 = vst [vmem:[#allocation7_spill] sm:$0xff] %v9100_v61 }
  0x72   :  { %8183 = vmatmul.mubr.bf16.gmra.mrb[32].mxu0 %v8365_v62  ;;  %v9102_v62 = vrot.slane %v51_v49, %v285_v52 }
  0x73   :  { %8239 = vmatmul.mubr.bf16.gmra.mrb[40].mxu1 %v8366_v63  ;;  %8186 = vmatprep.mubr.bf16.mxu0 %v8367_v0  ;;  %v9104_v63 = vsub.s32 7, %v236_v46  ;;  %v9106_v0 = vrot.slane %v7713_v48, %v285_v52 }
  0x74   :  { %8242 = vmatprep.mubr.bf16.mxu1 %v8368_v1  ;;  %v239_v1 = vmul.f32 %v9086_v51, %v227_v55 }
  0x75   :  { %15012 = vst [vmem:[#allocation8_spill] sm:$0xff] %v9104_v63 }
  0x7a   :  { %8187 = vmatmul.mubr.bf16.gmra.mrb[36].mxu0 %v8369_v3  ;;  %v259_v3 = vmul.f32 0.0, %v9097_v58 }
  0x7b   :  { %8243 = vmatmul.mubr.bf16.gmra.mrb[44].mxu1 %v8370_v4  ;;  %8190 = vmatprep.mubr.bf16.mxu0 %v8371_v5  ;;  %v1038_v4 = vmul.f32 %v9088_v53, %v1002_v57  ;;  %v1106_v5 = vmul.f32 0.0, %v9090_v54 }
  0x7c   :  { %8246 = vmatprep.mubr.bf16.mxu1 %v8372_v6  ;;  %v9113_v6 = vrot.slane %v9095_v56, %v257_v50 }
  0x7e   :  { %15013 = vst [vmem:[#allocation9_spill] sm:$0xff] %v9113_v6 }
  0x82   :  { %8191 = vmatmul.mubr.bf16.gmra.mrb[40].mxu0 %v8373_v7  ;;  %v275_v7 = vld [vmem:[#allocation2 + $0x9] sm:$0xff] }
  0x83   :  { %8247 = vmatmul.mubr.bf16.gmra.mrb[48].mxu1 %v8374_v8  ;;  %8194 = vmatprep.mubr.bf16.mxu0 %v8375_v9  ;;  %v1170_v8 = vld [vmem:[#allocation3 + $0x9] sm:$0xff]  ;;  %v1039_v9 = vmul.f32 %v9088_v53, %v1003_v60  ;;  %v9179_v60 = vrot.slane %v9095_v56, %v341_v59 }
  0x84   :  { %8250 = vmatprep.mubr.bf16.mxu1 %v8376_v10  ;;  %v313_v10 = vsub.s32 3, %v236_v46 }
  0x85   :  { %15024 = vst [vmem:[#allocation20_spill] sm:$0xff] %v9179_v60 }
  0x8a   :  { %8195 = vmatmul.mubr.bf16.gmra.mrb[44].mxu0 %v8377_v11  ;;  %v9117_v11 = vrot.slane %v9095_v56, %v285_v52 }
  0x8b   :  { %8251 = vmatmul.mubr.bf16.gmra.mrb[52].mxu1 %v8378_v12  ;;  %8198 = vmatprep.mubr.bf16.mxu0 %v8379_v13  ;;  %v1171_v12 = vld [vmem:[#allocation3 + $0x11] sm:$0xff]  ;;  %v3761_v13 = vmul.f32 %v9100_v61, %v3629_v2  ;;  %v9184_v2 = vrot.slane %v9095_v56, %v313_v10 }
  0x8c   :  { %8254 = vmatprep.mubr.bf16.mxu1 %v8380_v14  ;;  %15014 = vst [vmem:[#allocation10_spill] sm:$0xff] %v9117_v11  ;;  %v9121_v14 = vmul.f32 0.0, %v9113_v6 }
  0x8d   :  { %15026 = vst [vmem:[#allocation22_spill] sm:$0xff] %v9184_v2 }
  0x8e   :  { %15015 = vst [vmem:[#allocation11_spill] sm:$0xff] %v9121_v14 }
  0x92   :  { %8199 = vmatmul.mubr.bf16.gmra.mrb[48].mxu0 %v8381_v15  ;;  %v9123_v15 = vrot.slane %v51_v49, %v341_v59 }
  0x93   :  { %8255 = vmatmul.mubr.bf16.gmra.mrb[56].mxu1 %v8382_v16  ;;  %8202 = vmatprep.mubr.bf16.mxu0 %v8383_v17  ;;  %v369_v16 = vsub.s32 5, %v236_v46  ;;  %v9125_v17 = vsub.s32 6, %v236_v46 }
  0x94   :  { %8258 = vmatprep.mubr.bf16.mxu1 %v8384_v18  ;;  %v9128_v18 = vrot.slane %v51_v49, %v9104_v63 }
  0x95   :  { %15016 = vst [vmem:[#allocation12_spill] sm:$0xff] %v9125_v17 }
  0x96   :  { %v9173_v52 = vmul.f32 0.0, %v9128_v18 }
  0x98   :  { %15022 = vst [vmem:[#allocation18_spill] sm:$0xff] %v9173_v52 }
  0x9a   :  { %8203 = vmatmul.mubr.bf16.gmra.mrb[52].mxu0 %v8385_v19  ;;  %v267_v19 = vadd.f32 %v259_v3, %v239_v1 }
  0x9b   :  { %8259 = vmatmul.mubr.bf16.gmra.mrb[60].mxu1 %v8386_v20  ;;  %8206 = vmatprep.mubr.bf16.mxu0 %v8387_v21  ;;  %v287_v20 = vmul.f32 %v9102_v62, %v275_v7  ;;  %v1138_v21 = vadd.f32 %v1106_v5, %v1038_v4 }
  0x9c   :  { %8262 = vmatprep.mubr.bf16.mxu1 %v8388_v22  ;;  %v1206_v22 = vmul.f32 %v9106_v0, %v1170_v8 }
  0xa2   :  { %8207 = vmatmul.mubr.bf16.gmra.mrb[56].mxu0 %v8389_v23  ;;  %v4277_v23 = vld [vmem:[#allocation4 + $0x9] sm:$0xff] }
  0xa3   :  { %8263 = vmatmul.mubr.bf16.gmra.mrb[64].mxu1 %v8390_v24  ;;  %8210 = vmatprep.mubr.bf16.mxu0 %v8391_v25  ;;  %v9132_v24 = vrot.slane %v7713_v48, %v341_v59  ;;  %v9135_v25 = vrot.slane %v7713_v48, %v9104_v63 }
  0xa4   :  { %8266 = vmatprep.mubr.bf16.mxu1 %v8392_v26  ;;  %v1139_v26 = vadd.f32 %v1106_v5, %v1039_v9  ;;  %v4412_v9 = vmul.f32 %v9117_v11, %v4280_v45 }
  0xa5   :  { %15017 = vst [vmem:[#allocation13_spill] sm:$0xff] %v9132_v24  ;;  %15018 = vst [vmem:[#allocation14_spill] sm:$0xff] %v9135_v25 }
  0xaa   :  { %8211 = vmatmul.mubr.bf16.gmra.mrb[60].mxu0 %v8393_v27  ;;  %v1207_v27 = vmul.f32 %v9106_v0, %v1171_v12 }
  0xab   :  { %8267 = vmatmul.mubr.bf16.gmra.mrb[68].mxu1 %v8394_v28  ;;  %8214 = vmatprep.mubr.bf16.mxu0 %v8395_v29  ;;  %v3632_v28 = vld [vmem:[#allocation4 + $0x1f] sm:$0xff]  ;;  %v9138_v29 = vrot.slane %v51_v49, %v313_v10 }
  0xac   :  { %8270 = vmatprep.mubr.bf16.mxu1 %v8396_v30  ;;  %v395_v30 = vld [vmem:[#allocation2 + $0xdf] sm:$0xff] }
  0xb2   :  { %8215 = vmatmul.mubr.bf16.gmra.mrb[64].mxu0 %v8397_v31  ;;  %v451_v31 = vld [vmem:[#allocation2 + $0xe1] sm:$0xff] }
  0xb3   :  { %8271 = vmatmul.mubr.bf16.gmra.mrb[72].mxu1 %v8398_v32  ;;  %8218 = vmatprep.mubr.bf16.mxu0 %v8399_v33  ;;  %v4149_v32 = vadd.f32 %v9121_v14, %v3761_v13  ;;  %v4409_v33 = vmul.f32 %v9117_v11, %v4277_v23 }
  0xb4   :  { %8274 = vmatprep.mubr.bf16.mxu1 %v8400_v34  ;;  %v3764_v34 = vmul.f32 %v9100_v61, %v3632_v28 }
  0xb5   :  { %v9181_v1 = vadd.f32 %v4409_v33, %v4149_v32 }
  0xb6   :  { %v4152_v3 = vadd.f32 %v9121_v14, %v3764_v34  ;;  %v3630_v34 = vld [vmem:[#allocation4 + $0xf] sm:$0xff] }
  0xb7   :  { %15025 = vst [vmem:[#allocation21_spill] sm:$0xff] %v9181_v1 }
  0xba   :  { %8219 = vmatmul.mubr.bf16.gmra.mrb[68].mxu0 %v8401_v35  ;;  %v9143_v35 = vrot.slane %v51_v49, %v369_v16 }
  0xbb   :  { %8275 = vmatmul.mubr.bf16.gmra.mrb[76].mxu1 %v8402_v36  ;;  %8222 = vmatprep.mubr.bf16.mxu0 %v8403_v37  ;;  %v9146_v36 = vrot.slane %v51_v49, %v9125_v17  ;;  %v9148_v37 = vrot.slane %v7713_v48, %v369_v16  ;;  %v9167_v49 = vadd.f32 %v1207_v27, %v1139_v26 }
  0xbc   :  { %8278 = vmatprep.mubr.bf16.mxu1 %v8404_v38  ;;  %v9150_v38 = vrot.slane %v7713_v48, %v313_v10 }
  0xbd   :  { %v9170_v50 = vmul.f32 %v9146_v36, %v395_v30 }
  0xbf   :  { %15021 = vst [vmem:[#allocation17_spill] sm:$0xff] %v9170_v50 }
  0xc2   :  { %8223 = vmatmul.mubr.bf16.gmra.mrb[72].mxu0 %v8405_v39  ;;  %v9155_v39 = vld [vmem:[%s14938_s4 + $0x8] ss:$0 sm:$0xff] }
  0xc3   :  { %8279 = vmatmul.mubr.bf16.gmra.mrb[80].mxu1 %v8406_v40  ;;  %8226 = vmatprep.mubr.bf16.mxu0 %v8407_v41  ;;  %v9158_v41 = vrot.slane %v9095_v56, %v369_v16  ;;  %v9176_v55 = vmul.f32 %v9155_v39, %v451_v31 }
  0xc4   :  { %8282 = vmatprep.mubr.bf16.mxu1 %v8408_v42  ;;  %v9161_v42 = vrot.slane %v7713_v48, %v9125_v17  ;;  %v9252_v17 = vmul.f32 %v9100_v61, %v3630_v34 }
  0xc5   :  { %15019 = vst [vmem:[#allocation15_spill] sm:$0xff] %v9158_v41  ;;  %15023 = vst [vmem:[#allocation19_spill] sm:$0xff] %v9176_v55 }
  0xc6   :  { %15020 = vst [vmem:[#allocation16_spill] sm:$0xff] %v9161_v42  ;;  %15030 = vst [vmem:[#allocation26_spill] sm:$0xff] %v9252_v17 }
  0xca   :  { %8227 = vmatmul.mubr.bf16.gmra.mrb[76].mxu0 %v8409_v43  ;;  %v9163_v43 = vadd.f32 %v287_v20, %v267_v19 }
  0xcb   :  { %8283 = vmatmul.mubr.bf16.gmra.mrb[84].mxu1 %v8410_v44  ;;  %v9165_v44 = vadd.f32 %v1206_v22, %v1138_v21 }
  0xf5   :  { %v8088_v40 = vpop.f32.mrb[0].mxu0 }
  0xf6   :  { %221 = vst [vmem:[#allocation2 + $0x50] sm:$0xff] %v8088_v40  ;;  %v8112_v46 = vpop.f32.mrb[0].mxu1  ;;  %v160_v47 = vpop.f32.mrb[1].mxu0  ;;  %v262_v4 = vmul.f32 %v8088_v40, %v9097_v58  ;;  %v9189_v5 = vmul.f32 %v8088_v40, %v9123_v15  ;;  %v9192_v7 = vmul.f32 %v8088_v40, %v9128_v18  ;;  %v3631_v40 = vld [vmem:[#allocation4 + $0x17] sm:$0xff] }
  0xf7   :  { %972 = vst [vmem:[#allocation3 + $0x48] sm:$0xff] %v8112_v46  ;;  %219 = vst [vmem:[#allocation2 + $0x20] sm:$0xff] %v160_v47  ;;  %v797_v48 = vpop.f32.mrb[1].mxu1  ;;  %v8089_v57 = vpop.f32.mrb[2].mxu0  ;;  %v1110_v12 = vmul.f32 %v8112_v46, %v9090_v54  ;;  %v9197_v56 = vmul.f32 %v8112_v46, %v9132_v24  ;;  %v9200_v10 = vmul.f32 %v8112_v46, %v9135_v25 }
  0xf8   :  { %970 = vst [vmem:[#allocation3 + $0x28] sm:$0xff] %v797_v48  ;;  %222 = vst [vmem:[#allocation2 + $0x68] sm:$0xff] %v8089_v57  ;;  %v8113_v8 = vpop.f32.mrb[2].mxu1  ;;  %v163_v59 = vpop.f32.mrb[3].mxu0  ;;  %v9203_v13 = vmul.f32 %v9097_v58, %v160_v47  ;;  %v9206_v19 = vmul.f32 %v9123_v15, %v160_v47  ;;  %v9209_v20 = vmul.f32 %v9090_v54, %v797_v48 }
  0xf9   :  { %15027 = vst [vmem:[#allocation23_spill] sm:$0xff] %v9197_v56  ;;  %973 = vst [vmem:[#allocation3 + $0x50] sm:$0xff] %v8113_v8  ;;  %v800_v16 = vpop.f32.mrb[3].mxu1  ;;  %v9212_v21 = vmul.f32 %v9132_v24, %v797_v48  ;;  %v9215_v22 = vmul.f32 %v8089_v57, %v9097_v58  ;;  %v9218_v23 = vmul.f32 %v8089_v57, %v9123_v15 }
  0xfa   :  { %220 = vst [vmem:[#allocation2 + $0x38] sm:$0xff] %v163_v59  ;;  %971 = vst [vmem:[#allocation3 + $0x30] sm:$0xff] %v800_v16  ;;  %v9221_v26 = vmul.f32 %v8089_v57, %v9128_v18  ;;  %v9224_v27 = vmul.f32 %v8113_v8, %v9090_v54  ;;  %v9227_v28 = vmul.f32 %v8113_v8, %v9132_v24 }
  0xfb   :  { %v9230_v30 = vmul.f32 %v8113_v8, %v9135_v25  ;;  %v9233_v31 = vmul.f32 %v9097_v58, %v163_v59  ;;  %v9236_v32 = vmul.f32 %v9123_v15, %v163_v59  ;;  %v9239_v33 = vmul.f32 %v9128_v18, %v163_v59 }
  0xfc   :  { %15028 = vst [vmem:[#allocation24_spill] sm:$0xff] %v9227_v28  ;;  %v9242_v47 = vmul.f32 %v9090_v54, %v800_v16  ;;  %v9245_v48 = vmul.f32 %v9132_v24, %v800_v16  ;;  %v9249_v8 = vadd.f32 %v4412_v9, %v4152_v3  ;;  %v9265_v3 = vmul.f32 %v9100_v61, %v3631_v40 }
  0xfd   :  { %v230_v45 = vld [vmem:[#allocation2 + $0x4f] sm:$0xff]  ;;  %v9247_v57 = vpop.f32.mrb[4].mxu0 }
  0xfe   :  { %v278_v46 = vld [vmem:[#allocation2 + $0x51] sm:$0xff]  ;;  %15029 = vst [vmem:[#allocation25_spill] sm:$0xff] %v9249_v8  ;;  %v242_v59 = vmul.f32 %v9086_v51, %v230_v45  ;;  %v9257_v14 = vmul.f32 %v9138_v29, %v230_v45  ;;  %v228_v11 = vld [vmem:[#allocation2 + $0x1f] sm:$0xff]  ;;  %225 = vst [vmem:[#allocation2 + $0xb0] sm:$0xff] %v9247_v57  ;;  %v9260_v16 = vpop.f32.mrb[4].mxu1  ;;  %v9262_v2 = vpop.f32.mrb[5].mxu0  ;;  %v9271_v34 = vmul.f32 %v9146_v36, %v230_v45 }
  0xff   :  { %v290_v63 = vmul.f32 %v9102_v62, %v278_v46  ;;  %v1006_v41 = vld [vmem:[#allocation3 + $0x47] sm:$0xff]  ;;  %v276_v1 = vld [vmem:[#allocation2 + $0x21] sm:$0xff]  ;;  %15031 = vst [vmem:[#allocation27_spill] sm:$0xff] %v9260_v16  ;;  %15032 = vst [vmem:[#allocation28_spill] sm:$0xff] %v9262_v2  ;;  %v9268_v9 = vmul.f32 %v9143_v35, %v278_v46  ;;  %v9274_v17 = vmul.f32 %v9155_v39, %v278_v46  ;;  %v9279_v28 = vpop.f32.mrb[5].mxu1  ;;  %v9281_v40 = vpop.f32.mrb[6].mxu0 }
 0x100   :  { %15033 = vst [vmem:[#allocation29_spill] sm:$0xff] %v9265_v3  ;;  %v1042_v8 = vmul.f32 %v9088_v53, %v1006_v41  ;;  %v1004_v60 = vld [vmem:[#allocation3 + $0x27] sm:$0xff]  ;;  %v231_v6 = vld [vmem:[#allocation2 + $0x67] sm:$0xff]  ;;  %976 = vst [vmem:[#allocation3 + $0x88] sm:$0xff] %v9260_v16  ;;  %v270_v3 = vadd.f32 %v262_v4, %v242_v59  ;;  %v9284_v61 = vmul.f32 %v9150_v38, %v1006_v41  ;;  %v9292_v55 = vpop.f32.mrb[6].mxu1  ;;  %v9294_v52 = vpop.f32.mrb[7].mxu0 }
 0x101   :  { %223 = vst [vmem:[#allocation2 + $0x80] sm:$0xff] %v9262_v2  ;;  %15034 = vst [vmem:[#allocation30_spill] sm:$0xff] %v9279_v28  ;;  %v9287_v45 = vmul.f32 %v9161_v42, %v1006_v41  ;;  %v240_v46 = vmul.f32 %v9086_v51, %v228_v11  ;;  %v288_v56 = vmul.f32 %v9102_v62, %v276_v1  ;;  %v279_v25 = vld [vmem:[#allocation2 + $0x69] sm:$0xff]  ;;  %v9301_v41 = vpop.f32.mrb[7].mxu1  ;;  %v1174_v16 = vld [vmem:[#allocation3 + $0x49] sm:$0xff] }
 0x102   :  { %15035 = vst [vmem:[#allocation31_spill] sm:$0xff] %v9281_v40  ;;  %974 = vst [vmem:[#allocation3 + $0x68] sm:$0xff] %v9279_v28  ;;  %v1142_v50 = vadd.f32 %v1110_v12, %v1042_v8  ;;  %v315_v4 = vmul.f32 %v9138_v29, %v228_v11  ;;  %v1040_v59 = vmul.f32 %v9088_v53, %v1004_v60 }
 0x103   :  { %226 = vst [vmem:[#allocation2 + $0xc8] sm:$0xff] %v9281_v40  ;;  %15036 = vst [vmem:[#allocation32_spill] sm:$0xff] %v9292_v55  ;;  %v298_v28 = vadd.f32 %v290_v63, %v270_v3  ;;  %v268_v40 = vadd.f32 %v9203_v13, %v240_v46  ;;  %v1306_v2 = vmul.f32 %v9150_v38, %v1004_v60  ;;  %v1175_v46 = vld [vmem:[#allocation3 + $0x51] sm:$0xff] }
 0x104   :  { %15037 = vst [vmem:[#allocation33_spill] sm:$0xff] %v9294_v52  ;;  %977 = vst [vmem:[#allocation3 + $0x90] sm:$0xff] %v9292_v55  ;;  %v243_v12 = vmul.f32 %v9086_v51, %v231_v6  ;;  %v323_v11 = vadd.f32 %v315_v4, %v9163_v43  ;;  %v371_v8 = vmul.f32 %v9143_v35, %v276_v1  ;;  %v1007_v55 = vld [vmem:[#allocation3 + $0x4f] sm:$0xff] }
 0x105   :  { %224 = vst [vmem:[#allocation2 + $0x98] sm:$0xff] %v9294_v52  ;;  %15038 = vst [vmem:[#allocation34_spill] sm:$0xff] %v9301_v41  ;;  %v9310_v24 = vadd.f32 %v9209_v20, %v1040_v59  ;;  %v318_v52 = vmul.f32 %v9138_v29, %v231_v6  ;;  %v296_v63 = vadd.f32 %v288_v56, %v268_v40 }
 0x106   :  { %975 = vst [vmem:[#allocation3 + $0x70] sm:$0xff] %v9301_v41  ;;  %v1338_v13 = vadd.f32 %v1306_v2, %v9165_v44  ;;  %v271_v60 = vadd.f32 %v9215_v22, %v243_v12  ;;  %v291_v3 = vmul.f32 %v9102_v62, %v279_v25  ;;  %v351_v41 = vadd.f32 %v9206_v19, %v323_v11  ;;  %v9328_v44 = vld [vmem:[%s14938_s4 + $0x18] ss:$0 sm:$0xff] }
 0x107   :  { %v326_v43 = vadd.f32 %v318_v52, %v298_v28  ;;  %v374_v1 = vmul.f32 %v9143_v35, %v279_v25  ;;  %v9319_v20 = vmul.f32 %v9146_v36, %v231_v6  ;;  %v9323_v59 = vmul.f32 %v9155_v39, %v279_v25  ;;  %15039 = vst [vmem:[#allocation35_spill] sm:$0xff] %v9328_v44  ;;  %v9332_v52 = vpop.f32.mrb[8].mxu1  ;;  %v229_v25 = vld [vmem:[#allocation2 + $0x37] sm:$0xff] }
 0x108   :  { %v1438_v4 = vadd.f32 %v9212_v21, %v1338_v13  ;;  %v1043_v2 = vmul.f32 %v9088_v53, %v1007_v55  ;;  %v1210_v56 = vmul.f32 %v9106_v0, %v1174_v16  ;;  %15040 = vst [vmem:[#allocation36_spill] sm:$0xff] %v9332_v52  ;;  %v379_v19 = vadd.f32 %v371_v8, %v351_v41  ;;  %v9339_v28 = vpop.f32.mrb[9].mxu1  ;;  %v277_v8 = vld [vmem:[#allocation2 + $0x39] sm:$0xff] }
 0x109   :  { %v9334_v22 = vadd.f32 %v291_v3, %v271_v60  ;;  %v354_v6 = vadd.f32 %v9218_v23, %v326_v43  ;;  %v1211_v21 = vmul.f32 %v9106_v0, %v1175_v46  ;;  %980 = vst [vmem:[#allocation3 + $0xc8] sm:$0xff] %v9332_v52  ;;  %15042 = vst [vmem:[#allocation38_spill] sm:$0xff] %v9339_v28  ;;  %v1005_v13 = vld [vmem:[#allocation3 + $0x2f] sm:$0xff]  ;;  %v9351_v23 = vpop.f32.mrb[10].mxu1 }
 0x10a   :  { %v1143_v40 = vadd.f32 %v9224_v27, %v1043_v2  ;;  %v9342_v12 = vadd.f32 %v1210_v56, %v1142_v50  ;;  %v9345_v11 = vmul.f32 %v9150_v38, %v1007_v55  ;;  %v9348_v41 = vmul.f32 %v9148_v37, %v1174_v16  ;;  %978 = vst [vmem:[#allocation3 + $0xa8] sm:$0xff] %v9339_v28  ;;  %v1172_v43 = vld [vmem:[#allocation3 + $0x29] sm:$0xff]  ;;  %v1173_v2 = vld [vmem:[#allocation3 + $0x31] sm:$0xff]  ;;  %v9365_v56 = vpop.f32.mrb[11].mxu1 }
 0x10b   :  { %15041 = vst [vmem:[#allocation37_spill] sm:$0xff] %v9334_v22  ;;  %15045 = vst [vmem:[#allocation41_spill] sm:$0xff] %v9351_v23  ;;  %v9353_v60 = vadd.f32 %v374_v1, %v354_v6  ;;  %v9356_v3 = vmul.f32 %v9148_v37, %v1175_v46  ;;  %v9359_v50 = vmul.f32 %v9161_v42, %v1007_v55 }
 0x10c   :  { %15043 = vst [vmem:[#allocation39_spill] sm:$0xff] %v9342_v12  ;;  %15044 = vst [vmem:[#allocation40_spill] sm:$0xff] %v9348_v41  ;;  %v9362_v27 = vmul.f32 %v9328_v44, %v1174_v16  ;;  %v9367_v28 = vadd.f32 %v1211_v21, %v1143_v40  ;;  %v9370_v1 = vmul.f32 %v9328_v44, %v1175_v46 }
 0x10d   :  { %15046 = vst [vmem:[#allocation42_spill] sm:$0xff] %v9353_v60  ;;  %15047 = vst [vmem:[#allocation43_spill] sm:$0xff] %v9356_v3  ;;  %v241_v6 = vmul.f32 %v9086_v51, %v229_v25  ;;  %v316_v52 = vmul.f32 %v9138_v29, %v229_v25  ;;  %v289_v55 = vmul.f32 %v9102_v62, %v277_v8  ;;  %v234_v60 = vld [vmem:[#allocation2 + $0xaf] sm:$0xff] }
 0x10e   :  { %981 = vst [vmem:[#allocation3 + $0xd0] sm:$0xff] %v9351_v23  ;;  %15048 = vst [vmem:[#allocation44_spill] sm:$0xff] %v9365_v56  ;;  %v372_v16 = vmul.f32 %v9143_v35, %v277_v8  ;;  %v400_v3 = vmul.f32 %v9146_v36, %v229_v25  ;;  %v1041_v23 = vmul.f32 %v9088_v53, %v1005_v13 }
 0x10f   :  { %15049 = vst [vmem:[#allocation45_spill] sm:$0xff] %v9367_v28  ;;  %979 = vst [vmem:[#allocation3 + $0xb0] sm:$0xff] %v9365_v56  ;;  %v269_v21 = vadd.f32 %v9233_v31, %v241_v6  ;;  %v324_v40 = vadd.f32 %v316_v52, %v296_v63  ;;  %v1208_v46 = vmul.f32 %v9106_v0, %v1172_v43  ;;  %v9388_v63 = vpop.f32.mrb[12].mxu1 }
 0x110   :  { %v1209_v28 = vmul.f32 %v9106_v0, %v1173_v2  ;;  %v408_v44 = vadd.f32 %v400_v3, %v379_v19  ;;  %v1141_v41 = vadd.f32 %v9242_v47, %v1041_v23  ;;  %v1307_v56 = vmul.f32 %v9150_v38, %v1005_v13  ;;  %15050 = vst [vmem:[#allocation46_spill] sm:$0xff] %v9388_v63  ;;  %v9392_v23 = vld [vmem:[#allocation2 + $0xb1] sm:$0xff]  ;;  %v9395_v13 = vpop.f32.mrb[13].mxu1 }
 0x111   :  { %v1506_v12 = vmul.f32 %v9148_v37, %v1172_v43  ;;  %v297_v22 = vadd.f32 %v289_v55, %v269_v21  ;;  %v352_v25 = vadd.f32 %v9236_v32, %v324_v40  ;;  %v456_v42 = vmul.f32 %v9155_v39, %v277_v8  ;;  %984 = vst [vmem:[#allocation3 + $0x108] sm:$0xff] %v9388_v63  ;;  %v9400_v32 = vld [vmem:[%s14939_s5] ss:$0 sm:$0xff] }
 0x112   :  { %v1240_v31 = vadd.f32 %v1208_v46, %v9310_v24  ;;  %v436_v52 = vadd.f32 %v9239_v33, %v408_v44  ;;  %v1241_v6 = vadd.f32 %v1209_v28, %v1141_v41  ;;  %v1339_v19 = vadd.f32 %v1307_v56, %v9167_v49  ;;  %15051 = vst [vmem:[#allocation47_spill] sm:$0xff] %v9395_v13  ;;  %v9406_v49 = vpop.f32.mrb[14].mxu1  ;;  %v9433_v56 = vld [vmem:[%s14939_s5 + $0x1] ss:$0 sm:$0xff] }
 0x113   :  { %v1538_v47 = vadd.f32 %v1506_v12, %v1438_v4  ;;  %v325_v24 = vadd.f32 %v9257_v14, %v297_v22  ;;  %v380_v8 = vadd.f32 %v372_v16, %v352_v25  ;;  %v1507_v33 = vmul.f32 %v9148_v37, %v1173_v2  ;;  %982 = vst [vmem:[#allocation3 + $0xe8] sm:$0xff] %v9395_v13  ;;  %v9414_v14 = vpop.f32.mrb[15].mxu1 }
 0x114   :  { %v246_v44 = vmul.f32 %v9086_v51, %v234_v60  ;;  %15052 = vst [vmem:[#allocation48_spill] sm:$0xff] %v9406_v49  ;;  %v464_v4 = vadd.f32 %v456_v42, %v436_v52  ;;  %v9409_v28 = vadd.f32 %v9284_v61, %v1240_v31  ;;  %v1439_v12 = vadd.f32 %v9245_v48, %v1339_v19 }
 0x115   :  { %v1639_v41 = vadd.f32 %v9287_v45, %v1538_v47  ;;  %985 = vst [vmem:[#allocation3 + $0x110] sm:$0xff] %v9406_v49  ;;  %15053 = vst [vmem:[#allocation49_spill] sm:$0xff] %v9414_v14  ;;  %v353_v22 = vadd.f32 %v9189_v5, %v325_v24  ;;  %v409_v3 = vadd.f32 %v9271_v34, %v380_v8  ;;  %v281_v49 = vld [vmem:[#allocation2 + $0x99] sm:$0xff] }
 0x116   :  { %v266_v43 = vmul.f32 %v9247_v57, %v9097_v58  ;;  %v294_v42 = vmul.f32 %v9102_v62, %v9392_v23  ;;  %983 = vst [vmem:[#allocation3 + $0xf0] sm:$0xff] %v9414_v14  ;;  %v478_v61 = vadd.f32 %v9400_v32, %v464_v4  ;;  %v9425_v48 = vadd.f32 %v9345_v11, %v1241_v6  ;;  %v232_v4 = vld [vmem:[#allocation2 + $0x7f] sm:$0xff] }
 0x117   :  { %v1539_v45 = vadd.f32 %v1507_v33, %v1439_v12  ;;  %v1739_v2 = vadd.f32 %v9200_v10, %v1639_v41  ;;  %v381_v5 = vadd.f32 %v9268_v9, %v353_v22  ;;  %v437_v34 = vadd.f32 %v9192_v7, %v409_v3  ;;  %v1010_v9 = vld [vmem:[#allocation3 + $0x87] sm:$0xff]  ;;  %v9444_v7 = vpop.f32.mrb[8].mxu0 }
 0x118   :  { %v274_v55 = vadd.f32 %v266_v43, %v246_v44  ;;  %v9436_v16 = vmul.f32 %v9138_v29, %v234_v60  ;;  %v486_v21 = vmax.f32 %v478_v61, 0.0  ;;  %v9442_v10 = vmul.f32 %v9247_v57, %v9123_v15  ;;  %15054 = vst [vmem:[#allocation50_spill] sm:$0xff] %v9444_v7  ;;  %3503 = vst [vmem:[#allocation4 + $0x48] sm:$0xff] %v9444_v7  ;;  %v15057_v44 = vld [vmem:[#allocation27_spill] sm:$0xff] }
 0x119   :  { %v1640_v11 = vadd.f32 %v9359_v50, %v1539_v45  ;;  %v1839_v40 = vadd.f32 %v9362_v27, %v1739_v2  ;;  %v410_v46 = vadd.f32 %v9319_v20, %v381_v5  ;;  %v465_v25 = vadd.f32 %v9274_v17, %v437_v34  ;;  %v9454_v50 = vpop.f32.mrb[16].mxu1  ;;  %v2908_v27 = vpop.f32.mrb[9].mxu0  ;;  %v15058_v2 = vld [vmem:[#allocation13_spill] sm:$0xff]  ;;  %v15059_v34 = vld [vmem:[#allocation16_spill] sm:$0xff] }
 0x11a   :  { %v9448_v31 = vadd.f32 %v294_v42, %v274_v55  ;;  %v9452_v52 = vmul.f32 %v9143_v35, %v9392_v23  ;;  %15055 = vst [vmem:[#allocation51_spill] sm:$0xff] %v9454_v50  ;;  %494 = vst [vmem:[%s14941_s8] sm:$0xff] %v486_v21  ;;  %v9475_v6 = vmul.f32 %v9146_v36, %v234_v60  ;;  %v9482_v47 = vpop.f32.mrb[17].mxu1  ;;  %v8161_v24 = vpop.f32.mrb[10].mxu0 }
 0x11b   :  { %502 = vst [vmem:[%s14940_s7] ss:$2 sm:$0xff] %v486_v21  ;;  %7666 = vst [vmem:[%s14940_s7 + $0x10] ss:$2 sm:$0xff] %v486_v21  ;;  %v1740_v17 = vadd.f32 %v9230_v30, %v1640_v11  ;;  %v1877_v20 = vadd.f32 %v9433_v56, %v1839_v40  ;;  %v9479_v19 = vmul.f32 %v9247_v57, %v9128_v18  ;;  %v8129_v57 = vpop.f32.mrb[18].mxu1  ;;  %v2911_v12 = vpop.f32.mrb[11].mxu0  ;;  %v15060_v11 = vld [vmem:[#allocation28_spill] sm:$0xff] }
 0x11c   :  { %7681 = vst [vmem:[%s14940_s7 + $0x1] ss:$2 sm:$0xff] %v486_v21  ;;  %7682 = vst [vmem:[%s14940_s7 + $0x11] ss:$2 sm:$0xff] %v486_v21  ;;  %v438_v8 = vadd.f32 %v9221_v26, %v410_v46  ;;  %v479_v33 = vadd.f32 %v9400_v32, %v465_v25  ;;  %v1046_v30 = vmul.f32 %v9088_v53, %v1010_v9  ;;  %v864_v43 = vpop.f32.mrb[19].mxu1 }
 0x11d   :  { %988 = vst [vmem:[#allocation3 + $0x148] sm:$0xff] %v9454_v50  ;;  %15056 = vst [vmem:[#allocation52_spill] sm:$0xff] %v9482_v47  ;;  %v1114_v60 = vmul.f32 %v15057_v44, %v9090_v54  ;;  %v1840_v41 = vadd.f32 %v9370_v1, %v1740_v17  ;;  %v1909_v22 = vmax.f32 %v1877_v20, 0.0  ;;  %v9493_v3 = vmul.f32 %v9155_v39, %v9392_v23  ;;  %v280_v1 = vld [vmem:[#allocation2 + $0x81] sm:$0xff] }
 0x11e   :  { %3501 = vst [vmem:[#allocation4 + $0x38] sm:$0xff] %v2908_v27  ;;  %986 = vst [vmem:[#allocation3 + $0x128] sm:$0xff] %v9482_v47  ;;  %v9496_v26 = vmul.f32 %v9150_v38, %v1010_v9  ;;  %v466_v42 = vadd.f32 %v9323_v59, %v438_v8  ;;  %v487_v61 = vmax.f32 %v479_v33, 0.0  ;;  %v9503_v5 = vmul.f32 %v15057_v44, %v15058_v2  ;;  %v1008_v33 = vld [vmem:[#allocation3 + $0x67] sm:$0xff] }
 0x11f   :  { %3504 = vst [vmem:[#allocation4 + $0x50] sm:$0xff] %v8161_v24  ;;  %989 = vst [vmem:[#allocation3 + $0x150] sm:$0xff] %v8129_v57  ;;  %v9499_v45 = vadd.f32 %v1114_v60, %v1046_v30  ;;  %v1878_v23 = vadd.f32 %v9433_v56, %v1840_v41  ;;  %v9507_v55 = vmul.f32 %v15059_v34, %v1010_v9  ;;  %v15061_v9 = vld [vmem:[#allocation14_spill] sm:$0xff]  ;;  %v8164_v30 = vpop.f32.mrb[12].mxu0 }
 0x120   :  { %3502 = vst [vmem:[#allocation4 + $0x40] sm:$0xff] %v2911_v12  ;;  %987 = vst [vmem:[#allocation3 + $0x130] sm:$0xff] %v864_v43  ;;  %v244_v21 = vmul.f32 %v9086_v51, %v232_v4  ;;  %v264_v40 = vmul.f32 %v9097_v58, %v15060_v11  ;;  %v480_v59 = vadd.f32 %v9400_v32, %v466_v42  ;;  %v15062_v12 = vld [vmem:[#allocation37_spill] sm:$0xff] }
 0x121   :  { %495 = vst [vmem:[%s14941_s8 + $0x8] sm:$0xff] %v487_v61  ;;  %7667 = vst [vmem:[%s14940_s7 + $0x20] ss:$2 sm:$0xff] %v487_v61  ;;  %v9530_v46 = vmul.f32 %v15057_v44, %v15061_v9  ;;  %v319_v25 = vmul.f32 %v9138_v29, %v232_v4  ;;  %v347_v27 = vmul.f32 %v9123_v15, %v15060_v11  ;;  %v1910_v17 = vmax.f32 %v1878_v23, 0.0 }
 0x122   :  { %7683 = vst [vmem:[%s14940_s7 + $0x21] ss:$2 sm:$0xff] %v487_v61  ;;  %7668 = vst [vmem:[%s14940_s7 + $0x30] ss:$2 sm:$0xff] %v487_v61  ;;  %v272_v20 = vadd.f32 %v264_v40, %v244_v21  ;;  %v292_v24 = vmul.f32 %v9102_v62, %v280_v1  ;;  %v403_v8 = vmul.f32 %v9146_v36, %v232_v4  ;;  %v488_v60 = vmax.f32 %v480_v59, 0.0  ;;  %v2924_v4 = vpop.f32.mrb[13].mxu0 }
 0x123   :  { %7684 = vst [vmem:[%s14940_s7 + $0x31] ss:$2 sm:$0xff] %v487_v61  ;;  %v1941_v57 = vld [vmem:[%s14940_s7] sm:$0xff]  ;;  %v1942_v44 = vld [vmem:[%s14940_s7 + $0x8] sm:$0xff]  ;;  %v327_v41 = vadd.f32 %v319_v25, %v15062_v12  ;;  %v375_v43 = vmul.f32 %v9143_v35, %v280_v1  ;;  %v431_v42 = vmul.f32 %v9128_v18, %v15060_v11  ;;  %v8132_v61 = vpop.f32.mrb[20].mxu1  ;;  %3507 = vst [vmem:[#allocation4 + $0x78] sm:$0xff] %v8164_v30 }
 0x124   :  { %v1973_v23 = vadd.f32 %v1941_v57, %v1909_v22  ;;  %v1974_v21 = vadd.f32 %v1942_v44, %v1910_v17  ;;  %v15063_v40 = vld [vmem:[#allocation42_spill] sm:$0xff]  ;;  %v459_v47 = vmul.f32 %v9155_v39, %v280_v1  ;;  %992 = vst [vmem:[#allocation3 + $0x188] sm:$0xff] %v8132_v61  ;;  %v877_v7 = vpop.f32.mrb[21].mxu1  ;;  %3505 = vst [vmem:[#allocation4 + $0x68] sm:$0xff] %v2924_v4  ;;  %v8165_v50 = vpop.f32.mrb[14].mxu0  ;;  %v15065_v44 = vld [vmem:[#allocation23_spill] sm:$0xff] }
 0x125   :  { %v411_v59 = vadd.f32 %v403_v8, %v15063_v40  ;;  %496 = vst [vmem:[%s14941_s8 + $0x10] sm:$0xff] %v488_v60  ;;  %7669 = vst [vmem:[%s14940_s7 + $0x40] ss:$2 sm:$0xff] %v488_v60  ;;  %v355_v22 = vadd.f32 %v347_v27, %v327_v41  ;;  %v1044_v1 = vmul.f32 %v9088_v53, %v1008_v33  ;;  %v15064_v11 = vld [vmem:[#allocation30_spill] sm:$0xff]  ;;  %v310_v8 = vld [vmem:[#allocation2 + $0xc7] sm:$0xff]  ;;  %v8133_v30 = vpop.f32.mrb[22].mxu1 }
 0x126   :  { %7670 = vst [vmem:[%s14940_s7 + $0x50] ss:$2 sm:$0xff] %v488_v60  ;;  %7685 = vst [vmem:[%s14940_s7 + $0x41] ss:$2 sm:$0xff] %v488_v60  ;;  %v1112_v25 = vmul.f32 %v9090_v54, %v15064_v11  ;;  %v1310_v17 = vmul.f32 %v9150_v38, %v1008_v33  ;;  %v2927_v57 = vpop.f32.mrb[15].mxu0  ;;  %v9574_v27 = vadd.f32 %v292_v24, %v272_v20  ;;  %v15066_v24 = vld [vmem:[#allocation39_spill] sm:$0xff] }
 0x127   :  { %7686 = vst [vmem:[%s14940_s7 + $0x51] ss:$2 sm:$0xff] %v488_v60  ;;  %990 = vst [vmem:[#allocation3 + $0x168] sm:$0xff] %v877_v7  ;;  %v439_v60 = vadd.f32 %v431_v42, %v411_v59  ;;  %v1440_v12 = vadd.f32 %v15065_v44, %v9409_v28  ;;  %v1609_v41 = vmul.f32 %v15059_v34, %v1008_v33  ;;  %v366_v7 = vld [vmem:[#allocation2 + $0xc9] sm:$0xff]  ;;  %v880_v28 = vpop.f32.mrb[23].mxu1  ;;  %v15068_v59 = vld [vmem:[#allocation31_spill] sm:$0xff] }
 0x128   :  { %3508 = vst [vmem:[#allocation4 + $0x80] sm:$0xff] %v8165_v50  ;;  %2005 = vst [vmem:[%s14940_s7] sm:$0xff] %v1973_v23  ;;  %v383_v50 = vadd.f32 %v375_v43, %v355_v22  ;;  %v9603_v20 = vadd.f32 %v1112_v25, %v1044_v1  ;;  %v1342_v33 = vadd.f32 %v1310_v17, %v15066_v24  ;;  %v15067_v4 = vld [vmem:[#allocation40_spill] sm:$0xff]  ;;  %v1178_v44 = vld [vmem:[#allocation3 + $0x89] sm:$0xff] }
 0x129   :  { %2006 = vst [vmem:[%s14940_s7 + $0x8] sm:$0xff] %v1974_v21  ;;  %2037 = vst [vmem:[%s14942_s6] ss:$2 sm:$0xff] %v1973_v23  ;;  %v1410_v42 = vmul.f32 %v15058_v2, %v15064_v11  ;;  %v467_v61 = vadd.f32 %v459_v47, %v439_v60  ;;  %v1540_v40 = vadd.f32 %v15067_v4, %v1440_v12  ;;  %v15069_v24 = vld [vmem:[#allocation32_spill] sm:$0xff] }
 0x12a   :  { %7742 = vst [vmem:[%s14942_s6 + $0x10] ss:$2 sm:$0xff] %v1974_v21  ;;  %7743 = vst [vmem:[%s14942_s6 + $0x20] ss:$2 sm:$0xff] %v1973_v23  ;;  %v1709_v22 = vmul.f32 %v15061_v9, %v15064_v11  ;;  %v378_v1 = vmul.f32 %v9143_v35, %v366_v7  ;;  %v9620_v47 = vmul.f32 %v9146_v36, %v310_v8 }
 0x12b   :  { %7744 = vst [vmem:[%s14942_s6 + $0x30] ss:$2 sm:$0xff] %v1974_v21  ;;  %7805 = vst [vmem:[%s14942_s6 + $0x1] ss:$2 sm:$0xff] %v1973_v23  ;;  %v9614_v43 = vadd.f32 %v1410_v42, %v1342_v33  ;;  %v481_v25 = vadd.f32 %v9400_v32, %v467_v61  ;;  %v1641_v17 = vadd.f32 %v1609_v41, %v1540_v40  ;;  %v233_v61 = vld [vmem:[#allocation2 + $0x97] sm:$0xff] }
 0x12c   :  { %7806 = vst [vmem:[%s14942_s6 + $0x11] ss:$2 sm:$0xff] %v1974_v21  ;;  %7807 = vst [vmem:[%s14942_s6 + $0x21] ss:$2 sm:$0xff] %v1973_v23  ;;  %v322_v23 = vmul.f32 %v9138_v29, %v310_v8  ;;  %v9626_v12 = vmul.f32 %v15068_v59, %v9128_v18  ;;  %v1115_v33 = vmul.f32 %v15069_v24, %v9090_v54 }
 0x12d   :  { %7808 = vst [vmem:[%s14942_s6 + $0x31] ss:$2 sm:$0xff] %v1974_v21  ;;  %993 = vst [vmem:[#allocation3 + $0x190] sm:$0xff] %v8133_v30  ;;  %v350_v21 = vmul.f32 %v15068_v59, %v9123_v15  ;;  %v1011_v30 = vld [vmem:[#allocation3 + $0x8f] sm:$0xff]  ;;  %v1214_v11 = vmul.f32 %v9106_v0, %v1178_v44  ;;  %v489_v42 = vmax.f32 %v481_v25, 0.0  ;;  %v9634_v4 = vadd.f32 %v1709_v22, %v1641_v17 }
 0x12e   :  { %3506 = vst [vmem:[#allocation4 + $0x70] sm:$0xff] %v2927_v57  ;;  %991 = vst [vmem:[#allocation3 + $0x170] sm:$0xff] %v880_v28  ;;  %v9612_v57 = vld [vmem:[#allocation3 + $0x91] sm:$0xff]  ;;  %v330_v60 = vadd.f32 %v322_v23, %v9448_v31  ;;  %v1047_v28 = vmul.f32 %v9088_v53, %v1011_v30  ;;  %v9637_v31 = vmul.f32 %v9155_v39, %v366_v7 }
 0x12f   :  { %v1215_v8 = vmul.f32 %v9106_v0, %v9612_v57  ;;  %v9640_v23 = vadd.f32 %v1214_v11, %v9499_v45  ;;  %v9643_v59 = vmul.f32 %v9150_v38, %v1011_v30  ;;  %v9647_v14 = vmul.f32 %v15069_v24, %v15058_v2  ;;  %497 = vst [vmem:[%s14941_s8 + $0x18] sm:$0xff] %v489_v42 }
 0x130   :  { %v358_v41 = vadd.f32 %v350_v21, %v330_v60  ;;  %v1147_v40 = vadd.f32 %v1115_v33, %v1047_v28  ;;  %7671 = vst [vmem:[%s14940_s7 + $0x60] ss:$2 sm:$0xff] %v489_v42  ;;  %7672 = vst [vmem:[%s14940_s7 + $0x70] ss:$2 sm:$0xff] %v489_v42  ;;  %v9665_v7 = vmul.f32 %v9148_v37, %v1178_v44  ;;  %v15075_v60 = vld [vmem:[#allocation35_spill] sm:$0xff]  ;;  %v15076_v33 = vld [vmem:[#allocation17_spill] sm:$0xff] }
 0x131   :  { %15070 = vst [vmem:[#allocation27_spill] sm:$0xff] %v9640_v23  ;;  %15071 = vst [vmem:[#allocation13_spill] sm:$0xff] %v9647_v14  ;;  %v9669_v21 = vmul.f32 %v9148_v37, %v9612_v57  ;;  %v9672_v22 = vmul.f32 %v15059_v34, %v1011_v30  ;;  %v9678_v17 = vmul.f32 %v15069_v24, %v15061_v9 }
 0x132   :  { %7687 = vst [vmem:[%s14940_s7 + $0x61] ss:$2 sm:$0xff] %v489_v42  ;;  %7688 = vst [vmem:[%s14940_s7 + $0x71] ss:$2 sm:$0xff] %v489_v42  ;;  %v386_v45 = vadd.f32 %v378_v1, %v358_v41  ;;  %v9674_v25 = vadd.f32 %v1215_v8, %v1147_v40  ;;  %v9681_v28 = vmul.f32 %v15075_v60, %v1178_v44  ;;  %v15077_v42 = vld [vmem:[#allocation33_spill] sm:$0xff]  ;;  %v1009_v8 = vld [vmem:[#allocation3 + $0x6f] sm:$0xff] }
 0x133   :  { %15072 = vst [vmem:[#allocation16_spill] sm:$0xff] %v9665_v7  ;;  %15073 = vst [vmem:[#allocation28_spill] sm:$0xff] %v9669_v21  ;;  %v245_v1 = vmul.f32 %v9086_v51, %v233_v61  ;;  %v265_v41 = vmul.f32 %v9097_v58, %v15077_v42  ;;  %v293_v13 = vmul.f32 %v9102_v62, %v281_v49  ;;  %v9689_v40 = vld [vmem:[#allocation3 + $0x69] sm:$0xff] }
 0x134   :  { %15074 = vst [vmem:[#allocation14_spill] sm:$0xff] %v9674_v25  ;;  %v415_v11 = vadd.f32 %v15076_v33, %v386_v45  ;;  %v320_v30 = vmul.f32 %v9138_v29, %v233_v61  ;;  %v348_v24 = vmul.f32 %v9123_v15, %v15077_v42  ;;  %v376_v44 = vmul.f32 %v9143_v35, %v281_v49  ;;  %v9697_v45 = vld [vmem:[#allocation3 + $0x71] sm:$0xff]  ;;  %v15078_v58 = vld [vmem:[#allocation18_spill] sm:$0xff] }
 0x135   :  { %v404_v63 = vmul.f32 %v9146_v36, %v233_v61  ;;  %v432_v51 = vmul.f32 %v9128_v18, %v15077_v42  ;;  %v273_v62 = vadd.f32 %v265_v41, %v245_v1  ;;  %v460_v21 = vmul.f32 %v9155_v39, %v281_v49  ;;  %v15079_v15 = vld [vmem:[#allocation34_spill] sm:$0xff]  ;;  %v8136_v61 = vpop.f32.mrb[24].mxu1  ;;  %v8168_v18 = vpop.f32.mrb[16].mxu0  ;;  %v15080_v42 = vld [vmem:[#allocation19_spill] sm:$0xff] }
 0x136   :  { %v443_v33 = vadd.f32 %v15078_v58, %v415_v11  ;;  %v328_v29 = vadd.f32 %v320_v30, %v9574_v27  ;;  %v1045_v14 = vmul.f32 %v9088_v53, %v1009_v8  ;;  %v1113_v35 = vmul.f32 %v9090_v54, %v15079_v15  ;;  %996 = vst [vmem:[#allocation3 + $0x1c8] sm:$0xff] %v8136_v61  ;;  %v893_v39 = vpop.f32.mrb[25].mxu1  ;;  %v1014_v61 = vld [vmem:[#allocation3 + $0xc7] sm:$0xff] }
 0x137   :  { %v412_v25 = vadd.f32 %v404_v63, %v383_v50  ;;  %v1212_v36 = vmul.f32 %v9106_v0, %v9689_v40  ;;  %v301_v23 = vadd.f32 %v293_v13, %v273_v62  ;;  %v1213_v27 = vmul.f32 %v9106_v0, %v9697_v45  ;;  %3511 = vst [vmem:[#allocation4 + $0xa8] sm:$0xff] %v8168_v18  ;;  %v2940_v63 = vpop.f32.mrb[17].mxu0 }
 0x138   :  { %v471_v7 = vadd.f32 %v15080_v42, %v443_v33  ;;  %v356_v11 = vadd.f32 %v348_v24, %v328_v29  ;;  %v1145_v50 = vadd.f32 %v1113_v35, %v1045_v14  ;;  %v1311_v41 = vmul.f32 %v9150_v38, %v1009_v8  ;;  %994 = vst [vmem:[#allocation3 + $0x1a8] sm:$0xff] %v893_v39  ;;  %v15081_v29 = vld [vmem:[#allocation45_spill] sm:$0xff]  ;;  %v8137_v39 = vpop.f32.mrb[26].mxu1 }
 0x139   :  { %v440_v49 = vadd.f32 %v432_v51, %v412_v25  ;;  %v1244_v1 = vadd.f32 %v1212_v36, %v9603_v20  ;;  %3509 = vst [vmem:[#allocation4 + $0x98] sm:$0xff] %v2940_v63  ;;  %v9715_v13 = vmul.f32 %v15075_v60, %v9612_v57  ;;  %v329_v24 = vadd.f32 %v9436_v16, %v301_v23 }
 0x13a   :  { %v485_v30 = vadd.f32 %v9400_v32, %v471_v7  ;;  %v384_v58 = vadd.f32 %v376_v44, %v356_v11  ;;  %v1245_v62 = vadd.f32 %v1213_v27, %v1145_v50  ;;  %v1343_v25 = vadd.f32 %v1311_v41, %v15081_v29  ;;  %v15082_v7 = vld [vmem:[#allocation24_spill] sm:$0xff]  ;;  %997 = vst [vmem:[#allocation3 + $0x1d0] sm:$0xff] %v8137_v39 }
 0x13b   :  { %v468_v33 = vadd.f32 %v460_v21, %v440_v49  ;;  %v1411_v14 = vmul.f32 %v15058_v2, %v15079_v15  ;;  %v357_v51 = vadd.f32 %v9442_v10, %v329_v24  ;;  %v1441_v36 = vadd.f32 %v15082_v7, %v9425_v48 }
 0x13c   :  { %v493_v20 = vmax.f32 %v485_v30, 0.0  ;;  %v413_v35 = vadd.f32 %v9475_v6, %v384_v58  ;;  %v9727_v16 = vadd.f32 %v9496_v26, %v1244_v1  ;;  %v1510_v21 = vmul.f32 %v9148_v37, %v9689_v40  ;;  %v15083_v26 = vld [vmem:[#allocation43_spill] sm:$0xff] }
 0x13d   :  { %v482_v57 = vadd.f32 %v9400_v32, %v468_v33  ;;  %v1443_v23 = vadd.f32 %v1411_v14, %v1343_v25  ;;  %v385_v48 = vadd.f32 %v9452_v52, %v357_v51  ;;  %v1511_v6 = vmul.f32 %v9148_v37, %v9697_v45 }
 0x13e   :  { %501 = vst [vmem:[%s14941_s8 + $0x38] sm:$0xff] %v493_v20  ;;  %7679 = vst [vmem:[%s14940_s7 + $0xe0] ss:$2 sm:$0xff] %v493_v20  ;;  %v441_v10 = vadd.f32 %v9479_v19, %v413_v35  ;;  %v1541_v44 = vadd.f32 %v15083_v26, %v1441_v36  ;;  %v9752_v42 = vadd.f32 %v9643_v59, %v1245_v62  ;;  %v896_v36 = vpop.f32.mrb[27].mxu1 }
 0x13f   :  { %7680 = vst [vmem:[%s14940_s7 + $0xf0] ss:$2 sm:$0xff] %v493_v20  ;;  %7695 = vst [vmem:[%s14940_s7 + $0xe1] ss:$2 sm:$0xff] %v493_v20  ;;  %v490_v18 = vmax.f32 %v482_v57, 0.0  ;;  %v1542_v11 = vadd.f32 %v1510_v21, %v9614_v43  ;;  %v1610_v27 = vmul.f32 %v15059_v34, %v1009_v8  ;;  %v414_v63 = vadd.f32 %v9620_v47, %v385_v48  ;;  %v8169_v8 = vpop.f32.mrb[18].mxu0 }
 0x140   :  { %7696 = vst [vmem:[%s14940_s7 + $0xf1] ss:$2 sm:$0xff] %v493_v20  ;;  %v469_v52 = vadd.f32 %v9493_v3, %v441_v10  ;;  %v1543_v19 = vadd.f32 %v1511_v6, %v1443_v23  ;;  %v1809_v49 = vmul.f32 %v15075_v60, %v9689_v40  ;;  %v1710_v47 = vmul.f32 %v15061_v9, %v15079_v15  ;;  %v15084_v15 = vld [vmem:[#allocation36_spill] sm:$0xff]  ;;  %v1945_v21 = vld [vmem:[%s14940_s7 + $0x20] sm:$0xff] }
 0x141   :  { %498 = vst [vmem:[%s14941_s8 + $0x20] sm:$0xff] %v490_v18  ;;  %7673 = vst [vmem:[%s14940_s7 + $0x80] ss:$2 sm:$0xff] %v490_v18  ;;  %v1642_v3 = vadd.f32 %v1610_v27, %v1541_v44  ;;  %v1643_v43 = vadd.f32 %v9507_v55, %v1542_v11  ;;  %v1050_v59 = vmul.f32 %v9088_v53, %v1014_v61  ;;  %v1946_v44 = vld [vmem:[%s14940_s7 + $0x28] sm:$0xff]  ;;  %v1015_v27 = vld [vmem:[#allocation3 + $0xcf] sm:$0xff] }
 0x142   :  { %7674 = vst [vmem:[%s14940_s7 + $0x90] ss:$2 sm:$0xff] %v490_v18  ;;  %7689 = vst [vmem:[%s14940_s7 + $0x81] ss:$2 sm:$0xff] %v490_v18  ;;  %v442_v40 = vadd.f32 %v9626_v12, %v414_v63  ;;  %v483_v50 = vadd.f32 %v9400_v32, %v469_v52  ;;  %v1644_v1 = vadd.f32 %v9672_v22, %v1543_v19  ;;  %v1012_v22 = vld [vmem:[#allocation3 + $0xa7] sm:$0xff] }
 0x143   :  { %7690 = vst [vmem:[%s14940_s7 + $0x91] ss:$2 sm:$0xff] %v490_v18  ;;  %v1841_v41 = vadd.f32 %v1809_v49, %v9634_v4  ;;  %3512 = vst [vmem:[#allocation4 + $0xb0] sm:$0xff] %v8169_v8  ;;  %v1742_v30 = vadd.f32 %v1710_v47, %v1642_v3  ;;  %v1743_v24 = vadd.f32 %v9530_v46, %v1643_v43  ;;  %v1943_v46 = vld [vmem:[%s14940_s7 + $0x10] sm:$0xff]  ;;  %v1182_v49 = vld [vmem:[#allocation3 + $0xc9] sm:$0xff] }
 0x144   :  { %v1810_v55 = vmul.f32 %v15075_v60, %v9697_v45  ;;  %v1118_v58 = vmul.f32 %v15084_v15, %v9090_v54  ;;  %v470_v33 = vadd.f32 %v9637_v31, %v442_v40  ;;  %v491_v62 = vmax.f32 %v483_v50, 0.0  ;;  %995 = vst [vmem:[#allocation3 + $0x1b0] sm:$0xff] %v896_v36  ;;  %v1183_v3 = vld [vmem:[#allocation3 + $0xd1] sm:$0xff] }
 0x145   :  { %v1744_v12 = vadd.f32 %v9678_v17, %v1644_v1  ;;  %v1879_v29 = vadd.f32 %v9433_v56, %v1841_v41  ;;  %v1843_v4 = vadd.f32 %v9681_v28, %v1743_v24  ;;  %v9798_v45 = vmul.f32 %v9150_v38, %v1014_v61  ;;  %v15086_v8 = vld [vmem:[#allocation27_spill] sm:$0xff]  ;;  %v15087_v1 = vld [vmem:[#allocation16_spill] sm:$0xff]  ;;  %v15088_v24 = vld [vmem:[#allocation41_spill] sm:$0xff] }
 0x146   :  { %v1842_v25 = vadd.f32 %v1810_v55, %v1742_v30  ;;  %v9795_v14 = vadd.f32 %v1118_v58, %v1050_v59  ;;  %v484_v31 = vadd.f32 %v9400_v32, %v470_v33  ;;  %499 = vst [vmem:[%s14941_s8 + $0x28] sm:$0xff] %v491_v62  ;;  %7675 = vst [vmem:[%s14940_s7 + $0xa0] ss:$2 sm:$0xff] %v491_v62 }
 0x147   :  { %7691 = vst [vmem:[%s14940_s7 + $0xa1] ss:$2 sm:$0xff] %v491_v62  ;;  %7676 = vst [vmem:[%s14940_s7 + $0xb0] ss:$2 sm:$0xff] %v491_v62  ;;  %v1844_v32 = vadd.f32 %v9715_v13, %v1744_v12  ;;  %v1911_v17 = vmax.f32 %v1879_v29, 0.0  ;;  %v9819_v28 = vmul.f32 %v15084_v15, %v15058_v2  ;;  %v1881_v51 = vadd.f32 %v9433_v56, %v1843_v4  ;;  %v1944_v13 = vld [vmem:[%s14940_s7 + $0x18] sm:$0xff] }
 0x148   :  { %7692 = vst [vmem:[%s14940_s7 + $0xb1] ss:$2 sm:$0xff] %v491_v62  ;;  %v1880_v20 = vadd.f32 %v9433_v56, %v1842_v25  ;;  %v9824_v35 = vmul.f32 %v15059_v34, %v1014_v61  ;;  %v1048_v7 = vmul.f32 %v9088_v53, %v1012_v22  ;;  %v492_v57 = vmax.f32 %v484_v31, 0.0  ;;  %v15085_v61 = vld [vmem:[#allocation38_spill] sm:$0xff] }
 0x149   :  { %v1882_v23 = vadd.f32 %v9433_v56, %v1844_v32  ;;  %v1975_v48 = vadd.f32 %v1943_v46, %v1911_v17  ;;  %v9836_v10 = vmul.f32 %v15084_v15, %v15061_v9  ;;  %v1913_v26 = vmax.f32 %v1881_v51, 0.0  ;;  %v2943_v15 = vpop.f32.mrb[19].mxu0  ;;  %v1013_v25 = vld [vmem:[#allocation3 + $0xaf] sm:$0xff] }
 0x14a   :  { %v1912_v6 = vmax.f32 %v1880_v20, 0.0  ;;  %v1116_v18 = vmul.f32 %v9090_v54, %v15085_v61  ;;  %v1314_v11 = vmul.f32 %v9150_v38, %v1012_v22  ;;  %500 = vst [vmem:[%s14941_s8 + $0x30] sm:$0xff] %v492_v57  ;;  %7677 = vst [vmem:[%s14940_s7 + $0xc0] ss:$2 sm:$0xff] %v492_v57  ;;  %v1414_v63 = vmul.f32 %v15058_v2, %v15085_v61  ;;  %v1180_v4 = vld [vmem:[#allocation3 + $0xa9] sm:$0xff]  ;;  %v1181_v46 = vld [vmem:[#allocation3 + $0xb1] sm:$0xff] }
 0x14b   :  { %7678 = vst [vmem:[%s14940_s7 + $0xd0] ss:$2 sm:$0xff] %v492_v57  ;;  %7693 = vst [vmem:[%s14940_s7 + $0xc1] ss:$2 sm:$0xff] %v492_v57  ;;  %v1914_v39 = vmax.f32 %v1882_v23, 0.0  ;;  %v1444_v52 = vadd.f32 %v9503_v5, %v9727_v16  ;;  %v1613_v19 = vmul.f32 %v15059_v34, %v1012_v22  ;;  %v1977_v47 = vadd.f32 %v1945_v21, %v1913_v26 }
 0x14c   :  { %7694 = vst [vmem:[%s14940_s7 + $0xd1] ss:$2 sm:$0xff] %v492_v57  ;;  %2007 = vst [vmem:[%s14940_s7 + $0x10] sm:$0xff] %v1975_v48  ;;  %v1976_v43 = vadd.f32 %v1944_v13, %v1912_v6  ;;  %v1148_v59 = vadd.f32 %v1116_v18, %v1048_v7  ;;  %v1346_v40 = vadd.f32 %v1314_v11, %v15086_v8  ;;  %v15089_v13 = vld [vmem:[#allocation44_spill] sm:$0xff] }
 0x14d   :  { %7745 = vst [vmem:[%s14942_s6 + $0x40] ss:$2 sm:$0xff] %v1975_v48  ;;  %7747 = vst [vmem:[%s14942_s6 + $0x60] ss:$2 sm:$0xff] %v1975_v48  ;;  %v1978_v50 = vadd.f32 %v1946_v44, %v1914_v39  ;;  %v1544_v41 = vadd.f32 %v15087_v1, %v1444_v52  ;;  %v1051_v30 = vmul.f32 %v9088_v53, %v1015_v27  ;;  %v15090_v44 = vld [vmem:[#allocation13_spill] sm:$0xff] }
 0x14e   :  { %7809 = vst [vmem:[%s14942_s6 + $0x41] ss:$2 sm:$0xff] %v1975_v48  ;;  %7811 = vst [vmem:[%s14942_s6 + $0x61] ss:$2 sm:$0xff] %v1975_v48  ;;  %v1119_v55 = vmul.f32 %v15088_v24, %v9090_v54  ;;  %v1446_v5 = vadd.f32 %v1414_v63, %v1346_v40  ;;  %v1713_v16 = vmul.f32 %v15061_v9, %v15085_v61  ;;  %v1018_v52 = vld [vmem:[#allocation3 + $0x107] sm:$0xff] }
 0x14f   :  { %2008 = vst [vmem:[%s14940_s7 + $0x18] sm:$0xff] %v1976_v43  ;;  %2009 = vst [vmem:[%s14940_s7 + $0x20] sm:$0xff] %v1977_v47  ;;  %v1218_v58 = vmul.f32 %v9106_v0, %v1182_v49  ;;  %v1219_v33 = vmul.f32 %v9106_v0, %v1183_v3  ;;  %v1645_v62 = vadd.f32 %v1613_v19, %v1544_v41  ;;  %v15091_v19 = vld [vmem:[#allocation14_spill] sm:$0xff] }
 0x150   :  { %7746 = vst [vmem:[%s14942_s6 + $0x50] ss:$2 sm:$0xff] %v1976_v43  ;;  %7748 = vst [vmem:[%s14942_s6 + $0x70] ss:$2 sm:$0xff] %v1976_v43  ;;  %v1151_v12 = vadd.f32 %v1119_v55, %v1051_v30  ;;  %v1317_v29 = vmul.f32 %v9150_v38, %v1015_v27  ;;  %v9936_v22 = vmul.f32 %v15088_v24, %v15058_v2 }
 0x151   :  { %7810 = vst [vmem:[%s14942_s6 + $0x51] ss:$2 sm:$0xff] %v1976_v43  ;;  %7812 = vst [vmem:[%s14942_s6 + $0x71] ss:$2 sm:$0xff] %v1976_v43  ;;  %v1250_v31 = vadd.f32 %v1218_v58, %v9795_v14  ;;  %v9940_v32 = vmul.f32 %v9148_v37, %v1182_v49  ;;  %v9943_v17 = vmul.f32 %v9148_v37, %v1183_v3 }
 0x152   :  { %7749 = vst [vmem:[%s14942_s6 + $0x80] ss:$2 sm:$0xff] %v1977_v47  ;;  %7751 = vst [vmem:[%s14942_s6 + $0xa0] ss:$2 sm:$0xff] %v1977_v47  ;;  %v1616_v20 = vmul.f32 %v15059_v34, %v1015_v27  ;;  %v1745_v51 = vadd.f32 %v1713_v16, %v1645_v62  ;;  %v9946_v7 = vadd.f32 %v1219_v33, %v1151_v12 }
 0x153   :  { %7813 = vst [vmem:[%s14942_s6 + $0x81] ss:$2 sm:$0xff] %v1977_v47  ;;  %7815 = vst [vmem:[%s14942_s6 + $0xa1] ss:$2 sm:$0xff] %v1977_v47  ;;  %v1716_v36 = vmul.f32 %v15088_v24, %v15061_v9  ;;  %v1815_v57 = vmul.f32 %v15075_v60, %v1182_v49  ;;  %v1049_v23 = vmul.f32 %v9088_v53, %v1013_v25 }
 0x154   :  { %3510 = vst [vmem:[#allocation4 + $0xa0] sm:$0xff] %v2943_v15  ;;  %2010 = vst [vmem:[%s14940_s7 + $0x28] sm:$0xff] %v1978_v50  ;;  %v1117_v14 = vmul.f32 %v9090_v54, %v15089_v13  ;;  %v1216_v21 = vmul.f32 %v9106_v0, %v1180_v4  ;;  %v1217_v48 = vmul.f32 %v9106_v0, %v1181_v46 }
 0x155   :  { %7750 = vst [vmem:[%s14942_s6 + $0x90] ss:$2 sm:$0xff] %v1978_v50  ;;  %7752 = vst [vmem:[%s14942_s6 + $0xb0] ss:$2 sm:$0xff] %v1978_v50  ;;  %v1816_v6 = vmul.f32 %v15075_v60, %v1183_v3  ;;  %v1315_v26 = vmul.f32 %v9150_v38, %v1013_v25  ;;  %v1445_v61 = vadd.f32 %v15090_v44, %v9752_v42  ;;  %v15092_v3 = vld [vmem:[#allocation28_spill] sm:$0xff] }
 0x156   :  { %7814 = vst [vmem:[%s14942_s6 + $0x91] ss:$2 sm:$0xff] %v1978_v50  ;;  %7816 = vst [vmem:[%s14942_s6 + $0xb1] ss:$2 sm:$0xff] %v1978_v50  ;;  %v1514_v18 = vmul.f32 %v9148_v37, %v1180_v4  ;;  %v1149_v11 = vadd.f32 %v1117_v14, %v1049_v23  ;;  %v1248_v27 = vadd.f32 %v1216_v21, %v1148_v59 }
 0x157   :  { %v1415_v39 = vmul.f32 %v15058_v2, %v15089_v13  ;;  %v1614_v63 = vmul.f32 %v15059_v34, %v1013_v25  ;;  %v1347_v49 = vadd.f32 %v1315_v26, %v15091_v19  ;;  %v1515_v43 = vmul.f32 %v9148_v37, %v1181_v46  ;;  %v1016_v25 = vld [vmem:[#allocation3 + $0xe7] sm:$0xff] }
 0x158   :  { %v1545_v47 = vadd.f32 %v15092_v3, %v1445_v61  ;;  %v1546_v8 = vadd.f32 %v1514_v18, %v1446_v5  ;;  %v1249_v40 = vadd.f32 %v1217_v48, %v1149_v11  ;;  %v1348_v42 = vadd.f32 %v9798_v45, %v1248_v27  ;;  %v15093_v5 = vld [vmem:[#allocation46_spill] sm:$0xff]  ;;  %v15094_v48 = vld [vmem:[#allocation47_spill] sm:$0xff] }
 0x159   :  { %v1714_v50 = vmul.f32 %v15061_v9, %v15089_v13  ;;  %v1813_v59 = vmul.f32 %v15075_v60, %v1180_v4  ;;  %v1447_v1 = vadd.f32 %v1415_v39, %v1347_v49  ;;  %v1054_v24 = vmul.f32 %v9088_v53, %v1018_v52  ;;  %v1019_v11 = vld [vmem:[#allocation3 + $0x10f] sm:$0xff] }
 0x15a   :  { %v1646_v41 = vadd.f32 %v1614_v63, %v1545_v47  ;;  %v1647_v30 = vadd.f32 %v9824_v35, %v1546_v8  ;;  %v9973_v55 = vadd.f32 %v1317_v29, %v1249_v40  ;;  %v1814_v15 = vmul.f32 %v15075_v60, %v1181_v46  ;;  %v10010_v47 = vld [vmem:[#allocation3 + $0x111] sm:$0xff] }
 0x15b   :  { %v1845_v16 = vadd.f32 %v1813_v59, %v1745_v51  ;;  %v1122_v58 = vmul.f32 %v15093_v5, %v9090_v54  ;;  %v1547_v45 = vadd.f32 %v1515_v43, %v1447_v1  ;;  %v9980_v12 = vmul.f32 %v9150_v38, %v1018_v52  ;;  %v15095_v40 = vld [vmem:[#allocation48_spill] sm:$0xff]  ;;  %v8172_v59 = vpop.f32.mrb[20].mxu0 }
 0x15c   :  { %v1746_v33 = vadd.f32 %v1714_v50, %v1646_v41  ;;  %v1747_v62 = vadd.f32 %v9836_v10, %v1647_v30  ;;  %v9987_v29 = vmul.f32 %v15093_v5, %v15058_v2  ;;  %v9990_v60 = vmul.f32 %v15059_v34, %v1018_v52  ;;  %v1947_v10 = vld [vmem:[%s14940_s7 + $0x30] sm:$0xff]  ;;  %v8140_v50 = vpop.f32.mrb[28].mxu1  ;;  %3515 = vst [vmem:[#allocation4 + $0xd8] sm:$0xff] %v8172_v59 }
 0x15d   :  { %v1883_v35 = vadd.f32 %v9433_v56, %v1845_v16  ;;  %v9983_v4 = vadd.f32 %v1122_v58, %v1054_v24  ;;  %v1648_v46 = vadd.f32 %v1616_v20, %v1547_v45  ;;  %v9997_v13 = vmul.f32 %v15093_v5, %v15061_v9  ;;  %1000 = vst [vmem:[#allocation3 + $0x208] sm:$0xff] %v8140_v50  ;;  %v2956_v16 = vpop.f32.mrb[21].mxu0 }
 0x15e   :  { %v1846_v51 = vadd.f32 %v1814_v15, %v1746_v33  ;;  %v1847_v23 = vadd.f32 %v1815_v57, %v1747_v62  ;;  %v1052_v21 = vmul.f32 %v9088_v53, %v1016_v25  ;;  %v1120_v26 = vmul.f32 %v9090_v54, %v15094_v48  ;;  %v909_v15 = vpop.f32.mrb[29].mxu1  ;;  %3513 = vst [vmem:[#allocation4 + $0xc8] sm:$0xff] %v2956_v16 }
 0x15f   :  { %v1915_v14 = vmax.f32 %v1883_v35, 0.0  ;;  %v1318_v44 = vmul.f32 %v9150_v38, %v1016_v25  ;;  %v1748_v61 = vadd.f32 %v1716_v36, %v1648_v46  ;;  %v1448_v18 = vadd.f32 %v9819_v28, %v1348_v42  ;;  %v1186_v36 = vld [vmem:[#allocation3 + $0x109] sm:$0xff]  ;;  %998 = vst [vmem:[#allocation3 + $0x1e8] sm:$0xff] %v909_v15 }
 0x160   :  { %v1884_v20 = vadd.f32 %v9433_v56, %v1846_v51  ;;  %v1885_v57 = vadd.f32 %v9433_v56, %v1847_v23  ;;  %v1418_v63 = vmul.f32 %v15058_v2, %v15094_v48  ;;  %v1617_v52 = vmul.f32 %v15059_v34, %v1016_v25  ;;  %v1948_v28 = vld [vmem:[%s14940_s7 + $0x38] sm:$0xff]  ;;  %v1185_v23 = vld [vmem:[#allocation3 + $0xf1] sm:$0xff] }
 0x161   :  { %v1979_v27 = vadd.f32 %v1947_v10, %v1915_v14  ;;  %v1350_v39 = vadd.f32 %v1318_v44, %v1250_v31  ;;  %v1848_v19 = vadd.f32 %v1816_v6, %v1748_v61  ;;  %v1548_v3 = vadd.f32 %v9940_v32, %v1448_v18  ;;  %v1949_v31 = vld [vmem:[%s14940_s7 + $0x40] sm:$0xff]  ;;  %v1950_v10 = vld [vmem:[%s14940_s7 + $0x48] sm:$0xff] }
 0x162   :  { %v1916_v49 = vmax.f32 %v1884_v20, 0.0  ;;  %v1917_v43 = vmax.f32 %v1885_v57, 0.0  ;;  %v1717_v6 = vmul.f32 %v15061_v9, %v15094_v48  ;;  %v1055_v8 = vmul.f32 %v9088_v53, %v1019_v11  ;;  %v1017_v46 = vld [vmem:[#allocation3 + $0xef] sm:$0xff] }
 0x163   :  { %2011 = vst [vmem:[%s14940_s7 + $0x30] sm:$0xff] %v1979_v27  ;;  %7753 = vst [vmem:[%s14942_s6 + $0xc0] ss:$2 sm:$0xff] %v1979_v27  ;;  %v10033_v32 = vadd.f32 %v1418_v63, %v1350_v39  ;;  %v1123_v42 = vmul.f32 %v15095_v40, %v9090_v54  ;;  %v1886_v1 = vadd.f32 %v9433_v56, %v1848_v19  ;;  %v1184_v51 = vld [vmem:[#allocation3 + $0xe9] sm:$0xff] }
 0x164   :  { %7755 = vst [vmem:[%s14942_s6 + $0xe0] ss:$2 sm:$0xff] %v1979_v27  ;;  %7817 = vst [vmem:[%s14942_s6 + $0xc1] ss:$2 sm:$0xff] %v1979_v27  ;;  %v1980_v41 = vadd.f32 %v1948_v28, %v1916_v49  ;;  %v1981_v30 = vadd.f32 %v1949_v31, %v1917_v43  ;;  %v1649_v24 = vadd.f32 %v1617_v52, %v1548_v3  ;;  %v8141_v3 = vpop.f32.mrb[30].mxu1 }
 0x165   :  { %7819 = vst [vmem:[%s14942_s6 + $0xe1] ss:$2 sm:$0xff] %v1979_v27  ;;  %v1152_v5 = vadd.f32 %v1120_v26, %v1052_v21  ;;  %v1155_v58 = vadd.f32 %v1123_v42, %v1055_v8  ;;  %v1222_v45 = vmul.f32 %v9106_v0, %v1186_v36  ;;  %v1223_v33 = vmul.f32 %v9106_v0, %v10010_v47  ;;  %v15096_v27 = vld [vmem:[#allocation49_spill] sm:$0xff] }
 0x166   :  { %v1918_v62 = vmax.f32 %v1886_v1, 0.0  ;;  %2012 = vst [vmem:[%s14940_s7 + $0x38] sm:$0xff] %v1980_v41  ;;  %2013 = vst [vmem:[%s14940_s7 + $0x40] sm:$0xff] %v1981_v30  ;;  %v1749_v56 = vadd.f32 %v1717_v6, %v1649_v24  ;;  %v1321_v25 = vmul.f32 %v9150_v38, %v1019_v11  ;;  %v10077_v35 = vmul.f32 %v15095_v40, %v15058_v2 }
 0x167   :  { %7754 = vst [vmem:[%s14942_s6 + $0xd0] ss:$2 sm:$0xff] %v1980_v41  ;;  %7756 = vst [vmem:[%s14942_s6 + $0xf0] ss:$2 sm:$0xff] %v1980_v41  ;;  %v10083_v14 = vadd.f32 %v1222_v45, %v9983_v4  ;;  %v10085_v21 = vadd.f32 %v1223_v33, %v1155_v58  ;;  %v10088_v48 = vmul.f32 %v9148_v37, %v1186_v36  ;;  %v10100_v4 = vld [vmem:[%s14938_s4 + $0x18] ss:$0 sm:$0xff] }
 0x168   :  { %7818 = vst [vmem:[%s14942_s6 + $0xd1] ss:$2 sm:$0xff] %v1980_v41  ;;  %7820 = vst [vmem:[%s14942_s6 + $0xf1] ss:$2 sm:$0xff] %v1980_v41  ;;  %v10092_v26 = vmul.f32 %v9148_v37, %v10010_v47  ;;  %v1982_v44 = vadd.f32 %v1950_v10, %v1918_v62  ;;  %v1620_v61 = vmul.f32 %v15059_v34, %v1019_v11 }
 0x169   :  { %7757 = vst [vmem:[%s14942_s6 + $0x100] ss:$2 sm:$0xff] %v1981_v30  ;;  %7759 = vst [vmem:[%s14942_s6 + $0x120] ss:$2 sm:$0xff] %v1981_v30  ;;  %v1720_v20 = vmul.f32 %v15095_v40, %v15061_v9  ;;  %v1819_v57 = vmul.f32 %v10100_v4, %v1186_v36  ;;  %v1053_v18 = vmul.f32 %v9088_v53, %v1017_v46  ;;  %v8173_v36 = vpop.f32.mrb[22].mxu0  ;;  %v1022_v40 = vld [vmem:[#allocation3 + $0x147] sm:$0xff] }
 0x16a   :  { %7821 = vst [vmem:[%s14942_s6 + $0x101] ss:$2 sm:$0xff] %v1981_v30  ;;  %7823 = vst [vmem:[%s14942_s6 + $0x121] ss:$2 sm:$0xff] %v1981_v30  ;;  %v1121_v39 = vmul.f32 %v9090_v54, %v15096_v27  ;;  %v1220_v63 = vmul.f32 %v9106_v0, %v1184_v51  ;;  %v1221_v52 = vmul.f32 %v9106_v0, %v1185_v23 }
 0x16b   :  { %2014 = vst [vmem:[%s14940_s7 + $0x48] sm:$0xff] %v1982_v44  ;;  %7758 = vst [vmem:[%s14942_s6 + $0x110] ss:$2 sm:$0xff] %v1982_v44  ;;  %v1820_v11 = vmul.f32 %v10100_v4, %v10010_v47  ;;  %v1319_v19 = vmul.f32 %v9150_v38, %v1017_v46  ;;  %v1449_v49 = vadd.f32 %v9936_v22, %v9973_v55 }
 0x16c   :  { %7760 = vst [vmem:[%s14942_s6 + $0x130] ss:$2 sm:$0xff] %v1982_v44  ;;  %7822 = vst [vmem:[%s14942_s6 + $0x111] ss:$2 sm:$0xff] %v1982_v44  ;;  %v1518_v43 = vmul.f32 %v9148_v37, %v1184_v51  ;;  %v1153_v28 = vadd.f32 %v1121_v39, %v1053_v18  ;;  %v1252_v31 = vadd.f32 %v1220_v63, %v1152_v5  ;;  %v15098_v63 = vld [vmem:[#allocation9_spill] sm:$0xff] }
 0x16d   :  { %7824 = vst [vmem:[%s14942_s6 + $0x131] ss:$2 sm:$0xff] %v1982_v44  ;;  %v1419_v6 = vmul.f32 %v15058_v2, %v15096_v27  ;;  %v1618_v8 = vmul.f32 %v15059_v34, %v1017_v46  ;;  %1001 = vst [vmem:[#allocation3 + $0x210] sm:$0xff] %v8141_v3  ;;  %v1351_v47 = vadd.f32 %v1319_v19, %v9946_v7  ;;  %v1020_v46 = vld [vmem:[#allocation3 + $0x127] sm:$0xff] }
 0x16e   :  { %3516 = vst [vmem:[#allocation4 + $0xe0] sm:$0xff] %v8173_v36  ;;  %v1519_v42 = vmul.f32 %v9148_v37, %v1185_v23  ;;  %v1549_v22 = vadd.f32 %v9943_v17, %v1449_v49  ;;  %v1550_v55 = vadd.f32 %v1518_v43, %v10033_v32  ;;  %v1253_v50 = vadd.f32 %v1221_v52, %v1153_v28  ;;  %v15097_v32 = vld [vmem:[#allocation51_spill] sm:$0xff]  ;;  %v15099_v52 = vld [vmem:[#allocation50_spill] sm:$0xff]  ;;  %v15100_v49 = vld [vmem:[#allocation20_spill] sm:$0xff] }
 0x16f   :  { %v1352_v59 = vadd.f32 %v9980_v12, %v1252_v31  ;;  %v1718_v1 = vmul.f32 %v15061_v9, %v15096_v27  ;;  %v1817_v41 = vmul.f32 %v10100_v4, %v1184_v51  ;;  %v1451_v30 = vadd.f32 %v1419_v6, %v1351_v47  ;;  %v1951_v28 = vld [vmem:[%s14940_s7 + $0x50] sm:$0xff]  ;;  %v3633_v6 = vld [vmem:[#allocation4 + $0x37] sm:$0xff] }
 0x170   :  { %v1650_v24 = vadd.f32 %v1618_v8, %v1549_v22  ;;  %v1651_v15 = vadd.f32 %v9990_v60, %v1550_v55  ;;  %v1058_v7 = vmul.f32 %v9088_v53, %v1022_v40  ;;  %v10142_v16 = vadd.f32 %v1321_v25, %v1253_v50  ;;  %v10154_v60 = vld [vmem:[%s14939_s5 + $0x1] ss:$0 sm:$0xff] }
 0x171   :  { %v1818_v17 = vmul.f32 %v10100_v4, %v1185_v23  ;;  %v1849_v5 = vadd.f32 %v1817_v41, %v1749_v56  ;;  %v1126_v58 = vmul.f32 %v15097_v32, %v9090_v54  ;;  %v1551_v12 = vadd.f32 %v1519_v42, %v1451_v30  ;;  %v10191_v41 = vld [vmem:[#allocation3 + $0x14f] sm:$0xff] }
 0x172   :  { %v1750_v45 = vadd.f32 %v1718_v1, %v1650_v24  ;;  %v1751_v33 = vadd.f32 %v9997_v13, %v1651_v15  ;;  %v10149_v62 = vmul.f32 %v9150_v38, %v1022_v40  ;;  %v10161_v56 = vmul.f32 %v15097_v32, %v15058_v2  ;;  %v912_v13 = vpop.f32.mrb[31].mxu1  ;;  %v1952_v30 = vld [vmem:[%s14940_s7 + $0x58] sm:$0xff]  ;;  %v1953_v24 = vld [vmem:[%s14940_s7 + $0x60] sm:$0xff] }
 0x173   :  { %v1887_v25 = vadd.f32 %v10154_v60, %v1849_v5  ;;  %v10157_v51 = vadd.f32 %v1126_v58, %v1058_v7  ;;  %v10164_v23 = vmul.f32 %v15059_v34, %v1022_v40  ;;  %v1652_v10 = vadd.f32 %v1620_v61, %v1551_v12  ;;  %999 = vst [vmem:[#allocation3 + $0x1f0] sm:$0xff] %v912_v13  ;;  %v15101_v40 = vld [vmem:[#allocation52_spill] sm:$0xff]  ;;  %v1190_v7 = vld [vmem:[#allocation3 + $0x149] sm:$0xff] }
 0x174   :  { %v1850_v44 = vadd.f32 %v1818_v17, %v1750_v45  ;;  %v1851_v18 = vadd.f32 %v1819_v57, %v1751_v33  ;;  %v10168_v27 = vmul.f32 %v15097_v32, %v15061_v9  ;;  %v10172_v19 = vmul.f32 %v15099_v52, %v15098_v63  ;;  %v1191_v12 = vld [vmem:[#allocation3 + $0x151] sm:$0xff]  ;;  %v2959_v45 = vpop.f32.mrb[23].mxu0 }
 0x175   :  { %v1919_v39 = vmax.f32 %v1887_v25, 0.0  ;;  %v10176_v43 = vmul.f32 %v15099_v52, %v15100_v49  ;;  %v1056_v3 = vmul.f32 %v9088_v53, %v1020_v46  ;;  %v1752_v36 = vadd.f32 %v1720_v20, %v1652_v10  ;;  %v8413_v25 = vld [vmem:[#allocation3 + $0x128] sm:$0xff]  ;;  %v8414_v10 = vld [vmem:[#allocation4 + $0x38] sm:$0xff]  ;;  %3514 = vst [vmem:[#allocation4 + $0xd0] sm:$0xff] %v2959_v45  ;;  %v8415_v52 = vld [vmem:[#allocation3 + $0x150] sm:$0xff] }
 0x176   :  { %v1888_v61 = vadd.f32 %v10154_v60, %v1850_v44  ;;  %v1889_v57 = vadd.f32 %v10154_v60, %v1851_v18  ;;  %v1322_v31 = vmul.f32 %v9150_v38, %v1020_v46  ;;  %v1124_v47 = vmul.f32 %v9090_v54, %v15101_v40  ;;  %v15103_v44 = vld [vmem:[#allocation22_spill] sm:$0xff] }
 0x177   :  { %v1983_v8 = vadd.f32 %v1951_v28, %v1919_v39  ;;  %v1422_v42 = vmul.f32 %v15058_v2, %v15101_v40  ;;  %v1452_v20 = vadd.f32 %v9987_v29, %v1352_v59  ;;  %v1852_v22 = vadd.f32 %v1820_v11, %v1752_v36  ;;  %v15102_v59 = vld [vmem:[#allocation7_spill] sm:$0xff]  ;;  %v15104_v28 = vld [vmem:[#allocation21_spill] sm:$0xff] }
 0x178   :  { %v1920_v55 = vmax.f32 %v1888_v61, 0.0  ;;  %v1921_v50 = vmax.f32 %v1889_v57, 0.0  ;;  %v1354_v1 = vadd.f32 %v1322_v31, %v10083_v14  ;;  %v10214_v29 = vadd.f32 %v1124_v47, %v1056_v3  ;;  %v1954_v61 = vld [vmem:[%s14940_s7 + $0x68] sm:$0xff] }
 0x179   :  { %2015 = vst [vmem:[%s14940_s7 + $0x50] sm:$0xff] %v1983_v8  ;;  %7761 = vst [vmem:[%s14942_s6 + $0x140] ss:$2 sm:$0xff] %v1983_v8  ;;  %v1552_v14 = vadd.f32 %v10088_v48, %v1452_v20  ;;  %v1621_v11 = vmul.f32 %v15059_v34, %v1020_v46  ;;  %v3765_v15 = vmul.f32 %v15102_v59, %v3633_v6 }
 0x17a   :  { %7763 = vst [vmem:[%s14942_s6 + $0x160] ss:$2 sm:$0xff] %v1983_v8  ;;  %7825 = vst [vmem:[%s14942_s6 + $0x141] ss:$2 sm:$0xff] %v1983_v8  ;;  %v1890_v17 = vadd.f32 %v10154_v60, %v1852_v22  ;;  %v1984_v5 = vadd.f32 %v1952_v30, %v1920_v55  ;;  %v1985_v32 = vadd.f32 %v1953_v24, %v1921_v50  ;;  %v3636_v22 = vld [vmem:[#allocation4 + $0x4f] sm:$0xff] }
 0x17b   :  { %7827 = vst [vmem:[%s14942_s6 + $0x161] ss:$2 sm:$0xff] %v1983_v8  ;;  %v10220_v58 = vadd.f32 %v1422_v42, %v1354_v1  ;;  %v1653_v33 = vadd.f32 %v1621_v11, %v1552_v14  ;;  %v1721_v13 = vmul.f32 %v8413_v25, %v15061_v9  ;;  %v4025_v48 = vmul.f32 %v8414_v10, %v15098_v63  ;;  %v4283_v24 = vld [vmem:[#allocation4 + $0x49] sm:$0xff]  ;;  %v4284_v14 = vld [vmem:[#allocation4 + $0x51] sm:$0xff] }
 0x17c   :  { %v4797_v46 = vmul.f32 %v15103_v44, %v3633_v6  ;;  %v1922_v18 = vmax.f32 %v1890_v17, 0.0  ;;  %2016 = vst [vmem:[%s14940_s7 + $0x58] sm:$0xff] %v1984_v5  ;;  %2017 = vst [vmem:[%s14940_s7 + $0x60] sm:$0xff] %v1985_v32  ;;  %v1059_v39 = vmul.f32 %v9088_v53, %v10191_v41  ;;  %v1127_v3 = vmul.f32 %v8415_v52, %v9090_v54  ;;  %v8416_v25 = vld [vmem:[#allocation4 + $0x50] sm:$0xff] }
 0x17d   :  { %7762 = vst [vmem:[%s14942_s6 + $0x150] ss:$2 sm:$0xff] %v1984_v5  ;;  %7764 = vst [vmem:[%s14942_s6 + $0x170] ss:$2 sm:$0xff] %v1984_v5  ;;  %v1226_v36 = vmul.f32 %v9106_v0, %v1190_v7  ;;  %v10262_v57 = vadd.f32 %v1721_v13, %v1653_v33  ;;  %v5185_v6 = vmul.f32 %v8414_v10, %v15100_v49  ;;  %v1188_v10 = vld [vmem:[#allocation3 + $0x129] sm:$0xff] }
 0x17e   :  { %7826 = vst [vmem:[%s14942_s6 + $0x151] ss:$2 sm:$0xff] %v1984_v5  ;;  %7828 = vst [vmem:[%s14942_s6 + $0x171] ss:$2 sm:$0xff] %v1984_v5  ;;  %v4925_v31 = vadd.f32 %v4797_v46, %v15104_v28  ;;  %v1227_v8 = vmul.f32 %v9106_v0, %v1191_v12  ;;  %v1986_v40 = vadd.f32 %v1954_v61, %v1922_v18  ;;  %v1021_v5 = vld [vmem:[#allocation3 + $0x12f] sm:$0xff] }
 0x17f   :  { %7765 = vst [vmem:[%s14942_s6 + $0x180] ss:$2 sm:$0xff] %v1985_v32  ;;  %7767 = vst [vmem:[%s14942_s6 + $0x1a0] ss:$2 sm:$0xff] %v1985_v32  ;;  %v10267_v47 = vadd.f32 %v4025_v48, %v3765_v15  ;;  %v1159_v42 = vadd.f32 %v1127_v3, %v1059_v39  ;;  %v10270_v20 = vadd.f32 %v1226_v36, %v10157_v51  ;;  %v1189_v48 = vld [vmem:[#allocation3 + $0x131] sm:$0xff]  ;;  %v15108_v46 = vld [vmem:[#allocation10_spill] sm:$0xff] }
 0x180   :  { %7829 = vst [vmem:[%s14942_s6 + $0x181] ss:$2 sm:$0xff] %v1985_v32  ;;  %7831 = vst [vmem:[%s14942_s6 + $0x1a1] ss:$2 sm:$0xff] %v1985_v32  ;;  %v10272_v55 = vadd.f32 %v5185_v6, %v4925_v31  ;;  %v10276_v50 = vmul.f32 %v9150_v38, %v10191_v41  ;;  %v10279_v1 = vmul.f32 %v8415_v52, %v15058_v2  ;;  %v15110_v3 = vld [vmem:[#allocation15_spill] sm:$0xff]  ;;  %v15112_v31 = vld [vmem:[#allocation25_spill] sm:$0xff] }
 0x181   :  { %v10282_v30 = vmul.f32 %v9148_v37, %v1190_v7  ;;  %2018 = vst [vmem:[%s14940_s7 + $0x68] sm:$0xff] %v1986_v40  ;;  %7766 = vst [vmem:[%s14942_s6 + $0x190] ss:$2 sm:$0xff] %v1986_v40  ;;  %v10299_v51 = vadd.f32 %v1227_v8, %v1159_v42  ;;  %v10302_v11 = vmul.f32 %v9148_v37, %v1191_v12  ;;  %v8417_v61 = vld [vmem:[#allocation3 + $0x130] sm:$0xff] }
 0x182   :  { %15105 = vst [vmem:[#allocation37_spill] sm:$0xff] %v10279_v1  ;;  %7768 = vst [vmem:[%s14942_s6 + $0x1b0] ss:$2 sm:$0xff] %v1986_v40  ;;  %v1624_v15 = vmul.f32 %v15059_v34, %v10191_v41  ;;  %v10307_v17 = vmul.f32 %v8415_v52, %v15061_v9  ;;  %v10310_v32 = vmul.f32 %v10100_v4, %v1190_v7 }
 0x183   :  { %7830 = vst [vmem:[%s14942_s6 + $0x191] ss:$2 sm:$0xff] %v1986_v40  ;;  %7832 = vst [vmem:[%s14942_s6 + $0x1b1] ss:$2 sm:$0xff] %v1986_v40  ;;  %v10313_v45 = vmul.f32 %v10100_v4, %v1191_v12  ;;  %v3768_v33 = vmul.f32 %v15102_v59, %v3636_v22  ;;  %v4028_v13 = vmul.f32 %v8416_v25, %v15098_v63 }
 0x184   :  { %15106 = vst [vmem:[#allocation42_spill] sm:$0xff] %v10299_v51  ;;  %15107 = vst [vmem:[#allocation30_spill] sm:$0xff] %v10302_v11  ;;  %v10318_v18 = vmul.f32 %v15108_v46, %v4283_v24  ;;  %v4416_v41 = vmul.f32 %v15108_v46, %v4284_v14  ;;  %v4800_v39 = vmul.f32 %v15103_v44, %v3636_v22 }
 0x185   :  { %v5188_v7 = vmul.f32 %v8416_v25, %v15100_v49  ;;  %v4156_v52 = vadd.f32 %v4028_v13, %v3768_v33  ;;  %v10324_v12 = vmul.f32 %v15110_v3, %v4283_v24  ;;  %v1057_v36 = vmul.f32 %v9088_v53, %v1021_v5 }
 0x186   :  { %15109 = vst [vmem:[#allocation23_spill] sm:$0xff] %v10318_v18  ;;  %v1125_v28 = vmul.f32 %v8417_v61, %v9090_v54  ;;  %v4928_v6 = vadd.f32 %v4800_v39, %v15112_v31  ;;  %v1224_v8 = vmul.f32 %v9106_v0, %v1188_v10  ;;  %v1225_v40 = vmul.f32 %v9106_v0, %v1189_v48 }
 0x187   :  { %15111 = vst [vmem:[#allocation39_spill] sm:$0xff] %v10324_v12  ;;  %v1323_v42 = vmul.f32 %v9150_v38, %v1021_v5  ;;  %v5576_v22 = vmul.f32 %v15110_v3, %v4284_v14  ;;  %v1423_v33 = vmul.f32 %v8417_v61, %v15058_v2  ;;  %v1453_v24 = vadd.f32 %v10077_v35, %v10142_v16 }
 0x188   :  { %v1157_v25 = vadd.f32 %v1125_v28, %v1057_v36  ;;  %v5316_v13 = vadd.f32 %v5188_v7, %v4928_v6  ;;  %v1256_v12 = vadd.f32 %v1224_v8, %v10214_v29  ;;  %v1522_v39 = vmul.f32 %v9148_v37, %v1188_v10  ;;  %v3634_v36 = vld [vmem:[#allocation4 + $0x3f] sm:$0xff]  ;;  %v3635_v29 = vld [vmem:[#allocation4 + $0x47] sm:$0xff] }
 0x189   :  { %v1355_v18 = vadd.f32 %v1323_v42, %v10085_v21  ;;  %v10339_v31 = vadd.f32 %v4416_v41, %v4156_v52  ;;  %v1553_v51 = vadd.f32 %v10092_v26, %v1453_v24  ;;  %v1622_v14 = vmul.f32 %v15059_v34, %v1021_v5  ;;  %v8418_v42 = vld [vmem:[#allocation4 + $0x40] sm:$0xff] }
 0x18a   :  { %v1257_v11 = vadd.f32 %v1225_v40, %v1157_v25  ;;  %v10343_v28 = vadd.f32 %v5576_v22, %v5316_v13  ;;  %v1523_v35 = vmul.f32 %v9148_v37, %v1189_v48  ;;  %v1554_v16 = vadd.f32 %v1522_v39, %v10220_v58  ;;  %v15114_v22 = vld [vmem:[#allocation11_spill] sm:$0xff]  ;;  %v15115_v25 = vld [vmem:[#allocation29_spill] sm:$0xff] }
 0x18b   :  { %v1455_v1 = vadd.f32 %v1423_v33, %v1355_v18  ;;  %v10348_v21 = vadd.f32 %v10149_v62, %v1256_v12  ;;  %v1654_v7 = vadd.f32 %v1622_v14, %v1553_v51  ;;  %v1722_v41 = vmul.f32 %v8417_v61, %v15061_v9  ;;  %v4278_v51 = vld [vmem:[#allocation4 + $0x11] sm:$0xff]  ;;  %v4279_v12 = vld [vmem:[#allocation4 + $0x19] sm:$0xff] }
 0x18c   :  { %v1821_v52 = vmul.f32 %v10100_v4, %v1188_v10  ;;  %v1655_v5 = vadd.f32 %v10164_v23, %v1554_v16  ;;  %v1822_v6 = vmul.f32 %v10100_v4, %v1189_v48  ;;  %v3766_v18 = vmul.f32 %v15102_v59, %v3634_v36  ;;  %v4281_v33 = vld [vmem:[#allocation4 + $0x39] sm:$0xff] }
 0x18d   :  { %v1555_v26 = vadd.f32 %v1523_v35, %v1455_v1  ;;  %v1754_v8 = vadd.f32 %v1722_v41, %v1654_v7  ;;  %v3767_v58 = vmul.f32 %v15102_v59, %v3635_v29  ;;  %v4026_v62 = vmul.f32 %v8418_v42, %v15098_v63  ;;  %v15113_v1 = vld [vmem:[#allocation26_spill] sm:$0xff] }
 0x18e   :  { %v1853_v40 = vadd.f32 %v1821_v52, %v10262_v57  ;;  %v1755_v10 = vadd.f32 %v10168_v27, %v1655_v5  ;;  %v4150_v23 = vadd.f32 %v15114_v22, %v15113_v1  ;;  %v4151_v48 = vadd.f32 %v15114_v22, %v15115_v25  ;;  %v4282_v35 = vld [vmem:[#allocation4 + $0x41] sm:$0xff] }
 0x18f   :  { %v1656_v61 = vadd.f32 %v1624_v15, %v1555_v26  ;;  %v10364_v24 = vadd.f32 %v10276_v50, %v1257_v11  ;;  %v1854_v57 = vadd.f32 %v1822_v6, %v1754_v8  ;;  %v4154_v39 = vadd.f32 %v4026_v62, %v3766_v18  ;;  %v8176_v6 = vpop.f32.mrb[24].mxu0  ;;  %v8232_v18 = vpop.f32.mrb[32].mxu1  ;;  %v1026_v22 = vld [vmem:[#allocation3 + $0x187] sm:$0xff] }
 0x190   :  { %v1891_v13 = vadd.f32 %v10154_v60, %v1853_v40  ;;  %v1855_v15 = vadd.f32 %v10310_v32, %v1755_v10  ;;  %v4410_v27 = vmul.f32 %v15108_v46, %v4278_v51  ;;  %v4411_v16 = vmul.f32 %v15108_v46, %v4279_v12  ;;  %3519 = vst [vmem:[#allocation4 + $0x108] sm:$0xff] %v8176_v6  ;;  %v3637_v6 = vld [vmem:[#allocation4 + $0x67] sm:$0xff] }
 0x191   :  { %v1756_v14 = vadd.f32 %v10307_v17, %v1656_v61  ;;  %v1892_v7 = vadd.f32 %v10154_v60, %v1854_v57  ;;  %v10373_v52 = vadd.f32 %v10172_v19, %v3767_v58  ;;  %v4413_v50 = vmul.f32 %v15108_v46, %v4281_v33  ;;  %v1955_v17 = vld [vmem:[%s14940_s7 + $0x70] sm:$0xff]  ;;  %3575 = vst [vmem:[#allocation4 + $0x3a8] sm:$0xff] %v8232_v18  ;;  %v3196_v58 = vpop.f32.mrb[33].mxu1  ;;  %v1956_v61 = vld [vmem:[%s14940_s7 + $0x78] sm:$0xff]  ;;  %v8420_v18 = vld [vmem:[#allocation4 + $0x78] sm:$0xff] }
 0x192   :  { %v1923_v41 = vmax.f32 %v1891_v13, 0.0  ;;  %v1893_v26 = vadd.f32 %v10154_v60, %v1855_v15  ;;  %v4538_v32 = vadd.f32 %v4410_v27, %v4150_v23  ;;  %v4539_v5 = vadd.f32 %v4411_v16, %v4151_v48  ;;  %3573 = vst [vmem:[#allocation4 + $0x398] sm:$0xff] %v3196_v58  ;;  %v1958_v27 = vld [vmem:[%s14940_s7 + $0x88] sm:$0xff]  ;;  %v8419_v16 = vld [vmem:[#allocation3 + $0x188] sm:$0xff] }
 0x193   :  { %v1856_v11 = vadd.f32 %v10313_v45, %v1756_v14  ;;  %v1924_v8 = vmax.f32 %v1892_v7, 0.0  ;;  %v4414_v62 = vmul.f32 %v15108_v46, %v4282_v35  ;;  %v10383_v19 = vadd.f32 %v4413_v50, %v10267_v47  ;;  %v2972_v45 = vpop.f32.mrb[25].mxu0  ;;  %v1957_v47 = vld [vmem:[%s14940_s7 + $0x80] sm:$0xff] }
 0x194   :  { %v1987_v40 = vadd.f32 %v1955_v17, %v1923_v41  ;;  %v1925_v12 = vmax.f32 %v1893_v26, 0.0  ;;  %v4798_v10 = vmul.f32 %v15103_v44, %v3634_v36  ;;  %v4799_v1 = vmul.f32 %v15103_v44, %v3635_v29  ;;  %3517 = vst [vmem:[#allocation4 + $0xf8] sm:$0xff] %v2972_v45  ;;  %v8177_v48 = vpop.f32.mrb[26].mxu0  ;;  %v1024_v41 = vld [vmem:[#allocation3 + $0x167] sm:$0xff] }
 0x195   :  { %v1894_v51 = vadd.f32 %v10154_v60, %v1856_v11  ;;  %v1988_v23 = vadd.f32 %v1956_v61, %v1924_v8  ;;  %v10409_v36 = vadd.f32 %v4414_v62, %v4154_v39  ;;  %v5186_v29 = vmul.f32 %v8418_v42, %v15100_v49  ;;  %3520 = vst [vmem:[#allocation4 + $0x110] sm:$0xff] %v8177_v48  ;;  %v15118_v62 = vld [vmem:[#allocation8_spill] sm:$0xff]  ;;  %v1027_v48 = vld [vmem:[#allocation3 + $0x18f] sm:$0xff] }
 0x196   :  { %2019 = vst [vmem:[%s14940_s7 + $0x70] sm:$0xff] %v1987_v40  ;;  %7769 = vst [vmem:[%s14942_s6 + $0x1c0] ss:$2 sm:$0xff] %v1987_v40  ;;  %v5573_v25 = vmul.f32 %v15110_v3, %v4281_v33  ;;  %v1989_v13 = vadd.f32 %v1957_v47, %v1925_v12  ;;  %v4926_v14 = vadd.f32 %v4798_v10, %v4538_v32  ;;  %v8422_v12 = vld [vmem:[#allocation3 + $0x168] sm:$0xff] }
 0x197   :  { %7771 = vst [vmem:[%s14942_s6 + $0x1e0] ss:$2 sm:$0xff] %v1987_v40  ;;  %7833 = vst [vmem:[%s14942_s6 + $0x1c1] ss:$2 sm:$0xff] %v1987_v40  ;;  %v1926_v57 = vmax.f32 %v1894_v51, 0.0  ;;  %v4927_v15 = vadd.f32 %v4799_v1, %v4539_v5  ;;  %v5574_v42 = vmul.f32 %v15110_v3, %v4282_v35  ;;  %v1062_v39 = vmul.f32 %v9088_v53, %v1026_v22 }
 0x198   :  { %7835 = vst [vmem:[%s14942_s6 + $0x1e1] ss:$2 sm:$0xff] %v1987_v40  ;;  %2020 = vst [vmem:[%s14940_s7 + $0x78] sm:$0xff] %v1988_v23  ;;  %v10433_v33 = vadd.f32 %v5573_v25, %v10272_v55  ;;  %v1130_v7 = vmul.f32 %v8419_v16, %v9090_v54  ;;  %v5314_v55 = vadd.f32 %v5186_v29, %v4926_v14  ;;  %v8421_v40 = vld [vmem:[%s14938_s4 + $0x20] sm:$0xff] }
 0x199   :  { %7770 = vst [vmem:[%s14942_s6 + $0x1d0] ss:$2 sm:$0xff] %v1988_v23  ;;  %7772 = vst [vmem:[%s14942_s6 + $0x1f0] ss:$2 sm:$0xff] %v1988_v23  ;;  %v1990_v50 = vadd.f32 %v1958_v27, %v1926_v57  ;;  %v10453_v35 = vadd.f32 %v10176_v43, %v4927_v15  ;;  %v10456_v11 = vmul.f32 %v9150_v38, %v1026_v22  ;;  %v8423_v15 = vld [vmem:[#allocation4 + $0x68] sm:$0xff] }
 0x19a   :  { %7834 = vst [vmem:[%s14942_s6 + $0x1d1] ss:$2 sm:$0xff] %v1988_v23  ;;  %7836 = vst [vmem:[%s14942_s6 + $0x1f1] ss:$2 sm:$0xff] %v1988_v23  ;;  %v1162_v26 = vadd.f32 %v1130_v7, %v1062_v39  ;;  %v10459_v17 = vmul.f32 %v8419_v16, %v15058_v2  ;;  %v10462_v32 = vmul.f32 %v15059_v34, %v1026_v22  ;;  %v8233_v22 = vpop.f32.mrb[34].mxu1 }
 0x19b   :  { %2021 = vst [vmem:[%s14940_s7 + $0x80] sm:$0xff] %v1989_v13  ;;  %7775 = vst [vmem:[%s14942_s6 + $0x220] ss:$2 sm:$0xff] %v1989_v13  ;;  %v10465_v5 = vmul.f32 %v8419_v16, %v15061_v9  ;;  %v10482_v43 = vadd.f32 %v5574_v42, %v5314_v55  ;;  %v10485_v8 = vmul.f32 %v8420_v18, %v15098_v63  ;;  %v15121_v16 = vld [vmem:[#allocation12_spill] sm:$0xff] }
 0x19c   :  { %7839 = vst [vmem:[%s14942_s6 + $0x221] ss:$2 sm:$0xff] %v1989_v13  ;;  %7773 = vst [vmem:[%s14942_s6 + $0x200] ss:$2 sm:$0xff] %v1989_v13  ;;  %v10491_v45 = vrot.slane %v8421_v40, %v15118_v62  ;;  %v1060_v58 = vmul.f32 %v9088_v53, %v1024_v41  ;;  %v10495_v51 = vmul.f32 %v8420_v18, %v15100_v49 }
 0x19d   :  { %7837 = vst [vmem:[%s14942_s6 + $0x201] ss:$2 sm:$0xff] %v1989_v13  ;;  %15116 = vst [vmem:[#allocation40_spill] sm:$0xff] %v10459_v17  ;;  %v1128_v61 = vmul.f32 %v8422_v12, %v9090_v54  ;;  %v1326_v10 = vmul.f32 %v9150_v38, %v1024_v41  ;;  %v1456_v1 = vadd.f32 %v10161_v56, %v10348_v21  ;;  %v1194_v21 = vld [vmem:[#allocation3 + $0x189] sm:$0xff] }
 0x19e   :  { %2022 = vst [vmem:[%s14940_s7 + $0x88] sm:$0xff] %v1990_v50  ;;  %7776 = vst [vmem:[%s14942_s6 + $0x230] ss:$2 sm:$0xff] %v1990_v50  ;;  %v10502_v47 = vmul.f32 %v8420_v18, %v10491_v45  ;;  %v1426_v23 = vmul.f32 %v8422_v12, %v15058_v2  ;;  %v1625_v29 = vmul.f32 %v15059_v34, %v1024_v41  ;;  %v1195_v41 = vld [vmem:[#allocation3 + $0x191] sm:$0xff] }
 0x19f   :  { %7840 = vst [vmem:[%s14942_s6 + $0x231] ss:$2 sm:$0xff] %v1990_v50  ;;  %7774 = vst [vmem:[%s14942_s6 + $0x210] ss:$2 sm:$0xff] %v1990_v50  ;;  %v3769_v25 = vmul.f32 %v15102_v59, %v3637_v6  ;;  %v1358_v57 = vadd.f32 %v1326_v10, %v10270_v20  ;;  %v1556_v13 = vadd.f32 %v10282_v30, %v1456_v1 }
 0x1a0   :  { %7838 = vst [vmem:[%s14942_s6 + $0x211] ss:$2 sm:$0xff] %v1990_v50  ;;  %15117 = vst [vmem:[#allocation31_spill] sm:$0xff] %v10482_v43  ;;  %v1725_v14 = vmul.f32 %v8422_v12, %v15061_v9  ;;  %v4029_v56 = vmul.f32 %v8423_v15, %v15098_v63  ;;  %v10511_v27 = vadd.f32 %v1128_v61, %v1060_v58  ;;  %v2975_v50 = vpop.f32.mrb[27].mxu0  ;;  %v8424_v12 = vld [vmem:[#allocation3 + $0x190] sm:$0xff] }
 0x1a1   :  { %15119 = vst [vmem:[#allocation32_spill] sm:$0xff] %v10491_v45  ;;  %15120 = vst [vmem:[#allocation35_spill] sm:$0xff] %v10502_v47  ;;  %v4801_v42 = vmul.f32 %v15103_v44, %v3637_v6  ;;  %v5189_v39 = vmul.f32 %v8423_v15, %v15100_v49  ;;  %v10516_v7 = vrot.slane %v8421_v40, %v15121_v16  ;;  %v8426_v47 = vld [vmem:[#allocation3 + $0x170] sm:$0xff] }
 0x1a2   :  { %3576 = vst [vmem:[#allocation4 + $0x3b0] sm:$0xff] %v8233_v22  ;;  %v10518_v20 = vadd.f32 %v1426_v23, %v1358_v57  ;;  %v1657_v30 = vadd.f32 %v1625_v29, %v1556_v13  ;;  %v10520_v55 = vadd.f32 %v4029_v56, %v3769_v25  ;;  %v1063_v18 = vmul.f32 %v9088_v53, %v1027_v48  ;;  %v3640_v57 = vld [vmem:[#allocation4 + $0x7f] sm:$0xff] }
 0x1a3   :  { %15122 = vst [vmem:[#allocation17_spill] sm:$0xff] %v10516_v7  ;;  %3518 = vst [vmem:[#allocation4 + $0x100] sm:$0xff] %v2975_v50  ;;  %v4929_v62 = vadd.f32 %v4801_v42, %v10383_v19  ;;  %v5962_v58 = vmul.f32 %v10516_v7, %v3637_v6  ;;  %v1131_v61 = vmul.f32 %v8424_v12, %v9090_v54  ;;  %v4287_v13 = vld [vmem:[#allocation4 + $0x79] sm:$0xff] }
 0x1a4   :  { %v1230_v40 = vmul.f32 %v9106_v0, %v1194_v21  ;;  %v10527_v10 = vadd.f32 %v1725_v14, %v1657_v30  ;;  %v6350_v1 = vmul.f32 %v8423_v15, %v10491_v45  ;;  %v1231_v22 = vmul.f32 %v9106_v0, %v1195_v41 }
 0x1a5   :  { %v10532_v23 = vmul.f32 %v9150_v38, %v1027_v48  ;;  %v10534_v29 = vadd.f32 %v5189_v39, %v4929_v62  ;;  %v6090_v19 = vadd.f32 %v5962_v58, %v10433_v33  ;;  %v1163_v25 = vadd.f32 %v1131_v61, %v1063_v18  ;;  %v4288_v39 = vld [vmem:[#allocation4 + $0x81] sm:$0xff]  ;;  %v10567_v18 = vld [vmem:[%s14938_s4 + $0x28] ss:$0 sm:$0xff] }
 0x1a6   :  { %v10538_v6 = vmul.f32 %v8424_v12, %v15058_v2  ;;  %v10540_v56 = vadd.f32 %v1230_v40, %v1162_v26  ;;  %v10543_v14 = vmul.f32 %v9148_v37, %v1194_v21  ;;  %v10546_v15 = vmul.f32 %v9148_v37, %v1195_v41  ;;  %v8425_v62 = vld [vmem:[#allocation4 + $0x80] sm:$0xff] }
 0x1a7   :  { %v10549_v42 = vmul.f32 %v15059_v34, %v1027_v48  ;;  %v10551_v16 = vadd.f32 %v6350_v1, %v6090_v19  ;;  %v10553_v33 = vadd.f32 %v1231_v22, %v1163_v25  ;;  %v10556_v50 = vmul.f32 %v8424_v12, %v15061_v9  ;;  %v1025_v12 = vld [vmem:[#allocation3 + $0x16f] sm:$0xff] }
 0x1a8   :  { %15123 = vst [vmem:[#allocation33_spill] sm:$0xff] %v10538_v6  ;;  %15124 = vst [vmem:[#allocation18_spill] sm:$0xff] %v10540_v56  ;;  %v10559_v26 = vmul.f32 %v10100_v4, %v1194_v21  ;;  %v10562_v30 = vmul.f32 %v10100_v4, %v1195_v41  ;;  %v3772_v48 = vmul.f32 %v15102_v59, %v3640_v57  ;;  %v1192_v22 = vld [vmem:[#allocation3 + $0x169] sm:$0xff]  ;;  %v1193_v19 = vld [vmem:[#allocation3 + $0x171] sm:$0xff] }
 0x1a9   :  { %15125 = vst [vmem:[#allocation34_spill] sm:$0xff] %v10543_v14  ;;  %15126 = vst [vmem:[#allocation19_spill] sm:$0xff] %v10546_v15  ;;  %v4032_v58 = vmul.f32 %v8425_v62, %v15098_v63  ;;  %v10572_v61 = vmul.f32 %v15108_v46, %v4287_v13  ;;  %v4420_v21 = vmul.f32 %v15108_v46, %v4288_v39 }
 0x1aa   :  { %15127 = vst [vmem:[#allocation45_spill] sm:$0xff] %v10551_v16  ;;  %15128 = vst [vmem:[#allocation24_spill] sm:$0xff] %v10553_v33  ;;  %v4804_v40 = vmul.f32 %v15103_v44, %v3640_v57  ;;  %v5192_v41 = vmul.f32 %v8425_v62, %v15100_v49  ;;  %v10578_v1 = vmul.f32 %v15110_v3, %v4287_v13 }
 0x1ab   :  { %15129 = vst [vmem:[#allocation43_spill] sm:$0xff] %v10572_v61  ;;  %v4160_v25 = vadd.f32 %v4032_v58, %v3772_v48  ;;  %v5580_v15 = vmul.f32 %v15110_v3, %v4288_v39  ;;  %v5965_v33 = vmul.f32 %v10516_v7, %v3640_v57  ;;  %v6353_v6 = vmul.f32 %v8425_v62, %v10491_v45  ;;  %v3199_v61 = vpop.f32.mrb[35].mxu1 }
 0x1ac   :  { %15130 = vst [vmem:[#allocation36_spill] sm:$0xff] %v10578_v1  ;;  %v4932_v14 = vadd.f32 %v4804_v40, %v10339_v31  ;;  %v10585_v56 = vmul.f32 %v10567_v18, %v4287_v13  ;;  %v1061_v17 = vmul.f32 %v9088_v53, %v1025_v12  ;;  %v1129_v1 = vmul.f32 %v8426_v47, %v9090_v54  ;;  %v15132_v54 = vld [vmem:[#allocation37_spill] sm:$0xff] }
 0x1ad   :  { %3574 = vst [vmem:[#allocation4 + $0x3a0] sm:$0xff] %v3199_v61  ;;  %v10589_v16 = vadd.f32 %v4420_v21, %v4160_v25  ;;  %v6093_v48 = vadd.f32 %v5965_v33, %v10343_v28  ;;  %v1228_v57 = vmul.f32 %v9106_v0, %v1192_v22  ;;  %v1229_v62 = vmul.f32 %v9106_v0, %v1193_v19  ;;  %v10603_v28 = vld [vmem:[%s14939_s5 + $0x2] ss:$0 sm:$0xff] }
 0x1ae   :  { %15131 = vst [vmem:[#allocation38_spill] sm:$0xff] %v10585_v56  ;;  %v5320_v58 = vadd.f32 %v5192_v41, %v4932_v14  ;;  %v6741_v31 = vmul.f32 %v10567_v18, %v4288_v39  ;;  %v1161_v40 = vadd.f32 %v1129_v1, %v1061_v17  ;;  %v1327_v13 = vmul.f32 %v9150_v38, %v1025_v12  ;;  %v15133_v17 = vld [vmem:[#allocation42_spill] sm:$0xff] }
 0x1af   :  { %v6481_v56 = vadd.f32 %v6353_v6, %v6093_v48  ;;  %v1260_v43 = vadd.f32 %v1228_v57, %v10511_v27  ;;  %v1457_v61 = vadd.f32 %v15132_v54, %v10364_v24  ;;  %v1526_v21 = vmul.f32 %v9148_v37, %v1192_v22  ;;  %v15134_v1 = vld [vmem:[#allocation30_spill] sm:$0xff]  ;;  %v10616_v48 = vld [vmem:[#allocation4 + $0x77] sm:$0xff] }
 0x1b0   :  { %v10605_v33 = vadd.f32 %v5580_v15, %v5320_v58  ;;  %v10607_v14 = vadd.f32 %v1229_v62, %v1161_v40  ;;  %v1359_v39 = vadd.f32 %v1327_v13, %v15133_v17  ;;  %v1427_v6 = vmul.f32 %v8426_v47, %v15058_v2  ;;  %v10614_v25 = vld [vmem:[#allocation4 + $0x6f] sm:$0xff] }
 0x1b1   :  { %v6869_v41 = vadd.f32 %v6741_v31, %v6481_v56  ;;  %v1527_v27 = vmul.f32 %v9148_v37, %v1193_v19  ;;  %v1557_v54 = vadd.f32 %v15134_v1, %v1457_v61  ;;  %v1558_v24 = vadd.f32 %v1526_v21, %v10518_v20  ;;  %v10627_v13 = vld [vmem:[#allocation4 + $0x69] sm:$0xff] }
 0x1b2   :  { %v10619_v15 = vadd.f32 %v10456_v11, %v1260_v43  ;;  %v1459_v57 = vadd.f32 %v1427_v6, %v1359_v39  ;;  %v1626_v62 = vmul.f32 %v15059_v34, %v1025_v12  ;;  %v1726_v58 = vmul.f32 %v8426_v47, %v15061_v9 }
 0x1b3   :  { %v7003_v56 = vadd.f32 %v10603_v28, %v6869_v41  ;;  %v1659_v31 = vadd.f32 %v10462_v32, %v1558_v24  ;;  %v1825_v40 = vmul.f32 %v10100_v4, %v1192_v22  ;;  %v1826_v20 = vmul.f32 %v10100_v4, %v1193_v19  ;;  %v10635_v32 = vld [vmem:[#allocation4 + $0x70] sm:$0xff]  ;;  %v7259_v19 = vld [vmem:[%s14942_s6 + $0x18] sm:$0xff]  ;;  %v8180_v24 = vpop.f32.mrb[28].mxu0 }
 0x1b4   :  { %v1559_v61 = vadd.f32 %v1527_v27, %v1459_v57  ;;  %v1658_v21 = vadd.f32 %v1626_v62, %v1557_v54  ;;  %v3770_v11 = vmul.f32 %v15102_v59, %v10614_v25  ;;  %v3771_v43 = vmul.f32 %v15102_v59, %v10616_v48  ;;  %v10639_v22 = vld [vmem:[#allocation4 + $0x71] sm:$0xff]  ;;  %v8236_v57 = vpop.f32.mrb[36].mxu1  ;;  %3523 = vst [vmem:[#allocation4 + $0x138] sm:$0xff] %v8180_v24 }
 0x1b5   :  { %v7131_v12 = vmax.f32 %v7003_v56, 0.0  ;;  %v1759_v47 = vadd.f32 %v10465_v5, %v1659_v31  ;;  %v1857_v17 = vadd.f32 %v1825_v40, %v10527_v10  ;;  %v4030_v4 = vmul.f32 %v10635_v32, %v15098_v63  ;;  %3579 = vst [vmem:[#allocation4 + $0x3d8] sm:$0xff] %v8236_v57  ;;  %v2988_v31 = vpop.f32.mrb[29].mxu0  ;;  %v3212_v40 = vpop.f32.mrb[37].mxu1 }
 0x1b6   :  { %v1660_v39 = vadd.f32 %v10549_v42, %v1559_v61  ;;  %v1758_v6 = vadd.f32 %v1726_v58, %v1658_v21  ;;  %v10646_v41 = vadd.f32 %v10485_v8, %v3771_v43  ;;  %v4417_v5 = vmul.f32 %v15108_v46, %v10627_v13  ;;  %v15135_v8 = vld [vmem:[#allocation23_spill] sm:$0xff]  ;;  %3521 = vst [vmem:[#allocation4 + $0x128] sm:$0xff] %v2988_v31  ;;  %v1959_v43 = vld [vmem:[%s14940_s7 + $0x90] sm:$0xff] }
 0x1b7   :  { %v7387_v10 = vadd.f32 %v7259_v19, %v7131_v12  ;;  %v1859_v27 = vadd.f32 %v10559_v26, %v1759_v47  ;;  %v1895_v1 = vadd.f32 %v10154_v60, %v1857_v17  ;;  %v4158_v54 = vadd.f32 %v4030_v4, %v3770_v11  ;;  %3577 = vst [vmem:[#allocation4 + $0x3c8] sm:$0xff] %v3212_v40 }
 0x1b8   :  { %v1760_v62 = vadd.f32 %v10556_v50, %v1660_v39  ;;  %v1858_v56 = vadd.f32 %v1826_v20, %v1758_v6  ;;  %v4418_v42 = vmul.f32 %v15108_v46, %v10639_v22  ;;  %v4543_v58 = vadd.f32 %v15135_v8, %v10373_v52  ;;  %v8181_v52 = vpop.f32.mrb[30].mxu0  ;;  %v1962_v8 = vld [vmem:[%s14940_s7 + $0xa8] sm:$0xff] }
 0x1b9   :  { %7515 = vst [vmem:[%s14942_s6 + $0x18] sm:$0xff] %v7387_v10  ;;  %v1897_v26 = vadd.f32 %v10154_v60, %v1859_v27  ;;  %v1927_v61 = vmax.f32 %v1895_v1, 0.0  ;;  %v10662_v50 = vadd.f32 %v4417_v5, %v10520_v55  ;;  %v4802_v20 = vmul.f32 %v15103_v44, %v10614_v25  ;;  %3524 = vst [vmem:[#allocation4 + $0x140] sm:$0xff] %v8181_v52  ;;  %v1961_v5 = vld [vmem:[%s14940_s7 + $0xa0] sm:$0xff]  ;;  %v1960_v27 = vld [vmem:[%s14940_s7 + $0x98] sm:$0xff] }
 0x1ba   :  { %v1860_v21 = vadd.f32 %v10562_v30, %v1760_v62  ;;  %v1896_v11 = vadd.f32 %v10154_v60, %v1858_v56  ;;  %v10671_v12 = vadd.f32 %v4418_v42, %v4158_v54  ;;  %v4803_v55 = vmul.f32 %v15103_v44, %v10616_v48  ;;  %v1030_v1 = vld [vmem:[#allocation3 + $0x1c7] sm:$0xff]  ;;  %v15136_v62 = vld [vmem:[#allocation39_spill] sm:$0xff]  ;;  %v8237_v42 = vpop.f32.mrb[38].mxu1 }
 0x1bb   :  { %v1929_v47 = vmax.f32 %v1897_v26, 0.0  ;;  %v1991_v17 = vadd.f32 %v1959_v43, %v1927_v61  ;;  %v4930_v4 = vadd.f32 %v4802_v20, %v10409_v36  ;;  %v5190_v19 = vmul.f32 %v10635_v32, %v15100_v49  ;;  %3580 = vst [vmem:[#allocation4 + $0x3e0] sm:$0xff] %v8237_v42  ;;  %v15137_v26 = vld [vmem:[#allocation31_spill] sm:$0xff] }
 0x1bc   :  { %v10680_v30 = vadd.f32 %v10532_v23, %v10607_v14  ;;  %v1898_v39 = vadd.f32 %v10154_v60, %v1860_v21  ;;  %v1928_v6 = vmax.f32 %v1896_v11, 0.0  ;;  %v4931_v10 = vadd.f32 %v4803_v55, %v4543_v58  ;;  %v8428_v21 = vld [vmem:[#allocation3 + $0x1c8] sm:$0xff] }
 0x1bd   :  { %v1993_v36 = vadd.f32 %v1961_v5, %v1929_v47  ;;  %2023 = vst [vmem:[%s14940_s7 + $0x90] sm:$0xff] %v1991_v17  ;;  %7777 = vst [vmem:[%s14942_s6 + $0x240] ss:$2 sm:$0xff] %v1991_v17  ;;  %v5318_v60 = vadd.f32 %v5190_v19, %v4930_v4  ;;  %v5577_v23 = vmul.f32 %v15110_v3, %v10627_v13  ;;  %v15138_v11 = vld [vmem:[#allocation6_spill] sm:$0xff]  ;;  %v2991_v4 = vpop.f32.mrb[31].mxu0 }
 0x1be   :  { %7779 = vst [vmem:[%s14942_s6 + $0x260] ss:$2 sm:$0xff] %v1991_v17  ;;  %7841 = vst [vmem:[%s14942_s6 + $0x241] ss:$2 sm:$0xff] %v1991_v17  ;;  %v5578_v14 = vmul.f32 %v15110_v3, %v10639_v22  ;;  %v1930_v54 = vmax.f32 %v1898_v39, 0.0  ;;  %v1992_v24 = vadd.f32 %v1960_v27, %v1928_v6  ;;  %v10709_v57 = vadd.f32 %v10495_v51, %v4931_v10  ;;  %v1028_v55 = vld [vmem:[#allocation3 + $0x1a7] sm:$0xff] }
 0x1bf   :  { %7843 = vst [vmem:[%s14942_s6 + $0x261] ss:$2 sm:$0xff] %v1991_v17  ;;  %v5703_v56 = vadd.f32 %v15136_v62, %v10453_v35  ;;  %2025 = vst [vmem:[%s14940_s7 + $0xa0] sm:$0xff] %v1993_v36  ;;  %v10732_v35 = vadd.f32 %v5577_v23, %v10534_v29  ;;  %v5963_v58 = vmul.f32 %v10516_v7, %v10614_v25  ;;  %v15141_v39 = vld [vmem:[#allocation35_spill] sm:$0xff] }
 0x1c0   :  { %7781 = vst [vmem:[%s14942_s6 + $0x280] ss:$2 sm:$0xff] %v1993_v36  ;;  %7783 = vst [vmem:[%s14942_s6 + $0x2a0] ss:$2 sm:$0xff] %v1993_v36  ;;  %v10734_v51 = vadd.f32 %v5578_v14, %v5318_v60  ;;  %v5964_v31 = vmul.f32 %v10516_v7, %v10616_v48  ;;  %v1994_v40 = vadd.f32 %v1962_v8, %v1930_v54  ;;  %v15142_v54 = vld [vmem:[#allocation38_spill] sm:$0xff] }
 0x1c1   :  { %7845 = vst [vmem:[%s14942_s6 + $0x281] ss:$2 sm:$0xff] %v1993_v36  ;;  %7847 = vst [vmem:[%s14942_s6 + $0x2a1] ss:$2 sm:$0xff] %v1993_v36  ;;  %v6351_v29 = vmul.f32 %v10635_v32, %v10491_v45  ;;  %v6738_v25 = vmul.f32 %v10567_v18, %v10627_v13  ;;  %v1066_v48 = vmul.f32 %v9088_v53, %v1030_v1  ;;  %v15139_v13 = vld [vmem:[#allocation45_spill] sm:$0xff]  ;;  %v8429_v36 = vld [vmem:[#allocation4 + $0xa8] sm:$0xff] }
 0x1c2   :  { %2024 = vst [vmem:[%s14940_s7 + $0x98] sm:$0xff] %v1992_v24  ;;  %7778 = vst [vmem:[%s14942_s6 + $0x250] ss:$2 sm:$0xff] %v1992_v24  ;;  %v6091_v61 = vadd.f32 %v5963_v58, %v15137_v26  ;;  %v6092_v20 = vadd.f32 %v5964_v31, %v5703_v56  ;;  %v6739_v52 = vmul.f32 %v10567_v18, %v10639_v22  ;;  %v8430_v8 = vld [vmem:[#allocation3 + $0x1a8] sm:$0xff]  ;;  %v15144_v31 = vld [vmem:[#allocation40_spill] sm:$0xff] }
 0x1c3   :  { %7780 = vst [vmem:[%s14942_s6 + $0x270] ss:$2 sm:$0xff] %v1992_v24  ;;  %7842 = vst [vmem:[%s14942_s6 + $0x251] ss:$2 sm:$0xff] %v1992_v24  ;;  %v1134_v43 = vmul.f32 %v8428_v21, %v15138_v11  ;;  %v6866_v32 = vadd.f32 %v6738_v25, %v15139_v13  ;;  %v10781_v22 = vmul.f32 %v9150_v38, %v1030_v1  ;;  %v3641_v25 = vld [vmem:[#allocation4 + $0x97] sm:$0xff] }
 0x1c4   :  { %7844 = vst [vmem:[%s14942_s6 + $0x271] ss:$2 sm:$0xff] %v1992_v24  ;;  %2026 = vst [vmem:[%s14940_s7 + $0xa8] sm:$0xff] %v1994_v40  ;;  %v10784_v47 = vmul.f32 %v8428_v21, %v15058_v2  ;;  %v10787_v17 = vmul.f32 %v15059_v34, %v1030_v1  ;;  %v6479_v19 = vadd.f32 %v6351_v29, %v6091_v61  ;;  %v7256_v61 = vld [vmem:[%s14942_s6] sm:$0xff] }
 0x1c5   :  { %7782 = vst [vmem:[%s14942_s6 + $0x290] ss:$2 sm:$0xff] %v1994_v40  ;;  %7784 = vst [vmem:[%s14942_s6 + $0x2b0] ss:$2 sm:$0xff] %v1994_v40  ;;  %v6480_v6 = vadd.f32 %v15141_v39, %v6092_v20  ;;  %v10790_v5 = vadd.f32 %v1134_v43, %v1066_v48  ;;  %v10793_v10 = vmul.f32 %v8428_v21, %v15061_v9  ;;  %v15145_v20 = vld [vmem:[#allocation18_spill] sm:$0xff]  ;;  %v7257_v39 = vld [vmem:[%s14942_s6 + $0x8] sm:$0xff] }
 0x1c6   :  { %7846 = vst [vmem:[%s14942_s6 + $0x291] ss:$2 sm:$0xff] %v1994_v40  ;;  %7848 = vst [vmem:[%s14942_s6 + $0x2b1] ss:$2 sm:$0xff] %v1994_v40  ;;  %v7000_v27 = vadd.f32 %v10603_v28, %v6866_v32  ;;  %v10797_v60 = vmul.f32 %v8429_v36, %v15098_v63  ;;  %v10800_v23 = vmul.f32 %v8429_v36, %v15100_v49  ;;  %v15146_v32 = vld [vmem:[#allocation34_spill] sm:$0xff] }
 0x1c7   :  { %15140 = vst [vmem:[#allocation27_spill] sm:$0xff] %v10784_v47  ;;  %3522 = vst [vmem:[#allocation4 + $0x130] sm:$0xff] %v2991_v4  ;;  %v1064_v14 = vmul.f32 %v9088_v53, %v1028_v55  ;;  %v6867_v1 = vadd.f32 %v6739_v52, %v6479_v19  ;;  %v6868_v24 = vadd.f32 %v15142_v54, %v6480_v6  ;;  %v8431_v54 = vld [vmem:[#allocation4 + $0x98] sm:$0xff]  ;;  %v8435_v47 = vld [vmem:[#allocation3 + $0x1b0] sm:$0xff] }
 0x1c8   :  { %v10805_v62 = vmul.f32 %v8429_v36, %v10491_v45  ;;  %v1330_v56 = vmul.f32 %v9150_v38, %v1028_v55  ;;  %v7128_v42 = vmax.f32 %v7000_v27, 0.0  ;;  %v1132_v58 = vmul.f32 %v8430_v8, %v15138_v11  ;;  %v1031_v36 = vld [vmem:[#allocation3 + $0x1cf] sm:$0xff] }
 0x1c9   :  { %v1460_v40 = vadd.f32 %v15144_v31, %v10619_v15  ;;  %v1629_v29 = vmul.f32 %v15059_v34, %v1028_v55  ;;  %v7001_v48 = vadd.f32 %v10603_v28, %v6867_v1  ;;  %v7002_v26 = vadd.f32 %v10603_v28, %v6868_v24 }
 0x1ca   :  { %15143 = vst [vmem:[#allocation16_spill] sm:$0xff] %v10805_v62  ;;  %v1362_v52 = vadd.f32 %v1330_v56, %v15145_v20  ;;  %v1430_v21 = vmul.f32 %v8430_v8, %v15058_v2  ;;  %v7384_v43 = vadd.f32 %v7256_v61, %v7128_v42  ;;  %v10819_v13 = vadd.f32 %v1132_v58, %v1064_v14  ;;  %v7258_v14 = vld [vmem:[%s14942_s6 + $0x10] sm:$0xff]  ;;  %v1199_v58 = vld [vmem:[#allocation3 + $0x1d1] sm:$0xff]  ;;  %v3215_v61 = vpop.f32.mrb[39].mxu1 }
 0x1cb   :  { %v1560_v15 = vadd.f32 %v15146_v32, %v1460_v40  ;;  %v1729_v55 = vmul.f32 %v8430_v8, %v15061_v9  ;;  %v7129_v4 = vmax.f32 %v7001_v48, 0.0  ;;  %v7130_v19 = vmax.f32 %v7002_v26, 0.0  ;;  %v1198_v8 = vld [vmem:[#allocation3 + $0x1c9] sm:$0xff]  ;;  %3578 = vst [vmem:[#allocation4 + $0x3d0] sm:$0xff] %v3215_v61 }
 0x1cc   :  { %v10826_v6 = vadd.f32 %v1430_v21, %v1362_v52  ;;  %v3773_v27 = vmul.f32 %v15102_v59, %v3641_v25  ;;  %7512 = vst [vmem:[%s14942_s6] sm:$0xff] %v7384_v43  ;;  %v4033_v24 = vmul.f32 %v8431_v54, %v15098_v63  ;;  %v4805_v56 = vmul.f32 %v15103_v44, %v3641_v25  ;;  %v8432_v43 = vld [vmem:[#allocation3 + $0x1d0] sm:$0xff] }
 0x1cd   :  { %v1661_v1 = vadd.f32 %v1629_v29, %v1560_v15  ;;  %v5966_v42 = vmul.f32 %v10516_v7, %v3641_v25  ;;  %v7385_v31 = vadd.f32 %v7257_v39, %v7129_v4  ;;  %v7386_v40 = vadd.f32 %v7258_v14, %v7130_v19  ;;  %v3644_v15 = vld [vmem:[#allocation4 + $0xaf] sm:$0xff] }
 0x1ce   :  { %v5193_v48 = vmul.f32 %v8431_v54, %v15100_v49  ;;  %v6354_v26 = vmul.f32 %v8431_v54, %v10491_v45  ;;  %v4933_v29 = vadd.f32 %v4805_v56, %v10662_v50  ;;  %v1067_v21 = vmul.f32 %v9088_v53, %v1031_v36  ;;  %v4291_v14 = vld [vmem:[#allocation4 + $0xa9] sm:$0xff]  ;;  %v4292_v56 = vld [vmem:[#allocation4 + $0xb1] sm:$0xff] }
 0x1cf   :  { %v10840_v20 = vadd.f32 %v1729_v55, %v1661_v1  ;;  %v6094_v52 = vadd.f32 %v5966_v42, %v10732_v35  ;;  %7513 = vst [vmem:[%s14942_s6 + $0x8] sm:$0xff] %v7385_v31  ;;  %7514 = vst [vmem:[%s14942_s6 + $0x10] sm:$0xff] %v7386_v40  ;;  %v10851_v25 = vadd.f32 %v4033_v24, %v3773_v27  ;;  %v10882_v40 = vld [vmem:[%s14938_s4 + $0x18] ss:$0 sm:$0xff] }
 0x1d0   :  { %v1135_v32 = vmul.f32 %v8432_v43, %v15138_v11  ;;  %v1234_v50 = vmul.f32 %v9106_v0, %v1198_v8  ;;  %v1235_v35 = vmul.f32 %v9106_v0, %v1199_v58  ;;  %v10856_v55 = vadd.f32 %v5193_v48, %v4933_v29 }
 0x1d1   :  { %v10858_v4 = vadd.f32 %v6354_v26, %v6094_v52  ;;  %v1333_v19 = vmul.f32 %v9150_v38, %v1031_v36  ;;  %v10862_v39 = vmul.f32 %v8432_v43, %v15058_v2  ;;  %v10868_v54 = vmul.f32 %v9148_v37, %v1198_v8 }
 0x1d2   :  { %v1167_v27 = vadd.f32 %v1135_v32, %v1067_v21  ;;  %v10865_v1 = vadd.f32 %v1234_v50, %v10790_v5  ;;  %v10871_v24 = vmul.f32 %v9148_v37, %v1199_v58  ;;  %v10874_v42 = vmul.f32 %v15059_v34, %v1031_v36  ;;  %v8434_v36 = vld [vmem:[#allocation4 + $0xb0] sm:$0xff] }
 0x1d3   :  { %15147 = vst [vmem:[#allocation41_spill] sm:$0xff] %v10858_v4  ;;  %15148 = vst [vmem:[#allocation44_spill] sm:$0xff] %v10862_v39  ;;  %v10877_v31 = vmul.f32 %v8432_v43, %v15061_v9  ;;  %v10885_v5 = vmul.f32 %v10882_v40, %v1198_v8  ;;  %v3776_v48 = vmul.f32 %v15102_v59, %v3644_v15  ;;  %v1029_v21 = vld [vmem:[#allocation3 + $0x1af] sm:$0xff] }
 0x1d4   :  { %15149 = vst [vmem:[#allocation13_spill] sm:$0xff] %v10865_v1  ;;  %15150 = vst [vmem:[#allocation14_spill] sm:$0xff] %v10868_v54  ;;  %v10888_v26 = vadd.f32 %v1235_v35, %v1167_v27  ;;  %v10891_v61 = vmul.f32 %v10882_v40, %v1199_v58  ;;  %v4036_v29 = vmul.f32 %v8434_v36, %v15098_v63  ;;  %v1196_v35 = vld [vmem:[#allocation3 + $0x1a9] sm:$0xff]  ;;  %v1197_v27 = vld [vmem:[#allocation3 + $0x1b1] sm:$0xff] }
 0x1d5   :  { %15151 = vst [vmem:[#allocation28_spill] sm:$0xff] %v10871_v24  ;;  %v10895_v52 = vmul.f32 %v15108_v46, %v4291_v14  ;;  %v4424_v43 = vmul.f32 %v15108_v46, %v4292_v56  ;;  %v4808_v32 = vmul.f32 %v15103_v44, %v3644_v15  ;;  %v5196_v8 = vmul.f32 %v8434_v36, %v15100_v49 }
 0x1d6   :  { %15152 = vst [vmem:[#allocation46_spill] sm:$0xff] %v10888_v26  ;;  %v10901_v50 = vmul.f32 %v15110_v3, %v4291_v14  ;;  %v4164_v58 = vadd.f32 %v4036_v29, %v3776_v48  ;;  %v5584_v24 = vmul.f32 %v15110_v3, %v4292_v56  ;;  %v5969_v26 = vmul.f32 %v10516_v7, %v3644_v15 }
 0x1d7   :  { %15153 = vst [vmem:[#allocation47_spill] sm:$0xff] %v10895_v52  ;;  %v6357_v39 = vmul.f32 %v8434_v36, %v10491_v45  ;;  %v4936_v52 = vadd.f32 %v4808_v32, %v10589_v16  ;;  %v10908_v54 = vmul.f32 %v10567_v18, %v4291_v14  ;;  %v1065_v1 = vmul.f32 %v9088_v53, %v1029_v21  ;;  %v15157_v53 = vld [vmem:[#allocation33_spill] sm:$0xff] }
 0x1d8   :  { %15154 = vst [vmem:[#allocation48_spill] sm:$0xff] %v10901_v50  ;;  %v1133_v62 = vmul.f32 %v8435_v47, %v15138_v11  ;;  %v10912_v50 = vadd.f32 %v4424_v43, %v4164_v58  ;;  %v6097_v48 = vadd.f32 %v5969_v26, %v10605_v33  ;;  %v1232_v29 = vmul.f32 %v9106_v0, %v1196_v35  ;;  %v15158_v26 = vld [vmem:[#allocation24_spill] sm:$0xff] }
 0x1d9   :  { %15155 = vst [vmem:[#allocation49_spill] sm:$0xff] %v10908_v54  ;;  %v1233_v15 = vmul.f32 %v9106_v0, %v1197_v27  ;;  %v5324_v4 = vadd.f32 %v5196_v8, %v4936_v52  ;;  %v6745_v36 = vmul.f32 %v10567_v18, %v4292_v56  ;;  %v1331_v14 = vmul.f32 %v9150_v38, %v1029_v21 }
 0x1da   :  { %15156 = vst [vmem:[#allocation51_spill] sm:$0xff] %v10912_v50  ;;  %v1165_v16 = vadd.f32 %v1133_v62, %v1065_v1  ;;  %v6485_v32 = vadd.f32 %v6357_v39, %v6097_v48  ;;  %v1264_v54 = vadd.f32 %v1232_v29, %v10819_v13  ;;  %v1461_v11 = vadd.f32 %v15157_v53, %v10680_v30  ;;  %v15159_v1 = vld [vmem:[#allocation19_spill] sm:$0xff]  ;;  %v10930_v13 = vld [vmem:[#allocation4 + $0x9f] sm:$0xff]  ;;  %v10932_v48 = vld [vmem:[#allocation4 + $0xa7] sm:$0xff]  ;;  %v8184_v53 = vpop.f32.mrb[32].mxu0  ;;  %v8240_v30 = vpop.f32.mrb[40].mxu1 }
 0x1db   :  { %v1530_v43 = vmul.f32 %v9148_v37, %v1196_v35  ;;  %v10923_v58 = vadd.f32 %v5584_v24, %v5324_v4  ;;  %v1363_v50 = vadd.f32 %v1331_v14, %v15158_v26  ;;  %v1431_v52 = vmul.f32 %v8435_v47, %v15058_v2  ;;  %3527 = vst [vmem:[#allocation4 + $0x168] sm:$0xff] %v8184_v53  ;;  %v7263_v26 = vld [vmem:[%s14942_s6 + $0x38] sm:$0xff] }
 0x1dc   :  { %v1265_v33 = vadd.f32 %v1233_v15, %v1165_v16  ;;  %v6873_v8 = vadd.f32 %v6745_v36, %v6485_v32  ;;  %v1531_v62 = vmul.f32 %v9148_v37, %v1197_v27  ;;  %v1561_v56 = vadd.f32 %v15159_v1, %v1461_v11  ;;  %3583 = vst [vmem:[#allocation4 + $0x408] sm:$0xff] %v8240_v30  ;;  %v3004_v36 = vpop.f32.mrb[33].mxu0  ;;  %v3228_v11 = vpop.f32.mrb[41].mxu1 }
 0x1dd   :  { %v1562_v39 = vadd.f32 %v1530_v43, %v10826_v6  ;;  %v10935_v4 = vadd.f32 %v10781_v22, %v1264_v54  ;;  %v1463_v29 = vadd.f32 %v1431_v52, %v1363_v50  ;;  %v1630_v15 = vmul.f32 %v15059_v34, %v1029_v21  ;;  %v10944_v43 = vld [vmem:[#allocation4 + $0x99] sm:$0xff]  ;;  %3525 = vst [vmem:[#allocation4 + $0x158] sm:$0xff] %v3004_v36  ;;  %v8185_v22 = vpop.f32.mrb[34].mxu0  ;;  %v15160_v36 = vld [vmem:[#allocation43_spill] sm:$0xff] }
 0x1de   :  { %v10937_v24 = vadd.f32 %v1333_v19, %v1265_v33  ;;  %v7007_v6 = vadd.f32 %v10603_v28, %v6873_v8  ;;  %v1730_v14 = vmul.f32 %v8435_v47, %v15061_v9  ;;  %v1829_v32 = vmul.f32 %v10882_v40, %v1196_v35  ;;  %3581 = vst [vmem:[#allocation4 + $0x3f8] sm:$0xff] %v3228_v11 }
 0x1df   :  { %v1663_v16 = vadd.f32 %v10787_v17, %v1562_v39  ;;  %v1563_v19 = vadd.f32 %v1531_v62, %v1463_v29  ;;  %v1662_v54 = vadd.f32 %v1630_v15, %v1561_v56  ;;  %v3774_v21 = vmul.f32 %v15102_v59, %v10930_v13  ;;  %3528 = vst [vmem:[#allocation4 + $0x170] sm:$0xff] %v8185_v22  ;;  %v10957_v62 = vld [vmem:[#allocation4 + $0xa0] sm:$0xff]  ;;  %v10969_v39 = vld [vmem:[%s14939_s5 + $0x1] ss:$0 sm:$0xff] }
 0x1e0   :  { %v3775_v50 = vmul.f32 %v15102_v59, %v10932_v48  ;;  %v7135_v33 = vmax.f32 %v7007_v6, 0.0  ;;  %v1830_v47 = vmul.f32 %v10882_v40, %v1197_v27  ;;  %v1861_v35 = vadd.f32 %v1829_v32, %v10840_v20  ;;  %v10961_v56 = vld [vmem:[#allocation4 + $0xa1] sm:$0xff]  ;;  %v8241_v6 = vpop.f32.mrb[42].mxu1 }
 0x1e1   :  { %v1763_v17 = vadd.f32 %v10793_v10, %v1663_v16  ;;  %v1664_v52 = vadd.f32 %v10874_v42, %v1563_v19  ;;  %v1762_v8 = vadd.f32 %v1730_v14, %v1662_v54  ;;  %v4034_v1 = vmul.f32 %v10957_v62, %v15098_v63  ;;  %3584 = vst [vmem:[#allocation4 + $0x410] sm:$0xff] %v8241_v6 }
 0x1e2   :  { %v4421_v10 = vmul.f32 %v15108_v46, %v10944_v43  ;;  %v7391_v27 = vadd.f32 %v7263_v26, %v7135_v33  ;;  %v1899_v42 = vadd.f32 %v10969_v39, %v1861_v35  ;;  %v10973_v53 = vadd.f32 %v10797_v60, %v3775_v50  ;;  %v3007_v26 = vpop.f32.mrb[35].mxu0 }
 0x1e3   :  { %v1863_v20 = vadd.f32 %v10885_v5, %v1763_v17  ;;  %v1764_v30 = vadd.f32 %v10877_v31, %v1664_v52  ;;  %v1862_v29 = vadd.f32 %v1830_v47, %v1762_v8  ;;  %v4162_v15 = vadd.f32 %v4034_v1, %v3774_v21  ;;  %v1965_v47 = vld [vmem:[%s14940_s7 + $0xc0] sm:$0xff]  ;;  %v1964_v52 = vld [vmem:[%s14940_s7 + $0xb8] sm:$0xff]  ;;  %3526 = vst [vmem:[#allocation4 + $0x160] sm:$0xff] %v3007_v26 }
 0x1e4   :  { %v4547_v11 = vadd.f32 %v15160_v36, %v10646_v41  ;;  %7519 = vst [vmem:[%s14942_s6 + $0x38] sm:$0xff] %v7391_v27  ;;  %v1931_v16 = vmax.f32 %v1899_v42, 0.0  ;;  %v4422_v14 = vmul.f32 %v15108_v46, %v10961_v56  ;;  %v4806_v60 = vmul.f32 %v15103_v44, %v10930_v13  ;;  %v1963_v41 = vld [vmem:[%s14940_s7 + $0xb0] sm:$0xff]  ;;  %v1966_v36 = vld [vmem:[%s14940_s7 + $0xc8] sm:$0xff] }
 0x1e5   :  { %v1901_v5 = vadd.f32 %v10969_v39, %v1863_v20  ;;  %v1864_v31 = vadd.f32 %v10891_v61, %v1764_v30  ;;  %v1900_v32 = vadd.f32 %v10969_v39, %v1862_v29  ;;  %v10992_v22 = vadd.f32 %v4421_v10, %v10851_v25  ;;  %v15162_v30 = vld [vmem:[#allocation36_spill] sm:$0xff] }
 0x1e6   :  { %v4807_v19 = vmul.f32 %v15103_v44, %v10932_v48  ;;  %v1995_v21 = vadd.f32 %v1963_v41, %v1931_v16  ;;  %v4934_v50 = vadd.f32 %v4806_v60, %v10671_v12  ;;  %v5194_v33 = vmul.f32 %v10957_v62, %v15100_v49  ;;  %v1032_v16 = vld [vmem:[#allocation3 + $0x1e7] sm:$0xff] }
 0x1e7   :  { %v1933_v54 = vmax.f32 %v1901_v5, 0.0  ;;  %v1902_v61 = vadd.f32 %v10969_v39, %v1864_v31  ;;  %v1932_v17 = vmax.f32 %v1900_v32, 0.0  ;;  %v11003_v35 = vadd.f32 %v4422_v14, %v4162_v15  ;;  %v1300_v15 = vld [vmem:[#allocation3 + $0x207] sm:$0xff] }
 0x1e8   :  { %v4935_v25 = vadd.f32 %v4807_v19, %v4547_v11  ;;  %2027 = vst [vmem:[%s14940_s7 + $0xb0] sm:$0xff] %v1995_v21  ;;  %7785 = vst [vmem:[%s14942_s6 + $0x2c0] ss:$2 sm:$0xff] %v1995_v21  ;;  %v5322_v12 = vadd.f32 %v5194_v33, %v4934_v50  ;;  %v5581_v1 = vmul.f32 %v15110_v3, %v10944_v43  ;;  %v8438_v32 = vld [vmem:[#allocation3 + $0x208] sm:$0xff]  ;;  %v8439_v19 = vld [vmem:[#allocation4 + $0xd8] sm:$0xff] }
 0x1e9   :  { %v1997_v8 = vadd.f32 %v1965_v47, %v1933_v54  ;;  %7787 = vst [vmem:[%s14942_s6 + $0x2e0] ss:$2 sm:$0xff] %v1995_v21  ;;  %7849 = vst [vmem:[%s14942_s6 + $0x2c1] ss:$2 sm:$0xff] %v1995_v21  ;;  %v5582_v10 = vmul.f32 %v15110_v3, %v10961_v56  ;;  %v1934_v27 = vmax.f32 %v1902_v61, 0.0  ;;  %v1996_v20 = vadd.f32 %v1964_v52, %v1932_v17  ;;  %v15165_v50 = vld [vmem:[#allocation16_spill] sm:$0xff] }
 0x1ea   :  { %7851 = vst [vmem:[%s14942_s6 + $0x2e1] ss:$2 sm:$0xff] %v1995_v21  ;;  %v11028_v42 = vadd.f32 %v10800_v23, %v4935_v25  ;;  %v5707_v29 = vadd.f32 %v15162_v30, %v10709_v57  ;;  %v11051_v57 = vadd.f32 %v5581_v1, %v10856_v55  ;;  %v5967_v11 = vmul.f32 %v10516_v7, %v10930_v13  ;;  %v15167_v17 = vld [vmem:[#allocation5_spill] sm:$0xff]  ;;  %v8440_v52 = vld [vmem:[#allocation3 + $0x1e8] sm:$0xff] }
 0x1eb   :  { %2029 = vst [vmem:[%s14940_s7 + $0xc0] sm:$0xff] %v1997_v8  ;;  %7789 = vst [vmem:[%s14942_s6 + $0x300] ss:$2 sm:$0xff] %v1997_v8  ;;  %v11053_v23 = vadd.f32 %v5582_v10, %v5322_v12  ;;  %v5968_v6 = vmul.f32 %v10516_v7, %v10932_v48  ;;  %v1998_v5 = vadd.f32 %v1966_v36, %v1934_v27  ;;  %v3645_v10 = vld [vmem:[#allocation4 + $0xc7] sm:$0xff] }
 0x1ec   :  { %15161 = vst [vmem:[#allocation9_spill] sm:$0xff] %v11028_v42  ;;  %7791 = vst [vmem:[%s14942_s6 + $0x320] ss:$2 sm:$0xff] %v1997_v8  ;;  %v6355_v55 = vmul.f32 %v10957_v62, %v10491_v45  ;;  %v6742_v13 = vmul.f32 %v10567_v18, %v10944_v43  ;;  %v6743_v48 = vmul.f32 %v10567_v18, %v10961_v56 }
 0x1ed   :  { %7853 = vst [vmem:[%s14942_s6 + $0x301] ss:$2 sm:$0xff] %v1997_v8  ;;  %7855 = vst [vmem:[%s14942_s6 + $0x321] ss:$2 sm:$0xff] %v1997_v8  ;;  %v6095_v14 = vadd.f32 %v5967_v11, %v10734_v51  ;;  %v6096_v60 = vadd.f32 %v5968_v6, %v5707_v29  ;;  %v11082_v31 = vmul.f32 %v9150_v38, %v1300_v15  ;;  %v15164_v51 = vld [vmem:[#allocation41_spill] sm:$0xff]  ;;  %v15169_v8 = vld [vmem:[#allocation6_spill] sm:$0xff] }
 0x1ee   :  { %15163 = vst [vmem:[#allocation50_spill] sm:$0xff] %v11053_v23  ;;  %2028 = vst [vmem:[%s14940_s7 + $0xb8] sm:$0xff] %v1996_v20  ;;  %v11085_v41 = vmul.f32 %v8438_v32, %v15058_v2  ;;  %v6870_v43 = vadd.f32 %v6742_v13, %v15164_v51  ;;  %v11104_v62 = vmul.f32 %v15059_v34, %v1300_v15  ;;  %v15171_v29 = vld [vmem:[#allocation27_spill] sm:$0xff]  ;;  %v15173_v51 = vld [vmem:[#allocation14_spill] sm:$0xff] }
 0x1ef   :  { %7786 = vst [vmem:[%s14942_s6 + $0x2d0] ss:$2 sm:$0xff] %v1996_v20  ;;  %7788 = vst [vmem:[%s14942_s6 + $0x2f0] ss:$2 sm:$0xff] %v1996_v20  ;;  %v11107_v56 = vmul.f32 %v8438_v32, %v15061_v9  ;;  %v11110_v54 = vmul.f32 %v8439_v19, %v15098_v63  ;;  %v6483_v21 = vadd.f32 %v6355_v55, %v6095_v14  ;;  %v3231_v14 = vpop.f32.mrb[43].mxu1 }
 0x1f0   :  { %7850 = vst [vmem:[%s14942_s6 + $0x2d1] ss:$2 sm:$0xff] %v1996_v20  ;;  %7852 = vst [vmem:[%s14942_s6 + $0x2f1] ss:$2 sm:$0xff] %v1996_v20  ;;  %v6484_v33 = vadd.f32 %v15165_v50, %v6096_v60  ;;  %v11114_v61 = vmul.f32 %v8439_v19, %v15100_v49  ;;  %v1068_v47 = vmul.f32 %v15167_v17, %v1032_v16  ;;  %v15170_v20 = vld [vmem:[#allocation49_spill] sm:$0xff]  ;;  %v8244_v42 = vpop.f32.mrb[44].mxu1 }
 0x1f1   :  { %2030 = vst [vmem:[%s14940_s7 + $0xc8] sm:$0xff] %v1998_v5  ;;  %7790 = vst [vmem:[%s14942_s6 + $0x310] ss:$2 sm:$0xff] %v1998_v5  ;;  %v7004_v25 = vadd.f32 %v10603_v28, %v6870_v43  ;;  %v11119_v26 = vmul.f32 %v8439_v19, %v10491_v45  ;;  %v1136_v12 = vmul.f32 %v8440_v52, %v15169_v8 }
 0x1f2   :  { %7792 = vst [vmem:[%s14942_s6 + $0x330] ss:$2 sm:$0xff] %v1998_v5  ;;  %7854 = vst [vmem:[%s14942_s6 + $0x311] ss:$2 sm:$0xff] %v1998_v5  ;;  %v1334_v1 = vmul.f32 %v9150_v38, %v1032_v16  ;;  %v6871_v27 = vadd.f32 %v6743_v48, %v6483_v21  ;;  %v6872_v30 = vadd.f32 %v15170_v20, %v6484_v33  ;;  %v7260_v48 = vld [vmem:[%s14942_s6 + $0x20] sm:$0xff]  ;;  %v8441_v21 = vld [vmem:[#allocation4 + $0xc8] sm:$0xff] }
 0x1f3   :  { %7856 = vst [vmem:[%s14942_s6 + $0x331] ss:$2 sm:$0xff] %v1998_v5  ;;  %15166 = vst [vmem:[#allocation20_spill] sm:$0xff] %v11114_v61  ;;  %v1464_v15 = vadd.f32 %v15171_v29, %v10935_v4  ;;  %v1633_v36 = vmul.f32 %v15059_v34, %v1032_v16  ;;  %v7132_v11 = vmax.f32 %v7004_v25, 0.0  ;;  %v11127_v6 = vadd.f32 %v1136_v12, %v1068_v47  ;;  %v15172_v5 = vld [vmem:[#allocation13_spill] sm:$0xff]  ;;  %v7261_v12 = vld [vmem:[%s14942_s6 + $0x28] sm:$0xff] }
 0x1f4   :  { %15168 = vst [vmem:[#allocation52_spill] sm:$0xff] %v11119_v26  ;;  %v1366_v55 = vadd.f32 %v1334_v1, %v15172_v5  ;;  %v1434_v13 = vmul.f32 %v8440_v52, %v15058_v2  ;;  %v7005_v60 = vadd.f32 %v10603_v28, %v6871_v27  ;;  %v7006_v32 = vadd.f32 %v10603_v28, %v6872_v30  ;;  %v1301_v20 = vld [vmem:[#allocation3 + $0x20f] sm:$0xff]  ;;  %v7262_v30 = vld [vmem:[%s14942_s6 + $0x30] sm:$0xff] }
 0x1f5   :  { %v1564_v4 = vadd.f32 %v15173_v51, %v1464_v15  ;;  %v3777_v16 = vmul.f32 %v15102_v59, %v3645_v10  ;;  %3582 = vst [vmem:[#allocation4 + $0x400] sm:$0xff] %v3231_v14  ;;  %v7388_v43 = vadd.f32 %v7260_v48, %v7132_v11  ;;  %v4037_v50 = vmul.f32 %v8441_v21, %v15098_v63 }
 0x1f6   :  { %v11138_v19 = vadd.f32 %v1434_v13, %v1366_v55  ;;  %v4809_v33 = vmul.f32 %v15103_v44, %v3645_v10  ;;  %v7133_v47 = vmax.f32 %v7005_v60, 0.0  ;;  %v7134_v25 = vmax.f32 %v7006_v32, 0.0  ;;  %v1501_v55 = vld [vmem:[#allocation3 + $0x211] sm:$0xff]  ;;  %v3648_v32 = vld [vmem:[#allocation4 + $0xdf] sm:$0xff]  ;;  %3587 = vst [vmem:[#allocation4 + $0x438] sm:$0xff] %v8244_v42 }
 0x1f7   :  { %v1665_v1 = vadd.f32 %v1633_v36, %v1564_v4  ;;  %v1733_v27 = vmul.f32 %v8440_v52, %v15061_v9  ;;  %7516 = vst [vmem:[%s14942_s6 + $0x20] sm:$0xff] %v7388_v43  ;;  %v11152_v29 = vadd.f32 %v4037_v50, %v3777_v16  ;;  %v5197_v11 = vmul.f32 %v8441_v21, %v15100_v49  ;;  %v1500_v36 = vld [vmem:[#allocation3 + $0x209] sm:$0xff]  ;;  %v4296_v43 = vld [vmem:[#allocation4 + $0xe1] sm:$0xff] }
 0x1f8   :  { %v4937_v15 = vadd.f32 %v4809_v33, %v10992_v22  ;;  %v5970_v5 = vmul.f32 %v10516_v7, %v3645_v10  ;;  %v7389_v52 = vadd.f32 %v7261_v12, %v7133_v47  ;;  %v7390_v13 = vadd.f32 %v7262_v30, %v7134_v25  ;;  %v8442_v22 = vld [vmem:[#allocation3 + $0x210] sm:$0xff]  ;;  %v4295_v10 = vld [vmem:[#allocation4 + $0xd9] sm:$0xff] }
 0x1f9   :  { %v11157_v14 = vadd.f32 %v1733_v27, %v1665_v1  ;;  %v6358_v60 = vmul.f32 %v8441_v21, %v10491_v45  ;;  %v11164_v4 = vmul.f32 %v9150_v38, %v1301_v20  ;;  %v11167_v16 = vmul.f32 %v8442_v22, %v15058_v2  ;;  %v8443_v1 = vld [vmem:[#allocation4 + $0xe0] sm:$0xff] }
 0x1fa   :  { %v11160_v48 = vadd.f32 %v5197_v11, %v4937_v15  ;;  %v6098_v51 = vadd.f32 %v5970_v5, %v11051_v57  ;;  %7517 = vst [vmem:[%s14942_s6 + $0x28] sm:$0xff] %v7389_v52  ;;  %7518 = vst [vmem:[%s14942_s6 + $0x30] sm:$0xff] %v7390_v13  ;;  %v11176_v21 = vmul.f32 %v9148_v37, %v1500_v36  ;;  %v1033_v5 = vld [vmem:[#allocation3 + $0x1ef] sm:$0xff] }
 0x1fb   :  { %v11179_v57 = vmul.f32 %v9148_v37, %v1501_v55  ;;  %v11182_v50 = vmul.f32 %v15059_v34, %v1301_v20  ;;  %v11185_v33 = vmul.f32 %v8442_v22, %v15061_v9  ;;  %v11190_v25 = vmul.f32 %v10882_v40, %v1500_v36  ;;  %v11207_v22 = vld [vmem:[#allocation3 + $0x1f1] sm:$0xff] }
 0x1fc   :  { %15174 = vst [vmem:[#allocation7_spill] sm:$0xff] %v11160_v48  ;;  %v11187_v47 = vadd.f32 %v6358_v60, %v6098_v51  ;;  %v3780_v12 = vmul.f32 %v15102_v59, %v3648_v32  ;;  %v4040_v27 = vmul.f32 %v8443_v1, %v15098_v63  ;;  %v11195_v30 = vmul.f32 %v10882_v40, %v1501_v55  ;;  %v1200_v51 = vld [vmem:[#allocation3 + $0x1e9] sm:$0xff] }
 0x1fd   :  { %v11198_v15 = vmul.f32 %v15108_v46, %v4295_v10  ;;  %v4428_v20 = vmul.f32 %v15108_v46, %v4296_v43  ;;  %v4812_v11 = vmul.f32 %v15103_v44, %v3648_v32  ;;  %v5200_v36 = vmul.f32 %v8443_v1, %v15100_v49  ;;  %v15178_v55 = vld [vmem:[#allocation51_spill] sm:$0xff] }
 0x1fe   :  { %15175 = vst [vmem:[#allocation22_spill] sm:$0xff] %v11187_v47  ;;  %v4168_v52 = vadd.f32 %v4040_v27, %v3780_v12  ;;  %v11204_v13 = vmul.f32 %v15110_v3, %v4295_v10  ;;  %v5973_v60 = vmul.f32 %v10516_v7, %v3648_v32  ;;  %v6361_v47 = vmul.f32 %v8443_v1, %v10491_v45  ;;  %v8444_v32 = vld [vmem:[#allocation3 + $0x1f0] sm:$0xff]  ;;  %v1601_v45 = vld [vmem:[#allocation3 + $0x227] sm:$0xff] }
 0x1ff   :  { %15176 = vst [vmem:[#allocation21_spill] sm:$0xff] %v11198_v15  ;;  %v4940_v26 = vadd.f32 %v4812_v11, %v15178_v55  ;;  %v11211_v15 = vmul.f32 %v15110_v3, %v4296_v43  ;;  %v11215_v23 = vmul.f32 %v10567_v18, %v4295_v10  ;;  %v6749_v27 = vmul.f32 %v10567_v18, %v4296_v43  ;;  %v15180_v18 = vld [vmem:[#allocation44_spill] sm:$0xff]  ;;  %v1602_v7 = vld [vmem:[#allocation3 + $0x22f] sm:$0xff] }
 0x200   :  { %15177 = vst [vmem:[#allocation10_spill] sm:$0xff] %v11204_v13  ;;  %v6101_v12 = vadd.f32 %v5973_v60, %v10923_v58  ;;  %v1069_v13 = vmul.f32 %v15167_v17, %v1033_v5  ;;  %v1137_v48 = vmul.f32 %v8444_v32, %v15169_v8  ;;  %v1236_v11 = vmul.f32 %v9106_v0, %v1200_v51  ;;  %v15181_v60 = vld [vmem:[#allocation46_spill] sm:$0xff] }
 0x201   :  { %15179 = vst [vmem:[#allocation15_spill] sm:$0xff] %v11215_v23  ;;  %v11221_v61 = vadd.f32 %v5200_v36, %v4940_v26  ;;  %v1237_v55 = vmul.f32 %v9106_v0, %v11207_v22  ;;  %v1335_v1 = vmul.f32 %v9150_v38, %v1033_v5  ;;  %v11227_v10 = vadd.f32 %v4428_v20, %v4168_v52  ;;  %v8188_v0 = vpop.f32.mrb[36].mxu0 }
 0x202   :  { %v6489_v23 = vadd.f32 %v6361_v47, %v6101_v12  ;;  %v1169_v58 = vadd.f32 %v1137_v48, %v1069_v13  ;;  %v1465_v43 = vadd.f32 %v15180_v18, %v10937_v24  ;;  %v1268_v17 = vadd.f32 %v1236_v11, %v11127_v6  ;;  %v15182_v47 = vld [vmem:[#allocation28_spill] sm:$0xff]  ;;  %3531 = vst [vmem:[#allocation4 + $0x198] sm:$0xff] %v8188_v0  ;;  %v3020_v24 = vpop.f32.mrb[37].mxu0  ;;  %v3244_v11 = vpop.f32.mrb[45].mxu1 }
 0x203   :  { %v1367_v8 = vadd.f32 %v1335_v1, %v15181_v60  ;;  %v1435_v26 = vmul.f32 %v8444_v32, %v15058_v2  ;;  %v1534_v36 = vmul.f32 %v9148_v37, %v1200_v51  ;;  %v1535_v48 = vmul.f32 %v9148_v37, %v11207_v22  ;;  %3529 = vst [vmem:[#allocation4 + $0x188] sm:$0xff] %v3020_v24 }
 0x204   :  { %v6877_v38 = vadd.f32 %v6749_v27, %v6489_v23  ;;  %v1269_v20 = vadd.f32 %v1237_v55, %v1169_v58  ;;  %v1565_v52 = vadd.f32 %v15182_v47, %v1465_v43  ;;  %v1368_v6 = vadd.f32 %v11082_v31, %v1268_v17  ;;  %3585 = vst [vmem:[#allocation4 + $0x428] sm:$0xff] %v3244_v11  ;;  %v8445_v43 = vld [vmem:[#allocation2 + $0x48] sm:$0xff] }
 0x205   :  { %v1467_v13 = vadd.f32 %v1435_v26, %v1367_v8  ;;  %v1566_v2 = vadd.f32 %v1534_v36, %v11138_v19  ;;  %v1634_v12 = vmul.f32 %v15059_v34, %v1033_v5  ;;  %v1637_v37 = vmul.f32 %v15059_v34, %v1601_v45  ;;  %v1802_v17 = vld [vmem:[#allocation3 + $0x231] sm:$0xff]  ;;  %v8189_v45 = vpop.f32.mrb[38].mxu0 }
 0x206   :  { %v7011_v23 = vadd.f32 %v10603_v28, %v6877_v38  ;;  %v1369_v27 = vadd.f32 %v11164_v4, %v1269_v20  ;;  %v1638_v55 = vmul.f32 %v15059_v34, %v1602_v7  ;;  %v1468_v42 = vadd.f32 %v11085_v41, %v1368_v6  ;;  %v1801_v4 = vld [vmem:[#allocation3 + $0x229] sm:$0xff]  ;;  %3532 = vst [vmem:[#allocation4 + $0x1a0] sm:$0xff] %v8189_v45  ;;  %v8245_v6 = vpop.f32.mrb[46].mxu1  ;;  %v3023_v45 = vpop.f32.mrb[39].mxu0 }
 0x207   :  { %v1567_v1 = vadd.f32 %v1535_v48, %v1467_v13  ;;  %v1666_v31 = vadd.f32 %v1634_v12, %v1565_v52  ;;  %v1667_v58 = vadd.f32 %v11104_v62, %v1566_v2  ;;  %v1734_v18 = vmul.f32 %v8444_v32, %v15061_v9  ;;  %v7267_v34 = vld [vmem:[%s14942_s6 + $0x58] sm:$0xff]  ;;  %3588 = vst [vmem:[#allocation4 + $0x440] sm:$0xff] %v8245_v6  ;;  %v11439_v6 = vld [vmem:[%s14938_s4 + $0x28] ss:$0 sm:$0xff] }
 0x208   :  { %v7139_v19 = vmax.f32 %v7011_v23, 0.0  ;;  %v1469_v5 = vadd.f32 %v11167_v16, %v1369_v27  ;;  %v1737_v28 = vmul.f32 %v8445_v43, %v15061_v9  ;;  %v1568_v7 = vadd.f32 %v11176_v21, %v1468_v42  ;;  %v11260_v26 = vld [vmem:[#allocation4 + $0xcf] sm:$0xff]  ;;  %v1970_v43 = vld [vmem:[%s14940_s7 + $0xe8] sm:$0xff]  ;;  %3530 = vst [vmem:[#allocation4 + $0x190] sm:$0xff] %v3023_v45 }
 0x209   :  { %v1668_v41 = vadd.f32 %v11182_v50, %v1567_v1  ;;  %v1767_v62 = vadd.f32 %v11107_v56, %v1667_v58  ;;  %v1833_v16 = vmul.f32 %v10882_v40, %v1200_v51  ;;  %v1766_v9 = vadd.f32 %v1734_v18, %v1666_v31  ;;  %v1967_v1 = vld [vmem:[%s14940_s7 + $0xd0] sm:$0xff]  ;;  %v1968_v31 = vld [vmem:[%s14940_s7 + $0xd8] sm:$0xff]  ;;  %v1969_v58 = vld [vmem:[%s14940_s7 + $0xe0] sm:$0xff] }
 0x20a   :  { %v7395_v32 = vadd.f32 %v7267_v34, %v7139_v19  ;;  %v1569_v60 = vadd.f32 %v11179_v57, %v1469_v5  ;;  %v1834_v8 = vmul.f32 %v10882_v40, %v11207_v22  ;;  %v1669_v36 = vadd.f32 %v1637_v37, %v1568_v7  ;;  %v11270_v22 = vld [vmem:[#allocation4 + $0xd7] sm:$0xff] }
 0x20b   :  { %v1768_v0 = vadd.f32 %v11185_v33, %v1668_v41  ;;  %v1837_v21 = vmul.f32 %v10882_v40, %v1801_v4  ;;  %v1838_v50 = vmul.f32 %v10882_v40, %v1802_v17  ;;  %v1865_v57 = vadd.f32 %v1833_v16, %v11157_v14  ;;  %v11291_v37 = vld [vmem:[#allocation4 + $0xd1] sm:$0xff] }
 0x20c   :  { %7523 = vst [vmem:[%s14942_s6 + $0x58] sm:$0xff] %v7395_v32  ;;  %v1670_v56 = vadd.f32 %v1638_v55, %v1569_v60  ;;  %v1866_v51 = vadd.f32 %v1834_v8, %v1766_v9  ;;  %v1867_v38 = vadd.f32 %v11190_v25, %v1767_v62  ;;  %v11274_v20 = vadd.f32 %v11211_v15, %v11221_v61  ;;  %v11282_v25 = vld [vmem:[#allocation4 + $0xc9] sm:$0xff] }
 0x20d   :  { %v1769_v33 = vadd.f32 %v1737_v28, %v1669_v36  ;;  %v1868_v48 = vadd.f32 %v11195_v30, %v1768_v0  ;;  %v3778_v40 = vmul.f32 %v15102_v59, %v11260_v26  ;;  %v1903_v52 = vadd.f32 %v10969_v39, %v1865_v57  ;;  %v11287_v30 = vld [vmem:[#allocation4 + $0xd0] sm:$0xff]  ;;  %v1972_v8 = vld [vmem:[%s14940_s7 + $0xf8] sm:$0xff] }
 0x20e   :  { %v1770_v47 = vadd.f32 %v1737_v28, %v1670_v56  ;;  %v1904_v14 = vadd.f32 %v10969_v39, %v1866_v51  ;;  %v1905_v24 = vadd.f32 %v10969_v39, %v1867_v38  ;;  %v3779_v15 = vmul.f32 %v15102_v59, %v11270_v22  ;;  %v15185_v38 = vld [vmem:[#allocation48_spill] sm:$0xff] }
 0x20f   :  { %v1869_v13 = vadd.f32 %v1837_v21, %v1769_v33  ;;  %v1906_v61 = vadd.f32 %v10969_v39, %v1868_v48  ;;  %v4038_v2 = vmul.f32 %v11287_v30, %v15098_v63  ;;  %v1935_v11 = vmax.f32 %v1903_v52, 0.0  ;;  %v15186_v48 = vld [vmem:[#allocation17_spill] sm:$0xff] }
 0x210   :  { %v1870_v12 = vadd.f32 %v1838_v50, %v1770_v47  ;;  %v1936_v23 = vmax.f32 %v1904_v14, 0.0  ;;  %v1937_v27 = vmax.f32 %v1905_v24, 0.0  ;;  %v4425_v5 = vmul.f32 %v15108_v46, %v11282_v25  ;;  %v15188_v14 = vld [vmem:[#allocation7_spill] sm:$0xff] }
 0x211   :  { %v1907_v55 = vadd.f32 %v10969_v39, %v1869_v13  ;;  %v1938_v42 = vmax.f32 %v1906_v61, 0.0  ;;  %v4166_v19 = vadd.f32 %v4038_v2, %v3778_v40  ;;  %v1999_v28 = vadd.f32 %v1967_v1, %v1935_v11  ;;  %v15189_v61 = vld [vmem:[#allocation50_spill] sm:$0xff] }
 0x212   :  { %v1908_v18 = vadd.f32 %v10969_v39, %v1870_v12  ;;  %v2000_v4 = vadd.f32 %v1968_v31, %v1936_v23  ;;  %v2001_v17 = vadd.f32 %v1969_v58, %v1937_v27  ;;  %v11310_v41 = vadd.f32 %v11110_v54, %v3779_v15  ;;  %v1971_v39 = vld [vmem:[%s14940_s7 + $0xf0] sm:$0xff]  ;;  %v15183_v54 = vld [vmem:[#allocation47_spill] sm:$0xff]  ;;  %v15190_v12 = vld [vmem:[#allocation32_spill] sm:$0xff] }
 0x213   :  { %v1939_v34 = vmax.f32 %v1907_v55, 0.0  ;;  %v2002_v7 = vadd.f32 %v1970_v43, %v1938_v42  ;;  %v4426_v62 = vmul.f32 %v15108_v46, %v11291_v37  ;;  %2031 = vst [vmem:[%s14940_s7 + $0xd0] sm:$0xff] %v1999_v28  ;;  %7793 = vst [vmem:[%s14942_s6 + $0x340] ss:$2 sm:$0xff] %v1999_v28  ;;  %v4551_v32 = vadd.f32 %v15183_v54, %v10973_v53  ;;  %v3649_v27 = vld [vmem:[#allocation4 + $0xf7] sm:$0xff]  ;;  %v15191_v42 = vld [vmem:[#allocation22_spill] sm:$0xff] }
 0x214   :  { %v1940_v16 = vmax.f32 %v1908_v18, 0.0  ;;  %2032 = vst [vmem:[%s14940_s7 + $0xd8] sm:$0xff] %v2000_v4  ;;  %2033 = vst [vmem:[%s14940_s7 + $0xe0] sm:$0xff] %v2001_v17  ;;  %v4810_v60 = vmul.f32 %v15103_v44, %v11260_v26  ;;  %v4811_v9 = vmul.f32 %v15103_v44, %v11270_v22  ;;  %v4553_v53 = vadd.f32 %v4425_v5, %v11152_v29  ;;  %v15184_v29 = vld [vmem:[#allocation9_spill] sm:$0xff]  ;;  %v8448_v31 = vld [vmem:[#allocation4 + $0x108] sm:$0xff] }
 0x215   :  { %7794 = vst [vmem:[%s14942_s6 + $0x350] ss:$2 sm:$0xff] %v2000_v4  ;;  %7795 = vst [vmem:[%s14942_s6 + $0x360] ss:$2 sm:$0xff] %v1999_v28  ;;  %v2003_v36 = vadd.f32 %v1971_v39, %v1939_v34  ;;  %v11387_v0 = vadd.f32 %v4426_v62, %v4166_v19  ;;  %v5198_v21 = vmul.f32 %v11287_v30, %v15100_v49  ;;  %v15192_v5 = vld [vmem:[#allocation52_spill] sm:$0xff]  ;;  %v8449_v43 = vld [vmem:[#allocation4 + $0x3a8] sm:$0xff] }
 0x216   :  { %7796 = vst [vmem:[%s14942_s6 + $0x370] ss:$2 sm:$0xff] %v2000_v4  ;;  %7857 = vst [vmem:[%s14942_s6 + $0x341] ss:$2 sm:$0xff] %v1999_v28  ;;  %v2004_v50 = vadd.f32 %v1972_v8, %v1940_v16  ;;  %v4938_v56 = vadd.f32 %v4810_v60, %v11003_v35  ;;  %v4939_v57 = vadd.f32 %v4811_v9, %v4551_v32  ;;  %v8451_v34 = vld [vmem:[#allocation4 + $0xf8] sm:$0xff]  ;;  %v3247_v16 = vpop.f32.mrb[47].mxu1 }
 0x217   :  { %7858 = vst [vmem:[%s14942_s6 + $0x351] ss:$2 sm:$0xff] %v2000_v4  ;;  %7859 = vst [vmem:[%s14942_s6 + $0x361] ss:$2 sm:$0xff] %v1999_v28  ;;  %v5585_v51 = vmul.f32 %v15110_v3, %v11282_v25  ;;  %v5586_v35 = vmul.f32 %v15110_v3, %v11291_v37  ;;  %v5711_v33 = vadd.f32 %v15185_v38, %v15184_v29  ;;  %v11467_v28 = vld [vmem:[%s14939_s5 + $0x2] ss:$0 sm:$0xff] }
 0x218   :  { %7860 = vst [vmem:[%s14942_s6 + $0x371] ss:$2 sm:$0xff] %v2000_v4  ;;  %7797 = vst [vmem:[%s14942_s6 + $0x380] ss:$2 sm:$0xff] %v2001_v17  ;;  %v5971_v40 = vmul.f32 %v15186_v48, %v11260_v26  ;;  %v5972_v47 = vmul.f32 %v15186_v48, %v11270_v22  ;;  %v5326_v26 = vadd.f32 %v5198_v21, %v4938_v56  ;;  %v15187_v22 = vld [vmem:[#allocation20_spill] sm:$0xff]  ;;  %v15194_v54 = vld [vmem:[#allocation15_spill] sm:$0xff] }
 0x219   :  { %7799 = vst [vmem:[%s14942_s6 + $0x3a0] ss:$2 sm:$0xff] %v2001_v17  ;;  %7861 = vst [vmem:[%s14942_s6 + $0x381] ss:$2 sm:$0xff] %v2001_v17  ;;  %v11433_v52 = vadd.f32 %v15187_v22, %v4939_v57  ;;  %v5713_v24 = vadd.f32 %v5585_v51, %v15188_v14  ;;  %v6746_v13 = vmul.f32 %v11439_v6, %v11282_v25  ;;  %v3705_v62 = vld [vmem:[#allocation4 + $0x397] sm:$0xff]  ;;  %v3652_v22 = vld [vmem:[#allocation4 + $0x10f] sm:$0xff] }
 0x21a   :  { %7863 = vst [vmem:[%s14942_s6 + $0x3a1] ss:$2 sm:$0xff] %v2001_v17  ;;  %2034 = vst [vmem:[%s14940_s7 + $0xe8] sm:$0xff] %v2002_v7  ;;  %v6099_v15 = vadd.f32 %v5971_v40, %v15189_v61  ;;  %v6100_v2 = vadd.f32 %v5972_v47, %v5711_v33  ;;  %v6359_v11 = vmul.f32 %v11287_v30, %v15190_v12  ;;  %v7264_v51 = vld [vmem:[%s14942_s6 + $0x40] sm:$0xff]  ;;  %v8452_v47 = vld [vmem:[#allocation4 + $0x398] sm:$0xff] }
 0x21b   :  { %7798 = vst [vmem:[%s14942_s6 + $0x390] ss:$2 sm:$0xff] %v2002_v7  ;;  %7800 = vst [vmem:[%s14942_s6 + $0x3b0] ss:$2 sm:$0xff] %v2002_v7  ;;  %v6747_v23 = vmul.f32 %v11439_v6, %v11291_v37  ;;  %v11448_v55 = vadd.f32 %v5586_v35, %v5326_v26  ;;  %v6874_v1 = vadd.f32 %v6746_v13, %v15191_v42 }
 0x21c   :  { %7862 = vst [vmem:[%s14942_s6 + $0x391] ss:$2 sm:$0xff] %v2002_v7  ;;  %7864 = vst [vmem:[%s14942_s6 + $0x3b1] ss:$2 sm:$0xff] %v2002_v7  ;;  %v11452_v58 = vmul.f32 %v8448_v31, %v15098_v63  ;;  %v11455_v25 = vmul.f32 %v8448_v31, %v15100_v49  ;;  %v6487_v19 = vadd.f32 %v6359_v11, %v6099_v15  ;;  %v4300_v11 = vld [vmem:[#allocation4 + $0x111] sm:$0xff] }
 0x21d   :  { %2035 = vst [vmem:[%s14940_s7 + $0xf0] sm:$0xff] %v2003_v36  ;;  %7801 = vst [vmem:[%s14942_s6 + $0x3c0] ss:$2 sm:$0xff] %v2003_v36  ;;  %v6488_v18 = vadd.f32 %v15192_v5, %v6100_v2  ;;  %v11459_v30 = vmul.f32 %v8448_v31, %v15190_v12  ;;  %v11462_v37 = vmul.f32 %v8449_v43, %v15098_v63  ;;  %v4299_v2 = vld [vmem:[#allocation4 + $0x109] sm:$0xff] }
 0x21e   :  { %7803 = vst [vmem:[%s14942_s6 + $0x3e0] ss:$2 sm:$0xff] %v2003_v36  ;;  %7865 = vst [vmem:[%s14942_s6 + $0x3c1] ss:$2 sm:$0xff] %v2003_v36  ;;  %v7008_v4 = vadd.f32 %v11467_v28, %v6874_v1  ;;  %v11471_v17 = vmul.f32 %v8449_v43, %v15100_v49  ;;  %v3781_v45 = vmul.f32 %v15102_v59, %v3649_v27 }
 0x21f   :  { %7867 = vst [vmem:[%s14942_s6 + $0x3e1] ss:$2 sm:$0xff] %v2003_v36  ;;  %2036 = vst [vmem:[%s14940_s7 + $0xf8] sm:$0xff] %v2004_v50  ;;  %v4041_v7 = vmul.f32 %v8451_v34, %v15098_v63  ;;  %v6875_v39 = vadd.f32 %v6747_v23, %v6487_v19  ;;  %v6876_v32 = vadd.f32 %v15194_v54, %v6488_v18  ;;  %v8453_v18 = vld [vmem:[#allocation4 + $0x110] sm:$0xff] }
 0x220   :  { %7802 = vst [vmem:[%s14942_s6 + $0x3d0] ss:$2 sm:$0xff] %v2004_v50  ;;  %7804 = vst [vmem:[%s14942_s6 + $0x3f0] ss:$2 sm:$0xff] %v2004_v50  ;;  %v11477_v60 = vmul.f32 %v8449_v43, %v15190_v12  ;;  %v4813_v9 = vmul.f32 %v15103_v44, %v3649_v27  ;;  %v7136_v8 = vmax.f32 %v7008_v4, 0.0  ;;  %v5201_v21 = vmul.f32 %v8451_v34, %v15100_v49 }
 0x221   :  { %7866 = vst [vmem:[%s14942_s6 + $0x3d1] ss:$2 sm:$0xff] %v2004_v50  ;;  %7868 = vst [vmem:[%s14942_s6 + $0x3f1] ss:$2 sm:$0xff] %v2004_v50  ;;  %v11480_v36 = vadd.f32 %v4041_v7, %v3781_v45  ;;  %v5974_v50 = vmul.f32 %v15186_v48, %v3649_v27  ;;  %v7009_v56 = vadd.f32 %v11467_v28, %v6875_v39 }
 0x222   :  { %15193 = vst [vmem:[#allocation25_spill] sm:$0xff] %v11471_v17  ;;  %15195 = vst [vmem:[#allocation26_spill] sm:$0xff] %v11477_v60  ;;  %v7010_v57 = vadd.f32 %v11467_v28, %v6876_v32  ;;  %v4941_v35 = vadd.f32 %v4813_v9, %v4553_v53  ;;  %v3837_v29 = vmul.f32 %v15102_v59, %v3705_v62  ;;  %v7265_v53 = vld [vmem:[%s14942_s6 + $0x48] sm:$0xff]  ;;  %v4355_v9 = vld [vmem:[#allocation4 + $0x3a9] sm:$0xff] }
 0x223   :  { %3586 = vst [vmem:[#allocation4 + $0x430] sm:$0xff] %v3247_v16  ;;  %v7392_v38 = vadd.f32 %v7264_v51, %v7136_v8  ;;  %v6102_v33 = vadd.f32 %v5974_v50, %v5713_v24  ;;  %v6362_v40 = vmul.f32 %v8451_v34, %v15190_v12  ;;  %v4097_v26 = vmul.f32 %v8452_v47, %v15098_v63  ;;  %v7266_v24 = vld [vmem:[%s14942_s6 + $0x50] sm:$0xff]  ;;  %v3708_v16 = vld [vmem:[#allocation4 + $0x3af] sm:$0xff] }
 0x224   :  { %v7137_v14 = vmax.f32 %v7009_v56, 0.0  ;;  %v7138_v13 = vmax.f32 %v7010_v57, 0.0  ;;  %v11492_v61 = vadd.f32 %v5201_v21, %v4941_v35  ;;  %v11495_v15 = vmul.f32 %v15103_v44, %v3705_v62  ;;  %v4356_v8 = vld [vmem:[#allocation4 + $0x3b1] sm:$0xff] }
 0x225   :  { %7520 = vst [vmem:[%s14942_s6 + $0x40] sm:$0xff] %v7392_v38  ;;  %v11506_v23 = vadd.f32 %v6362_v40, %v6102_v33  ;;  %v11508_v27 = vadd.f32 %v4097_v26, %v3837_v29  ;;  %v11511_v42 = vmul.f32 %v8452_v47, %v15100_v49  ;;  %v11514_v1 = vmul.f32 %v15186_v48, %v3705_v62  ;;  %v8454_v38 = vld [vmem:[#allocation4 + $0x3b0] sm:$0xff] }
 0x226   :  { %15196 = vst [vmem:[#allocation11_spill] sm:$0xff] %v11495_v15  ;;  %v7393_v31 = vadd.f32 %v7265_v53, %v7137_v14  ;;  %v7394_v19 = vadd.f32 %v7266_v24, %v7138_v13  ;;  %v3784_v5 = vmul.f32 %v15102_v59, %v3652_v22  ;;  %v4044_v43 = vmul.f32 %v8453_v18, %v15098_v63  ;;  %v4297_v53 = vld [vmem:[#allocation4 + $0xf9] sm:$0xff] }
 0x227   :  { %15197 = vst [vmem:[#allocation29_spill] sm:$0xff] %v11511_v42  ;;  %15198 = vst [vmem:[#allocation8_spill] sm:$0xff] %v11514_v1  ;;  %v11519_v4 = vmul.f32 %v8452_v47, %v15190_v12  ;;  %v11522_v45 = vmul.f32 %v15108_v46, %v4299_v2  ;;  %v4432_v34 = vmul.f32 %v15108_v46, %v4300_v11  ;;  %v8460_v1 = vld [vmem:[#allocation4 + $0x3c8] sm:$0xff] }
 0x228   :  { %v4816_v7 = vmul.f32 %v15103_v44, %v3652_v22  ;;  %7521 = vst [vmem:[%s14942_s6 + $0x48] sm:$0xff] %v7393_v31  ;;  %7522 = vst [vmem:[%s14942_s6 + $0x50] sm:$0xff] %v7394_v19  ;;  %v4172_v62 = vadd.f32 %v4044_v43, %v3784_v5  ;;  %v5204_v39 = vmul.f32 %v8453_v18, %v15100_v49 }
 0x229   :  { %15199 = vst [vmem:[#allocation12_spill] sm:$0xff] %v11519_v4  ;;  %v11534_v54 = vmul.f32 %v15110_v3, %v4299_v2  ;;  %v5977_v32 = vmul.f32 %v15186_v48, %v3652_v22  ;;  %v5592_v50 = vmul.f32 %v15110_v3, %v4300_v11  ;;  %v6365_v56 = vmul.f32 %v8453_v18, %v15190_v12  ;;  %v4298_v18 = vld [vmem:[#allocation4 + $0x101] sm:$0xff] }
 0x22a   :  { %v4944_v21 = vadd.f32 %v4816_v7, %v11227_v10  ;;  %v11541_v57 = vmul.f32 %v11439_v6, %v4299_v2  ;;  %v6753_v35 = vmul.f32 %v11439_v6, %v4300_v11  ;;  %v3840_v29 = vmul.f32 %v15102_v59, %v3708_v16  ;;  %v3650_v2 = vld [vmem:[#allocation4 + $0xff] sm:$0xff]  ;;  %v3651_v11 = vld [vmem:[#allocation4 + $0x107] sm:$0xff] }
 0x22b   :  { %v6105_v51 = vadd.f32 %v5977_v32, %v11274_v20  ;;  %v4100_v33 = vmul.f32 %v8454_v38, %v15098_v63  ;;  %v11547_v40 = vadd.f32 %v4432_v34, %v4172_v62  ;;  %v11550_v10 = vmul.f32 %v15108_v46, %v4355_v9  ;;  %v8248_v32 = vpop.f32.mrb[48].mxu1 }
 0x22c   :  { %v5332_v47 = vadd.f32 %v5204_v39, %v4944_v21  ;;  %v4488_v26 = vmul.f32 %v15108_v46, %v4356_v8  ;;  %v11554_v13 = vmul.f32 %v15103_v44, %v3708_v16  ;;  %v11557_v20 = vmul.f32 %v8454_v38, %v15100_v49  ;;  %v8192_v39 = vpop.f32.mrb[40].mxu0  ;;  %3591 = vst [vmem:[#allocation4 + $0x468] sm:$0xff] %v8248_v32 }
 0x22d   :  { %v6493_v22 = vadd.f32 %v6365_v56, %v6105_v51  ;;  %v4228_v14 = vadd.f32 %v4100_v33, %v3840_v29  ;;  %v11562_v31 = vmul.f32 %v15110_v3, %v4355_v9  ;;  %v11565_v19 = vmul.f32 %v15110_v3, %v4356_v8  ;;  %v8455_v56 = vld [vmem:[#allocation4 + $0x100] sm:$0xff]  ;;  %3535 = vst [vmem:[#allocation4 + $0x1c8] sm:$0xff] %v8192_v39 }
 0x22e   :  { %15200 = vst [vmem:[#allocation37_spill] sm:$0xff] %v11554_v13  ;;  %15201 = vst [vmem:[#allocation42_spill] sm:$0xff] %v11557_v20  ;;  %v11559_v24 = vadd.f32 %v5592_v50, %v5332_v47  ;;  %v11568_v5 = vmul.f32 %v15186_v48, %v3708_v16  ;;  %v11573_v7 = vmul.f32 %v8454_v38, %v15190_v12  ;;  %v3260_v47 = vpop.f32.mrb[49].mxu1 }
 0x22f   :  { %15202 = vst [vmem:[#allocation30_spill] sm:$0xff] %v11562_v31  ;;  %15203 = vst [vmem:[#allocation23_spill] sm:$0xff] %v11565_v19  ;;  %v6881_v43 = vadd.f32 %v6753_v35, %v6493_v22  ;;  %v11570_v34 = vadd.f32 %v4488_v26, %v4228_v14  ;;  %v11576_v62 = vmul.f32 %v11439_v6, %v4355_v9  ;;  %v3036_v35 = vpop.f32.mrb[41].mxu0  ;;  %v15208_v14 = vld [vmem:[#allocation21_spill] sm:$0xff] }
 0x230   :  { %15204 = vst [vmem:[#allocation39_spill] sm:$0xff] %v11568_v5  ;;  %15205 = vst [vmem:[#allocation31_spill] sm:$0xff] %v11573_v7  ;;  %v3782_v21 = vmul.f32 %v15102_v59, %v3650_v2  ;;  %v3783_v50 = vmul.f32 %v15102_v59, %v3651_v11  ;;  %v4042_v16 = vmul.f32 %v8455_v56, %v15098_v63  ;;  %v4302_v7 = vld [vmem:[#allocation4 + $0x131] sm:$0xff] }
 0x231   :  { %15206 = vst [vmem:[#allocation45_spill] sm:$0xff] %v11576_v62  ;;  %v4429_v51 = vmul.f32 %v15108_v46, %v4297_v53  ;;  %v7015_v29 = vadd.f32 %v11467_v28, %v6881_v43  ;;  %v11584_v38 = vmul.f32 %v11439_v6, %v4356_v8  ;;  %v4430_v9 = vmul.f32 %v15108_v46, %v4298_v18 }
 0x232   :  { %v4814_v33 = vmul.f32 %v15103_v44, %v3650_v2  ;;  %3533 = vst [vmem:[#allocation4 + $0x1b8] sm:$0xff] %v3036_v35  ;;  %v4170_v26 = vadd.f32 %v4042_v16, %v3782_v21  ;;  %v11589_v22 = vadd.f32 %v11452_v58, %v3783_v50  ;;  %v4555_v39 = vadd.f32 %v15208_v14, %v11310_v41  ;;  %v7271_v21 = vld [vmem:[%s14942_s6 + $0x78] sm:$0xff]  ;;  %v3706_v35 = vld [vmem:[#allocation4 + $0x39f] sm:$0xff] }
 0x233   :  { %15207 = vst [vmem:[#allocation35_spill] sm:$0xff] %v11584_v38  ;;  %v4815_v32 = vmul.f32 %v15103_v44, %v3651_v11  ;;  %3589 = vst [vmem:[#allocation4 + $0x458] sm:$0xff] %v3260_v47  ;;  %v7143_v43 = vmax.f32 %v7015_v29, 0.0  ;;  %v11595_v8 = vadd.f32 %v4429_v51, %v11480_v36  ;;  %v5202_v60 = vmul.f32 %v8455_v56, %v15100_v49  ;;  %v8193_v29 = vpop.f32.mrb[42].mxu0  ;;  %v15209_v51 = vld [vmem:[#allocation10_spill] sm:$0xff] }
 0x234   :  { %v4942_v62 = vadd.f32 %v4814_v33, %v11387_v0  ;;  %v11602_v58 = vadd.f32 %v4430_v9, %v4170_v26  ;;  %v5589_v41 = vmul.f32 %v15110_v3, %v4297_v53  ;;  %v5590_v16 = vmul.f32 %v15110_v3, %v4298_v18  ;;  %v3707_v14 = vld [vmem:[#allocation4 + $0x3a7] sm:$0xff]  ;;  %3536 = vst [vmem:[#allocation4 + $0x1d0] sm:$0xff] %v8193_v29 }
 0x235   :  { %v4943_v50 = vadd.f32 %v4815_v32, %v4555_v39  ;;  %v7399_v47 = vadd.f32 %v7271_v21, %v7143_v43  ;;  %v5715_v0 = vadd.f32 %v15209_v51, %v11433_v52  ;;  %v5975_v33 = vmul.f32 %v15186_v48, %v3650_v2  ;;  %v4353_v32 = vld [vmem:[#allocation4 + $0x399] sm:$0xff]  ;;  %v4354_v43 = vld [vmem:[#allocation4 + $0x3a1] sm:$0xff] }
 0x236   :  { %v5330_v36 = vadd.f32 %v5202_v60, %v4942_v62  ;;  %v11613_v9 = vadd.f32 %v5589_v41, %v11492_v61  ;;  %v5976_v26 = vmul.f32 %v15186_v48, %v3651_v11  ;;  %v6750_v39 = vmul.f32 %v11439_v6, %v4297_v53  ;;  %v8456_v53 = vld [vmem:[#allocation4 + $0x3a0] sm:$0xff] }
 0x237   :  { %v11610_v4 = vadd.f32 %v11455_v25, %v4943_v50  ;;  %7527 = vst [vmem:[%s14942_s6 + $0x78] sm:$0xff] %v7399_v47  ;;  %v6103_v60 = vadd.f32 %v5975_v33, %v11448_v55  ;;  %v6363_v25 = vmul.f32 %v8455_v56, %v15190_v12  ;;  %v3838_v2 = vmul.f32 %v15102_v59, %v3706_v35 }
 0x238   :  { %v11620_v52 = vadd.f32 %v5590_v16, %v5330_v36  ;;  %v6104_v61 = vadd.f32 %v5976_v26, %v5715_v0  ;;  %v6878_v62 = vadd.f32 %v6750_v39, %v11506_v23  ;;  %v3839_v11 = vmul.f32 %v15102_v59, %v3707_v14  ;;  %v8249_v23 = vpop.f32.mrb[50].mxu1 }
 0x239   :  { %v4098_v21 = vmul.f32 %v8456_v53, %v15098_v63  ;;  %v6491_v50 = vadd.f32 %v6363_v25, %v6103_v60  ;;  %v6751_v41 = vmul.f32 %v11439_v6, %v4298_v18  ;;  %v4485_v16 = vmul.f32 %v15108_v46, %v4353_v32  ;;  %3592 = vst [vmem:[#allocation4 + $0x470] sm:$0xff] %v8249_v23 }
 0x23a   :  { %v4486_v29 = vmul.f32 %v15108_v46, %v4354_v43  ;;  %v6492_v55 = vadd.f32 %v11459_v30, %v6104_v61  ;;  %v7012_v56 = vadd.f32 %v11467_v28, %v6878_v62  ;;  %v11634_v36 = vmul.f32 %v15103_v44, %v3706_v35 }
 0x23b   :  { %v4226_v47 = vadd.f32 %v4098_v21, %v3838_v2  ;;  %v6879_v51 = vadd.f32 %v6751_v41, %v6491_v50  ;;  %v11637_v0 = vadd.f32 %v11462_v37, %v3839_v11  ;;  %v4613_v33 = vadd.f32 %v4485_v16, %v11508_v27  ;;  %v7268_v37 = vld [vmem:[%s14942_s6 + $0x60] sm:$0xff]  ;;  %v3653_v50 = vld [vmem:[#allocation4 + $0x127] sm:$0xff]  ;;  %v3039_v41 = vpop.f32.mrb[43].mxu0 }
 0x23c   :  { %15210 = vst [vmem:[#allocation38_spill] sm:$0xff] %v11634_v36  ;;  %v11641_v18 = vmul.f32 %v15103_v44, %v3707_v14  ;;  %v6880_v26 = vadd.f32 %v11541_v57, %v6492_v55  ;;  %v7140_v30 = vmax.f32 %v7012_v56, 0.0  ;;  %v11647_v60 = vmul.f32 %v8456_v53, %v15100_v49  ;;  %3534 = vst [vmem:[#allocation4 + $0x1c0] sm:$0xff] %v3039_v41  ;;  %v3655_v36 = vld [vmem:[#allocation4 + $0x137] sm:$0xff] }
 0x23d   :  { %v11644_v39 = vadd.f32 %v4486_v29, %v4226_v47  ;;  %v7013_v25 = vadd.f32 %v11467_v28, %v6879_v51  ;;  %v11654_v27 = vmul.f32 %v15110_v3, %v4353_v32  ;;  %v11657_v2 = vmul.f32 %v15110_v3, %v4354_v43  ;;  %v3709_v51 = vld [vmem:[#allocation4 + $0x3c7] sm:$0xff] }
 0x23e   :  { %15211 = vst [vmem:[#allocation40_spill] sm:$0xff] %v11641_v18  ;;  %15212 = vst [vmem:[#allocation18_spill] sm:$0xff] %v11647_v60  ;;  %v11660_v57 = vmul.f32 %v15186_v48, %v3706_v35  ;;  %v7014_v61 = vadd.f32 %v11467_v28, %v6880_v26  ;;  %v7396_v62 = vadd.f32 %v7268_v37, %v7140_v30  ;;  %v8457_v35 = vld [vmem:[#allocation4 + $0x138] sm:$0xff]  ;;  %v7270_v26 = vld [vmem:[%s14942_s6 + $0x70] sm:$0xff] }
 0x23f   :  { %15213 = vst [vmem:[#allocation34_spill] sm:$0xff] %v11654_v27  ;;  %15214 = vst [vmem:[#allocation33_spill] sm:$0xff] %v11657_v2  ;;  %v11664_v11 = vmul.f32 %v15186_v48, %v3707_v14  ;;  %v11667_v21 = vmul.f32 %v8456_v53, %v15190_v12  ;;  %v7141_v16 = vmax.f32 %v7013_v25, 0.0  ;;  %v11670_v29 = vmul.f32 %v11439_v6, %v4353_v32  ;;  %v7269_v14 = vld [vmem:[%s14942_s6 + $0x68] sm:$0xff] }
 0x240   :  { %15215 = vst [vmem:[#allocation24_spill] sm:$0xff] %v11660_v57  ;;  %v11673_v55 = vmul.f32 %v11439_v6, %v4354_v43  ;;  %v11676_v56 = vmul.f32 %v8457_v35, %v15098_v63  ;;  %v7142_v47 = vmax.f32 %v7014_v61, 0.0  ;;  %7524 = vst [vmem:[%s14942_s6 + $0x60] sm:$0xff] %v7396_v62  ;;  %v11685_v32 = vmul.f32 %v8457_v35, %v15100_v49  ;;  %v8458_v53 = vld [vmem:[#allocation4 + $0x3d8] sm:$0xff]  ;;  %v8459_v61 = vld [vmem:[#allocation4 + $0x128] sm:$0xff] }
 0x241   :  { %15216 = vst [vmem:[#allocation19_spill] sm:$0xff] %v11664_v11  ;;  %15217 = vst [vmem:[#allocation43_spill] sm:$0xff] %v11667_v21  ;;  %v11688_v43 = vmul.f32 %v8457_v35, %v15190_v12  ;;  %v11691_v23 = vmul.f32 %v8458_v53, %v15098_v63  ;;  %v7397_v30 = vadd.f32 %v7269_v14, %v7141_v16  ;;  %v3656_v21 = vld [vmem:[#allocation4 + $0x13f] sm:$0xff] }
 0x242   :  { %15218 = vst [vmem:[#allocation36_spill] sm:$0xff] %v11670_v29  ;;  %15219 = vst [vmem:[#allocation41_spill] sm:$0xff] %v11673_v55  ;;  %v11697_v25 = vmul.f32 %v8458_v53, %v15100_v49  ;;  %v3785_v37 = vmul.f32 %v15102_v59, %v3653_v50  ;;  %v4045_v62 = vmul.f32 %v8459_v61, %v15098_v63  ;;  %v4359_v60 = vld [vmem:[#allocation4 + $0x3d9] sm:$0xff] }
 0x243   :  { %v7398_v41 = vadd.f32 %v7270_v26, %v7142_v47  ;;  %v11702_v35 = vmul.f32 %v8458_v53, %v15190_v12  ;;  %v4817_v55 = vmul.f32 %v15103_v44, %v3653_v50  ;;  %v5978_v29 = vmul.f32 %v15186_v48, %v3653_v50  ;;  %7525 = vst [vmem:[%s14942_s6 + $0x68] sm:$0xff] %v7397_v30 }
 0x244   :  { %v11709_v16 = vadd.f32 %v4045_v62, %v3785_v37  ;;  %v5205_v14 = vmul.f32 %v8459_v61, %v15100_v49  ;;  %v3841_v57 = vmul.f32 %v15102_v59, %v3709_v51  ;;  %v4101_v47 = vmul.f32 %v8460_v1, %v15098_v63  ;;  %v4303_v37 = vld [vmem:[#allocation4 + $0x139] sm:$0xff]  ;;  %v4304_v62 = vld [vmem:[#allocation4 + $0x141] sm:$0xff] }
 0x245   :  { %15220 = vst [vmem:[#allocation16_spill] sm:$0xff] %v11702_v35  ;;  %7526 = vst [vmem:[%s14942_s6 + $0x70] sm:$0xff] %v7398_v41  ;;  %v4945_v50 = vadd.f32 %v4817_v55, %v11595_v8  ;;  %v6106_v53 = vadd.f32 %v5978_v29, %v11613_v9  ;;  %v6366_v26 = vmul.f32 %v8459_v61, %v15190_v12  ;;  %v8461_v29 = vld [vmem:[#allocation4 + $0x140] sm:$0xff] }
 0x246   :  { %v4873_v30 = vmul.f32 %v15103_v44, %v3709_v51  ;;  %v11721_v35 = vadd.f32 %v4101_v47, %v3841_v57  ;;  %v5261_v11 = vmul.f32 %v8460_v1, %v15100_v49  ;;  %v11725_v31 = vmul.f32 %v15186_v48, %v3709_v51 }
 0x247   :  { %v3788_v2 = vmul.f32 %v15102_v59, %v3656_v21  ;;  %v11728_v41 = vadd.f32 %v5205_v14, %v4945_v50  ;;  %v11730_v8 = vadd.f32 %v6366_v26, %v6106_v53  ;;  %v4048_v55 = vmul.f32 %v8461_v29, %v15098_v63  ;;  %v4360_v53 = vld [vmem:[#allocation4 + $0x3e1] sm:$0xff]  ;;  %v3263_v26 = vpop.f32.mrb[51].mxu1 }
 0x248   :  { %15221 = vst [vmem:[#allocation5_spill] sm:$0xff] %v11725_v31  ;;  %v5001_v9 = vadd.f32 %v4873_v30, %v4613_v33  ;;  %v11734_v61 = vmul.f32 %v8460_v1, %v15190_v12  ;;  %v11737_v57 = vmul.f32 %v15108_v46, %v4303_v37  ;;  %v4436_v47 = vmul.f32 %v15108_v46, %v4304_v62  ;;  %v3712_v31 = vld [vmem:[#allocation4 + $0x3df] sm:$0xff] }
 0x249   :  { %v4820_v51 = vmul.f32 %v15103_v44, %v3656_v21  ;;  %v4176_v14 = vadd.f32 %v4048_v55, %v3788_v2  ;;  %v5208_v50 = vmul.f32 %v8461_v29, %v15100_v49  ;;  %v11745_v33 = vmul.f32 %v15110_v3, %v4303_v37  ;;  %3590 = vst [vmem:[#allocation4 + $0x460] sm:$0xff] %v3263_v26  ;;  %v8462_v55 = vld [vmem:[#allocation4 + $0x3e0] sm:$0xff] }
 0x24a   :  { %15222 = vst [vmem:[#allocation6_spill] sm:$0xff] %v11734_v61  ;;  %v11741_v27 = vadd.f32 %v5261_v11, %v5001_v9  ;;  %v5596_v30 = vmul.f32 %v15110_v3, %v4304_v62  ;;  %v5981_v61 = vmul.f32 %v15186_v48, %v3656_v21  ;;  %v6369_v17 = vmul.f32 %v8461_v29, %v15190_v12 }
 0x24b   :  { %v4948_v1 = vadd.f32 %v4820_v51, %v11547_v40  ;;  %v11751_v11 = vadd.f32 %v4436_v47, %v4176_v14  ;;  %v11754_v2 = vmul.f32 %v11439_v6, %v4303_v37  ;;  %v3844_v9 = vmul.f32 %v15102_v59, %v3712_v31  ;;  %v3654_v14 = vld [vmem:[#allocation4 + $0x12f] sm:$0xff] }
 0x24c   :  { %v4104_v42 = vmul.f32 %v8462_v55, %v15098_v63  ;;  %v6109_v40 = vadd.f32 %v5981_v61, %v11559_v24  ;;  %v6757_v51 = vmul.f32 %v11439_v6, %v4304_v62  ;;  %v4492_v21 = vmul.f32 %v15108_v46, %v4360_v53  ;;  %v4301_v62 = vld [vmem:[#allocation4 + $0x129] sm:$0xff] }
 0x24d   :  { %v5336_v18 = vadd.f32 %v5208_v50, %v4948_v1  ;;  %v11762_v26 = vmul.f32 %v15108_v46, %v4359_v60  ;;  %v4876_v47 = vmul.f32 %v15103_v44, %v3712_v31  ;;  %v5264_v37 = vmul.f32 %v8462_v55, %v15100_v49 }
 0x24e   :  { %v4232_v29 = vadd.f32 %v4104_v42, %v3844_v9  ;;  %v6497_v38 = vadd.f32 %v6369_v17, %v6109_v40  ;;  %v11769_v50 = vmul.f32 %v15110_v3, %v4359_v60  ;;  %v5652_v24 = vmul.f32 %v15110_v3, %v4360_v53 }
 0x24f   :  { %v11766_v15 = vadd.f32 %v5596_v30, %v5336_v18  ;;  %v5004_v42 = vadd.f32 %v4876_v47, %v11570_v34  ;;  %v11776_v1 = vmul.f32 %v15186_v48, %v3712_v31  ;;  %v11779_v9 = vmul.f32 %v8462_v55, %v15190_v12  ;;  %v8463_v34 = vld [vmem:[#allocation4 + $0x130] sm:$0xff] }
 0x250   :  { %v11772_v61 = vadd.f32 %v4492_v21, %v4232_v29  ;;  %v6885_v18 = vadd.f32 %v6757_v51, %v6497_v38  ;;  %v11782_v17 = vmul.f32 %v11439_v6, %v4359_v60  ;;  %v3786_v30 = vmul.f32 %v15102_v59, %v3654_v14 }
 0x251   :  { %15223 = vst [vmem:[#allocation49_spill] sm:$0xff] %v11776_v1  ;;  %15224 = vst [vmem:[#allocation27_spill] sm:$0xff] %v11779_v9  ;;  %v3787_v40 = vmul.f32 %v15102_v59, %v3655_v36  ;;  %v5392_v5 = vadd.f32 %v5264_v37, %v5004_v42  ;;  %v11787_v21 = vmul.f32 %v11439_v6, %v4360_v53  ;;  %v4358_v9 = vld [vmem:[#allocation4 + $0x3d1] sm:$0xff] }
 0x252   :  { %15225 = vst [vmem:[#allocation13_spill] sm:$0xff] %v11782_v17  ;;  %v4046_v31 = vmul.f32 %v8463_v34, %v15098_v63  ;;  %v4433_v29 = vmul.f32 %v15108_v46, %v4301_v62  ;;  %v7019_v55 = vadd.f32 %v11467_v28, %v6885_v18  ;;  %v4434_v60 = vmul.f32 %v15108_v46, %v4302_v7 }
 0x253   :  { %15226 = vst [vmem:[#allocation14_spill] sm:$0xff] %v11787_v21  ;;  %v11793_v38 = vadd.f32 %v11676_v56, %v3787_v40  ;;  %v4818_v51 = vmul.f32 %v15103_v44, %v3654_v14  ;;  %v4559_v37 = vadd.f32 %v11522_v45, %v11589_v22  ;;  %v4819_v42 = vmul.f32 %v15103_v44, %v3655_v36  ;;  %v7275_v40 = vld [vmem:[%s14942_s6 + $0x98] sm:$0xff] }
 0x254   :  { %v4174_v47 = vadd.f32 %v4046_v31, %v3786_v30  ;;  %v11800_v53 = vadd.f32 %v4433_v29, %v11709_v16  ;;  %v7147_v17 = vmax.f32 %v7019_v55, 0.0  ;;  %v11803_v21 = vadd.f32 %v5652_v24, %v5392_v5  ;;  %v3710_v16 = vld [vmem:[#allocation4 + $0x3cf] sm:$0xff]  ;;  %v3711_v24 = vld [vmem:[#allocation4 + $0x3d7] sm:$0xff] }
 0x255   :  { %v4946_v18 = vadd.f32 %v4818_v51, %v11602_v58  ;;  %v5206_v56 = vmul.f32 %v8463_v34, %v15100_v49  ;;  %v4947_v31 = vadd.f32 %v4819_v42, %v4559_v37  ;;  %v5593_v45 = vmul.f32 %v15110_v3, %v4301_v62  ;;  %v4357_v42 = vld [vmem:[#allocation4 + $0x3c9] sm:$0xff] }
 0x256   :  { %v11810_v30 = vadd.f32 %v4434_v60, %v4174_v47  ;;  %v5594_v22 = vmul.f32 %v15110_v3, %v4302_v7  ;;  %v7403_v29 = vadd.f32 %v7275_v40, %v7147_v17  ;;  %v5719_v5 = vadd.f32 %v11534_v54, %v11610_v4  ;;  %v8252_v17 = vpop.f32.mrb[52].mxu1 }
 0x257   :  { %v5334_v55 = vadd.f32 %v5206_v56, %v4946_v18  ;;  %v5979_v58 = vmul.f32 %v15186_v48, %v3654_v14  ;;  %v11818_v51 = vadd.f32 %v11685_v32, %v4947_v31  ;;  %v11821_v60 = vadd.f32 %v5593_v45, %v11728_v41  ;;  %v8196_v41 = vpop.f32.mrb[44].mxu0  ;;  %v8464_v56 = vld [vmem:[#allocation4 + $0x3d0] sm:$0xff]  ;;  %3595 = vst [vmem:[#allocation4 + $0x498] sm:$0xff] %v8252_v17 }
 0x258   :  { %v5980_v47 = vmul.f32 %v15186_v48, %v3655_v36  ;;  %v6754_v37 = vmul.f32 %v11439_v6, %v4301_v62  ;;  %7531 = vst [vmem:[%s14942_s6 + $0x98] sm:$0xff] %v7403_v29  ;;  %v6367_v32 = vmul.f32 %v8463_v34, %v15190_v12  ;;  %v3842_v14 = vmul.f32 %v15102_v59, %v3710_v16  ;;  %v3052_v31 = vpop.f32.mrb[45].mxu0  ;;  %v3276_v29 = vpop.f32.mrb[53].mxu1 }
 0x259   :  { %v11828_v4 = vadd.f32 %v5594_v22, %v5334_v55  ;;  %v6107_v54 = vadd.f32 %v5979_v58, %v11620_v52  ;;  %v3843_v62 = vmul.f32 %v15102_v59, %v3711_v24  ;;  %v4102_v40 = vmul.f32 %v8464_v56, %v15098_v63  ;;  %3539 = vst [vmem:[#allocation4 + $0x1f8] sm:$0xff] %v8196_v41 }
 0x25a   :  { %v6108_v18 = vadd.f32 %v5980_v47, %v5719_v5  ;;  %v6882_v36 = vadd.f32 %v6754_v37, %v11730_v8  ;;  %v6755_v52 = vmul.f32 %v11439_v6, %v4302_v7  ;;  %v4489_v34 = vmul.f32 %v15108_v46, %v4357_v42  ;;  %3537 = vst [vmem:[#allocation4 + $0x1e8] sm:$0xff] %v3052_v31 }
 0x25b   :  { %v6495_v45 = vadd.f32 %v6367_v32, %v6107_v54  ;;  %v4490_v22 = vmul.f32 %v15108_v46, %v4358_v9  ;;  %v4230_v5 = vadd.f32 %v4102_v40, %v3842_v14  ;;  %v4615_v58 = vadd.f32 %v11550_v10, %v11637_v0  ;;  %3593 = vst [vmem:[#allocation4 + $0x488] sm:$0xff] %v3276_v29  ;;  %v8197_v14 = vpop.f32.mrb[46].mxu0  ;;  %v7272_v10 = vld [vmem:[%s14942_s6 + $0x80] sm:$0xff]  ;;  %v7273_v29 = vld [vmem:[%s14942_s6 + $0x88] sm:$0xff] }
 0x25c   :  { %v6496_v55 = vadd.f32 %v11688_v43, %v6108_v18  ;;  %v7016_v8 = vadd.f32 %v11467_v28, %v6882_v36  ;;  %v11844_v37 = vadd.f32 %v11691_v23, %v3843_v62  ;;  %v4874_v7 = vmul.f32 %v15103_v44, %v3710_v16  ;;  %3540 = vst [vmem:[#allocation4 + $0x200] sm:$0xff] %v8197_v14 }
 0x25d   :  { %v6883_v47 = vadd.f32 %v6755_v52, %v6495_v45  ;;  %v4875_v54 = vmul.f32 %v15103_v44, %v3711_v24  ;;  %v4617_v43 = vadd.f32 %v4489_v34, %v11721_v35  ;;  %v5262_v17 = vmul.f32 %v8464_v56, %v15100_v49 }
 0x25e   :  { %v6884_v32 = vadd.f32 %v11754_v2, %v6496_v55  ;;  %v7144_v41 = vmax.f32 %v7016_v8, 0.0  ;;  %v5002_v0 = vadd.f32 %v4874_v7, %v11644_v39  ;;  %v5649_v36 = vmul.f32 %v15110_v3, %v4357_v42  ;;  %v3657_v8 = vld [vmem:[#allocation4 + $0x157] sm:$0xff] }
 0x25f   :  { %v7017_v18 = vadd.f32 %v11467_v28, %v6883_v47  ;;  %v5003_v23 = vadd.f32 %v4875_v54, %v4615_v58  ;;  %v11858_v40 = vadd.f32 %v4490_v22, %v4230_v5  ;;  %v5650_v35 = vmul.f32 %v15110_v3, %v4358_v9 }
 0x260   :  { %v7018_v2 = vadd.f32 %v11467_v28, %v6884_v32  ;;  %v7400_v62 = vadd.f32 %v7272_v10, %v7144_v41  ;;  %v5390_v45 = vadd.f32 %v5262_v17, %v5002_v0  ;;  %v11865_v34 = vmul.f32 %v15186_v48, %v3710_v16  ;;  %v7274_v16 = vld [vmem:[%s14942_s6 + $0x90] sm:$0xff]  ;;  %v3713_v41 = vld [vmem:[#allocation4 + $0x3f7] sm:$0xff]  ;;  %v8253_v17 = vpop.f32.mrb[54].mxu1 }
 0x261   :  { %v7145_v31 = vmax.f32 %v7017_v18, 0.0  ;;  %v11862_v52 = vadd.f32 %v11697_v25, %v5003_v23  ;;  %v5777_v22 = vadd.f32 %v5649_v36, %v11741_v27  ;;  %v11875_v55 = vmul.f32 %v15186_v48, %v3711_v24  ;;  %v8465_v24 = vld [vmem:[#allocation4 + $0x168] sm:$0xff]  ;;  %v8467_v10 = vld [vmem:[#allocation4 + $0x158] sm:$0xff]  ;;  %3596 = vst [vmem:[#allocation4 + $0x4a0] sm:$0xff] %v8253_v17 }
 0x262   :  { %15227 = vst [vmem:[#allocation51_spill] sm:$0xff] %v11865_v34  ;;  %v7146_v39 = vmax.f32 %v7018_v2, 0.0  ;;  %7528 = vst [vmem:[%s14942_s6 + $0x80] sm:$0xff] %v7400_v62  ;;  %v11878_v25 = vmul.f32 %v8464_v56, %v15190_v12  ;;  %v11883_v58 = vadd.f32 %v5650_v35, %v5390_v45  ;;  %v11886_v47 = vmul.f32 %v11439_v6, %v4357_v42  ;;  %v8466_v42 = vld [vmem:[#allocation4 + $0x408] sm:$0xff]  ;;  %v8470_v34 = vld [vmem:[#allocation4 + $0x410] sm:$0xff] }
 0x263   :  { %15228 = vst [vmem:[#allocation44_spill] sm:$0xff] %v11875_v55  ;;  %v7401_v5 = vadd.f32 %v7273_v29, %v7145_v31  ;;  %v11889_v7 = vmul.f32 %v11439_v6, %v4358_v9  ;;  %v11892_v54 = vmul.f32 %v8465_v24, %v15098_v63  ;;  %v11895_v56 = vmul.f32 %v8465_v24, %v15100_v49  ;;  %v3660_v35 = vld [vmem:[#allocation4 + $0x16f] sm:$0xff] }
 0x264   :  { %15229 = vst [vmem:[#allocation46_spill] sm:$0xff] %v11878_v25  ;;  %15230 = vst [vmem:[#allocation28_spill] sm:$0xff] %v11886_v47  ;;  %v7402_v27 = vadd.f32 %v7274_v16, %v7146_v39  ;;  %v11898_v32 = vmul.f32 %v8465_v24, %v15190_v12  ;;  %v11904_v9 = vmul.f32 %v8466_v42, %v15098_v63  ;;  %v8468_v39 = vld [vmem:[#allocation4 + $0x3f8] sm:$0xff]  ;;  %v4307_v17 = vld [vmem:[#allocation4 + $0x169] sm:$0xff] }
 0x265   :  { %15231 = vst [vmem:[#allocation47_spill] sm:$0xff] %v11889_v7  ;;  %7529 = vst [vmem:[%s14942_s6 + $0x88] sm:$0xff] %v7401_v5  ;;  %v11907_v14 = vmul.f32 %v8466_v42, %v15100_v49  ;;  %v3789_v18 = vmul.f32 %v15102_v59, %v3657_v8  ;;  %v4049_v0 = vmul.f32 %v8467_v10, %v15098_v63  ;;  %v4308_v25 = vld [vmem:[#allocation4 + $0x171] sm:$0xff] }
 0x266   :  { %7530 = vst [vmem:[%s14942_s6 + $0x90] sm:$0xff] %v7402_v27  ;;  %v4821_v23 = vmul.f32 %v15103_v44, %v3657_v8  ;;  %v5209_v36 = vmul.f32 %v8467_v10, %v15100_v49  ;;  %v5982_v2 = vmul.f32 %v15186_v48, %v3657_v8  ;;  %v6370_v62 = vmul.f32 %v8467_v10, %v15190_v12  ;;  %v3055_v10 = vpop.f32.mrb[47].mxu0 }
 0x267   :  { %v11918_v31 = vadd.f32 %v4049_v0, %v3789_v18  ;;  %v3845_v45 = vmul.f32 %v15102_v59, %v3713_v41  ;;  %v4105_v29 = vmul.f32 %v8468_v39, %v15098_v63  ;;  %v4877_v16 = vmul.f32 %v15103_v44, %v3713_v41  ;;  %3538 = vst [vmem:[#allocation4 + $0x1f0] sm:$0xff] %v3055_v10  ;;  %v4364_v10 = vld [vmem:[#allocation4 + $0x411] sm:$0xff] }
 0x268   :  { %v4949_v5 = vadd.f32 %v4821_v23, %v11800_v53  ;;  %v6110_v27 = vadd.f32 %v5982_v2, %v11821_v60  ;;  %v5265_v24 = vmul.f32 %v8468_v39, %v15100_v49  ;;  %v6038_v8 = vmul.f32 %v15186_v48, %v3713_v41  ;;  %v8469_v23 = vld [vmem:[#allocation4 + $0x170] sm:$0xff] }
 0x269   :  { %v11927_v7 = vadd.f32 %v4105_v29, %v3845_v45  ;;  %v5005_v18 = vadd.f32 %v4877_v16, %v4617_v43  ;;  %v6426_v0 = vmul.f32 %v8468_v39, %v15190_v12  ;;  %v3792_v47 = vmul.f32 %v15102_v59, %v3660_v35  ;;  %v3716_v29 = vld [vmem:[#allocation4 + $0x40f] sm:$0xff] }
 0x26a   :  { %v11931_v55 = vadd.f32 %v5209_v36, %v4949_v5  ;;  %v11933_v53 = vadd.f32 %v6370_v62, %v6110_v27  ;;  %v6166_v60 = vadd.f32 %v6038_v8, %v5777_v22  ;;  %v4052_v2 = vmul.f32 %v8469_v23, %v15098_v63  ;;  %v4363_v8 = vld [vmem:[#allocation4 + $0x409] sm:$0xff] }
 0x26b   :  { %v11937_v41 = vmul.f32 %v8466_v42, %v15190_v12  ;;  %v11939_v45 = vadd.f32 %v5265_v24, %v5005_v18  ;;  %v11942_v43 = vmul.f32 %v15108_v46, %v4307_v17  ;;  %v4824_v39 = vmul.f32 %v15103_v44, %v3660_v35 }
 0x26c   :  { %v11945_v16 = vadd.f32 %v6426_v0, %v6166_v60  ;;  %v4180_v36 = vadd.f32 %v4052_v2, %v3792_v47  ;;  %v4440_v62 = vmul.f32 %v15108_v46, %v4308_v25  ;;  %v5212_v22 = vmul.f32 %v8469_v23, %v15100_v49 }
 0x26d   :  { %15232 = vst [vmem:[#allocation9_spill] sm:$0xff] %v11937_v41  ;;  %15233 = vst [vmem:[#allocation48_spill] sm:$0xff] %v11942_v43  ;;  %v4952_v5 = vadd.f32 %v4824_v39, %v11751_v11  ;;  %v11951_v42 = vmul.f32 %v15110_v3, %v4307_v17  ;;  %v5600_v27 = vmul.f32 %v15110_v3, %v4308_v25  ;;  %v4306_v43 = vld [vmem:[#allocation4 + $0x161] sm:$0xff] }
 0x26e   :  { %v5985_v24 = vmul.f32 %v15186_v48, %v3660_v35  ;;  %v11955_v18 = vadd.f32 %v4440_v62, %v4180_v36  ;;  %v6373_v0 = vmul.f32 %v8469_v23, %v15190_v12  ;;  %v11959_v47 = vmul.f32 %v11439_v6, %v4307_v17  ;;  %v3658_v62 = vld [vmem:[#allocation4 + $0x15f] sm:$0xff] }
 0x26f   :  { %15234 = vst [vmem:[#allocation17_spill] sm:$0xff] %v11951_v42  ;;  %v3848_v60 = vmul.f32 %v15102_v59, %v3716_v29  ;;  %v5340_v2 = vadd.f32 %v5212_v22, %v4952_v5  ;;  %v6761_v39 = vmul.f32 %v11439_v6, %v4308_v25  ;;  %v4108_v1 = vmul.f32 %v8470_v34, %v15098_v63  ;;  %v3659_v25 = vld [vmem:[#allocation4 + $0x167] sm:$0xff]  ;;  %v4305_v42 = vld [vmem:[#allocation4 + $0x159] sm:$0xff] }
 0x270   :  { %15235 = vst [vmem:[#allocation20_spill] sm:$0xff] %v11955_v18  ;;  %v6113_v11 = vadd.f32 %v5985_v24, %v11766_v15  ;;  %v11966_v35 = vmul.f32 %v15108_v46, %v4363_v8  ;;  %v4496_v36 = vmul.f32 %v15108_v46, %v4364_v10  ;;  %v4880_v23 = vmul.f32 %v15103_v44, %v3716_v29  ;;  %v3279_v18 = vpop.f32.mrb[55].mxu1 }
 0x271   :  { %v5268_v17 = vmul.f32 %v8470_v34, %v15100_v49  ;;  %v11971_v19 = vadd.f32 %v5600_v27, %v5340_v2  ;;  %v4236_v5 = vadd.f32 %v4108_v1, %v3848_v60  ;;  %v11974_v15 = vmul.f32 %v15110_v3, %v4363_v8  ;;  %3594 = vst [vmem:[#allocation4 + $0x490] sm:$0xff] %v3279_v18 }
 0x272   :  { %15236 = vst [vmem:[#allocation7_spill] sm:$0xff] %v11966_v35  ;;  %v6501_v22 = vadd.f32 %v6373_v0, %v6113_v11  ;;  %v5008_v24 = vadd.f32 %v4880_v23, %v11772_v61  ;;  %v5656_v20 = vmul.f32 %v15110_v3, %v4364_v10  ;;  %v6041_v13 = vmul.f32 %v15186_v48, %v3716_v29  ;;  %v8471_v29 = vld [vmem:[#allocation4 + $0x160] sm:$0xff] }
 0x273   :  { %v6429_v35 = vmul.f32 %v8470_v34, %v15190_v12  ;;  %v11980_v27 = vadd.f32 %v4496_v36, %v4236_v5  ;;  %v11983_v1 = vmul.f32 %v11439_v6, %v4363_v8  ;;  %v3790_v0 = vmul.f32 %v15102_v59, %v3658_v62  ;;  %v7279_v5 = vld [vmem:[%s14942_s6 + $0xb8] sm:$0xff] }
 0x274   :  { %v6889_v41 = vadd.f32 %v6761_v39, %v6501_v22  ;;  %v5396_v60 = vadd.f32 %v5268_v17, %v5008_v24  ;;  %v6169_v61 = vadd.f32 %v6041_v13, %v11803_v21  ;;  %v3791_v2 = vmul.f32 %v15102_v59, %v3659_v25 }
 0x275   :  { %v4050_v34 = vmul.f32 %v8471_v29, %v15098_v63  ;;  %v6817_v39 = vmul.f32 %v11439_v6, %v4364_v10  ;;  %v4437_v36 = vmul.f32 %v15108_v46, %v4305_v42  ;;  %v4438_v8 = vmul.f32 %v15108_v46, %v4306_v43 }
 0x276   :  { %v7023_v11 = vadd.f32 %v11467_v28, %v6889_v41  ;;  %v6557_v23 = vadd.f32 %v6429_v35, %v6169_v61  ;;  %v11994_v18 = vadd.f32 %v11892_v54, %v3791_v2  ;;  %v4563_v13 = vadd.f32 %v11737_v57, %v11793_v38 }
 0x277   :  { %v4178_v22 = vadd.f32 %v4050_v34, %v3790_v0  ;;  %v11999_v17 = vadd.f32 %v4437_v36, %v11918_v31  ;;  %v4822_v41 = vmul.f32 %v15103_v44, %v3658_v62  ;;  %v4823_v10 = vmul.f32 %v15103_v44, %v3659_v25 }
 0x278   :  { %v7151_v21 = vmax.f32 %v7023_v11, 0.0  ;;  %v12006_v35 = vadd.f32 %v5656_v20, %v5396_v60  ;;  %v6945_v24 = vadd.f32 %v6817_v39, %v6557_v23  ;;  %v5210_v0 = vmul.f32 %v8471_v29, %v15100_v49  ;;  %v12018_v60 = vld [vmem:[#allocation4 + $0x3ff] sm:$0xff]  ;;  %v12020_v39 = vld [vmem:[#allocation4 + $0x407] sm:$0xff] }
 0x279   :  { %v12008_v54 = vadd.f32 %v4438_v8, %v4178_v22  ;;  %v4950_v38 = vadd.f32 %v4822_v41, %v11810_v30  ;;  %v4951_v31 = vadd.f32 %v4823_v10, %v4563_v13  ;;  %v5597_v61 = vmul.f32 %v15110_v3, %v4305_v42  ;;  %v4361_v13 = vld [vmem:[#allocation4 + $0x3f9] sm:$0xff] }
 0x27a   :  { %v7407_v57 = vadd.f32 %v7279_v5, %v7151_v21  ;;  %v7079_v2 = vadd.f32 %v11467_v28, %v6945_v24  ;;  %v5598_v34 = vmul.f32 %v15110_v3, %v4306_v43  ;;  %v5723_v11 = vadd.f32 %v11745_v33, %v11818_v51  ;;  %v12035_v21 = vld [vmem:[#allocation4 + $0x401] sm:$0xff] }
 0x27b   :  { %v5983_v20 = vmul.f32 %v15186_v48, %v3658_v62  ;;  %v5338_v30 = vadd.f32 %v5210_v0, %v4950_v38  ;;  %v12026_v36 = vadd.f32 %v11895_v56, %v4951_v31  ;;  %v12029_v8 = vadd.f32 %v5597_v61, %v11931_v55  ;;  %v7335_v56 = vld [vmem:[%s14942_s6 + $0x278] sm:$0xff]  ;;  %v8472_v5 = vld [vmem:[#allocation4 + $0x400] sm:$0xff] }
 0x27c   :  { %7535 = vst [vmem:[%s14942_s6 + $0xb8] sm:$0xff] %v7407_v57  ;;  %v5984_v23 = vmul.f32 %v15186_v48, %v3659_v25  ;;  %v7207_v33 = vmax.f32 %v7079_v2, 0.0  ;;  %v6371_v62 = vmul.f32 %v8471_v29, %v15190_v12  ;;  %v6758_v22 = vmul.f32 %v11439_v6, %v4305_v42 }
 0x27d   :  { %v6111_v51 = vadd.f32 %v5983_v20, %v11828_v4  ;;  %v6759_v55 = vmul.f32 %v11439_v6, %v4306_v43  ;;  %v3846_v25 = vmul.f32 %v15102_v59, %v12018_v60  ;;  %v3847_v4 = vmul.f32 %v15102_v59, %v12020_v39  ;;  %v8200_v20 = vpop.f32.mrb[48].mxu0 }
 0x27e   :  { %v6112_v41 = vadd.f32 %v5984_v23, %v5723_v11  ;;  %v7463_v10 = vadd.f32 %v7335_v56, %v7207_v33  ;;  %v6886_v42 = vadd.f32 %v6758_v22, %v11933_v53  ;;  %v4106_v24 = vmul.f32 %v8472_v5, %v15098_v63  ;;  %v8256_v23 = vpop.f32.mrb[56].mxu1  ;;  %3543 = vst [vmem:[#allocation4 + $0x228] sm:$0xff] %v8200_v20 }
 0x27f   :  { %v6499_v29 = vadd.f32 %v6371_v62, %v6111_v51  ;;  %v12049_v57 = vadd.f32 %v11904_v9, %v3847_v4  ;;  %v4493_v6 = vmul.f32 %v15108_v46, %v4361_v13  ;;  %v4494_v43 = vmul.f32 %v15108_v46, %v12035_v21  ;;  %3599 = vst [vmem:[#allocation4 + $0x4c8] sm:$0xff] %v8256_v23 }
 0x280   :  { %v6500_v0 = vadd.f32 %v11898_v32, %v6112_v41  ;;  %7591 = vst [vmem:[%s14942_s6 + $0x278] sm:$0xff] %v7463_v10  ;;  %v7020_v53 = vadd.f32 %v11467_v28, %v6886_v42  ;;  %v4234_v31 = vadd.f32 %v4106_v24, %v3846_v25  ;;  %v4619_v61 = vadd.f32 %v11762_v26, %v11844_v37  ;;  %v3068_v37 = vpop.f32.mrb[49].mxu0  ;;  %v7277_v42 = vld [vmem:[%s14942_s6 + $0xa8] sm:$0xff] }
 0x281   :  { %v6887_v38 = vadd.f32 %v6759_v55, %v6499_v29  ;;  %v12062_v9 = vadd.f32 %v4493_v6, %v11927_v7  ;;  %v4878_v2 = vmul.f32 %v15103_v44, %v12018_v60  ;;  %v4879_v11 = vmul.f32 %v15103_v44, %v12020_v39  ;;  %3541 = vst [vmem:[#allocation4 + $0x218] sm:$0xff] %v3068_v37  ;;  %v3292_v55 = vpop.f32.mrb[57].mxu1 }
 0x282   :  { %v6888_v32 = vadd.f32 %v11959_v47, %v6500_v0  ;;  %v7148_v51 = vmax.f32 %v7020_v53, 0.0  ;;  %v12069_v62 = vadd.f32 %v4494_v43, %v4234_v31  ;;  %v5266_v26 = vmul.f32 %v8472_v5, %v15100_v49  ;;  %v7276_v47 = vld [vmem:[%s14942_s6 + $0xa0] sm:$0xff]  ;;  %3597 = vst [vmem:[#allocation4 + $0x4b8] sm:$0xff] %v3292_v55  ;;  %v12109_v31 = vld [vmem:[%s14938_s4 + $0x28] ss:$0 sm:$0xff] }
 0x283   :  { %v7021_v33 = vadd.f32 %v11467_v28, %v6887_v38  ;;  %v5006_v22 = vadd.f32 %v4878_v2, %v11858_v40  ;;  %v5007_v56 = vadd.f32 %v4879_v11, %v4619_v61  ;;  %v5653_v41 = vmul.f32 %v15110_v3, %v4361_v13  ;;  %v8201_v38 = vpop.f32.mrb[50].mxu0  ;;  %v3661_v61 = vld [vmem:[#allocation4 + $0x187] sm:$0xff] }
 0x284   :  { %v7022_v7 = vadd.f32 %v11467_v28, %v6888_v32  ;;  %v12078_v25 = vadd.f32 %v5598_v34, %v5338_v30  ;;  %v7404_v10 = vadd.f32 %v7276_v47, %v7148_v51  ;;  %v5654_v29 = vmul.f32 %v15110_v3, %v12035_v21  ;;  %v7278_v34 = vld [vmem:[%s14942_s6 + $0xb0] sm:$0xff]  ;;  %3544 = vst [vmem:[#allocation4 + $0x230] sm:$0xff] %v8201_v38 }
 0x285   :  { %v7149_v4 = vmax.f32 %v7021_v33, 0.0  ;;  %v5394_v24 = vadd.f32 %v5266_v26, %v5006_v22  ;;  %v12086_v40 = vadd.f32 %v11907_v14, %v5007_v56  ;;  %v5779_v0 = vadd.f32 %v11769_v50, %v11862_v52  ;;  %v15237_v33 = vld [vmem:[#allocation9_spill] sm:$0xff]  ;;  %v8477_v22 = vld [vmem:[#allocation4 + $0x188] sm:$0xff] }
 0x286   :  { %v7150_v28 = vmax.f32 %v7022_v7, 0.0  ;;  %7532 = vst [vmem:[%s14942_s6 + $0xa0] sm:$0xff] %v7404_v10  ;;  %v12097_v6 = vadd.f32 %v5653_v41, %v11939_v45  ;;  %v6039_v43 = vmul.f32 %v15186_v48, %v12018_v60  ;;  %v6040_v14 = vmul.f32 %v15186_v48, %v12020_v39  ;;  %v3717_v7 = vld [vmem:[#allocation4 + $0x427] sm:$0xff] }
 0x287   :  { %v7405_v30 = vadd.f32 %v7277_v42, %v7149_v4  ;;  %v12103_v52 = vadd.f32 %v5654_v29, %v5394_v24  ;;  %v6427_v53 = vmul.f32 %v8472_v5, %v15190_v12  ;;  %v6814_v45 = vmul.f32 %v12109_v31, %v4361_v13  ;;  %v8474_v5 = vld [vmem:[#allocation4 + $0x198] sm:$0xff]  ;;  %v8257_v42 = vpop.f32.mrb[58].mxu1 }
 0x288   :  { %v7406_v50 = vadd.f32 %v7278_v34, %v7150_v28  ;;  %v6167_v60 = vadd.f32 %v6039_v43, %v11883_v58  ;;  %v6168_v39 = vadd.f32 %v6040_v14, %v5779_v0  ;;  %v6815_v32 = vmul.f32 %v12109_v31, %v12035_v21  ;;  %v8475_v58 = vld [vmem:[#allocation4 + $0x438] sm:$0xff]  ;;  %3600 = vst [vmem:[#allocation4 + $0x4d0] sm:$0xff] %v8257_v42 }
 0x289   :  { %7533 = vst [vmem:[%s14942_s6 + $0xa8] sm:$0xff] %v7405_v30  ;;  %v12119_v2 = vmul.f32 %v8474_v5, %v15098_v63  ;;  %v6942_v13 = vadd.f32 %v6814_v45, %v11945_v16  ;;  %v12126_v11 = vmul.f32 %v8474_v5, %v15100_v49  ;;  %v12129_v20 = vmul.f32 %v8474_v5, %v15190_v12  ;;  %v12142_v16 = vld [vmem:[%s14939_s5 + $0x2] ss:$0 sm:$0xff]  ;;  %v3664_v45 = vld [vmem:[#allocation4 + $0x19f] sm:$0xff] }
 0x28a   :  { %7534 = vst [vmem:[%s14942_s6 + $0xb0] sm:$0xff] %v7406_v50  ;;  %v12132_v23 = vmul.f32 %v8475_v58, %v15098_v63  ;;  %v6555_v21 = vadd.f32 %v6427_v53, %v6167_v60  ;;  %v6556_v51 = vadd.f32 %v15237_v33, %v6168_v39  ;;  %v12136_v26 = vmul.f32 %v8475_v58, %v15100_v49  ;;  %v8478_v50 = vld [vmem:[#allocation4 + $0x428] sm:$0xff]  ;;  %v4311_v33 = vld [vmem:[#allocation4 + $0x199] sm:$0xff] }
 0x28b   :  { %v3793_v37 = vmul.f32 %v15102_v59, %v3661_v61  ;;  %v7076_v47 = vadd.f32 %v12142_v16, %v6942_v13  ;;  %v4053_v56 = vmul.f32 %v8477_v22, %v15098_v63  ;;  %v4825_v41 = vmul.f32 %v15103_v44, %v3661_v61 }
 0x28c   :  { %v5213_v55 = vmul.f32 %v8477_v22, %v15100_v49  ;;  %v6943_v4 = vadd.f32 %v6815_v32, %v6555_v21  ;;  %v6944_v10 = vadd.f32 %v11983_v1, %v6556_v51  ;;  %v5986_v29 = vmul.f32 %v15186_v48, %v3661_v61  ;;  %v7332_v1 = vld [vmem:[%s14942_s6 + $0x260] sm:$0xff]  ;;  %v7333_v51 = vld [vmem:[%s14942_s6 + $0x268] sm:$0xff] }
 0x28d   :  { %v6374_v28 = vmul.f32 %v8477_v22, %v15190_v12  ;;  %v7204_v24 = vmax.f32 %v7076_v47, 0.0  ;;  %v12151_v0 = vadd.f32 %v4053_v56, %v3793_v37  ;;  %v4953_v34 = vadd.f32 %v4825_v41, %v11999_v17  ;;  %v4312_v41 = vld [vmem:[#allocation4 + $0x1a1] sm:$0xff] }
 0x28e   :  { %v3849_v30 = vmul.f32 %v15102_v59, %v3717_v7  ;;  %v7077_v43 = vadd.f32 %v12142_v16, %v6943_v4  ;;  %v7078_v14 = vadd.f32 %v12142_v16, %v6944_v10  ;;  %v6114_v38 = vadd.f32 %v5986_v29, %v12029_v8  ;;  %v3071_v8 = vpop.f32.mrb[51].mxu0  ;;  %v8479_v29 = vld [vmem:[#allocation4 + $0x1a0] sm:$0xff] }
 0x28f   :  { %v4109_v53 = vmul.f32 %v8478_v50, %v15098_v63  ;;  %v7460_v61 = vadd.f32 %v7332_v1, %v7204_v24  ;;  %v12163_v17 = vmul.f32 %v8475_v58, %v15190_v12  ;;  %v12165_v60 = vadd.f32 %v5213_v55, %v4953_v34  ;;  %v7334_v58 = vld [vmem:[%s14942_s6 + $0x270] sm:$0xff]  ;;  %3542 = vst [vmem:[#allocation4 + $0x220] sm:$0xff] %v3071_v8 }
 0x290   :  { %v4881_v39 = vmul.f32 %v15103_v44, %v3717_v7  ;;  %v7205_v32 = vmax.f32 %v7077_v43, 0.0  ;;  %v7206_v5 = vmax.f32 %v7078_v14, 0.0  ;;  %v12168_v13 = vadd.f32 %v6374_v28, %v6114_v38  ;;  %v3720_v34 = vld [vmem:[#allocation4 + $0x43f] sm:$0xff] }
 0x291   :  { %v12170_v21 = vadd.f32 %v4109_v53, %v3849_v30  ;;  %7588 = vst [vmem:[%s14942_s6 + $0x260] sm:$0xff] %v7460_v61  ;;  %v5269_v47 = vmul.f32 %v8478_v50, %v15100_v49  ;;  %v6042_v22 = vmul.f32 %v15186_v48, %v3717_v7  ;;  %v3796_v56 = vmul.f32 %v15102_v59, %v3664_v45  ;;  %v15239_v38 = vld [vmem:[#allocation20_spill] sm:$0xff] }
 0x292   :  { %v5009_v37 = vadd.f32 %v4881_v39, %v12062_v9  ;;  %v7461_v55 = vadd.f32 %v7333_v51, %v7205_v32  ;;  %v7462_v4 = vadd.f32 %v7334_v58, %v7206_v5  ;;  %v6430_v10 = vmul.f32 %v8478_v50, %v15190_v12  ;;  %v4367_v39 = vld [vmem:[#allocation4 + $0x439] sm:$0xff]  ;;  %v4368_v32 = vld [vmem:[#allocation4 + $0x441] sm:$0xff] }
 0x293   :  { %v4056_v28 = vmul.f32 %v8479_v29, %v15098_v63  ;;  %v6170_v24 = vadd.f32 %v6042_v22, %v12097_v6  ;;  %v12191_v9 = vmul.f32 %v15108_v46, %v4311_v33  ;;  %v4828_v7 = vmul.f32 %v15103_v44, %v3664_v45 }
 0x294   :  { %v12187_v42 = vadd.f32 %v5269_v47, %v5009_v37  ;;  %7589 = vst [vmem:[%s14942_s6 + $0x268] sm:$0xff] %v7461_v55  ;;  %7590 = vst [vmem:[%s14942_s6 + $0x270] sm:$0xff] %v7462_v4  ;;  %v4444_v43 = vmul.f32 %v15108_v46, %v4312_v41  ;;  %v5216_v14 = vmul.f32 %v8479_v29, %v15100_v49 }
 0x295   :  { %v4184_v30 = vadd.f32 %v4056_v28, %v3796_v56  ;;  %v12203_v6 = vmul.f32 %v15110_v3, %v4311_v33  ;;  %v12205_v1 = vadd.f32 %v6430_v10, %v6170_v24  ;;  %v4956_v50 = vadd.f32 %v4828_v7, %v15239_v38  ;;  %v8480_v56 = vld [vmem:[#allocation4 + $0x440] sm:$0xff] }
 0x296   :  { %v5604_v53 = vmul.f32 %v15110_v3, %v4312_v41  ;;  %v5989_v61 = vmul.f32 %v15186_v48, %v3664_v45  ;;  %v6377_v8 = vmul.f32 %v8479_v29, %v15190_v12  ;;  %v12214_v51 = vmul.f32 %v12109_v31, %v4311_v33  ;;  %v3662_v29 = vld [vmem:[#allocation4 + $0x18f] sm:$0xff] }
 0x297   :  { %15238 = vst [vmem:[#allocation50_spill] sm:$0xff] %v12203_v6  ;;  %v12210_v5 = vadd.f32 %v4444_v43, %v4184_v30  ;;  %v3852_v58 = vmul.f32 %v15102_v59, %v3720_v34  ;;  %v5344_v37 = vadd.f32 %v5216_v14, %v4956_v50  ;;  %v6765_v22 = vmul.f32 %v12109_v31, %v4312_v41  ;;  %v3663_v41 = vld [vmem:[#allocation4 + $0x197] sm:$0xff]  ;;  %v4309_v50 = vld [vmem:[#allocation4 + $0x189] sm:$0xff] }
 0x298   :  { %v6117_v47 = vadd.f32 %v5989_v61, %v11971_v19  ;;  %v4112_v55 = vmul.f32 %v8480_v56, %v15098_v63  ;;  %v12221_v45 = vmul.f32 %v15108_v46, %v4367_v39  ;;  %v4500_v4 = vmul.f32 %v15108_v46, %v4368_v32  ;;  %v3295_v61 = vpop.f32.mrb[59].mxu1 }
 0x299   :  { %v4884_v10 = vmul.f32 %v15103_v44, %v3720_v34  ;;  %v5272_v33 = vmul.f32 %v8480_v56, %v15100_v49  ;;  %v12226_v28 = vadd.f32 %v5604_v53, %v5344_v37  ;;  %v12229_v19 = vmul.f32 %v15110_v3, %v4367_v39  ;;  %3598 = vst [vmem:[#allocation4 + $0x4c0] sm:$0xff] %v3295_v61  ;;  %v7283_v61 = vld [vmem:[%s14942_s6 + $0xd8] sm:$0xff] }
 0x29a   :  { %15240 = vst [vmem:[#allocation32_spill] sm:$0xff] %v12221_v45  ;;  %v6505_v24 = vadd.f32 %v6377_v8, %v6117_v47  ;;  %v4240_v7 = vadd.f32 %v4112_v55, %v3852_v58  ;;  %v5660_v43 = vmul.f32 %v15110_v3, %v4368_v32  ;;  %v6045_v14 = vmul.f32 %v15186_v48, %v3720_v34  ;;  %v4310_v58 = vld [vmem:[#allocation4 + $0x191] sm:$0xff] }
 0x29b   :  { %15241 = vst [vmem:[#allocation22_spill] sm:$0xff] %v12229_v19  ;;  %v5012_v30 = vadd.f32 %v4884_v10, %v11980_v27  ;;  %v6433_v38 = vmul.f32 %v8480_v56, %v15190_v12  ;;  %v12238_v53 = vmul.f32 %v12109_v31, %v4367_v39  ;;  %v3794_v8 = vmul.f32 %v15102_v59, %v3662_v29  ;;  %v8481_v34 = vld [vmem:[#allocation4 + $0x190] sm:$0xff]  ;;  %v15242_v39 = vld [vmem:[#allocation48_spill] sm:$0xff] }
 0x29c   :  { %v6893_v45 = vadd.f32 %v6765_v22, %v6505_v24  ;;  %v12235_v6 = vadd.f32 %v4500_v4, %v4240_v7  ;;  %v6173_v27 = vadd.f32 %v6045_v14, %v12006_v35  ;;  %v3795_v47 = vmul.f32 %v15102_v59, %v3663_v41 }
 0x29d   :  { %v5400_v37 = vadd.f32 %v5272_v33, %v5012_v30  ;;  %v4054_v56 = vmul.f32 %v8481_v34, %v15098_v63  ;;  %v6821_v22 = vmul.f32 %v12109_v31, %v4368_v32  ;;  %v4441_v4 = vmul.f32 %v15108_v46, %v4309_v50 }
 0x29e   :  { %v7027_v55 = vadd.f32 %v12142_v16, %v6893_v45  ;;  %v4567_v10 = vadd.f32 %v15242_v39, %v11994_v18  ;;  %v6561_v24 = vadd.f32 %v6433_v38, %v6173_v27  ;;  %v12250_v33 = vadd.f32 %v12119_v2, %v3795_v47  ;;  %v15243_v39 = vld [vmem:[#allocation17_spill] sm:$0xff] }
 0x29f   :  { %v4182_v7 = vadd.f32 %v4054_v56, %v3794_v8  ;;  %v4442_v35 = vmul.f32 %v15108_v46, %v4310_v58  ;;  %v12254_v14 = vadd.f32 %v4441_v4, %v12151_v0  ;;  %v4826_v45 = vmul.f32 %v15103_v44, %v3662_v29 }
 0x2a0   :  { %v7155_v30 = vmax.f32 %v7027_v55, 0.0  ;;  %v4827_v32 = vmul.f32 %v15103_v44, %v3663_v41  ;;  %v12261_v18 = vadd.f32 %v5660_v43, %v5400_v37  ;;  %v6949_v38 = vadd.f32 %v6821_v22, %v6561_v24  ;;  %v12273_v37 = vld [vmem:[#allocation4 + $0x42f] sm:$0xff]  ;;  %v12275_v22 = vld [vmem:[#allocation4 + $0x437] sm:$0xff] }
 0x2a1   :  { %v12263_v8 = vadd.f32 %v4442_v35, %v4182_v7  ;;  %v5214_v2 = vmul.f32 %v8481_v34, %v15100_v49  ;;  %v4954_v47 = vadd.f32 %v4826_v45, %v12008_v54  ;;  %v5601_v56 = vmul.f32 %v15110_v3, %v4309_v50  ;;  %v4365_v45 = vld [vmem:[#allocation4 + $0x429] sm:$0xff] }
 0x2a2   :  { %v7411_v27 = vadd.f32 %v7283_v61, %v7155_v30  ;;  %v4955_v0 = vadd.f32 %v4827_v32, %v4567_v10  ;;  %v7083_v55 = vadd.f32 %v12142_v16, %v6949_v38  ;;  %v5602_v4 = vmul.f32 %v15110_v3, %v4310_v58  ;;  %v12290_v32 = vld [vmem:[#allocation4 + $0x431] sm:$0xff] }
 0x2a3   :  { %v5727_v19 = vadd.f32 %v15243_v39, %v12026_v36  ;;  %v5987_v43 = vmul.f32 %v15186_v48, %v3662_v29  ;;  %v5342_v54 = vadd.f32 %v5214_v2, %v4954_v47  ;;  %v12284_v24 = vadd.f32 %v5601_v56, %v12165_v60  ;;  %v8482_v2 = vld [vmem:[#allocation4 + $0x430] sm:$0xff] }
 0x2a4   :  { %7539 = vst [vmem:[%s14942_s6 + $0xd8] sm:$0xff] %v7411_v27  ;;  %v12281_v10 = vadd.f32 %v12126_v11, %v4955_v0  ;;  %v5988_v7 = vmul.f32 %v15186_v48, %v3663_v41  ;;  %v7211_v36 = vmax.f32 %v7083_v55, 0.0  ;;  %v6375_v35 = vmul.f32 %v8481_v34, %v15190_v12  ;;  %v7339_v11 = vld [vmem:[%s14942_s6 + $0x298] sm:$0xff]  ;;  %v15244_v39 = vld [vmem:[#allocation7_spill] sm:$0xff] }
 0x2a5   :  { %v6115_v29 = vadd.f32 %v5987_v43, %v12078_v25  ;;  %v6762_v30 = vmul.f32 %v12109_v31, %v4309_v50  ;;  %v6763_v60 = vmul.f32 %v12109_v31, %v4310_v58  ;;  %v3850_v41 = vmul.f32 %v15102_v59, %v12273_v37 }
 0x2a6   :  { %v6116_v61 = vadd.f32 %v5988_v7, %v5727_v19  ;;  %v3851_v25 = vmul.f32 %v15102_v59, %v12275_v22  ;;  %v7467_v38 = vadd.f32 %v7339_v11, %v7211_v36  ;;  %v4110_v27 = vmul.f32 %v8482_v2, %v15098_v63 }
 0x2a7   :  { %v6503_v34 = vadd.f32 %v6375_v35, %v6115_v29  ;;  %v6890_v50 = vadd.f32 %v6762_v30, %v12168_v13  ;;  %v4497_v19 = vmul.f32 %v15108_v46, %v4365_v45  ;;  %v4498_v58 = vmul.f32 %v15108_v46, %v12290_v32  ;;  %v8204_v29 = vpop.f32.mrb[52].mxu0  ;;  %v8260_v35 = vpop.f32.mrb[60].mxu1 }
 0x2a8   :  { %v6504_v47 = vadd.f32 %v12129_v20, %v6116_v61  ;;  %v12304_v0 = vadd.f32 %v12132_v23, %v3851_v25  ;;  %7595 = vst [vmem:[%s14942_s6 + $0x298] sm:$0xff] %v7467_v38  ;;  %v4238_v55 = vadd.f32 %v4110_v27, %v3850_v41  ;;  %v4623_v43 = vadd.f32 %v15244_v39, %v12049_v57 }
 0x2a9   :  { %v6891_v56 = vadd.f32 %v6763_v60, %v6503_v34  ;;  %v7024_v13 = vadd.f32 %v12142_v16, %v6890_v50  ;;  %v12317_v23 = vadd.f32 %v4497_v19, %v12170_v21  ;;  %v4882_v7 = vmul.f32 %v15103_v44, %v12273_v37  ;;  %3547 = vst [vmem:[#allocation4 + $0x258] sm:$0xff] %v8204_v29  ;;  %v7280_v60 = vld [vmem:[%s14942_s6 + $0xc0] sm:$0xff]  ;;  %v3308_v34 = vpop.f32.mrb[61].mxu1 }
 0x2aa   :  { %v6892_v20 = vadd.f32 %v12214_v51, %v6504_v47  ;;  %v4883_v36 = vmul.f32 %v15103_v44, %v12275_v22  ;;  %v12324_v61 = vadd.f32 %v4498_v58, %v4238_v55  ;;  %v5270_v57 = vmul.f32 %v8482_v2, %v15100_v49  ;;  %3603 = vst [vmem:[#allocation4 + $0x4f8] sm:$0xff] %v8260_v35  ;;  %v3084_v51 = vpop.f32.mrb[53].mxu0  ;;  %v3665_v29 = vld [vmem:[#allocation4 + $0x1b7] sm:$0xff]  ;;  %v8483_v35 = vld [vmem:[#allocation4 + $0x1c8] sm:$0xff] }
 0x2ab   :  { %v7025_v30 = vadd.f32 %v12142_v16, %v6891_v56  ;;  %v7152_v11 = vmax.f32 %v7024_v13, 0.0  ;;  %v5010_v41 = vadd.f32 %v4882_v7, %v12069_v62  ;;  %v5657_v38 = vmul.f32 %v15110_v3, %v4365_v45  ;;  %3545 = vst [vmem:[#allocation4 + $0x248] sm:$0xff] %v3084_v51  ;;  %3601 = vst [vmem:[#allocation4 + $0x4e8] sm:$0xff] %v3308_v34  ;;  %v7281_v56 = vld [vmem:[%s14942_s6 + $0xc8] sm:$0xff] }
 0x2ac   :  { %v7026_v21 = vadd.f32 %v12142_v16, %v6892_v20  ;;  %v5011_v25 = vadd.f32 %v4883_v36, %v4623_v43  ;;  %v12333_v50 = vadd.f32 %v5602_v4, %v5342_v54  ;;  %v5658_v19 = vmul.f32 %v15110_v3, %v12290_v32  ;;  %v7282_v4 = vld [vmem:[%s14942_s6 + $0xd0] sm:$0xff]  ;;  %v8205_v20 = vpop.f32.mrb[54].mxu0 }
 0x2ad   :  { %v7153_v27 = vmax.f32 %v7025_v30, 0.0  ;;  %v7408_v47 = vadd.f32 %v7280_v60, %v7152_v11  ;;  %v5398_v13 = vadd.f32 %v5270_v57, %v5010_v41  ;;  %v5783_v55 = vadd.f32 %v11974_v15, %v12086_v40  ;;  %3548 = vst [vmem:[#allocation4 + $0x260] sm:$0xff] %v8205_v20  ;;  %v3721_v41 = vld [vmem:[#allocation4 + $0x457] sm:$0xff] }
 0x2ae   :  { %v7154_v58 = vmax.f32 %v7026_v21, 0.0  ;;  %v12341_v62 = vadd.f32 %v12136_v26, %v5011_v25  ;;  %v12352_v39 = vadd.f32 %v5657_v38, %v12187_v42  ;;  %v6043_v43 = vmul.f32 %v15186_v48, %v12273_v37  ;;  %v8485_v25 = vld [vmem:[#allocation4 + $0x1b8] sm:$0xff] }
 0x2af   :  { %v7409_v54 = vadd.f32 %v7281_v56, %v7153_v27  ;;  %7536 = vst [vmem:[%s14942_s6 + $0xc0] sm:$0xff] %v7408_v47  ;;  %v6044_v26 = vmul.f32 %v15186_v48, %v12275_v22  ;;  %v12358_v40 = vadd.f32 %v5658_v19, %v5398_v13  ;;  %v6431_v7 = vmul.f32 %v8482_v2, %v15190_v12  ;;  %v8261_v56 = vpop.f32.mrb[62].mxu1 }
 0x2b0   :  { %v7410_v15 = vadd.f32 %v7282_v4, %v7154_v58  ;;  %v6818_v36 = vmul.f32 %v12109_v31, %v4365_v45  ;;  %v6171_v42 = vadd.f32 %v6043_v43, %v12103_v52  ;;  %v6819_v22 = vmul.f32 %v12109_v31, %v12290_v32  ;;  %v8484_v52 = vld [vmem:[#allocation4 + $0x468] sm:$0xff]  ;;  %3604 = vst [vmem:[#allocation4 + $0x500] sm:$0xff] %v8261_v56 }
 0x2b1   :  { %7537 = vst [vmem:[%s14942_s6 + $0xc8] sm:$0xff] %v7409_v54  ;;  %v6172_v37 = vadd.f32 %v6044_v26, %v5783_v55  ;;  %v12369_v30 = vmul.f32 %v8483_v35, %v15098_v63  ;;  %v12376_v2 = vmul.f32 %v8483_v35, %v15100_v49  ;;  %v12379_v11 = vmul.f32 %v8483_v35, %v15190_v12 }
 0x2b2   :  { %7538 = vst [vmem:[%s14942_s6 + $0xd0] sm:$0xff] %v7410_v15  ;;  %v6946_v45 = vadd.f32 %v6818_v36, %v12205_v1  ;;  %v12382_v57 = vmul.f32 %v8484_v52, %v15098_v63  ;;  %v6559_v32 = vadd.f32 %v6431_v7, %v6171_v42  ;;  %v12386_v21 = vmul.f32 %v8484_v52, %v15100_v49  ;;  %v8486_v15 = vld [vmem:[#allocation4 + $0x458] sm:$0xff]  ;;  %v3668_v36 = vld [vmem:[#allocation4 + $0x1cf] sm:$0xff] }
 0x2b3   :  { %v6560_v51 = vadd.f32 %v12163_v17, %v6172_v37  ;;  %v3797_v60 = vmul.f32 %v15102_v59, %v3665_v29  ;;  %v4057_v38 = vmul.f32 %v8485_v25, %v15098_v63  ;;  %v4829_v34 = vmul.f32 %v15103_v44, %v3665_v29 }
 0x2b4   :  { %v7080_v1 = vadd.f32 %v12142_v16, %v6946_v45  ;;  %v5217_v27 = vmul.f32 %v8485_v25, %v15100_v49  ;;  %v6947_v47 = vadd.f32 %v6819_v22, %v6559_v32  ;;  %v5990_v17 = vmul.f32 %v15186_v48, %v3665_v29 }
 0x2b5   :  { %v6948_v19 = vadd.f32 %v12238_v53, %v6560_v51  ;;  %v6378_v58 = vmul.f32 %v8485_v25, %v15190_v12  ;;  %v12396_v55 = vadd.f32 %v4057_v38, %v3797_v60  ;;  %v4957_v4 = vadd.f32 %v4829_v34, %v12254_v14  ;;  %v7336_v53 = vld [vmem:[%s14942_s6 + $0x280] sm:$0xff]  ;;  %v7337_v60 = vld [vmem:[%s14942_s6 + $0x288] sm:$0xff] }
 0x2b6   :  { %v7208_v13 = vmax.f32 %v7080_v1, 0.0  ;;  %v3853_v54 = vmul.f32 %v15102_v59, %v3721_v41  ;;  %v7081_v43 = vadd.f32 %v12142_v16, %v6947_v47  ;;  %v6118_v20 = vadd.f32 %v5990_v17, %v12284_v24  ;;  %v4315_v51 = vld [vmem:[#allocation4 + $0x1c9] sm:$0xff]  ;;  %v3087_v24 = vpop.f32.mrb[55].mxu0 }
 0x2b7   :  { %v7082_v26 = vadd.f32 %v12142_v16, %v6948_v19  ;;  %v4113_v7 = vmul.f32 %v8486_v15, %v15098_v63  ;;  %v12408_v14 = vmul.f32 %v8484_v52, %v15190_v12  ;;  %v12410_v42 = vadd.f32 %v5217_v27, %v4957_v4  ;;  %v7338_v52 = vld [vmem:[%s14942_s6 + $0x290] sm:$0xff]  ;;  %v4316_v27 = vld [vmem:[#allocation4 + $0x1d1] sm:$0xff]  ;;  %3546 = vst [vmem:[#allocation4 + $0x250] sm:$0xff] %v3087_v24 }
 0x2b8   :  { %v7464_v29 = vadd.f32 %v7336_v53, %v7208_v13  ;;  %v4885_v37 = vmul.f32 %v15103_v44, %v3721_v41  ;;  %v7209_v22 = vmax.f32 %v7081_v43, 0.0  ;;  %v12413_v45 = vadd.f32 %v6378_v58, %v6118_v20  ;;  %v8487_v58 = vld [vmem:[#allocation4 + $0x1d0] sm:$0xff] }
 0x2b9   :  { %v7210_v35 = vmax.f32 %v7082_v26, 0.0  ;;  %v12415_v32 = vadd.f32 %v4113_v7, %v3853_v54  ;;  %v5273_v25 = vmul.f32 %v8486_v15, %v15100_v49  ;;  %v6046_v38 = vmul.f32 %v15186_v48, %v3721_v41  ;;  %v3724_v54 = vld [vmem:[#allocation4 + $0x46f] sm:$0xff] }
 0x2ba   :  { %7592 = vst [vmem:[%s14942_s6 + $0x280] sm:$0xff] %v7464_v29  ;;  %v5013_v1 = vadd.f32 %v4885_v37, %v12317_v23  ;;  %v3800_v34 = vmul.f32 %v15102_v59, %v3668_v36  ;;  %v7465_v47 = vadd.f32 %v7337_v60, %v7209_v22  ;;  %v6434_v17 = vmul.f32 %v8486_v15, %v15190_v12  ;;  %v4371_v37 = vld [vmem:[#allocation4 + $0x469] sm:$0xff]  ;;  %v4372_v22 = vld [vmem:[#allocation4 + $0x471] sm:$0xff] }
 0x2bb   :  { %v7466_v19 = vadd.f32 %v7338_v52, %v7210_v35  ;;  %v4060_v56 = vmul.f32 %v8487_v58, %v15098_v63  ;;  %v6174_v4 = vadd.f32 %v6046_v38, %v12352_v39  ;;  %v12436_v23 = vmul.f32 %v15108_v46, %v4315_v51  ;;  %v8488_v38 = vld [vmem:[#allocation4 + $0x470] sm:$0xff] }
 0x2bc   :  { %v12432_v13 = vadd.f32 %v5273_v25, %v5013_v1  ;;  %v4832_v41 = vmul.f32 %v15103_v44, %v3668_v36  ;;  %7593 = vst [vmem:[%s14942_s6 + $0x288] sm:$0xff] %v7465_v47  ;;  %v4448_v26 = vmul.f32 %v15108_v46, %v4316_v27  ;;  %v5220_v53 = vmul.f32 %v8487_v58, %v15100_v49 }
 0x2bd   :  { %7594 = vst [vmem:[%s14942_s6 + $0x290] sm:$0xff] %v7466_v19  ;;  %v4188_v43 = vadd.f32 %v4060_v56, %v3800_v34  ;;  %v12448_v39 = vmul.f32 %v15110_v3, %v4315_v51  ;;  %v12450_v20 = vadd.f32 %v6434_v17, %v6174_v4  ;;  %v5608_v7 = vmul.f32 %v15110_v3, %v4316_v27  ;;  %v3666_v17 = vld [vmem:[#allocation4 + $0x1bf] sm:$0xff] }
 0x2be   :  { %v4960_v15 = vadd.f32 %v4832_v41, %v12210_v5  ;;  %v5993_v29 = vmul.f32 %v15186_v48, %v3668_v36  ;;  %v6381_v24 = vmul.f32 %v8487_v58, %v15190_v12  ;;  %v12459_v60 = vmul.f32 %v12109_v31, %v4315_v51 }
 0x2bf   :  { %15245 = vst [vmem:[#allocation52_spill] sm:$0xff] %v12448_v39  ;;  %v12455_v35 = vadd.f32 %v4448_v26, %v4188_v43  ;;  %v3856_v52 = vmul.f32 %v15102_v59, %v3724_v54  ;;  %v6769_v5 = vmul.f32 %v12109_v31, %v4316_v27  ;;  %v4116_v34 = vmul.f32 %v8488_v38, %v15098_v63  ;;  %v3667_v27 = vld [vmem:[#allocation4 + $0x1c7] sm:$0xff] }
 0x2c0   :  { %v5348_v1 = vadd.f32 %v5220_v53, %v4960_v15  ;;  %v6121_v25 = vadd.f32 %v5993_v29, %v12226_v28  ;;  %v12466_v36 = vmul.f32 %v15108_v46, %v4371_v37  ;;  %v4504_v47 = vmul.f32 %v15108_v46, %v4372_v22  ;;  %v4313_v15 = vld [vmem:[#allocation4 + $0x1b9] sm:$0xff]  ;;  %v3311_v29 = vpop.f32.mrb[63].mxu1 }
 0x2c1   :  { %v4888_v19 = vmul.f32 %v15103_v44, %v3724_v54  ;;  %v5276_v51 = vmul.f32 %v8488_v38, %v15100_v49  ;;  %v4244_v4 = vadd.f32 %v4116_v34, %v3856_v52  ;;  %v12474_v28 = vmul.f32 %v15110_v3, %v4371_v37  ;;  %v4314_v52 = vld [vmem:[#allocation4 + $0x1c1] sm:$0xff]  ;;  %3602 = vst [vmem:[#allocation4 + $0x4f0] sm:$0xff] %v3311_v29 }
 0x2c2   :  { %15246 = vst [vmem:[#allocation15_spill] sm:$0xff] %v12466_v36  ;;  %v12471_v58 = vadd.f32 %v5608_v7, %v5348_v1  ;;  %v6509_v56 = vadd.f32 %v6381_v24, %v6121_v25  ;;  %v5664_v43 = vmul.f32 %v15110_v3, %v4372_v22  ;;  %v6049_v26 = vmul.f32 %v15186_v48, %v3724_v54  ;;  %v8489_v54 = vld [vmem:[#allocation4 + $0x1c0] sm:$0xff] }
 0x2c3   :  { %v5016_v41 = vadd.f32 %v4888_v19, %v12235_v6  ;;  %v6437_v53 = vmul.f32 %v8488_v38, %v15190_v12  ;;  %v12480_v39 = vadd.f32 %v4504_v47, %v4244_v4  ;;  %v12483_v7 = vmul.f32 %v12109_v31, %v4371_v37 }
 0x2c4   :  { %v6897_v36 = vadd.f32 %v6769_v5, %v6509_v56  ;;  %v3798_v24 = vmul.f32 %v15102_v59, %v3666_v17  ;;  %v6177_v6 = vadd.f32 %v6049_v26, %v12261_v18  ;;  %v3799_v25 = vmul.f32 %v15102_v59, %v3667_v27  ;;  %v7287_v26 = vld [vmem:[%s14942_s6 + $0xf8] sm:$0xff] }
 0x2c5   :  { %v5404_v1 = vadd.f32 %v5276_v51, %v5016_v41  ;;  %v4058_v38 = vmul.f32 %v8489_v54, %v15098_v63  ;;  %v6825_v5 = vmul.f32 %v12109_v31, %v4372_v22  ;;  %v4445_v47 = vmul.f32 %v15108_v46, %v4313_v15 }
 0x2c6   :  { %v7031_v34 = vadd.f32 %v12142_v16, %v6897_v36  ;;  %v4571_v37 = vadd.f32 %v12191_v9, %v12250_v33  ;;  %v6565_v19 = vadd.f32 %v6437_v53, %v6177_v6  ;;  %v12495_v51 = vadd.f32 %v12369_v30, %v3799_v25 }
 0x2c7   :  { %v4186_v56 = vadd.f32 %v4058_v38, %v3798_v24  ;;  %v4446_v18 = vmul.f32 %v15108_v46, %v4314_v52  ;;  %v12499_v41 = vadd.f32 %v4445_v47, %v12396_v55  ;;  %v4830_v36 = vmul.f32 %v15103_v44, %v3666_v17 }
 0x2c8   :  { %v7159_v4 = vmax.f32 %v7031_v34, 0.0  ;;  %v4831_v22 = vmul.f32 %v15103_v44, %v3667_v27  ;;  %v12506_v9 = vadd.f32 %v5664_v43, %v5404_v1  ;;  %v6953_v33 = vadd.f32 %v6825_v5, %v6565_v19  ;;  %v15247_v34 = vld [vmem:[#allocation50_spill] sm:$0xff]  ;;  %v12518_v1 = vld [vmem:[#allocation4 + $0x45f] sm:$0xff] }
 0x2c9   :  { %v12508_v53 = vadd.f32 %v4446_v18, %v4186_v56  ;;  %v5218_v30 = vmul.f32 %v8489_v54, %v15100_v49  ;;  %v4958_v24 = vadd.f32 %v4830_v36, %v12263_v8  ;;  %v5605_v6 = vmul.f32 %v15110_v3, %v4313_v15  ;;  %v12520_v5 = vld [vmem:[#allocation4 + $0x467] sm:$0xff]  ;;  %v4369_v36 = vld [vmem:[#allocation4 + $0x459] sm:$0xff] }
 0x2ca   :  { %v7415_v29 = vadd.f32 %v7287_v26, %v7159_v4  ;;  %v4959_v55 = vadd.f32 %v4831_v22, %v4571_v37  ;;  %v7087_v25 = vadd.f32 %v12142_v16, %v6953_v33  ;;  %v5606_v38 = vmul.f32 %v15110_v3, %v4314_v52  ;;  %v12535_v22 = vld [vmem:[#allocation4 + $0x461] sm:$0xff] }
 0x2cb   :  { %v5731_v47 = vadd.f32 %v15247_v34, %v12281_v10  ;;  %v5991_v43 = vmul.f32 %v15186_v48, %v3666_v17  ;;  %v5346_v8 = vadd.f32 %v5218_v30, %v4958_v24  ;;  %v12529_v19 = vadd.f32 %v5605_v6, %v12410_v42  ;;  %v8490_v30 = vld [vmem:[#allocation4 + $0x460] sm:$0xff] }
 0x2cc   :  { %7543 = vst [vmem:[%s14942_s6 + $0xf8] sm:$0xff] %v7415_v29  ;;  %v12526_v37 = vadd.f32 %v12376_v2, %v4959_v55  ;;  %v5992_v56 = vmul.f32 %v15186_v48, %v3667_v27  ;;  %v7215_v10 = vmax.f32 %v7087_v25, 0.0  ;;  %v6379_v18 = vmul.f32 %v8489_v54, %v15190_v12  ;;  %v7343_v2 = vld [vmem:[%s14942_s6 + $0x2b8] sm:$0xff] }
 0x2cd   :  { %v6119_v17 = vadd.f32 %v5991_v43, %v12333_v50  ;;  %v6766_v4 = vmul.f32 %v12109_v31, %v4313_v15  ;;  %v6767_v42 = vmul.f32 %v12109_v31, %v4314_v52  ;;  %v3854_v27 = vmul.f32 %v15102_v59, %v12518_v1 }
 0x2ce   :  { %v6120_v26 = vadd.f32 %v5992_v56, %v5731_v47  ;;  %v3855_v50 = vmul.f32 %v15102_v59, %v12520_v5  ;;  %v7471_v33 = vadd.f32 %v7343_v2, %v7215_v10  ;;  %v4114_v29 = vmul.f32 %v8490_v30, %v15098_v63  ;;  %v15248_v47 = vld [vmem:[#allocation32_spill] sm:$0xff] }
 0x2cf   :  { %v6507_v54 = vadd.f32 %v6379_v18, %v6119_v17  ;;  %v6894_v15 = vadd.f32 %v6766_v4, %v12413_v45  ;;  %v4501_v52 = vmul.f32 %v15108_v46, %v4369_v36  ;;  %v4502_v6 = vmul.f32 %v15108_v46, %v12535_v22  ;;  %v8208_v17 = vpop.f32.mrb[56].mxu0  ;;  %v8264_v18 = vpop.f32.mrb[64].mxu1 }
 0x2d0   :  { %v6508_v24 = vadd.f32 %v12379_v11, %v6120_v26  ;;  %v12549_v55 = vadd.f32 %v12382_v57, %v3855_v50  ;;  %7599 = vst [vmem:[%s14942_s6 + $0x2b8] sm:$0xff] %v7471_v33  ;;  %v4242_v34 = vadd.f32 %v4114_v29, %v3854_v27  ;;  %v4627_v43 = vadd.f32 %v15248_v47, %v12304_v0 }
 0x2d1   :  { %v6895_v25 = vadd.f32 %v6767_v42, %v6507_v54  ;;  %v7028_v45 = vadd.f32 %v12142_v16, %v6894_v15  ;;  %v12562_v57 = vadd.f32 %v4501_v52, %v12415_v32  ;;  %v4886_v56 = vmul.f32 %v15103_v44, %v12518_v1  ;;  %3551 = vst [vmem:[#allocation4 + $0x288] sm:$0xff] %v8208_v17  ;;  %v7284_v42 = vld [vmem:[%s14942_s6 + $0xe0] sm:$0xff]  ;;  %v3324_v54 = vpop.f32.mrb[65].mxu1 }
 0x2d2   :  { %v6896_v11 = vadd.f32 %v12459_v60, %v6508_v24  ;;  %v4887_v10 = vmul.f32 %v15103_v44, %v12520_v5  ;;  %v12569_v26 = vadd.f32 %v4502_v6, %v4242_v34  ;;  %v5274_v0 = vmul.f32 %v8490_v30, %v15100_v49  ;;  %3607 = vst [vmem:[#allocation4 + $0x528] sm:$0xff] %v8264_v18  ;;  %v3100_v60 = vpop.f32.mrb[57].mxu0  ;;  %v15249_v34 = vld [vmem:[#allocation22_spill] sm:$0xff] }
 0x2d3   :  { %v7029_v4 = vadd.f32 %v12142_v16, %v6895_v25  ;;  %v7156_v2 = vmax.f32 %v7028_v45, 0.0  ;;  %v5014_v27 = vadd.f32 %v4886_v56, %v12324_v61  ;;  %v5661_v33 = vmul.f32 %v15110_v3, %v4369_v36  ;;  %3549 = vst [vmem:[#allocation4 + $0x278] sm:$0xff] %v3100_v60  ;;  %3605 = vst [vmem:[#allocation4 + $0x518] sm:$0xff] %v3324_v54  ;;  %v7285_v25 = vld [vmem:[%s14942_s6 + $0xe8] sm:$0xff]  ;;  %v8209_v56 = vpop.f32.mrb[58].mxu0  ;;  %v8493_v54 = vld [vmem:[#allocation4 + $0x1e8] sm:$0xff] }
 0x2d4   :  { %v7030_v32 = vadd.f32 %v12142_v16, %v6896_v11  ;;  %v5015_v50 = vadd.f32 %v4887_v10, %v4627_v43  ;;  %v12578_v15 = vadd.f32 %v5606_v38, %v5346_v8  ;;  %v5662_v52 = vmul.f32 %v15110_v3, %v12535_v22  ;;  %v7286_v38 = vld [vmem:[%s14942_s6 + $0xf0] sm:$0xff]  ;;  %3552 = vst [vmem:[#allocation4 + $0x290] sm:$0xff] %v8209_v56 }
 0x2d5   :  { %v7157_v29 = vmax.f32 %v7029_v4, 0.0  ;;  %v7412_v24 = vadd.f32 %v7284_v42, %v7156_v2  ;;  %v5402_v45 = vadd.f32 %v5274_v0, %v5014_v27  ;;  %v5787_v47 = vadd.f32 %v15249_v34, %v12341_v62  ;;  %v3669_v4 = vld [vmem:[#allocation4 + $0x1e7] sm:$0xff]  ;;  %v8491_v2 = vld [vmem:[#allocation4 + $0x1f8] sm:$0xff]  ;;  %v8265_v34 = vpop.f32.mrb[66].mxu1 }
 0x2d6   :  { %v7158_v6 = vmax.f32 %v7030_v32, 0.0  ;;  %v12586_v61 = vadd.f32 %v12386_v21, %v5015_v50  ;;  %v12597_v43 = vadd.f32 %v5661_v33, %v12432_v13  ;;  %v6047_v11 = vmul.f32 %v15186_v48, %v12518_v1  ;;  %v3725_v33 = vld [vmem:[#allocation4 + $0x487] sm:$0xff]  ;;  %3608 = vst [vmem:[#allocation4 + $0x530] sm:$0xff] %v8265_v34 }
 0x2d7   :  { %v7413_v8 = vadd.f32 %v7285_v25, %v7157_v29  ;;  %7540 = vst [vmem:[%s14942_s6 + $0xe0] sm:$0xff] %v7412_v24  ;;  %v6048_v21 = vmul.f32 %v15186_v48, %v12520_v5  ;;  %v12603_v10 = vadd.f32 %v5662_v52, %v5402_v45  ;;  %v6435_v17 = vmul.f32 %v8490_v30, %v15190_v12  ;;  %v8495_v34 = vld [vmem:[#allocation4 + $0x200] sm:$0xff] }
 0x2d8   :  { %v7414_v62 = vadd.f32 %v7286_v38, %v7158_v6  ;;  %v6822_v18 = vmul.f32 %v12109_v31, %v4369_v36  ;;  %v6175_v13 = vadd.f32 %v6047_v11, %v12358_v40  ;;  %v6823_v5 = vmul.f32 %v12109_v31, %v12535_v22  ;;  %v8492_v40 = vld [vmem:[#allocation4 + $0x498] sm:$0xff] }
 0x2d9   :  { %7541 = vst [vmem:[%s14942_s6 + $0xe8] sm:$0xff] %v7413_v8  ;;  %v6176_v1 = vadd.f32 %v6048_v21, %v5787_v47  ;;  %v12614_v0 = vmul.f32 %v8491_v2, %v15098_v63  ;;  %v12621_v30 = vmul.f32 %v8491_v2, %v15100_v49  ;;  %v12624_v60 = vmul.f32 %v8491_v2, %v15190_v12 }
 0x2da   :  { %7542 = vst [vmem:[%s14942_s6 + $0xf0] sm:$0xff] %v7414_v62  ;;  %v6950_v36 = vadd.f32 %v6822_v18, %v12450_v20  ;;  %v12627_v32 = vmul.f32 %v8492_v40, %v15098_v63  ;;  %v6563_v22 = vadd.f32 %v6435_v17, %v6175_v13  ;;  %v12631_v27 = vmul.f32 %v8492_v40, %v15100_v49  ;;  %v8494_v17 = vld [vmem:[#allocation4 + $0x488] sm:$0xff] }
 0x2db   :  { %v6564_v42 = vadd.f32 %v12408_v14, %v6176_v1  ;;  %v3801_v50 = vmul.f32 %v15102_v59, %v3669_v4  ;;  %v4061_v29 = vmul.f32 %v8493_v54, %v15098_v63  ;;  %v4833_v24 = vmul.f32 %v15103_v44, %v3669_v4 }
 0x2dc   :  { %v7084_v20 = vadd.f32 %v12142_v16, %v6950_v36  ;;  %v5221_v52 = vmul.f32 %v8493_v54, %v15100_v49  ;;  %v6951_v6 = vadd.f32 %v6823_v5, %v6563_v22  ;;  %v5994_v14 = vmul.f32 %v15186_v48, %v3669_v4  ;;  %v3672_v4 = vld [vmem:[#allocation4 + $0x1ff] sm:$0xff] }
 0x2dd   :  { %v6952_v25 = vadd.f32 %v12483_v7, %v6564_v42  ;;  %v6382_v45 = vmul.f32 %v8493_v54, %v15190_v12  ;;  %v12641_v38 = vadd.f32 %v4061_v29, %v3801_v50  ;;  %v4961_v8 = vadd.f32 %v4833_v24, %v12499_v41  ;;  %v7340_v7 = vld [vmem:[%s14942_s6 + $0x2a0] sm:$0xff]  ;;  %v4319_v50 = vld [vmem:[#allocation4 + $0x1f9] sm:$0xff] }
 0x2de   :  { %v7212_v47 = vmax.f32 %v7084_v20, 0.0  ;;  %v3857_v11 = vmul.f32 %v15102_v59, %v3725_v33  ;;  %v7085_v21 = vadd.f32 %v12142_v16, %v6951_v6  ;;  %v6122_v62 = vadd.f32 %v5994_v14, %v12529_v19  ;;  %v3103_v19 = vpop.f32.mrb[59].mxu0  ;;  %v7341_v20 = vld [vmem:[%s14942_s6 + $0x2a8] sm:$0xff]  ;;  %v4320_v6 = vld [vmem:[#allocation4 + $0x201] sm:$0xff] }
 0x2df   :  { %v7086_v56 = vadd.f32 %v12142_v16, %v6952_v25  ;;  %v4117_v18 = vmul.f32 %v8494_v17, %v15098_v63  ;;  %v12653_v41 = vmul.f32 %v8492_v40, %v15190_v12  ;;  %v12655_v1 = vadd.f32 %v5221_v52, %v4961_v8  ;;  %v7342_v40 = vld [vmem:[%s14942_s6 + $0x2b0] sm:$0xff]  ;;  %3550 = vst [vmem:[#allocation4 + $0x280] sm:$0xff] %v3103_v19 }
 0x2e0   :  { %v7468_v13 = vadd.f32 %v7340_v7, %v7212_v47  ;;  %v4889_v5 = vmul.f32 %v15103_v44, %v3725_v33  ;;  %v7213_v2 = vmax.f32 %v7085_v21, 0.0  ;;  %v12658_v22 = vadd.f32 %v6382_v45, %v6122_v62  ;;  %v3728_v21 = vld [vmem:[#allocation4 + $0x49f] sm:$0xff] }
 0x2e1   :  { %v7214_v36 = vmax.f32 %v7086_v56, 0.0  ;;  %v12660_v42 = vadd.f32 %v4117_v18, %v3857_v11  ;;  %v5277_v29 = vmul.f32 %v8494_v17, %v15100_v49  ;;  %v6050_v24 = vmul.f32 %v15186_v48, %v3725_v33 }
 0x2e2   :  { %7596 = vst [vmem:[%s14942_s6 + $0x2a0] sm:$0xff] %v7468_v13  ;;  %v5017_v54 = vadd.f32 %v4889_v5, %v12562_v57  ;;  %v3804_v52 = vmul.f32 %v15102_v59, %v3672_v4  ;;  %v7469_v25 = vadd.f32 %v7341_v20, %v7213_v2  ;;  %v6438_v45 = vmul.f32 %v8494_v17, %v15190_v12  ;;  %v4375_v2 = vld [vmem:[#allocation4 + $0x499] sm:$0xff] }
 0x2e3   :  { %v7470_v14 = vadd.f32 %v7342_v40, %v7214_v36  ;;  %v4064_v47 = vmul.f32 %v8495_v34, %v15098_v63  ;;  %v6178_v11 = vadd.f32 %v6050_v24, %v12597_v43  ;;  %v12681_v57 = vmul.f32 %v15108_v46, %v4319_v50  ;;  %v4376_v36 = vld [vmem:[#allocation4 + $0x4a1] sm:$0xff] }
 0x2e4   :  { %v12677_v8 = vadd.f32 %v5277_v29, %v5017_v54  ;;  %v4836_v33 = vmul.f32 %v15103_v44, %v3672_v4  ;;  %7597 = vst [vmem:[%s14942_s6 + $0x2a8] sm:$0xff] %v7469_v25  ;;  %v4452_v7 = vmul.f32 %v15108_v46, %v4320_v6  ;;  %v5224_v62 = vmul.f32 %v8495_v34, %v15100_v49 }
 0x2e5   :  { %7598 = vst [vmem:[%s14942_s6 + $0x2b0] sm:$0xff] %v7470_v14  ;;  %v4192_v56 = vadd.f32 %v4064_v47, %v3804_v52  ;;  %v12693_v43 = vmul.f32 %v15110_v3, %v4319_v50  ;;  %v12695_v17 = vadd.f32 %v6438_v45, %v6178_v11  ;;  %v5612_v13 = vmul.f32 %v15110_v3, %v4320_v6  ;;  %v8496_v52 = vld [vmem:[#allocation4 + $0x4a0] sm:$0xff] }
 0x2e6   :  { %v4964_v18 = vadd.f32 %v4836_v33, %v12455_v35  ;;  %v5997_v5 = vmul.f32 %v15186_v48, %v3672_v4  ;;  %v6385_v20 = vmul.f32 %v8495_v34, %v15190_v12  ;;  %v12704_v40 = vmul.f32 %v12109_v31, %v4319_v50  ;;  %v3670_v34 = vld [vmem:[#allocation4 + $0x1ef] sm:$0xff] }
 0x2e7   :  { %15250 = vst [vmem:[#allocation21_spill] sm:$0xff] %v12693_v43  ;;  %v12700_v19 = vadd.f32 %v4452_v7, %v4192_v56  ;;  %v3860_v54 = vmul.f32 %v15102_v59, %v3728_v21  ;;  %v6773_v35 = vmul.f32 %v12109_v31, %v4320_v6  ;;  %v4120_v25 = vmul.f32 %v8496_v52, %v15098_v63  ;;  %v3671_v31 = vld [vmem:[#allocation4 + $0x1f7] sm:$0xff] }
 0x2e8   :  { %v5352_v29 = vadd.f32 %v5224_v62, %v4964_v18  ;;  %v6125_v24 = vadd.f32 %v5997_v5, %v12471_v58  ;;  %v12711_v4 = vmul.f32 %v15108_v46, %v4375_v2  ;;  %v4508_v14 = vmul.f32 %v15108_v46, %v4376_v36  ;;  %v4317_v18 = vld [vmem:[#allocation4 + $0x1e9] sm:$0xff]  ;;  %v3327_v5 = vpop.f32.mrb[67].mxu1 }
 0x2e9   :  { %v4892_v45 = vmul.f32 %v15103_v44, %v3728_v21  ;;  %v5280_v50 = vmul.f32 %v8496_v52, %v15100_v49  ;;  %v4248_v33 = vadd.f32 %v4120_v25, %v3860_v54  ;;  %v12719_v58 = vmul.f32 %v15110_v3, %v4375_v2  ;;  %v4318_v54 = vld [vmem:[#allocation4 + $0x1f1] sm:$0xff]  ;;  %3606 = vst [vmem:[#allocation4 + $0x520] sm:$0xff] %v3327_v5 }
 0x2ea   :  { %15251 = vst [vmem:[#allocation10_spill] sm:$0xff] %v12711_v4  ;;  %v12716_v47 = vadd.f32 %v5612_v13, %v5352_v29  ;;  %v6513_v11 = vadd.f32 %v6385_v20, %v6125_v24  ;;  %v5668_v56 = vmul.f32 %v15110_v3, %v4376_v36  ;;  %v6053_v7 = vmul.f32 %v15186_v48, %v3728_v21  ;;  %v12730_v13 = vld [vmem:[%s14938_s4 + $0x28] ss:$0 sm:$0xff] }
 0x2eb   :  { %v5020_v6 = vadd.f32 %v4892_v45, %v12480_v39  ;;  %v6441_v62 = vmul.f32 %v8496_v52, %v15190_v12  ;;  %v12725_v43 = vadd.f32 %v4508_v14, %v4248_v33  ;;  %v12733_v20 = vmul.f32 %v12730_v13, %v4375_v2 }
 0x2ec   :  { %v6901_v4 = vadd.f32 %v6773_v35, %v6513_v11  ;;  %v3802_v39 = vmul.f32 %v15102_v59, %v3670_v34  ;;  %v6181_v29 = vadd.f32 %v6053_v7, %v12506_v9  ;;  %v3803_v24 = vmul.f32 %v15102_v59, %v3671_v31  ;;  %v8498_v35 = vld [vmem:[#allocation4 + $0x1f0] sm:$0xff] }
 0x2ed   :  { %v5408_v21 = vadd.f32 %v5280_v50, %v5020_v6  ;;  %v4062_v52 = vmul.f32 %v8498_v35, %v15098_v63  ;;  %v6829_v14 = vmul.f32 %v12730_v13, %v4376_v36  ;;  %v4449_v45 = vmul.f32 %v15108_v46, %v4317_v18 }
 0x2ee   :  { %v7035_v25 = vadd.f32 %v12142_v16, %v6901_v4  ;;  %v4575_v2 = vadd.f32 %v12436_v23, %v12495_v51  ;;  %v6569_v11 = vadd.f32 %v6441_v62, %v6181_v29  ;;  %v12745_v50 = vadd.f32 %v12614_v0, %v3803_v24  ;;  %v7291_v4 = vld [vmem:[%s14942_s6 + $0x118] sm:$0xff]  ;;  %v12766_v24 = vld [vmem:[%s14939_s5 + $0x2] ss:$0 sm:$0xff] }
 0x2ef   :  { %v4190_v33 = vadd.f32 %v4062_v52, %v3802_v39  ;;  %v4450_v9 = vmul.f32 %v15108_v46, %v4318_v54  ;;  %v12749_v7 = vadd.f32 %v4449_v45, %v12641_v38  ;;  %v4834_v16 = vmul.f32 %v15103_v44, %v3670_v34  ;;  %v12773_v45 = vld [vmem:[#allocation4 + $0x48f] sm:$0xff] }
 0x2f0   :  { %v7163_v6 = vmax.f32 %v7035_v25, 0.0  ;;  %v4835_v36 = vmul.f32 %v15103_v44, %v3671_v31  ;;  %v12756_v23 = vadd.f32 %v5668_v56, %v5408_v21  ;;  %v6957_v51 = vadd.f32 %v6829_v14, %v6569_v11  ;;  %v15252_v21 = vld [vmem:[#allocation52_spill] sm:$0xff] }
 0x2f1   :  { %v12758_v62 = vadd.f32 %v4450_v9, %v4190_v33  ;;  %v5222_v0 = vmul.f32 %v8498_v35, %v15100_v49  ;;  %v4962_v39 = vadd.f32 %v4834_v16, %v12508_v53  ;;  %v5609_v29 = vmul.f32 %v15110_v3, %v4317_v18  ;;  %v12775_v53 = vld [vmem:[#allocation4 + $0x497] sm:$0xff] }
 0x2f2   :  { %v7419_v5 = vadd.f32 %v7291_v4, %v7163_v6  ;;  %v4963_v38 = vadd.f32 %v4835_v36, %v4575_v2  ;;  %v7091_v52 = vadd.f32 %v12766_v24, %v6957_v51  ;;  %v5610_v56 = vmul.f32 %v15110_v3, %v4318_v54  ;;  %v4373_v36 = vld [vmem:[#allocation4 + $0x489] sm:$0xff]  ;;  %v12790_v4 = vld [vmem:[#allocation4 + $0x491] sm:$0xff] }
 0x2f3   :  { %v5735_v25 = vadd.f32 %v15252_v21, %v12526_v37  ;;  %v5995_v14 = vmul.f32 %v15186_v48, %v3670_v34  ;;  %v5350_v2 = vadd.f32 %v5222_v0, %v4962_v39  ;;  %v12784_v33 = vadd.f32 %v5609_v29, %v12655_v1 }
 0x2f4   :  { %7547 = vst [vmem:[%s14942_s6 + $0x118] sm:$0xff] %v7419_v5  ;;  %v12781_v11 = vadd.f32 %v12621_v30, %v4963_v38  ;;  %v5996_v9 = vmul.f32 %v15186_v48, %v3671_v31  ;;  %v7219_v37 = vmax.f32 %v7091_v52, 0.0  ;;  %v6383_v6 = vmul.f32 %v8498_v35, %v15190_v12  ;;  %v7347_v30 = vld [vmem:[%s14942_s6 + $0x2d8] sm:$0xff]  ;;  %v8500_v5 = vld [vmem:[#allocation4 + $0x490] sm:$0xff] }
 0x2f5   :  { %v6123_v34 = vadd.f32 %v5995_v14, %v12578_v15  ;;  %v6770_v16 = vmul.f32 %v12730_v13, %v4317_v18  ;;  %v6771_v1 = vmul.f32 %v12730_v13, %v4318_v54  ;;  %v3858_v31 = vmul.f32 %v15102_v59, %v12773_v45  ;;  %v15253_v14 = vld [vmem:[#allocation15_spill] sm:$0xff] }
 0x2f6   :  { %v6124_v51 = vadd.f32 %v5996_v9, %v5735_v25  ;;  %v3859_v15 = vmul.f32 %v15102_v59, %v12775_v53  ;;  %v7475_v0 = vadd.f32 %v7347_v30, %v7219_v37  ;;  %v4118_v39 = vmul.f32 %v8500_v5, %v15098_v63 }
 0x2f7   :  { %v6511_v35 = vadd.f32 %v6383_v6, %v6123_v34  ;;  %v6898_v18 = vadd.f32 %v6770_v16, %v12658_v22  ;;  %v4505_v54 = vmul.f32 %v15108_v46, %v4373_v36  ;;  %v4506_v52 = vmul.f32 %v15108_v46, %v12790_v4  ;;  %v8212_v6 = vpop.f32.mrb[60].mxu0  ;;  %v8268_v16 = vpop.f32.mrb[68].mxu1 }
 0x2f8   :  { %v6512_v38 = vadd.f32 %v12624_v60, %v6124_v51  ;;  %v12804_v29 = vadd.f32 %v12627_v32, %v3859_v15  ;;  %7603 = vst [vmem:[%s14942_s6 + $0x2d8] sm:$0xff] %v7475_v0  ;;  %v4246_v25 = vadd.f32 %v4118_v39, %v3858_v31  ;;  %v4631_v9 = vadd.f32 %v15253_v14, %v12549_v55  ;;  %v7288_v31 = vld [vmem:[%s14942_s6 + $0x100] sm:$0xff] }
 0x2f9   :  { %v6899_v21 = vadd.f32 %v6771_v1, %v6511_v35  ;;  %v7032_v22 = vadd.f32 %v12766_v24, %v6898_v18  ;;  %v12817_v32 = vadd.f32 %v4505_v54, %v12660_v42  ;;  %v4890_v37 = vmul.f32 %v15103_v44, %v12773_v45  ;;  %3555 = vst [vmem:[#allocation4 + $0x2b8] sm:$0xff] %v8212_v6  ;;  %v3340_v18 = vpop.f32.mrb[69].mxu1 }
 0x2fa   :  { %v6900_v60 = vadd.f32 %v12704_v40, %v6512_v38  ;;  %v4891_v34 = vmul.f32 %v15103_v44, %v12775_v53  ;;  %v12824_v1 = vadd.f32 %v4506_v52, %v4246_v25  ;;  %v5278_v55 = vmul.f32 %v8500_v5, %v15100_v49  ;;  %3611 = vst [vmem:[#allocation4 + $0x558] sm:$0xff] %v8268_v16  ;;  %v3116_v40 = vpop.f32.mrb[61].mxu0  ;;  %v3673_v16 = vld [vmem:[#allocation4 + $0x217] sm:$0xff] }
 0x2fb   :  { %v7033_v30 = vadd.f32 %v12766_v24, %v6899_v21  ;;  %v7160_v51 = vmax.f32 %v7032_v22, 0.0  ;;  %v5018_v15 = vadd.f32 %v4890_v37, %v12569_v26  ;;  %v5665_v35 = vmul.f32 %v15110_v3, %v4373_v36  ;;  %3553 = vst [vmem:[#allocation4 + $0x2a8] sm:$0xff] %v3116_v40  ;;  %3609 = vst [vmem:[#allocation4 + $0x548] sm:$0xff] %v3340_v18  ;;  %v7289_v22 = vld [vmem:[%s14942_s6 + $0x108] sm:$0xff]  ;;  %v8213_v37 = vpop.f32.mrb[62].mxu0 }
 0x2fc   :  { %v7034_v42 = vadd.f32 %v12766_v24, %v6900_v60  ;;  %v5019_v0 = vadd.f32 %v4891_v34, %v4631_v9  ;;  %v12833_v39 = vadd.f32 %v5610_v56, %v5350_v2  ;;  %v5666_v52 = vmul.f32 %v15110_v3, %v12790_v4  ;;  %v7290_v56 = vld [vmem:[%s14942_s6 + $0x110] sm:$0xff]  ;;  %3556 = vst [vmem:[#allocation4 + $0x2c0] sm:$0xff] %v8213_v37 }
 0x2fd   :  { %v7161_v38 = vmax.f32 %v7033_v30, 0.0  ;;  %v7416_v54 = vadd.f32 %v7288_v31, %v7160_v51  ;;  %v5406_v25 = vadd.f32 %v5278_v55, %v5018_v15  ;;  %v5791_v14 = vadd.f32 %v12474_v28, %v12586_v61  ;;  %v8501_v30 = vld [vmem:[#allocation4 + $0x228] sm:$0xff] }
 0x2fe   :  { %v7162_v21 = vmax.f32 %v7034_v42, 0.0  ;;  %v12841_v26 = vadd.f32 %v12631_v27, %v5019_v0  ;;  %v12852_v9 = vadd.f32 %v5665_v35, %v12677_v8  ;;  %v6051_v60 = vmul.f32 %v15186_v48, %v12773_v45  ;;  %v3729_v0 = vld [vmem:[#allocation4 + $0x4b7] sm:$0xff] }
 0x2ff   :  { %v7417_v2 = vadd.f32 %v7289_v22, %v7161_v38  ;;  %7544 = vst [vmem:[%s14942_s6 + $0x100] sm:$0xff] %v7416_v54  ;;  %v6052_v27 = vmul.f32 %v15186_v48, %v12775_v53  ;;  %v12858_v61 = vadd.f32 %v5666_v52, %v5406_v25  ;;  %v6439_v34 = vmul.f32 %v8500_v5, %v15190_v12  ;;  %v8503_v35 = vld [vmem:[#allocation4 + $0x218] sm:$0xff]  ;;  %v8269_v25 = vpop.f32.mrb[70].mxu1 }
 0x300   :  { %v7418_v28 = vadd.f32 %v7290_v56, %v7162_v21  ;;  %v6826_v6 = vmul.f32 %v12730_v13, %v4373_v36  ;;  %v6179_v8 = vadd.f32 %v6051_v60, %v12603_v10  ;;  %v6827_v53 = vmul.f32 %v12730_v13, %v12790_v4  ;;  %v8502_v10 = vld [vmem:[#allocation4 + $0x4c8] sm:$0xff]  ;;  %3612 = vst [vmem:[#allocation4 + $0x560] sm:$0xff] %v8269_v25  ;;  %v8505_v25 = vld [vmem:[#allocation4 + $0x230] sm:$0xff] }
 0x301   :  { %7545 = vst [vmem:[%s14942_s6 + $0x108] sm:$0xff] %v7417_v2  ;;  %v6180_v45 = vadd.f32 %v6052_v27, %v5791_v14  ;;  %v12869_v51 = vmul.f32 %v8501_v30, %v15098_v63  ;;  %v12876_v5 = vmul.f32 %v8501_v30, %v15100_v49  ;;  %v12879_v55 = vmul.f32 %v8501_v30, %v15190_v12 }
 0x302   :  { %7546 = vst [vmem:[%s14942_s6 + $0x110] sm:$0xff] %v7418_v28  ;;  %v6954_v36 = vadd.f32 %v6826_v6, %v12695_v17  ;;  %v12882_v40 = vmul.f32 %v8502_v10, %v15098_v63  ;;  %v6567_v4 = vadd.f32 %v6439_v34, %v6179_v8  ;;  %v12886_v31 = vmul.f32 %v8502_v10, %v15100_v49  ;;  %v8504_v34 = vld [vmem:[#allocation4 + $0x4b8] sm:$0xff] }
 0x303   :  { %v6568_v42 = vadd.f32 %v12653_v41, %v6180_v45  ;;  %v3805_v15 = vmul.f32 %v15102_v59, %v3673_v16  ;;  %v4065_v18 = vmul.f32 %v8503_v35, %v15098_v63  ;;  %v4837_v38 = vmul.f32 %v15103_v44, %v3673_v16 }
 0x304   :  { %v7088_v17 = vadd.f32 %v12766_v24, %v6954_v36  ;;  %v5225_v54 = vmul.f32 %v8503_v35, %v15100_v49  ;;  %v6955_v52 = vadd.f32 %v6827_v53, %v6567_v4  ;;  %v5998_v41 = vmul.f32 %v15186_v48, %v3673_v16  ;;  %v3676_v16 = vld [vmem:[#allocation4 + $0x22f] sm:$0xff] }
 0x305   :  { %v6956_v21 = vadd.f32 %v12733_v20, %v6568_v42  ;;  %v6386_v22 = vmul.f32 %v8503_v35, %v15190_v12  ;;  %v12896_v56 = vadd.f32 %v4065_v18, %v3805_v15  ;;  %v4965_v2 = vadd.f32 %v4837_v38, %v12749_v7  ;;  %v7344_v20 = vld [vmem:[%s14942_s6 + $0x2c0] sm:$0xff] }
 0x306   :  { %v7216_v14 = vmax.f32 %v7088_v17, 0.0  ;;  %v3861_v60 = vmul.f32 %v15102_v59, %v3729_v0  ;;  %v7089_v27 = vadd.f32 %v12766_v24, %v6955_v52  ;;  %v6126_v28 = vadd.f32 %v5998_v41, %v12784_v33  ;;  %v4323_v15 = vld [vmem:[#allocation4 + $0x229] sm:$0xff]  ;;  %v3119_v33 = vpop.f32.mrb[63].mxu0  ;;  %v7345_v17 = vld [vmem:[%s14942_s6 + $0x2c8] sm:$0xff] }
 0x307   :  { %v7090_v37 = vadd.f32 %v12766_v24, %v6956_v21  ;;  %v4121_v6 = vmul.f32 %v8504_v34, %v15098_v63  ;;  %v12908_v7 = vmul.f32 %v8502_v10, %v15190_v12  ;;  %v12910_v45 = vadd.f32 %v5225_v54, %v4965_v2  ;;  %v7346_v10 = vld [vmem:[%s14942_s6 + $0x2d0] sm:$0xff]  ;;  %v4324_v52 = vld [vmem:[#allocation4 + $0x231] sm:$0xff]  ;;  %3554 = vst [vmem:[#allocation4 + $0x2b0] sm:$0xff] %v3119_v33 }
 0x308   :  { %v7472_v8 = vadd.f32 %v7344_v20, %v7216_v14  ;;  %v4893_v53 = vmul.f32 %v15103_v44, %v3729_v0  ;;  %v7217_v30 = vmax.f32 %v7089_v27, 0.0  ;;  %v12913_v4 = vadd.f32 %v6386_v22, %v6126_v28  ;;  %v3732_v27 = vld [vmem:[#allocation4 + $0x4cf] sm:$0xff] }
 0x309   :  { %v7218_v36 = vmax.f32 %v7090_v37, 0.0  ;;  %v12915_v42 = vadd.f32 %v4121_v6, %v3861_v60  ;;  %v5281_v18 = vmul.f32 %v8504_v34, %v15100_v49  ;;  %v6054_v38 = vmul.f32 %v15186_v48, %v3729_v0 }
 0x30a   :  { %7600 = vst [vmem:[%s14942_s6 + $0x2c0] sm:$0xff] %v7472_v8  ;;  %v5021_v35 = vadd.f32 %v4893_v53, %v12817_v32  ;;  %v3808_v54 = vmul.f32 %v15102_v59, %v3676_v16  ;;  %v7473_v21 = vadd.f32 %v7345_v17, %v7217_v30  ;;  %v6442_v22 = vmul.f32 %v8504_v34, %v15190_v12  ;;  %v4379_v30 = vld [vmem:[#allocation4 + $0x4c9] sm:$0xff] }
 0x30b   :  { %v7474_v41 = vadd.f32 %v7346_v10, %v7218_v36  ;;  %v4068_v14 = vmul.f32 %v8505_v25, %v15098_v63  ;;  %v6182_v60 = vadd.f32 %v6054_v38, %v12852_v9  ;;  %v12936_v32 = vmul.f32 %v15108_v46, %v4323_v15  ;;  %v4380_v36 = vld [vmem:[#allocation4 + $0x4d1] sm:$0xff] }
 0x30c   :  { %v12932_v2 = vadd.f32 %v5281_v18, %v5021_v35  ;;  %v4840_v0 = vmul.f32 %v15103_v44, %v3676_v16  ;;  %7601 = vst [vmem:[%s14942_s6 + $0x2c8] sm:$0xff] %v7473_v21  ;;  %v4456_v20 = vmul.f32 %v15108_v46, %v4324_v52  ;;  %v5228_v28 = vmul.f32 %v8505_v25, %v15100_v49 }
 0x30d   :  { %15254 = vst [vmem:[#allocation9_spill] sm:$0xff] %v12936_v32  ;;  %7602 = vst [vmem:[%s14942_s6 + $0x2d0] sm:$0xff] %v7474_v41  ;;  %v4196_v37 = vadd.f32 %v4068_v14, %v3808_v54  ;;  %v12948_v9 = vmul.f32 %v15110_v3, %v4323_v15  ;;  %v12950_v34 = vadd.f32 %v6442_v22, %v6182_v60  ;;  %v8506_v54 = vld [vmem:[#allocation4 + $0x4d0] sm:$0xff] }
 0x30e   :  { %v4968_v6 = vadd.f32 %v4840_v0, %v12700_v19  ;;  %v5616_v8 = vmul.f32 %v15110_v3, %v4324_v52  ;;  %v6001_v53 = vmul.f32 %v15186_v48, %v3676_v16  ;;  %v6389_v17 = vmul.f32 %v8505_v25, %v15190_v12  ;;  %v3674_v25 = vld [vmem:[#allocation4 + $0x21f] sm:$0xff] }
 0x30f   :  { %15255 = vst [vmem:[#allocation20_spill] sm:$0xff] %v12948_v9  ;;  %v12955_v33 = vadd.f32 %v4456_v20, %v4196_v37  ;;  %v12959_v10 = vmul.f32 %v12730_v13, %v4323_v15  ;;  %v3864_v35 = vmul.f32 %v15102_v59, %v3732_v27  ;;  %v6777_v19 = vmul.f32 %v12730_v13, %v4324_v52  ;;  %v3675_v52 = vld [vmem:[#allocation4 + $0x227] sm:$0xff] }
 0x310   :  { %v5356_v18 = vadd.f32 %v5228_v28, %v4968_v6  ;;  %v6129_v38 = vadd.f32 %v6001_v53, %v12716_v47  ;;  %v4124_v21 = vmul.f32 %v8506_v54, %v15098_v63  ;;  %v12966_v16 = vmul.f32 %v15108_v46, %v4379_v30  ;;  %v4321_v53 = vld [vmem:[#allocation4 + $0x219] sm:$0xff] }
 0x311   :  { %v4512_v41 = vmul.f32 %v15108_v46, %v4380_v36  ;;  %v4896_v22 = vmul.f32 %v15103_v44, %v3732_v27  ;;  %v5284_v15 = vmul.f32 %v8506_v54, %v15100_v49  ;;  %v12974_v47 = vmul.f32 %v15110_v3, %v4379_v30 }
 0x312   :  { %15256 = vst [vmem:[#allocation48_spill] sm:$0xff] %v12966_v16  ;;  %v12971_v14 = vadd.f32 %v5616_v8, %v5356_v18  ;;  %v6517_v60 = vadd.f32 %v6389_v17, %v6129_v38  ;;  %v4252_v0 = vadd.f32 %v4124_v21, %v3864_v35  ;;  %v5672_v20 = vmul.f32 %v15110_v3, %v4380_v36  ;;  %v3343_v16 = vpop.f32.mrb[71].mxu1  ;;  %v4322_v35 = vld [vmem:[#allocation4 + $0x221] sm:$0xff] }
 0x313   :  { %v5024_v37 = vadd.f32 %v4896_v22, %v12725_v43  ;;  %v6057_v28 = vmul.f32 %v15186_v48, %v3732_v27  ;;  %v6445_v6 = vmul.f32 %v8506_v54, %v15190_v12  ;;  %v12983_v8 = vmul.f32 %v12730_v13, %v4379_v30  ;;  %3610 = vst [vmem:[#allocation4 + $0x550] sm:$0xff] %v3343_v16  ;;  %v8507_v27 = vld [vmem:[#allocation4 + $0x220] sm:$0xff] }
 0x314   :  { %v6905_v9 = vadd.f32 %v6777_v19, %v6517_v60  ;;  %v12980_v32 = vadd.f32 %v4512_v41, %v4252_v0  ;;  %v3806_v17 = vmul.f32 %v15102_v59, %v3674_v25  ;;  %v3807_v38 = vmul.f32 %v15102_v59, %v3675_v52 }
 0x315   :  { %v5412_v18 = vadd.f32 %v5284_v15, %v5024_v37  ;;  %v6185_v43 = vadd.f32 %v6057_v28, %v12756_v23  ;;  %v4066_v54 = vmul.f32 %v8507_v27, %v15098_v63  ;;  %v6833_v19 = vmul.f32 %v12730_v13, %v4380_v36  ;;  %v7295_v37 = vld [vmem:[%s14942_s6 + $0x138] sm:$0xff] }
 0x316   :  { %v7039_v21 = vadd.f32 %v12766_v24, %v6905_v9  ;;  %v4453_v41 = vmul.f32 %v15108_v46, %v4321_v53  ;;  %v4579_v30 = vadd.f32 %v12681_v57, %v12745_v50  ;;  %v12995_v16 = vadd.f32 %v12869_v51, %v3807_v38 }
 0x317   :  { %v6573_v22 = vadd.f32 %v6445_v6, %v6185_v43  ;;  %v4194_v60 = vadd.f32 %v4066_v54, %v3806_v17  ;;  %v4454_v23 = vmul.f32 %v15108_v46, %v4322_v35  ;;  %v4838_v9 = vmul.f32 %v15103_v44, %v3674_v25 }
 0x318   :  { %v7167_v15 = vmax.f32 %v7039_v21, 0.0  ;;  %v12999_v0 = vadd.f32 %v4453_v41, %v12896_v56  ;;  %v4839_v36 = vmul.f32 %v15103_v44, %v3675_v52  ;;  %v13006_v57 = vadd.f32 %v5672_v20, %v5412_v18  ;;  %v15257_v21 = vld [vmem:[#allocation21_spill] sm:$0xff] }
 0x319   :  { %v6961_v50 = vadd.f32 %v6833_v19, %v6573_v22  ;;  %v13008_v28 = vadd.f32 %v4454_v23, %v4194_v60  ;;  %v5226_v51 = vmul.f32 %v8507_v27, %v15100_v49  ;;  %v4966_v17 = vadd.f32 %v4838_v9, %v12758_v62  ;;  %v13018_v18 = vld [vmem:[#allocation4 + $0x4bf] sm:$0xff]  ;;  %v13020_v19 = vld [vmem:[#allocation4 + $0x4c7] sm:$0xff] }
 0x31a   :  { %v7423_v6 = vadd.f32 %v7295_v37, %v7167_v15  ;;  %v4967_v56 = vadd.f32 %v4839_v36, %v4579_v30  ;;  %v5613_v43 = vmul.f32 %v15110_v3, %v4321_v53  ;;  %v5614_v54 = vmul.f32 %v15110_v3, %v4322_v35  ;;  %v4377_v9 = vld [vmem:[#allocation4 + $0x4b9] sm:$0xff]  ;;  %v13035_v36 = vld [vmem:[#allocation4 + $0x4c1] sm:$0xff] }
 0x31b   :  { %v7095_v38 = vadd.f32 %v12766_v24, %v6961_v50  ;;  %v5739_v41 = vadd.f32 %v15257_v21, %v12781_v11  ;;  %v5999_v20 = vmul.f32 %v15186_v48, %v3674_v25  ;;  %v5354_v62 = vadd.f32 %v5226_v51, %v4966_v17  ;;  %v8508_v51 = vld [vmem:[#allocation4 + $0x4c0] sm:$0xff] }
 0x31c   :  { %7551 = vst [vmem:[%s14942_s6 + $0x138] sm:$0xff] %v7423_v6  ;;  %v13026_v30 = vadd.f32 %v12876_v5, %v4967_v56  ;;  %v13029_v22 = vadd.f32 %v5613_v43, %v12910_v45  ;;  %v6000_v60 = vmul.f32 %v15186_v48, %v3675_v52  ;;  %v6387_v23 = vmul.f32 %v8507_v27, %v15190_v12  ;;  %v7351_v5 = vld [vmem:[%s14942_s6 + $0x2f8] sm:$0xff] }
 0x31d   :  { %v7223_v11 = vmax.f32 %v7095_v38, 0.0  ;;  %v6127_v25 = vadd.f32 %v5999_v20, %v12833_v39  ;;  %v6774_v15 = vmul.f32 %v12730_v13, %v4321_v53  ;;  %v6775_v45 = vmul.f32 %v12730_v13, %v4322_v35 }
 0x31e   :  { %v6128_v37 = vadd.f32 %v6000_v60, %v5739_v41  ;;  %v3862_v52 = vmul.f32 %v15102_v59, %v13018_v18  ;;  %v3863_v39 = vmul.f32 %v15102_v59, %v13020_v19  ;;  %v4122_v6 = vmul.f32 %v8508_v51, %v15098_v63  ;;  %v15258_v41 = vld [vmem:[#allocation10_spill] sm:$0xff] }
 0x31f   :  { %v7479_v50 = vadd.f32 %v7351_v5, %v7223_v11  ;;  %v6515_v27 = vadd.f32 %v6387_v23, %v6127_v25  ;;  %v6902_v53 = vadd.f32 %v6774_v15, %v12913_v4  ;;  %v4509_v35 = vmul.f32 %v15108_v46, %v4377_v9  ;;  %v8216_v25 = vpop.f32.mrb[64].mxu0  ;;  %v8272_v23 = vpop.f32.mrb[72].mxu1 }
 0x320   :  { %v6516_v17 = vadd.f32 %v12879_v55, %v6128_v37  ;;  %v13049_v56 = vadd.f32 %v12882_v40, %v3863_v39  ;;  %v4510_v43 = vmul.f32 %v15108_v46, %v13035_v36  ;;  %v4250_v21 = vadd.f32 %v4122_v6, %v3862_v52  ;;  %3559 = vst [vmem:[#allocation4 + $0x2e8] sm:$0xff] %v8216_v25  ;;  %v3677_v25 = vld [vmem:[#allocation4 + $0x247] sm:$0xff] }
 0x321   :  { %7607 = vst [vmem:[%s14942_s6 + $0x2f8] sm:$0xff] %v7479_v50  ;;  %v6903_v38 = vadd.f32 %v6775_v45, %v6515_v27  ;;  %v7036_v4 = vadd.f32 %v12766_v24, %v6902_v53  ;;  %v4635_v20 = vadd.f32 %v15258_v41, %v12804_v29  ;;  %v13062_v40 = vadd.f32 %v4509_v35, %v12915_v42  ;;  %v7292_v45 = vld [vmem:[%s14942_s6 + $0x120] sm:$0xff]  ;;  %v3356_v27 = vpop.f32.mrb[73].mxu1 }
 0x322   :  { %v6904_v55 = vadd.f32 %v12959_v10, %v6516_v17  ;;  %v4894_v60 = vmul.f32 %v15103_v44, %v13018_v18  ;;  %v4895_v11 = vmul.f32 %v15103_v44, %v13020_v19  ;;  %v13069_v37 = vadd.f32 %v4510_v43, %v4250_v21  ;;  %3615 = vst [vmem:[#allocation4 + $0x588] sm:$0xff] %v8272_v23  ;;  %v3132_v10 = vpop.f32.mrb[65].mxu0  ;;  %v8509_v23 = vld [vmem:[#allocation4 + $0x258] sm:$0xff] }
 0x323   :  { %v7037_v15 = vadd.f32 %v12766_v24, %v6903_v38  ;;  %v7164_v5 = vmax.f32 %v7036_v4, 0.0  ;;  %v5282_v29 = vmul.f32 %v8508_v51, %v15100_v49  ;;  %v5669_v50 = vmul.f32 %v15110_v3, %v4377_v9  ;;  %3557 = vst [vmem:[#allocation4 + $0x2d8] sm:$0xff] %v3132_v10  ;;  %3613 = vst [vmem:[#allocation4 + $0x578] sm:$0xff] %v3356_v27  ;;  %v7293_v38 = vld [vmem:[%s14942_s6 + $0x128] sm:$0xff] }
 0x324   :  { %v7038_v42 = vadd.f32 %v12766_v24, %v6904_v55  ;;  %v5022_v52 = vadd.f32 %v4894_v60, %v12824_v1  ;;  %v5023_v39 = vadd.f32 %v4895_v11, %v4635_v20  ;;  %v13078_v53 = vadd.f32 %v5614_v54, %v5354_v62  ;;  %v7294_v54 = vld [vmem:[%s14942_s6 + $0x130] sm:$0xff]  ;;  %v8217_v55 = vpop.f32.mrb[66].mxu0 }
 0x325   :  { %v7165_v6 = vmax.f32 %v7037_v15, 0.0  ;;  %v7420_v17 = vadd.f32 %v7292_v45, %v7164_v5  ;;  %v5670_v35 = vmul.f32 %v15110_v3, %v13035_v36  ;;  %v5795_v21 = vadd.f32 %v12719_v58, %v12841_v26  ;;  %3560 = vst [vmem:[#allocation4 + $0x2f0] sm:$0xff] %v8217_v55 }
 0x326   :  { %v7166_v43 = vmax.f32 %v7038_v42, 0.0  ;;  %v5410_v4 = vadd.f32 %v5282_v29, %v5022_v52  ;;  %v13086_v1 = vadd.f32 %v12886_v31, %v5023_v39  ;;  %v13097_v41 = vadd.f32 %v5669_v50, %v12932_v2  ;;  %v3733_v52 = vld [vmem:[#allocation4 + $0x4e7] sm:$0xff] }
 0x327   :  { %v7421_v62 = vadd.f32 %v7293_v38, %v7165_v6  ;;  %7548 = vst [vmem:[%s14942_s6 + $0x120] sm:$0xff] %v7420_v17  ;;  %v6055_v20 = vmul.f32 %v15186_v48, %v13018_v18  ;;  %v6056_v31 = vmul.f32 %v15186_v48, %v13020_v19  ;;  %v6443_v60 = vmul.f32 %v8508_v51, %v15190_v12  ;;  %v8511_v39 = vld [vmem:[#allocation4 + $0x248] sm:$0xff]  ;;  %v8273_v38 = vpop.f32.mrb[74].mxu1 }
 0x328   :  { %v7422_v58 = vadd.f32 %v7294_v54, %v7166_v43  ;;  %v13103_v26 = vadd.f32 %v5670_v35, %v5410_v4  ;;  %v6830_v11 = vmul.f32 %v12730_v13, %v4377_v9  ;;  %v6831_v19 = vmul.f32 %v12730_v13, %v13035_v36  ;;  %3616 = vst [vmem:[#allocation4 + $0x590] sm:$0xff] %v8273_v38 }
 0x329   :  { %7549 = vst [vmem:[%s14942_s6 + $0x128] sm:$0xff] %v7421_v62  ;;  %v6183_v2 = vadd.f32 %v6055_v20, %v12858_v61  ;;  %v6184_v18 = vadd.f32 %v6056_v31, %v5795_v21  ;;  %v13114_v15 = vmul.f32 %v8509_v23, %v15098_v63  ;;  %v13121_v51 = vmul.f32 %v8509_v23, %v15100_v49  ;;  %v8510_v61 = vld [vmem:[#allocation4 + $0x4f8] sm:$0xff] }
 0x32a   :  { %7550 = vst [vmem:[%s14942_s6 + $0x130] sm:$0xff] %v7422_v58  ;;  %v6958_v9 = vadd.f32 %v6830_v11, %v12950_v34  ;;  %v13124_v5 = vmul.f32 %v8509_v23, %v15190_v12  ;;  %v13127_v29 = vmul.f32 %v8510_v61, %v15098_v63  ;;  %v13131_v42 = vmul.f32 %v8510_v61, %v15100_v49  ;;  %v8512_v58 = vld [vmem:[#allocation4 + $0x4e8] sm:$0xff]  ;;  %v3680_v11 = vld [vmem:[#allocation4 + $0x25f] sm:$0xff] }
 0x32b   :  { %v6571_v36 = vadd.f32 %v6443_v60, %v6183_v2  ;;  %v6572_v10 = vadd.f32 %v12908_v7, %v6184_v18  ;;  %v3809_v45 = vmul.f32 %v15102_v59, %v3677_v25  ;;  %v4069_v50 = vmul.f32 %v8511_v39, %v15098_v63 }
 0x32c   :  { %v7092_v34 = vadd.f32 %v12766_v24, %v6958_v9  ;;  %v4841_v27 = vmul.f32 %v15103_v44, %v3677_v25  ;;  %v5229_v6 = vmul.f32 %v8511_v39, %v15100_v49  ;;  %v6002_v7 = vmul.f32 %v15186_v48, %v3677_v25 }
 0x32d   :  { %v6959_v17 = vadd.f32 %v6831_v19, %v6571_v36  ;;  %v6960_v35 = vadd.f32 %v12983_v8, %v6572_v10  ;;  %v6390_v43 = vmul.f32 %v8511_v39, %v15190_v12  ;;  %v13141_v21 = vadd.f32 %v4069_v50, %v3809_v45  ;;  %v7348_v8 = vld [vmem:[%s14942_s6 + $0x2e0] sm:$0xff]  ;;  %v4327_v10 = vld [vmem:[#allocation4 + $0x259] sm:$0xff] }
 0x32e   :  { %v7220_v4 = vmax.f32 %v7092_v34, 0.0  ;;  %v4969_v54 = vadd.f32 %v4841_v27, %v12999_v0  ;;  %v3865_v62 = vmul.f32 %v15102_v59, %v3733_v52  ;;  %v6130_v55 = vadd.f32 %v6002_v7, %v13029_v22  ;;  %v3135_v22 = vpop.f32.mrb[67].mxu0  ;;  %v7349_v45 = vld [vmem:[%s14942_s6 + $0x2e8] sm:$0xff] }
 0x32f   :  { %v7093_v20 = vadd.f32 %v12766_v24, %v6959_v17  ;;  %v7094_v31 = vadd.f32 %v12766_v24, %v6960_v35  ;;  %v4125_v60 = vmul.f32 %v8512_v58, %v15098_v63  ;;  %v13153_v0 = vmul.f32 %v8510_v61, %v15190_v12  ;;  %v7350_v61 = vld [vmem:[%s14942_s6 + $0x2f0] sm:$0xff]  ;;  %3558 = vst [vmem:[#allocation4 + $0x2e0] sm:$0xff] %v3135_v22 }
 0x330   :  { %v7476_v25 = vadd.f32 %v7348_v8, %v7220_v4  ;;  %v13155_v2 = vadd.f32 %v5229_v6, %v4969_v54  ;;  %v4897_v18 = vmul.f32 %v15103_v44, %v3733_v52  ;;  %v13158_v9 = vadd.f32 %v6390_v43, %v6130_v55  ;;  %v4328_v6 = vld [vmem:[#allocation4 + $0x261] sm:$0xff] }
 0x331   :  { %v7221_v19 = vmax.f32 %v7093_v20, 0.0  ;;  %v7222_v23 = vmax.f32 %v7094_v31, 0.0  ;;  %v13160_v36 = vadd.f32 %v4125_v60, %v3865_v62  ;;  %v5285_v39 = vmul.f32 %v8512_v58, %v15100_v49  ;;  %v8513_v43 = vld [vmem:[#allocation4 + $0x260] sm:$0xff] }
 0x332   :  { %7604 = vst [vmem:[%s14942_s6 + $0x2e0] sm:$0xff] %v7476_v25  ;;  %v5025_v34 = vadd.f32 %v4897_v18, %v13062_v40  ;;  %v6058_v50 = vmul.f32 %v15186_v48, %v3733_v52  ;;  %v3812_v27 = vmul.f32 %v15102_v59, %v3680_v11  ;;  %v6446_v7 = vmul.f32 %v8512_v58, %v15190_v12  ;;  %v3736_v62 = vld [vmem:[#allocation4 + $0x4ff] sm:$0xff] }
 0x333   :  { %v7477_v17 = vadd.f32 %v7349_v45, %v7221_v19  ;;  %v7478_v35 = vadd.f32 %v7350_v61, %v7222_v23  ;;  %v4072_v38 = vmul.f32 %v8513_v43, %v15098_v63  ;;  %v13181_v40 = vmul.f32 %v15108_v46, %v4327_v10  ;;  %v4383_v18 = vld [vmem:[#allocation4 + $0x4f9] sm:$0xff]  ;;  %v4384_v19 = vld [vmem:[#allocation4 + $0x501] sm:$0xff] }
 0x334   :  { %v13177_v4 = vadd.f32 %v5285_v39, %v5025_v34  ;;  %v6186_v54 = vadd.f32 %v6058_v50, %v13097_v41  ;;  %v4844_v52 = vmul.f32 %v15103_v44, %v3680_v11  ;;  %v4460_v31 = vmul.f32 %v15108_v46, %v4328_v6  ;;  %v8514_v50 = vld [vmem:[#allocation4 + $0x500] sm:$0xff] }
 0x335   :  { %7605 = vst [vmem:[%s14942_s6 + $0x2e8] sm:$0xff] %v7477_v17  ;;  %7606 = vst [vmem:[%s14942_s6 + $0x2f0] sm:$0xff] %v7478_v35  ;;  %v4200_v20 = vadd.f32 %v4072_v38, %v3812_v27  ;;  %v5232_v8 = vmul.f32 %v8513_v43, %v15100_v49  ;;  %v13193_v41 = vmul.f32 %v15110_v3, %v4327_v10 }
 0x336   :  { %v13195_v55 = vadd.f32 %v6446_v7, %v6186_v54  ;;  %v4972_v58 = vadd.f32 %v4844_v52, %v12955_v33  ;;  %v5620_v60 = vmul.f32 %v15110_v3, %v4328_v6  ;;  %v6005_v25 = vmul.f32 %v15186_v48, %v3680_v11  ;;  %v3678_v7 = vld [vmem:[#allocation4 + $0x24f] sm:$0xff] }
 0x337   :  { %15259 = vst [vmem:[#allocation17_spill] sm:$0xff] %v13193_v41  ;;  %v13200_v23 = vadd.f32 %v4460_v31, %v4200_v20  ;;  %v6393_v22 = vmul.f32 %v8513_v43, %v15190_v12  ;;  %v13204_v45 = vmul.f32 %v12730_v13, %v4327_v10  ;;  %v3868_v61 = vmul.f32 %v15102_v59, %v3736_v62 }
 0x338   :  { %v5360_v34 = vadd.f32 %v5232_v8, %v4972_v58  ;;  %v6133_v39 = vadd.f32 %v6005_v25, %v12971_v14  ;;  %v6781_v33 = vmul.f32 %v12730_v13, %v4328_v6  ;;  %v4128_v27 = vmul.f32 %v8514_v50, %v15098_v63  ;;  %v3679_v6 = vld [vmem:[#allocation4 + $0x257] sm:$0xff]  ;;  %v4325_v58 = vld [vmem:[#allocation4 + $0x249] sm:$0xff]  ;;  %v3359_v25 = vpop.f32.mrb[75].mxu1 }
 0x339   :  { %v13211_v11 = vmul.f32 %v15108_v46, %v4383_v18  ;;  %v4516_v17 = vmul.f32 %v15108_v46, %v4384_v19  ;;  %v4900_v35 = vmul.f32 %v15103_v44, %v3736_v62  ;;  %v5288_v10 = vmul.f32 %v8514_v50, %v15100_v49  ;;  %3614 = vst [vmem:[#allocation4 + $0x580] sm:$0xff] %v3359_v25  ;;  %v7299_v25 = vld [vmem:[%s14942_s6 + $0x158] sm:$0xff] }
 0x33a   :  { %v13216_v43 = vadd.f32 %v5620_v60, %v5360_v34  ;;  %v6521_v38 = vadd.f32 %v6393_v22, %v6133_v39  ;;  %v4256_v54 = vadd.f32 %v4128_v27, %v3868_v61  ;;  %v13219_v14 = vmul.f32 %v15110_v3, %v4383_v18  ;;  %v4326_v61 = vld [vmem:[#allocation4 + $0x251] sm:$0xff] }
 0x33b   :  { %15260 = vst [vmem:[#allocation7_spill] sm:$0xff] %v13211_v11  ;;  %v5028_v52 = vadd.f32 %v4900_v35, %v12980_v32  ;;  %v5676_v20 = vmul.f32 %v15110_v3, %v4384_v19  ;;  %v6061_v31 = vmul.f32 %v15186_v48, %v3736_v62  ;;  %v6449_v8 = vmul.f32 %v8514_v50, %v15190_v12  ;;  %v8515_v62 = vld [vmem:[#allocation4 + $0x250] sm:$0xff] }
 0x33c   :  { %15261 = vst [vmem:[#allocation50_spill] sm:$0xff] %v13219_v14  ;;  %v6909_v11 = vadd.f32 %v6781_v33, %v6521_v38  ;;  %v13225_v41 = vadd.f32 %v4516_v17, %v4256_v54  ;;  %v13228_v60 = vmul.f32 %v12730_v13, %v4383_v18  ;;  %v3810_v22 = vmul.f32 %v15102_v59, %v3678_v7  ;;  %v15262_v18 = vld [vmem:[#allocation9_spill] sm:$0xff] }
 0x33d   :  { %v5416_v34 = vadd.f32 %v5288_v10, %v5028_v52  ;;  %v6189_v32 = vadd.f32 %v6061_v31, %v13006_v57  ;;  %v3811_v39 = vmul.f32 %v15102_v59, %v3679_v6  ;;  %v4070_v50 = vmul.f32 %v8515_v62, %v15098_v63 }
 0x33e   :  { %v7043_v27 = vadd.f32 %v12766_v24, %v6909_v11  ;;  %v6837_v33 = vmul.f32 %v12730_v13, %v4384_v19  ;;  %v4457_v17 = vmul.f32 %v15108_v46, %v4325_v58  ;;  %v4583_v35 = vadd.f32 %v15262_v18, %v12995_v16  ;;  %v15263_v18 = vld [vmem:[#allocation20_spill] sm:$0xff] }
 0x33f   :  { %v6577_v38 = vadd.f32 %v6449_v8, %v6189_v32  ;;  %v4198_v54 = vadd.f32 %v4070_v50, %v3810_v22  ;;  %v13240_v10 = vadd.f32 %v13114_v15, %v3811_v39  ;;  %v4458_v57 = vmul.f32 %v15108_v46, %v4326_v61 }
 0x340   :  { %v7171_v52 = vmax.f32 %v7043_v27, 0.0  ;;  %v13244_v31 = vadd.f32 %v4457_v17, %v13141_v21  ;;  %v4842_v11 = vmul.f32 %v15103_v44, %v3678_v7  ;;  %v4843_v19 = vmul.f32 %v15103_v44, %v3679_v6 }
 0x341   :  { %v13251_v16 = vadd.f32 %v5676_v20, %v5416_v34  ;;  %v6965_v8 = vadd.f32 %v6837_v33, %v6577_v38  ;;  %v13253_v22 = vadd.f32 %v4458_v57, %v4198_v54  ;;  %v5230_v15 = vmul.f32 %v8515_v62, %v15100_v49  ;;  %v13263_v34 = vld [vmem:[#allocation4 + $0x4ef] sm:$0xff]  ;;  %v13265_v33 = vld [vmem:[#allocation4 + $0x4f7] sm:$0xff] }
 0x342   :  { %v7427_v32 = vadd.f32 %v7299_v25, %v7171_v52  ;;  %v4970_v39 = vadd.f32 %v4842_v11, %v13008_v28  ;;  %v4971_v21 = vadd.f32 %v4843_v19, %v4583_v35  ;;  %v5617_v50 = vmul.f32 %v15110_v3, %v4325_v58  ;;  %v4381_v11 = vld [vmem:[#allocation4 + $0x4e9] sm:$0xff]  ;;  %v13280_v19 = vld [vmem:[#allocation4 + $0x4f1] sm:$0xff] }
 0x343   :  { %v7099_v27 = vadd.f32 %v12766_v24, %v6965_v8  ;;  %v5618_v17 = vmul.f32 %v15110_v3, %v4326_v61  ;;  %v5743_v14 = vadd.f32 %v15263_v18, %v13026_v30  ;;  %v6003_v20 = vmul.f32 %v15186_v48, %v3678_v7 }
 0x344   :  { %7555 = vst [vmem:[%s14942_s6 + $0x158] sm:$0xff] %v7427_v32  ;;  %v5358_v28 = vadd.f32 %v5230_v15, %v4970_v39  ;;  %v13271_v35 = vadd.f32 %v13121_v51, %v4971_v21  ;;  %v13274_v38 = vadd.f32 %v5617_v50, %v13155_v2  ;;  %v6004_v54 = vmul.f32 %v15186_v48, %v3679_v6  ;;  %v7355_v51 = vld [vmem:[%s14942_s6 + $0x318] sm:$0xff]  ;;  %v8516_v15 = vld [vmem:[#allocation4 + $0x4f0] sm:$0xff] }
 0x345   :  { %v7227_v30 = vmax.f32 %v7099_v27, 0.0  ;;  %v6131_v7 = vadd.f32 %v6003_v20, %v13078_v53  ;;  %v6391_v57 = vmul.f32 %v8515_v62, %v15190_v12  ;;  %v6778_v52 = vmul.f32 %v12730_v13, %v4325_v58  ;;  %v15264_v27 = vld [vmem:[#allocation48_spill] sm:$0xff] }
 0x346   :  { %v6132_v25 = vadd.f32 %v6004_v54, %v5743_v14  ;;  %v6779_v2 = vmul.f32 %v12730_v13, %v4326_v61  ;;  %v3866_v6 = vmul.f32 %v15102_v59, %v13263_v34  ;;  %v3867_v53 = vmul.f32 %v15102_v59, %v13265_v33 }
 0x347   :  { %v7483_v8 = vadd.f32 %v7355_v51, %v7227_v30  ;;  %v6519_v62 = vadd.f32 %v6391_v57, %v6131_v7  ;;  %v6906_v58 = vadd.f32 %v6778_v52, %v13158_v9  ;;  %v4126_v32 = vmul.f32 %v8516_v15, %v15098_v63  ;;  %v8220_v30 = vpop.f32.mrb[68].mxu0  ;;  %v8276_v7 = vpop.f32.mrb[76].mxu1 }
 0x348   :  { %v6520_v39 = vadd.f32 %v13124_v5, %v6132_v25  ;;  %v13294_v21 = vadd.f32 %v13127_v29, %v3867_v53  ;;  %v4513_v13 = vmul.f32 %v15108_v46, %v4381_v11  ;;  %v4514_v14 = vmul.f32 %v15108_v46, %v13280_v19  ;;  %3563 = vst [vmem:[#allocation4 + $0x318] sm:$0xff] %v8220_v30  ;;  %v7296_v25 = vld [vmem:[%s14942_s6 + $0x140] sm:$0xff] }
 0x349   :  { %7611 = vst [vmem:[%s14942_s6 + $0x318] sm:$0xff] %v7483_v8  ;;  %v6907_v61 = vadd.f32 %v6779_v2, %v6519_v62  ;;  %v7040_v9 = vadd.f32 %v12766_v24, %v6906_v58  ;;  %v4254_v50 = vadd.f32 %v4126_v32, %v3866_v6  ;;  %v4639_v18 = vadd.f32 %v15264_v27, %v13049_v56  ;;  %v3372_v8 = vpop.f32.mrb[77].mxu1 }
 0x34a   :  { %v6908_v5 = vadd.f32 %v13204_v45, %v6520_v39  ;;  %v13307_v29 = vadd.f32 %v4513_v13, %v13160_v36  ;;  %v4898_v20 = vmul.f32 %v15103_v44, %v13263_v34  ;;  %v4899_v54 = vmul.f32 %v15103_v44, %v13265_v33  ;;  %3619 = vst [vmem:[#allocation4 + $0x5b8] sm:$0xff] %v8276_v7  ;;  %v3148_v45 = vpop.f32.mrb[69].mxu0 }
 0x34b   :  { %v7041_v57 = vadd.f32 %v12766_v24, %v6907_v61  ;;  %v7168_v52 = vmax.f32 %v7040_v9, 0.0  ;;  %v13314_v51 = vadd.f32 %v4514_v14, %v4254_v50  ;;  %v5286_v56 = vmul.f32 %v8516_v15, %v15100_v49  ;;  %3561 = vst [vmem:[#allocation4 + $0x308] sm:$0xff] %v3148_v45  ;;  %3617 = vst [vmem:[#allocation4 + $0x5a8] sm:$0xff] %v3372_v8  ;;  %v7297_v14 = vld [vmem:[%s14942_s6 + $0x148] sm:$0xff] }
 0x34c   :  { %v7042_v36 = vadd.f32 %v12766_v24, %v6908_v5  ;;  %v5026_v2 = vadd.f32 %v4898_v20, %v13069_v37  ;;  %v5027_v6 = vadd.f32 %v4899_v54, %v4639_v18  ;;  %v5673_v53 = vmul.f32 %v15110_v3, %v4381_v11  ;;  %v8221_v18 = vpop.f32.mrb[70].mxu0  ;;  %v13354_v20 = vld [vmem:[%s14938_s4 + $0x28] ss:$0 sm:$0xff] }
 0x34d   :  { %v13323_v62 = vadd.f32 %v5618_v17, %v5358_v28  ;;  %v7169_v58 = vmax.f32 %v7041_v57, 0.0  ;;  %v7424_v32 = vadd.f32 %v7296_v25, %v7168_v52  ;;  %v5674_v39 = vmul.f32 %v15110_v3, %v13280_v19  ;;  %v7298_v17 = vld [vmem:[%s14942_s6 + $0x150] sm:$0xff]  ;;  %v3681_v54 = vld [vmem:[#allocation4 + $0x277] sm:$0xff]  ;;  %3564 = vst [vmem:[#allocation4 + $0x320] sm:$0xff] %v8221_v18 }
 0x34e   :  { %v7170_v13 = vmax.f32 %v7042_v36, 0.0  ;;  %v5414_v61 = vadd.f32 %v5286_v56, %v5026_v2  ;;  %v13331_v37 = vadd.f32 %v13131_v42, %v5027_v6  ;;  %v5799_v9 = vadd.f32 %v12974_v47, %v13086_v1  ;;  %v3737_v2 = vld [vmem:[#allocation4 + $0x517] sm:$0xff] }
 0x34f   :  { %v7425_v28 = vadd.f32 %v7297_v14, %v7169_v58  ;;  %7552 = vst [vmem:[%s14942_s6 + $0x140] sm:$0xff] %v7424_v32  ;;  %v13342_v50 = vadd.f32 %v5673_v53, %v13177_v4  ;;  %v6059_v27 = vmul.f32 %v15186_v48, %v13263_v34  ;;  %v6060_v42 = vmul.f32 %v15186_v48, %v13265_v33  ;;  %v8520_v6 = vld [vmem:[#allocation4 + $0x278] sm:$0xff]  ;;  %v8277_v14 = vpop.f32.mrb[78].mxu1 }
 0x350   :  { %v7426_v47 = vadd.f32 %v7298_v17, %v7170_v13  ;;  %v13348_v1 = vadd.f32 %v5674_v39, %v5414_v61  ;;  %v6447_v5 = vmul.f32 %v8516_v15, %v15190_v12  ;;  %v6834_v4 = vmul.f32 %v13354_v20, %v4381_v11  ;;  %v8518_v15 = vld [vmem:[#allocation4 + $0x288] sm:$0xff]  ;;  %3620 = vst [vmem:[#allocation4 + $0x5c0] sm:$0xff] %v8277_v14 }
 0x351   :  { %7553 = vst [vmem:[%s14942_s6 + $0x148] sm:$0xff] %v7425_v28  ;;  %v6187_v34 = vadd.f32 %v6059_v27, %v13103_v26  ;;  %v6188_v33 = vadd.f32 %v6060_v42, %v5799_v9  ;;  %v6835_v30 = vmul.f32 %v13354_v20, %v13280_v19  ;;  %v13364_v7 = vmul.f32 %v8518_v15, %v15098_v63  ;;  %v8519_v26 = vld [vmem:[#allocation4 + $0x528] sm:$0xff]  ;;  %v13398_v28 = vld [vmem:[%s14939_s5 + $0x2] ss:$0 sm:$0xff] }
 0x352   :  { %7554 = vst [vmem:[%s14942_s6 + $0x150] sm:$0xff] %v7426_v47  ;;  %v6962_v11 = vadd.f32 %v6834_v4, %v13195_v55  ;;  %v13371_v57 = vmul.f32 %v8518_v15, %v15100_v49  ;;  %v13374_v52 = vmul.f32 %v8518_v15, %v15190_v12  ;;  %v13377_v56 = vmul.f32 %v8519_v26, %v15098_v63  ;;  %v7352_v42 = vld [vmem:[%s14942_s6 + $0x300] sm:$0xff]  ;;  %v8522_v47 = vld [vmem:[#allocation4 + $0x518] sm:$0xff] }
 0x353   :  { %v6575_v19 = vadd.f32 %v6447_v5, %v6187_v34  ;;  %v6576_v45 = vadd.f32 %v13153_v0, %v6188_v33  ;;  %v13381_v36 = vmul.f32 %v8519_v26, %v15100_v49  ;;  %v3813_v25 = vmul.f32 %v15102_v59, %v3681_v54  ;;  %v3684_v5 = vld [vmem:[#allocation4 + $0x28f] sm:$0xff] }
 0x354   :  { %v7096_v55 = vadd.f32 %v12766_v24, %v6962_v11  ;;  %v4073_v53 = vmul.f32 %v8520_v6, %v15098_v63  ;;  %v4845_v8 = vmul.f32 %v15103_v44, %v3681_v54  ;;  %v5233_v58 = vmul.f32 %v8520_v6, %v15100_v49 }
 0x355   :  { %v6963_v32 = vadd.f32 %v6835_v30, %v6575_v19  ;;  %v6964_v39 = vadd.f32 %v13228_v60, %v6576_v45  ;;  %v6006_v0 = vmul.f32 %v15186_v48, %v3681_v54  ;;  %v6394_v13 = vmul.f32 %v8520_v6, %v15190_v12  ;;  %v4331_v45 = vld [vmem:[#allocation4 + $0x289] sm:$0xff] }
 0x356   :  { %v7224_v61 = vmax.f32 %v7096_v55, 0.0  ;;  %v13391_v9 = vadd.f32 %v4073_v53, %v3813_v25  ;;  %v4973_v24 = vadd.f32 %v4845_v8, %v13244_v31  ;;  %v3869_v17 = vmul.f32 %v15102_v59, %v3737_v2  ;;  %v7353_v25 = vld [vmem:[%s14942_s6 + $0x308] sm:$0xff] }
 0x357   :  { %v7097_v60 = vadd.f32 %v13398_v28, %v6963_v32  ;;  %v7098_v27 = vadd.f32 %v13398_v28, %v6964_v39  ;;  %v6134_v18 = vadd.f32 %v6006_v0, %v13274_v38  ;;  %v4129_v31 = vmul.f32 %v8522_v47, %v15098_v63  ;;  %v3151_v38 = vpop.f32.mrb[71].mxu0 }
 0x358   :  { %v7480_v4 = vadd.f32 %v7352_v42, %v7224_v61  ;;  %v13408_v54 = vmul.f32 %v8519_v26, %v15190_v12  ;;  %v13410_v34 = vadd.f32 %v5233_v58, %v4973_v24  ;;  %v4901_v33 = vmul.f32 %v15103_v44, %v3737_v2  ;;  %v7354_v26 = vld [vmem:[%s14942_s6 + $0x310] sm:$0xff]  ;;  %v4332_v58 = vld [vmem:[#allocation4 + $0x291] sm:$0xff]  ;;  %3562 = vst [vmem:[#allocation4 + $0x310] sm:$0xff] %v3151_v38 }
 0x359   :  { %v7225_v30 = vmax.f32 %v7097_v60, 0.0  ;;  %v7226_v15 = vmax.f32 %v7098_v27, 0.0  ;;  %v13413_v11 = vadd.f32 %v6394_v13, %v6134_v18  ;;  %v13415_v19 = vadd.f32 %v4129_v31, %v3869_v17  ;;  %v8523_v13 = vld [vmem:[#allocation4 + $0x290] sm:$0xff] }
 0x35a   :  { %7608 = vst [vmem:[%s14942_s6 + $0x300] sm:$0xff] %v7480_v4  ;;  %v5029_v55 = vadd.f32 %v4901_v33, %v13307_v29  ;;  %v5289_v6 = vmul.f32 %v8522_v47, %v15100_v49  ;;  %v6062_v53 = vmul.f32 %v15186_v48, %v3737_v2  ;;  %v3816_v8 = vmul.f32 %v15102_v59, %v3684_v5  ;;  %v3740_v17 = vld [vmem:[#allocation4 + $0x52f] sm:$0xff] }
 0x35b   :  { %v7481_v32 = vadd.f32 %v7353_v25, %v7225_v30  ;;  %v7482_v39 = vadd.f32 %v7354_v26, %v7226_v15  ;;  %v6450_v0 = vmul.f32 %v8522_v47, %v15190_v12  ;;  %v4076_v14 = vmul.f32 %v8523_v13, %v15098_v63  ;;  %v4387_v33 = vld [vmem:[#allocation4 + $0x529] sm:$0xff]  ;;  %v4388_v30 = vld [vmem:[#allocation4 + $0x531] sm:$0xff] }
 0x35c   :  { %v13432_v61 = vadd.f32 %v5289_v6, %v5029_v55  ;;  %v6190_v24 = vadd.f32 %v6062_v53, %v13342_v50  ;;  %v13436_v29 = vmul.f32 %v15108_v46, %v4331_v45  ;;  %v4848_v2 = vmul.f32 %v15103_v44, %v3684_v5  ;;  %v8524_v53 = vld [vmem:[#allocation4 + $0x530] sm:$0xff] }
 0x35d   :  { %7609 = vst [vmem:[%s14942_s6 + $0x308] sm:$0xff] %v7481_v32  ;;  %7610 = vst [vmem:[%s14942_s6 + $0x310] sm:$0xff] %v7482_v39  ;;  %v4204_v60 = vadd.f32 %v4076_v14, %v3816_v8  ;;  %v4464_v27 = vmul.f32 %v15108_v46, %v4332_v58  ;;  %v5236_v42 = vmul.f32 %v8523_v13, %v15100_v49 }
 0x35e   :  { %v13448_v50 = vmul.f32 %v15110_v3, %v4331_v45  ;;  %v13450_v18 = vadd.f32 %v6450_v0, %v6190_v24  ;;  %v4976_v47 = vadd.f32 %v4848_v2, %v13200_v23  ;;  %v5624_v31 = vmul.f32 %v15110_v3, %v4332_v58  ;;  %v3682_v0 = vld [vmem:[#allocation4 + $0x27f] sm:$0xff] }
 0x35f   :  { %v6009_v4 = vmul.f32 %v15186_v48, %v3684_v5  ;;  %v13455_v15 = vadd.f32 %v4464_v27, %v4204_v60  ;;  %v6397_v38 = vmul.f32 %v8523_v13, %v15190_v12  ;;  %v13459_v25 = vmul.f32 %v13354_v20, %v4331_v45 }
 0x360   :  { %15265 = vst [vmem:[#allocation32_spill] sm:$0xff] %v13448_v50  ;;  %v3872_v26 = vmul.f32 %v15102_v59, %v3740_v17  ;;  %v5364_v55 = vadd.f32 %v5236_v42, %v4976_v47  ;;  %v6785_v23 = vmul.f32 %v13354_v20, %v4332_v58  ;;  %v4132_v8 = vmul.f32 %v8524_v53, %v15098_v63  ;;  %v3683_v58 = vld [vmem:[#allocation4 + $0x287] sm:$0xff]  ;;  %v4329_v47 = vld [vmem:[#allocation4 + $0x279] sm:$0xff] }
 0x361   :  { %v6137_v6 = vadd.f32 %v6009_v4, %v13216_v43  ;;  %v13466_v5 = vmul.f32 %v15108_v46, %v4387_v33  ;;  %v4520_v32 = vmul.f32 %v15108_v46, %v4388_v30  ;;  %v4904_v39 = vmul.f32 %v15103_v44, %v3740_v17  ;;  %v3375_v4 = vpop.f32.mrb[79].mxu1 }
 0x362   :  { %v5292_v45 = vmul.f32 %v8524_v53, %v15100_v49  ;;  %v13471_v13 = vadd.f32 %v5624_v31, %v5364_v55  ;;  %v4260_v24 = vadd.f32 %v4132_v8, %v3872_v26  ;;  %v13474_v43 = vmul.f32 %v15110_v3, %v4387_v33  ;;  %v4330_v26 = vld [vmem:[#allocation4 + $0x281] sm:$0xff]  ;;  %3618 = vst [vmem:[#allocation4 + $0x5b0] sm:$0xff] %v3375_v4 }
 0x363   :  { %15266 = vst [vmem:[#allocation22_spill] sm:$0xff] %v13466_v5  ;;  %v6525_v14 = vadd.f32 %v6397_v38, %v6137_v6  ;;  %v5032_v2 = vadd.f32 %v4904_v39, %v13225_v41  ;;  %v5680_v60 = vmul.f32 %v15110_v3, %v4388_v30  ;;  %v6065_v27 = vmul.f32 %v15186_v48, %v3740_v17  ;;  %v8525_v17 = vld [vmem:[#allocation4 + $0x280] sm:$0xff] }
 0x364   :  { %v6453_v42 = vmul.f32 %v8524_v53, %v15190_v12  ;;  %v13480_v50 = vadd.f32 %v4520_v32, %v4260_v24  ;;  %v13483_v31 = vmul.f32 %v13354_v20, %v4387_v33  ;;  %v3814_v38 = vmul.f32 %v15102_v59, %v3682_v0 }
 0x365   :  { %v6913_v5 = vadd.f32 %v6785_v23, %v6525_v14  ;;  %v5420_v55 = vadd.f32 %v5292_v45, %v5032_v2  ;;  %v6193_v41 = vadd.f32 %v6065_v27, %v13251_v16  ;;  %v3815_v6 = vmul.f32 %v15102_v59, %v3683_v58  ;;  %v7303_v27 = vld [vmem:[%s14942_s6 + $0x178] sm:$0xff] }
 0x366   :  { %v4074_v53 = vmul.f32 %v8525_v17, %v15098_v63  ;;  %v6841_v23 = vmul.f32 %v13354_v20, %v4388_v30  ;;  %v4461_v32 = vmul.f32 %v15108_v46, %v4329_v47  ;;  %v4587_v33 = vadd.f32 %v13181_v40, %v13240_v10 }
 0x367   :  { %v7047_v8 = vadd.f32 %v13398_v28, %v6913_v5  ;;  %v6581_v39 = vadd.f32 %v6453_v42, %v6193_v41  ;;  %v13495_v45 = vadd.f32 %v13364_v7, %v3815_v6  ;;  %v4462_v16 = vmul.f32 %v15108_v46, %v4330_v26 }
 0x368   :  { %v4202_v14 = vadd.f32 %v4074_v53, %v3814_v38  ;;  %v13499_v2 = vadd.f32 %v4461_v32, %v13391_v9  ;;  %v4846_v5 = vmul.f32 %v15103_v44, %v3682_v0  ;;  %v4847_v30 = vmul.f32 %v15103_v44, %v3683_v58 }
 0x369   :  { %v7175_v24 = vmax.f32 %v7047_v8, 0.0  ;;  %v13506_v40 = vadd.f32 %v5680_v60, %v5420_v55  ;;  %v6969_v10 = vadd.f32 %v6841_v23, %v6581_v39  ;;  %v5234_v7 = vmul.f32 %v8525_v17, %v15100_v49  ;;  %v15267_v8 = vld [vmem:[#allocation17_spill] sm:$0xff] }
 0x36a   :  { %v13508_v42 = vadd.f32 %v4462_v16, %v4202_v14  ;;  %v4974_v38 = vadd.f32 %v4846_v5, %v13253_v22  ;;  %v4975_v9 = vadd.f32 %v4847_v30, %v4587_v33  ;;  %v5621_v41 = vmul.f32 %v15110_v3, %v4329_v47  ;;  %v13518_v55 = vld [vmem:[#allocation4 + $0x51f] sm:$0xff]  ;;  %v13520_v23 = vld [vmem:[#allocation4 + $0x527] sm:$0xff] }
 0x36b   :  { %v7431_v4 = vadd.f32 %v7303_v27, %v7175_v24  ;;  %v7103_v6 = vadd.f32 %v13398_v28, %v6969_v10  ;;  %v5622_v53 = vmul.f32 %v15110_v3, %v4330_v26  ;;  %v5747_v32 = vadd.f32 %v15267_v8, %v13271_v35  ;;  %v4385_v5 = vld [vmem:[#allocation4 + $0x519] sm:$0xff]  ;;  %v13535_v30 = vld [vmem:[#allocation4 + $0x521] sm:$0xff] }
 0x36c   :  { %v6007_v60 = vmul.f32 %v15186_v48, %v3682_v0  ;;  %v5362_v22 = vadd.f32 %v5234_v7, %v4974_v38  ;;  %v13526_v33 = vadd.f32 %v13371_v57, %v4975_v9  ;;  %v13529_v39 = vadd.f32 %v5621_v41, %v13410_v34  ;;  %v7359_v57 = vld [vmem:[%s14942_s6 + $0x338] sm:$0xff]  ;;  %v8526_v7 = vld [vmem:[#allocation4 + $0x520] sm:$0xff] }
 0x36d   :  { %7559 = vst [vmem:[%s14942_s6 + $0x178] sm:$0xff] %v7431_v4  ;;  %v6008_v14 = vmul.f32 %v15186_v48, %v3683_v58  ;;  %v7231_v35 = vmax.f32 %v7103_v6, 0.0  ;;  %v6395_v16 = vmul.f32 %v8525_v17, %v15190_v12  ;;  %v6782_v24 = vmul.f32 %v13354_v20, %v4329_v47 }
 0x36e   :  { %v6135_v0 = vadd.f32 %v6007_v60, %v13323_v62  ;;  %v6783_v34 = vmul.f32 %v13354_v20, %v4330_v26  ;;  %v3870_v58 = vmul.f32 %v15102_v59, %v13518_v55  ;;  %v3871_v62 = vmul.f32 %v15102_v59, %v13520_v23 }
 0x36f   :  { %v6136_v27 = vadd.f32 %v6008_v14, %v5747_v32  ;;  %v7487_v10 = vadd.f32 %v7359_v57, %v7231_v35  ;;  %v6910_v47 = vadd.f32 %v6782_v24, %v13413_v11  ;;  %v4130_v4 = vmul.f32 %v8526_v7, %v15098_v63  ;;  %v15268_v32 = vld [vmem:[#allocation7_spill] sm:$0xff] }
 0x370   :  { %v6523_v17 = vadd.f32 %v6395_v16, %v6135_v0  ;;  %v13549_v9 = vadd.f32 %v13377_v56, %v3871_v62  ;;  %v4517_v26 = vmul.f32 %v15108_v46, %v4385_v5  ;;  %v4518_v41 = vmul.f32 %v15108_v46, %v13535_v30  ;;  %v8224_v0 = vpop.f32.mrb[72].mxu0  ;;  %v8280_v16 = vpop.f32.mrb[80].mxu1 }
 0x371   :  { %v6524_v38 = vadd.f32 %v13374_v52, %v6136_v27  ;;  %7615 = vst [vmem:[%s14942_s6 + $0x338] sm:$0xff] %v7487_v10  ;;  %v7044_v11 = vadd.f32 %v13398_v28, %v6910_v47  ;;  %v4258_v8 = vadd.f32 %v4130_v4, %v3870_v58  ;;  %v4643_v60 = vadd.f32 %v15268_v32, %v13294_v21 }
 0x372   :  { %v6911_v6 = vadd.f32 %v6783_v34, %v6523_v17  ;;  %v13562_v56 = vadd.f32 %v4517_v26, %v13415_v19  ;;  %v4902_v14 = vmul.f32 %v15103_v44, %v13518_v55  ;;  %v4903_v35 = vmul.f32 %v15103_v44, %v13520_v23  ;;  %3567 = vst [vmem:[#allocation4 + $0x348] sm:$0xff] %v8224_v0  ;;  %v7300_v34 = vld [vmem:[%s14942_s6 + $0x160] sm:$0xff]  ;;  %v3388_v17 = vpop.f32.mrb[81].mxu1 }
 0x373   :  { %v6912_v52 = vadd.f32 %v13459_v25, %v6524_v38  ;;  %v7172_v57 = vmax.f32 %v7044_v11, 0.0  ;;  %v13569_v27 = vadd.f32 %v4518_v41, %v4258_v8  ;;  %v5290_v21 = vmul.f32 %v8526_v7, %v15100_v49  ;;  %3623 = vst [vmem:[#allocation4 + $0x5e8] sm:$0xff] %v8280_v16  ;;  %v3164_v25 = vpop.f32.mrb[73].mxu0  ;;  %3621 = vst [vmem:[#allocation4 + $0x5d8] sm:$0xff] %v3388_v17  ;;  %v15269_v8 = vld [vmem:[#allocation50_spill] sm:$0xff] }
 0x374   :  { %v7045_v24 = vadd.f32 %v13398_v28, %v6911_v6  ;;  %v5030_v58 = vadd.f32 %v4902_v14, %v13314_v51  ;;  %v5031_v62 = vadd.f32 %v4903_v35, %v4643_v60  ;;  %v5677_v10 = vmul.f32 %v15110_v3, %v4385_v5  ;;  %3565 = vst [vmem:[#allocation4 + $0x338] sm:$0xff] %v3164_v25  ;;  %v7301_v6 = vld [vmem:[%s14942_s6 + $0x168] sm:$0xff]  ;;  %v8225_v14 = vpop.f32.mrb[74].mxu0  ;;  %v8529_v17 = vld [vmem:[#allocation4 + $0x2a8] sm:$0xff] }
 0x375   :  { %v7046_v19 = vadd.f32 %v13398_v28, %v6912_v52  ;;  %v13578_v47 = vadd.f32 %v5622_v53, %v5362_v22  ;;  %v7428_v38 = vadd.f32 %v7300_v34, %v7172_v57  ;;  %v5678_v26 = vmul.f32 %v15110_v3, %v13535_v30  ;;  %v7302_v53 = vld [vmem:[%s14942_s6 + $0x170] sm:$0xff]  ;;  %3568 = vst [vmem:[#allocation4 + $0x350] sm:$0xff] %v8225_v14  ;;  %v8527_v57 = vld [vmem:[#allocation4 + $0x2b8] sm:$0xff] }
 0x376   :  { %v7173_v4 = vmax.f32 %v7045_v24, 0.0  ;;  %v5418_v11 = vadd.f32 %v5290_v21, %v5030_v58  ;;  %v13586_v51 = vadd.f32 %v13381_v36, %v5031_v62  ;;  %v5803_v32 = vadd.f32 %v15269_v8, %v13331_v37  ;;  %v3685_v24 = vld [vmem:[#allocation4 + $0x2a7] sm:$0xff]  ;;  %v8281_v8 = vpop.f32.mrb[82].mxu1 }
 0x377   :  { %v7174_v41 = vmax.f32 %v7046_v19, 0.0  ;;  %7556 = vst [vmem:[%s14942_s6 + $0x160] sm:$0xff] %v7428_v38  ;;  %v13597_v60 = vadd.f32 %v5677_v10, %v13432_v61  ;;  %v6063_v52 = vmul.f32 %v15186_v48, %v13518_v55  ;;  %v6064_v36 = vmul.f32 %v15186_v48, %v13520_v23  ;;  %v3741_v10 = vld [vmem:[#allocation4 + $0x547] sm:$0xff]  ;;  %3624 = vst [vmem:[#allocation4 + $0x5f0] sm:$0xff] %v8281_v8 }
 0x378   :  { %v7429_v22 = vadd.f32 %v7301_v6, %v7173_v4  ;;  %v13603_v35 = vadd.f32 %v5678_v26, %v5418_v11  ;;  %v6451_v0 = vmul.f32 %v8526_v7, %v15190_v12  ;;  %v6838_v16 = vmul.f32 %v13354_v20, %v4385_v5  ;;  %v8531_v8 = vld [vmem:[#allocation4 + $0x2c0] sm:$0xff] }
 0x379   :  { %v7430_v37 = vadd.f32 %v7302_v53, %v7174_v41  ;;  %v6191_v61 = vadd.f32 %v6063_v52, %v13348_v1  ;;  %v6192_v55 = vadd.f32 %v6064_v36, %v5803_v32  ;;  %v6839_v23 = vmul.f32 %v13354_v20, %v13535_v30  ;;  %v8528_v1 = vld [vmem:[#allocation4 + $0x558] sm:$0xff] }
 0x37a   :  { %7557 = vst [vmem:[%s14942_s6 + $0x168] sm:$0xff] %v7429_v22  ;;  %v13614_v21 = vmul.f32 %v8527_v57, %v15098_v63  ;;  %v6966_v5 = vadd.f32 %v6838_v16, %v13450_v18  ;;  %v13621_v7 = vmul.f32 %v8527_v57, %v15100_v49  ;;  %v13624_v25 = vmul.f32 %v8527_v57, %v15190_v12 }
 0x37b   :  { %7558 = vst [vmem:[%s14942_s6 + $0x170] sm:$0xff] %v7430_v37  ;;  %v13627_v19 = vmul.f32 %v8528_v1, %v15098_v63  ;;  %v6579_v30 = vadd.f32 %v6451_v0, %v6191_v61  ;;  %v6580_v34 = vadd.f32 %v13408_v54, %v6192_v55  ;;  %v13631_v58 = vmul.f32 %v8528_v1, %v15100_v49  ;;  %v8530_v0 = vld [vmem:[#allocation4 + $0x548] sm:$0xff] }
 0x37c   :  { %v3817_v62 = vmul.f32 %v15102_v59, %v3685_v24  ;;  %v7100_v18 = vadd.f32 %v13398_v28, %v6966_v5  ;;  %v4077_v4 = vmul.f32 %v8529_v17, %v15098_v63  ;;  %v4849_v38 = vmul.f32 %v15103_v44, %v3685_v24 }
 0x37d   :  { %v5237_v26 = vmul.f32 %v8529_v17, %v15100_v49  ;;  %v6967_v41 = vadd.f32 %v6839_v23, %v6579_v30  ;;  %v6968_v6 = vadd.f32 %v13483_v31, %v6580_v34  ;;  %v6010_v54 = vmul.f32 %v15186_v48, %v3685_v24  ;;  %v7356_v31 = vld [vmem:[%s14942_s6 + $0x320] sm:$0xff]  ;;  %v3688_v24 = vld [vmem:[#allocation4 + $0x2bf] sm:$0xff] }
 0x37e   :  { %v6398_v11 = vmul.f32 %v8529_v17, %v15190_v12  ;;  %v7228_v32 = vmax.f32 %v7100_v18, 0.0  ;;  %v13641_v53 = vadd.f32 %v4077_v4, %v3817_v62  ;;  %v4977_v22 = vadd.f32 %v4849_v38, %v13499_v2  ;;  %v4335_v62 = vld [vmem:[#allocation4 + $0x2b9] sm:$0xff] }
 0x37f   :  { %v3873_v52 = vmul.f32 %v15102_v59, %v3741_v10  ;;  %v7101_v36 = vadd.f32 %v13398_v28, %v6967_v41  ;;  %v7102_v14 = vadd.f32 %v13398_v28, %v6968_v6  ;;  %v6138_v37 = vadd.f32 %v6010_v54, %v13529_v39  ;;  %v3167_v39 = vpop.f32.mrb[75].mxu0  ;;  %v7357_v18 = vld [vmem:[%s14942_s6 + $0x328] sm:$0xff]  ;;  %v4336_v41 = vld [vmem:[#allocation4 + $0x2c1] sm:$0xff] }
 0x380   :  { %v4133_v16 = vmul.f32 %v8530_v0, %v15098_v63  ;;  %v7484_v61 = vadd.f32 %v7356_v31, %v7228_v32  ;;  %v13653_v2 = vmul.f32 %v8528_v1, %v15190_v12  ;;  %v13655_v55 = vadd.f32 %v5237_v26, %v4977_v22  ;;  %v7358_v1 = vld [vmem:[%s14942_s6 + $0x330] sm:$0xff]  ;;  %3566 = vst [vmem:[#allocation4 + $0x340] sm:$0xff] %v3167_v39 }
 0x381   :  { %v4905_v23 = vmul.f32 %v15103_v44, %v3741_v10  ;;  %v7229_v57 = vmax.f32 %v7101_v36, 0.0  ;;  %v7230_v5 = vmax.f32 %v7102_v14, 0.0  ;;  %v13658_v30 = vadd.f32 %v6398_v11, %v6138_v37  ;;  %v3744_v36 = vld [vmem:[#allocation4 + $0x55f] sm:$0xff] }
 0x382   :  { %v13660_v34 = vadd.f32 %v4133_v16, %v3873_v52  ;;  %7612 = vst [vmem:[%s14942_s6 + $0x320] sm:$0xff] %v7484_v61  ;;  %v5293_v4 = vmul.f32 %v8530_v0, %v15100_v49  ;;  %v6066_v38 = vmul.f32 %v15186_v48, %v3741_v10  ;;  %v3820_v26 = vmul.f32 %v15102_v59, %v3688_v24 }
 0x383   :  { %v5033_v17 = vadd.f32 %v4905_v23, %v13562_v56  ;;  %v7485_v6 = vadd.f32 %v7357_v18, %v7229_v57  ;;  %v7486_v54 = vadd.f32 %v7358_v1, %v7230_v5  ;;  %v6454_v11 = vmul.f32 %v8530_v0, %v15190_v12  ;;  %v4391_v57 = vld [vmem:[#allocation4 + $0x559] sm:$0xff]  ;;  %v4392_v5 = vld [vmem:[#allocation4 + $0x561] sm:$0xff] }
 0x384   :  { %v4080_v32 = vmul.f32 %v8531_v8, %v15098_v63  ;;  %v6194_v52 = vadd.f32 %v6066_v38, %v13597_v60  ;;  %v13681_v56 = vmul.f32 %v15108_v46, %v4335_v62  ;;  %v4852_v10 = vmul.f32 %v15103_v44, %v3688_v24 }
 0x385   :  { %v13677_v22 = vadd.f32 %v5293_v4, %v5033_v17  ;;  %7613 = vst [vmem:[%s14942_s6 + $0x328] sm:$0xff] %v7485_v6  ;;  %7614 = vst [vmem:[%s14942_s6 + $0x330] sm:$0xff] %v7486_v54  ;;  %v4468_v31 = vmul.f32 %v15108_v46, %v4336_v41  ;;  %v5240_v37 = vmul.f32 %v8531_v8, %v15100_v49 }
 0x386   :  { %15270 = vst [vmem:[#allocation52_spill] sm:$0xff] %v13681_v56  ;;  %v4208_v14 = vadd.f32 %v4080_v32, %v3820_v26  ;;  %v13693_v60 = vmul.f32 %v15110_v3, %v4335_v62  ;;  %v13695_v0 = vadd.f32 %v6454_v11, %v6194_v52  ;;  %v4980_v16 = vadd.f32 %v4852_v10, %v13455_v15  ;;  %v8532_v26 = vld [vmem:[#allocation4 + $0x560] sm:$0xff] }
 0x387   :  { %v5628_v61 = vmul.f32 %v15110_v3, %v4336_v41  ;;  %v6013_v23 = vmul.f32 %v15186_v48, %v3688_v24  ;;  %v6401_v18 = vmul.f32 %v8531_v8, %v15190_v12  ;;  %v13704_v1 = vmul.f32 %v13354_v20, %v4335_v62  ;;  %v3686_v8 = vld [vmem:[#allocation4 + $0x2af] sm:$0xff] }
 0x388   :  { %15271 = vst [vmem:[#allocation15_spill] sm:$0xff] %v13693_v60  ;;  %v13700_v39 = vadd.f32 %v4468_v31, %v4208_v14  ;;  %v3876_v17 = vmul.f32 %v15102_v59, %v3744_v36  ;;  %v5368_v4 = vadd.f32 %v5240_v37, %v4980_v16  ;;  %v6789_v15 = vmul.f32 %v13354_v20, %v4336_v41  ;;  %v3687_v41 = vld [vmem:[#allocation4 + $0x2b7] sm:$0xff] }
 0x389   :  { %v6141_v38 = vadd.f32 %v6013_v23, %v13471_v13  ;;  %v4136_v6 = vmul.f32 %v8532_v26, %v15098_v63  ;;  %v13711_v24 = vmul.f32 %v15108_v46, %v4391_v57  ;;  %v4524_v54 = vmul.f32 %v15108_v46, %v4392_v5  ;;  %v4333_v23 = vld [vmem:[#allocation4 + $0x2a9] sm:$0xff] }
 0x38a   :  { %v4908_v11 = vmul.f32 %v15103_v44, %v3744_v36  ;;  %v5296_v62 = vmul.f32 %v8532_v26, %v15100_v49  ;;  %v13716_v32 = vadd.f32 %v5628_v61, %v5368_v4  ;;  %v13719_v13 = vmul.f32 %v15110_v3, %v4391_v57 }
 0x38b   :  { %15272 = vst [vmem:[#allocation21_spill] sm:$0xff] %v13711_v24  ;;  %v6529_v52 = vadd.f32 %v6401_v18, %v6141_v38  ;;  %v4264_v10 = vadd.f32 %v4136_v6, %v3876_v17  ;;  %v5684_v31 = vmul.f32 %v15110_v3, %v4392_v5  ;;  %v6069_v37 = vmul.f32 %v15186_v48, %v3744_v36  ;;  %v3391_v24 = vpop.f32.mrb[83].mxu1  ;;  %v4334_v17 = vld [vmem:[#allocation4 + $0x2b1] sm:$0xff] }
 0x38c   :  { %v5036_v14 = vadd.f32 %v4908_v11, %v13480_v50  ;;  %v6457_v16 = vmul.f32 %v8532_v26, %v15190_v12  ;;  %v13728_v61 = vmul.f32 %v13354_v20, %v4391_v57  ;;  %v3818_v18 = vmul.f32 %v15102_v59, %v3686_v8  ;;  %3622 = vst [vmem:[#allocation4 + $0x5e0] sm:$0xff] %v3391_v24  ;;  %v8533_v36 = vld [vmem:[#allocation4 + $0x2b0] sm:$0xff] }
 0x38d   :  { %v6917_v60 = vadd.f32 %v6789_v15, %v6529_v52  ;;  %v13725_v56 = vadd.f32 %v4524_v54, %v4264_v10  ;;  %v6197_v50 = vadd.f32 %v6069_v37, %v13506_v40  ;;  %v3819_v38 = vmul.f32 %v15102_v59, %v3687_v41 }
 0x38e   :  { %v5424_v4 = vadd.f32 %v5296_v62, %v5036_v14  ;;  %v4078_v26 = vmul.f32 %v8533_v36, %v15098_v63  ;;  %v6845_v15 = vmul.f32 %v13354_v20, %v4392_v5  ;;  %v4465_v54 = vmul.f32 %v15108_v46, %v4333_v23  ;;  %v7307_v14 = vld [vmem:[%s14942_s6 + $0x198] sm:$0xff] }
 0x38f   :  { %v7051_v6 = vadd.f32 %v13398_v28, %v6917_v60  ;;  %v4591_v57 = vadd.f32 %v13436_v29, %v13495_v45  ;;  %v6585_v11 = vadd.f32 %v6457_v16, %v6197_v50  ;;  %v13740_v24 = vadd.f32 %v13614_v21, %v3819_v38 }
 0x390   :  { %v4206_v52 = vadd.f32 %v4078_v26, %v3818_v18  ;;  %v4466_v40 = vmul.f32 %v15108_v46, %v4334_v17  ;;  %v13744_v10 = vadd.f32 %v4465_v54, %v13641_v53  ;;  %v4850_v60 = vmul.f32 %v15103_v44, %v3686_v8 }
 0x391   :  { %v7179_v62 = vmax.f32 %v7051_v6, 0.0  ;;  %v4851_v5 = vmul.f32 %v15103_v44, %v3687_v41  ;;  %v13751_v29 = vadd.f32 %v5684_v31, %v5424_v4  ;;  %v6973_v45 = vadd.f32 %v6845_v15, %v6585_v11  ;;  %v15273_v6 = vld [vmem:[#allocation32_spill] sm:$0xff]  ;;  %v13763_v4 = vld [vmem:[#allocation4 + $0x54f] sm:$0xff] }
 0x392   :  { %v13753_v37 = vadd.f32 %v4466_v40, %v4206_v52  ;;  %v5238_v21 = vmul.f32 %v8533_v36, %v15100_v49  ;;  %v4978_v18 = vadd.f32 %v4850_v60, %v13508_v42  ;;  %v5625_v50 = vmul.f32 %v15110_v3, %v4333_v23  ;;  %v13765_v15 = vld [vmem:[#allocation4 + $0x557] sm:$0xff]  ;;  %v4389_v60 = vld [vmem:[#allocation4 + $0x549] sm:$0xff] }
 0x393   :  { %v7435_v16 = vadd.f32 %v7307_v14, %v7179_v62  ;;  %v4979_v53 = vadd.f32 %v4851_v5, %v4591_v57  ;;  %v7107_v38 = vadd.f32 %v13398_v28, %v6973_v45  ;;  %v5626_v26 = vmul.f32 %v15110_v3, %v4334_v17  ;;  %v13780_v5 = vld [vmem:[#allocation4 + $0x551] sm:$0xff] }
 0x394   :  { %v5751_v54 = vadd.f32 %v15273_v6, %v13526_v33  ;;  %v6011_v31 = vmul.f32 %v15186_v48, %v3686_v8  ;;  %v5366_v42 = vadd.f32 %v5238_v21, %v4978_v18  ;;  %v13774_v11 = vadd.f32 %v5625_v50, %v13655_v55  ;;  %v8534_v21 = vld [vmem:[#allocation4 + $0x550] sm:$0xff] }
 0x395   :  { %7563 = vst [vmem:[%s14942_s6 + $0x198] sm:$0xff] %v7435_v16  ;;  %v13771_v57 = vadd.f32 %v13621_v7, %v4979_v53  ;;  %v6012_v52 = vmul.f32 %v15186_v48, %v3687_v41  ;;  %v7235_v33 = vmax.f32 %v7107_v38, 0.0  ;;  %v6399_v40 = vmul.f32 %v8533_v36, %v15190_v12  ;;  %v7363_v7 = vld [vmem:[%s14942_s6 + $0x358] sm:$0xff] }
 0x396   :  { %v6139_v8 = vadd.f32 %v6011_v31, %v13578_v47  ;;  %v6786_v62 = vmul.f32 %v13354_v20, %v4333_v23  ;;  %v6787_v55 = vmul.f32 %v13354_v20, %v4334_v17  ;;  %v3874_v41 = vmul.f32 %v15102_v59, %v13763_v4 }
 0x397   :  { %v6140_v14 = vadd.f32 %v6012_v52, %v5751_v54  ;;  %v3875_v47 = vmul.f32 %v15102_v59, %v13765_v15  ;;  %v7491_v45 = vadd.f32 %v7363_v7, %v7235_v33  ;;  %v4134_v16 = vmul.f32 %v8534_v21, %v15098_v63  ;;  %v15274_v54 = vld [vmem:[#allocation22_spill] sm:$0xff] }
 0x398   :  { %v6527_v36 = vadd.f32 %v6399_v40, %v6139_v8  ;;  %v6914_v23 = vadd.f32 %v6786_v62, %v13658_v30  ;;  %v4521_v17 = vmul.f32 %v15108_v46, %v4389_v60  ;;  %v4522_v50 = vmul.f32 %v15108_v46, %v13780_v5  ;;  %v8228_v8 = vpop.f32.mrb[76].mxu0  ;;  %v8284_v40 = vpop.f32.mrb[84].mxu1 }
 0x399   :  { %v6528_v18 = vadd.f32 %v13624_v25, %v6140_v14  ;;  %v13794_v53 = vadd.f32 %v13627_v19, %v3875_v47  ;;  %7619 = vst [vmem:[%s14942_s6 + $0x358] sm:$0xff] %v7491_v45  ;;  %v4262_v6 = vadd.f32 %v4134_v16, %v3874_v41  ;;  %v4647_v31 = vadd.f32 %v15274_v54, %v13549_v9 }
 0x39a   :  { %v6915_v38 = vadd.f32 %v6787_v55, %v6527_v36  ;;  %v7048_v30 = vadd.f32 %v13398_v28, %v6914_v23  ;;  %v13807_v19 = vadd.f32 %v4521_v17, %v13660_v34  ;;  %v4906_v52 = vmul.f32 %v15103_v44, %v13763_v4  ;;  %3571 = vst [vmem:[#allocation4 + $0x378] sm:$0xff] %v8228_v8  ;;  %v7304_v55 = vld [vmem:[%s14942_s6 + $0x180] sm:$0xff]  ;;  %v3404_v36 = vpop.f32.mrb[85].mxu1 }
 0x39b   :  { %v6916_v25 = vadd.f32 %v13704_v1, %v6528_v18  ;;  %v4907_v33 = vmul.f32 %v15103_v44, %v13765_v15  ;;  %v13814_v14 = vadd.f32 %v4522_v50, %v4262_v6  ;;  %v5294_v9 = vmul.f32 %v8534_v21, %v15100_v49  ;;  %3627 = vst [vmem:[#allocation4 + $0x618] sm:$0xff] %v8284_v40  ;;  %v3180_v1 = vpop.f32.mrb[77].mxu0  ;;  %v3689_v8 = vld [vmem:[#allocation4 + $0x2d7] sm:$0xff] }
 0x39c   :  { %v7049_v62 = vadd.f32 %v13398_v28, %v6915_v38  ;;  %v7176_v7 = vmax.f32 %v7048_v30, 0.0  ;;  %v5034_v41 = vadd.f32 %v4906_v52, %v13569_v27  ;;  %v5681_v45 = vmul.f32 %v15110_v3, %v4389_v60  ;;  %3569 = vst [vmem:[#allocation4 + $0x368] sm:$0xff] %v3180_v1  ;;  %3625 = vst [vmem:[#allocation4 + $0x608] sm:$0xff] %v3404_v36  ;;  %v7305_v38 = vld [vmem:[%s14942_s6 + $0x188] sm:$0xff] }
 0x39d   :  { %v7050_v34 = vadd.f32 %v13398_v28, %v6916_v25  ;;  %v5035_v47 = vadd.f32 %v4907_v33, %v4647_v31  ;;  %v13823_v23 = vadd.f32 %v5626_v26, %v5366_v42  ;;  %v5682_v17 = vmul.f32 %v15110_v3, %v13780_v5  ;;  %v8229_v26 = vpop.f32.mrb[78].mxu0  ;;  %v7306_v42 = vld [vmem:[%s14942_s6 + $0x190] sm:$0xff] }
 0x39e   :  { %v7177_v16 = vmax.f32 %v7049_v62, 0.0  ;;  %v7432_v18 = vadd.f32 %v7304_v55, %v7176_v7  ;;  %v5422_v30 = vadd.f32 %v5294_v9, %v5034_v41  ;;  %v5807_v6 = vadd.f32 %v13474_v43, %v13586_v51  ;;  %3572 = vst [vmem:[#allocation4 + $0x380] sm:$0xff] %v8229_v26  ;;  %v3745_v41 = vld [vmem:[#allocation4 + $0x577] sm:$0xff] }
 0x39f   :  { %v7178_v50 = vmax.f32 %v7050_v34, 0.0  ;;  %v13831_v27 = vadd.f32 %v13631_v58, %v5035_v47  ;;  %v13842_v31 = vadd.f32 %v5681_v45, %v13677_v22  ;;  %v6067_v58 = vmul.f32 %v15186_v48, %v13763_v4  ;;  %v8537_v47 = vld [vmem:[#allocation4 + $0x2d8] sm:$0xff] }
 0x3a0   :  { %v7433_v54 = vadd.f32 %v7305_v38, %v7177_v16  ;;  %7560 = vst [vmem:[%s14942_s6 + $0x180] sm:$0xff] %v7432_v18  ;;  %v6068_v25 = vmul.f32 %v15186_v48, %v13765_v15  ;;  %v13848_v51 = vadd.f32 %v5682_v17, %v5422_v30  ;;  %v6455_v52 = vmul.f32 %v8534_v21, %v15190_v12  ;;  %v8535_v15 = vld [vmem:[#allocation4 + $0x2e8] sm:$0xff]  ;;  %v8285_v18 = vpop.f32.mrb[86].mxu1 }
 0x3a1   :  { %v7434_v43 = vadd.f32 %v7306_v42, %v7178_v50  ;;  %v6842_v33 = vmul.f32 %v13354_v20, %v4389_v60  ;;  %v6195_v22 = vadd.f32 %v6067_v58, %v13603_v35  ;;  %v6843_v4 = vmul.f32 %v13354_v20, %v13780_v5  ;;  %v8536_v35 = vld [vmem:[#allocation4 + $0x588] sm:$0xff]  ;;  %3628 = vst [vmem:[#allocation4 + $0x620] sm:$0xff] %v8285_v18 }
 0x3a2   :  { %7561 = vst [vmem:[%s14942_s6 + $0x188] sm:$0xff] %v7433_v54  ;;  %v6196_v40 = vadd.f32 %v6068_v25, %v5807_v6  ;;  %v13859_v62 = vmul.f32 %v8535_v15, %v15098_v63  ;;  %v13866_v21 = vmul.f32 %v8535_v15, %v15100_v49  ;;  %v13869_v7 = vmul.f32 %v8535_v15, %v15190_v12 }
 0x3a3   :  { %7562 = vst [vmem:[%s14942_s6 + $0x190] sm:$0xff] %v7434_v43  ;;  %v6970_v60 = vadd.f32 %v6842_v33, %v13695_v0  ;;  %v13872_v9 = vmul.f32 %v8536_v35, %v15098_v63  ;;  %v6583_v5 = vadd.f32 %v6455_v52, %v6195_v22  ;;  %v13876_v34 = vmul.f32 %v8536_v35, %v15100_v49  ;;  %v8538_v43 = vld [vmem:[#allocation4 + $0x578] sm:$0xff]  ;;  %v3692_v33 = vld [vmem:[#allocation4 + $0x2ef] sm:$0xff] }
 0x3a4   :  { %v6584_v1 = vadd.f32 %v13653_v2, %v6196_v40  ;;  %v3821_v55 = vmul.f32 %v15102_v59, %v3689_v8  ;;  %v4081_v45 = vmul.f32 %v8537_v47, %v15098_v63  ;;  %v4853_v36 = vmul.f32 %v15103_v44, %v3689_v8 }
 0x3a5   :  { %v7104_v0 = vadd.f32 %v13398_v28, %v6970_v60  ;;  %v5241_v16 = vmul.f32 %v8537_v47, %v15100_v49  ;;  %v6971_v17 = vadd.f32 %v6843_v4, %v6583_v5  ;;  %v6014_v2 = vmul.f32 %v15186_v48, %v3689_v8  ;;  %v3183_v8 = vpop.f32.mrb[79].mxu0 }
 0x3a6   :  { %v6972_v50 = vadd.f32 %v13728_v61, %v6584_v1  ;;  %v6402_v38 = vmul.f32 %v8537_v47, %v15190_v12  ;;  %v13886_v6 = vadd.f32 %v4081_v45, %v3821_v55  ;;  %v4981_v26 = vadd.f32 %v4853_v36, %v13744_v10  ;;  %v7360_v61 = vld [vmem:[%s14942_s6 + $0x340] sm:$0xff]  ;;  %3570 = vst [vmem:[#allocation4 + $0x370] sm:$0xff] %v3183_v8  ;;  %v7361_v55 = vld [vmem:[%s14942_s6 + $0x348] sm:$0xff] }
 0x3a7   :  { %v7232_v30 = vmax.f32 %v7104_v0, 0.0  ;;  %v3877_v42 = vmul.f32 %v15102_v59, %v3745_v41  ;;  %v7105_v54 = vadd.f32 %v13398_v28, %v6971_v17  ;;  %v6142_v25 = vadd.f32 %v6014_v2, %v13774_v11  ;;  %v4339_v11 = vld [vmem:[#allocation4 + $0x2e9] sm:$0xff] }
 0x3a8   :  { %v7106_v58 = vadd.f32 %v13398_v28, %v6972_v50  ;;  %v4137_v52 = vmul.f32 %v8538_v43, %v15098_v63  ;;  %v13898_v10 = vmul.f32 %v8536_v35, %v15190_v12  ;;  %v13900_v40 = vadd.f32 %v5241_v16, %v4981_v26  ;;  %v7362_v35 = vld [vmem:[%s14942_s6 + $0x350] sm:$0xff]  ;;  %v4340_v16 = vld [vmem:[#allocation4 + $0x2f1] sm:$0xff] }
 0x3a9   :  { %v7488_v22 = vadd.f32 %v7360_v61, %v7232_v30  ;;  %v4909_v4 = vmul.f32 %v15103_v44, %v3745_v41  ;;  %v7233_v15 = vmax.f32 %v7105_v54, 0.0  ;;  %v13903_v5 = vadd.f32 %v6402_v38, %v6142_v25  ;;  %v8539_v2 = vld [vmem:[#allocation4 + $0x2f0] sm:$0xff] }
 0x3aa   :  { %v7234_v60 = vmax.f32 %v7106_v58, 0.0  ;;  %v13905_v1 = vadd.f32 %v4137_v52, %v3877_v42  ;;  %v5297_v47 = vmul.f32 %v8538_v43, %v15100_v49  ;;  %v6070_v45 = vmul.f32 %v15186_v48, %v3745_v41  ;;  %v3748_v41 = vld [vmem:[#allocation4 + $0x58f] sm:$0xff] }
 0x3ab   :  { %7616 = vst [vmem:[%s14942_s6 + $0x340] sm:$0xff] %v7488_v22  ;;  %v5037_v0 = vadd.f32 %v4909_v4, %v13807_v19  ;;  %v3824_v36 = vmul.f32 %v15102_v59, %v3692_v33  ;;  %v7489_v18 = vadd.f32 %v7361_v55, %v7233_v15  ;;  %v6458_v50 = vmul.f32 %v8538_v43, %v15190_v12  ;;  %v4395_v22 = vld [vmem:[#allocation4 + $0x589] sm:$0xff]  ;;  %v4396_v4 = vld [vmem:[#allocation4 + $0x591] sm:$0xff] }
 0x3ac   :  { %v7490_v17 = vadd.f32 %v7362_v35, %v7234_v60  ;;  %v4084_v38 = vmul.f32 %v8539_v2, %v15098_v63  ;;  %v6198_v26 = vadd.f32 %v6070_v45, %v13842_v31  ;;  %v13926_v19 = vmul.f32 %v15108_v46, %v4339_v11  ;;  %v8540_v45 = vld [vmem:[#allocation4 + $0x590] sm:$0xff] }
 0x3ad   :  { %v13922_v30 = vadd.f32 %v5297_v47, %v5037_v0  ;;  %v4856_v42 = vmul.f32 %v15103_v44, %v3692_v33  ;;  %7617 = vst [vmem:[%s14942_s6 + $0x348] sm:$0xff] %v7489_v18  ;;  %v4472_v58 = vmul.f32 %v15108_v46, %v4340_v16  ;;  %v5244_v61 = vmul.f32 %v8539_v2, %v15100_v49 }
 0x3ae   :  { %7618 = vst [vmem:[%s14942_s6 + $0x350] sm:$0xff] %v7490_v17  ;;  %v4212_v54 = vadd.f32 %v4084_v38, %v3824_v36  ;;  %v13938_v31 = vmul.f32 %v15110_v3, %v4339_v11  ;;  %v13940_v25 = vadd.f32 %v6458_v50, %v6198_v26  ;;  %v5632_v52 = vmul.f32 %v15110_v3, %v4340_v16  ;;  %v3690_v50 = vld [vmem:[#allocation4 + $0x2df] sm:$0xff] }
 0x3af   :  { %v4984_v43 = vadd.f32 %v4856_v42, %v13700_v39  ;;  %v6017_v8 = vmul.f32 %v15186_v48, %v3692_v33  ;;  %v6405_v60 = vmul.f32 %v8539_v2, %v15190_v12  ;;  %v13949_v55 = vmul.f32 %v13354_v20, %v4339_v11 }
 0x3b0   :  { %v13945_v15 = vadd.f32 %v4472_v58, %v4212_v54  ;;  %v3880_v35 = vmul.f32 %v15102_v59, %v3748_v41  ;;  %v6793_v39 = vmul.f32 %v13354_v20, %v4340_v16  ;;  %v4140_v36 = vmul.f32 %v8540_v45, %v15098_v63  ;;  %v3691_v20 = vld [vmem:[#allocation4 + $0x2e7] sm:$0xff] }
 0x3b1   :  { %v5372_v0 = vadd.f32 %v5244_v61, %v4984_v43  ;;  %v6145_v47 = vadd.f32 %v6017_v8, %v13716_v32  ;;  %v13956_v33 = vmul.f32 %v15108_v46, %v4395_v22  ;;  %v4528_v18 = vmul.f32 %v15108_v46, %v4396_v4  ;;  %v4337_v61 = vld [vmem:[#allocation4 + $0x2d9] sm:$0xff] }
 0x3b2   :  { %v4912_v17 = vmul.f32 %v15103_v44, %v3748_v41  ;;  %v5300_v11 = vmul.f32 %v8540_v45, %v15100_v49  ;;  %v4268_v26 = vadd.f32 %v4140_v36, %v3880_v35  ;;  %v13964_v32 = vmul.f32 %v15110_v3, %v4395_v22  ;;  %v4338_v35 = vld [vmem:[#allocation4 + $0x2e1] sm:$0xff] }
 0x3b3   :  { %v13961_v2 = vadd.f32 %v5632_v52, %v5372_v0  ;;  %v6533_v38 = vadd.f32 %v6405_v60, %v6145_v47  ;;  %v5688_v42 = vmul.f32 %v15110_v3, %v4396_v4  ;;  %v6073_v54 = vmul.f32 %v15186_v48, %v3748_v41  ;;  %v13975_v52 = vld [vmem:[%s14938_s4 + $0x28] ss:$0 sm:$0xff] }
 0x3b4   :  { %15275 = vst [vmem:[#allocation10_spill] sm:$0xff] %v13964_v32  ;;  %v5040_v16 = vadd.f32 %v4912_v17, %v13725_v56  ;;  %v6461_v58 = vmul.f32 %v8540_v45, %v15190_v12  ;;  %v13970_v8 = vadd.f32 %v4528_v18, %v4268_v26  ;;  %v13978_v60 = vmul.f32 %v13975_v52, %v4395_v22  ;;  %v8542_v45 = vld [vmem:[#allocation4 + $0x2e0] sm:$0xff]  ;;  %v15276_v22 = vld [vmem:[#allocation52_spill] sm:$0xff] }
 0x3b5   :  { %v6921_v43 = vadd.f32 %v6793_v39, %v6533_v38  ;;  %v3822_v56 = vmul.f32 %v15102_v59, %v3690_v50  ;;  %v6201_v41 = vadd.f32 %v6073_v54, %v13751_v29  ;;  %v3823_v47 = vmul.f32 %v15102_v59, %v3691_v20 }
 0x3b6   :  { %v5428_v0 = vadd.f32 %v5300_v11, %v5040_v16  ;;  %v4082_v39 = vmul.f32 %v8542_v45, %v15098_v63  ;;  %v6849_v18 = vmul.f32 %v13975_v52, %v4396_v4  ;;  %v4469_v17 = vmul.f32 %v15108_v46, %v4337_v61 }
 0x3b7   :  { %v7055_v36 = vadd.f32 %v13398_v28, %v6921_v43  ;;  %v4595_v38 = vadd.f32 %v15276_v22, %v13740_v24  ;;  %v6589_v26 = vadd.f32 %v6461_v58, %v6201_v41  ;;  %v13990_v11 = vadd.f32 %v13859_v62, %v3823_v47  ;;  %v7311_v43 = vld [vmem:[%s14942_s6 + $0x1b8] sm:$0xff]  ;;  %v3746_v22 = vld [vmem:[#allocation4 + $0x57f] sm:$0xff] }
 0x3b8   :  { %v4210_v32 = vadd.f32 %v4082_v39, %v3822_v56  ;;  %v4470_v29 = vmul.f32 %v15108_v46, %v4338_v35  ;;  %v13994_v54 = vadd.f32 %v4469_v17, %v13886_v6  ;;  %v4854_v28 = vmul.f32 %v15103_v44, %v3690_v50 }
 0x3b9   :  { %v7183_v16 = vmax.f32 %v7055_v36, 0.0  ;;  %v4855_v4 = vmul.f32 %v15103_v44, %v3691_v20  ;;  %v14001_v24 = vadd.f32 %v5688_v42, %v5428_v0  ;;  %v6977_v58 = vadd.f32 %v6849_v18, %v6589_v26  ;;  %v14011_v36 = vld [vmem:[%s14939_s5 + $0x2] ss:$0 sm:$0xff]  ;;  %v3747_v26 = vld [vmem:[#allocation4 + $0x587] sm:$0xff] }
 0x3ba   :  { %v14003_v56 = vadd.f32 %v4470_v29, %v4210_v32  ;;  %v5242_v62 = vmul.f32 %v8542_v45, %v15100_v49  ;;  %v4982_v47 = vadd.f32 %v4854_v28, %v13753_v37  ;;  %v5629_v39 = vmul.f32 %v15110_v3, %v4337_v61  ;;  %v15277_v32 = vld [vmem:[#allocation15_spill] sm:$0xff]  ;;  %v3407_v28 = vpop.f32.mrb[87].mxu1 }
 0x3bb   :  { %v7439_v41 = vadd.f32 %v7311_v43, %v7183_v16  ;;  %v4983_v6 = vadd.f32 %v4855_v4, %v4595_v38  ;;  %v7111_v17 = vadd.f32 %v14011_v36, %v6977_v58  ;;  %v5630_v42 = vmul.f32 %v15110_v3, %v4338_v35  ;;  %v4393_v58 = vld [vmem:[#allocation4 + $0x579] sm:$0xff]  ;;  %3626 = vst [vmem:[#allocation4 + $0x610] sm:$0xff] %v3407_v28 }
 0x3bc   :  { %v5755_v0 = vadd.f32 %v15277_v32, %v13771_v57  ;;  %v6015_v18 = vmul.f32 %v15186_v48, %v3690_v50  ;;  %v5370_v37 = vadd.f32 %v5242_v62, %v4982_v47  ;;  %v14025_v29 = vadd.f32 %v5629_v39, %v13900_v40  ;;  %v4394_v32 = vld [vmem:[#allocation4 + $0x581] sm:$0xff] }
 0x3bd   :  { %7567 = vst [vmem:[%s14942_s6 + $0x1b8] sm:$0xff] %v7439_v41  ;;  %v14022_v38 = vadd.f32 %v13866_v21, %v4983_v6  ;;  %v6016_v16 = vmul.f32 %v15186_v48, %v3691_v20  ;;  %v7239_v4 = vmax.f32 %v7111_v17, 0.0  ;;  %v6403_v50 = vmul.f32 %v8542_v45, %v15190_v12  ;;  %v7367_v21 = vld [vmem:[%s14942_s6 + $0x378] sm:$0xff]  ;;  %v8544_v6 = vld [vmem:[#allocation4 + $0x580] sm:$0xff] }
 0x3be   :  { %v6143_v57 = vadd.f32 %v6015_v18, %v13823_v23  ;;  %v6790_v43 = vmul.f32 %v13975_v52, %v4337_v61  ;;  %v6791_v40 = vmul.f32 %v13975_v52, %v4338_v35  ;;  %v3878_v20 = vmul.f32 %v15102_v59, %v3746_v22  ;;  %v15278_v28 = vld [vmem:[#allocation21_spill] sm:$0xff] }
 0x3bf   :  { %v6144_v62 = vadd.f32 %v6016_v16, %v5755_v0  ;;  %v3879_v41 = vmul.f32 %v15102_v59, %v3747_v26  ;;  %v7495_v47 = vadd.f32 %v7367_v21, %v7239_v4  ;;  %v4138_v61 = vmul.f32 %v8544_v6, %v15098_v63 }
 0x3c0   :  { %v6531_v23 = vadd.f32 %v6403_v50, %v6143_v57  ;;  %v6918_v45 = vadd.f32 %v6790_v43, %v13903_v5  ;;  %v4525_v0 = vmul.f32 %v15108_v46, %v4393_v58  ;;  %v4526_v35 = vmul.f32 %v15108_v46, %v4394_v32 }
 0x3c1   :  { %v6532_v39 = vadd.f32 %v13869_v7, %v6144_v62  ;;  %v14041_v17 = vadd.f32 %v13872_v9, %v3879_v41  ;;  %7623 = vst [vmem:[%s14942_s6 + $0x378] sm:$0xff] %v7495_v47  ;;  %v4266_v5 = vadd.f32 %v4138_v61, %v3878_v20  ;;  %v4651_v4 = vadd.f32 %v15278_v28, %v13794_v53  ;;  %v7308_v53 = vld [vmem:[%s14942_s6 + $0x1a0] sm:$0xff] }
 0x3c2   :  { %v6919_v18 = vadd.f32 %v6791_v40, %v6531_v23  ;;  %v7052_v16 = vadd.f32 %v14011_v36, %v6918_v45  ;;  %v14053_v9 = vadd.f32 %v4525_v0, %v13905_v1  ;;  %v4910_v57 = vmul.f32 %v15103_v44, %v3746_v22  ;;  %v7309_v0 = vld [vmem:[%s14942_s6 + $0x1a8] sm:$0xff] }
 0x3c3   :  { %v6920_v7 = vadd.f32 %v13949_v55, %v6532_v39  ;;  %v4911_v50 = vmul.f32 %v15103_v44, %v3747_v26  ;;  %v14058_v62 = vadd.f32 %v4526_v35, %v4266_v5  ;;  %v5298_v40 = vmul.f32 %v8544_v6, %v15100_v49 }
 0x3c4   :  { %v7053_v43 = vadd.f32 %v14011_v36, %v6919_v18  ;;  %v7180_v21 = vmax.f32 %v7052_v16, 0.0  ;;  %v5038_v1 = vadd.f32 %v4910_v57, %v13814_v14  ;;  %v5685_v41 = vmul.f32 %v15110_v3, %v4393_v58 }
 0x3c5   :  { %v7054_v20 = vadd.f32 %v14011_v36, %v6920_v7  ;;  %v5039_v55 = vadd.f32 %v4911_v50, %v4651_v4  ;;  %v14067_v47 = vadd.f32 %v5630_v42, %v5370_v37  ;;  %v5686_v61 = vmul.f32 %v15110_v3, %v4394_v32  ;;  %v7310_v42 = vld [vmem:[%s14942_s6 + $0x1b0] sm:$0xff] }
 0x3c6   :  { %v7181_v23 = vmax.f32 %v7053_v43, 0.0  ;;  %v7436_v45 = vadd.f32 %v7308_v53, %v7180_v21  ;;  %v5426_v35 = vadd.f32 %v5298_v40, %v5038_v1  ;;  %v5811_v14 = vadd.f32 %v13719_v13, %v13831_v27  ;;  %v3693_v7 = vld [vmem:[#allocation4 + $0x307] sm:$0xff] }
 0x3c7   :  { %v7182_v39 = vmax.f32 %v7054_v20, 0.0  ;;  %v14074_v18 = vadd.f32 %v13876_v34, %v5039_v55  ;;  %v14085_v16 = vadd.f32 %v5685_v41, %v13922_v30  ;;  %v6071_v5 = vmul.f32 %v15186_v48, %v3746_v22  ;;  %v8545_v22 = vld [vmem:[#allocation4 + $0x318] sm:$0xff]  ;;  %v3749_v1 = vld [vmem:[#allocation4 + $0x5a7] sm:$0xff] }
 0x3c8   :  { %v7437_v37 = vadd.f32 %v7309_v0, %v7181_v23  ;;  %7564 = vst [vmem:[%s14942_s6 + $0x1a0] sm:$0xff] %v7436_v45  ;;  %v6072_v34 = vmul.f32 %v15186_v48, %v3747_v26  ;;  %v14089_v4 = vadd.f32 %v5686_v61, %v5426_v35  ;;  %v6459_v13 = vmul.f32 %v8544_v6, %v15190_v12  ;;  %v8547_v55 = vld [vmem:[#allocation4 + $0x308] sm:$0xff] }
 0x3c9   :  { %v7438_v28 = vadd.f32 %v7310_v42, %v7182_v39  ;;  %v6846_v27 = vmul.f32 %v13975_v52, %v4393_v58  ;;  %v6199_v57 = vadd.f32 %v6071_v5, %v13848_v51  ;;  %v6847_v50 = vmul.f32 %v13975_v52, %v4394_v32  ;;  %v8546_v51 = vld [vmem:[#allocation4 + $0x5b8] sm:$0xff] }
 0x3ca   :  { %7565 = vst [vmem:[%s14942_s6 + $0x1a8] sm:$0xff] %v7437_v37  ;;  %v6200_v30 = vadd.f32 %v6072_v34, %v5811_v14  ;;  %v14099_v26 = vmul.f32 %v8545_v22, %v15098_v63  ;;  %v14106_v6 = vmul.f32 %v8545_v22, %v15100_v49  ;;  %v14109_v43 = vmul.f32 %v8545_v22, %v15190_v12 }
 0x3cb   :  { %7566 = vst [vmem:[%s14942_s6 + $0x1b0] sm:$0xff] %v7438_v28  ;;  %v6974_v58 = vadd.f32 %v6846_v27, %v13940_v25  ;;  %v14112_v21 = vmul.f32 %v8546_v51, %v15098_v63  ;;  %v6587_v32 = vadd.f32 %v6459_v13, %v6199_v57  ;;  %v14116_v20 = vmul.f32 %v8546_v51, %v15100_v49  ;;  %v7364_v28 = vld [vmem:[%s14942_s6 + $0x360] sm:$0xff]  ;;  %v8548_v13 = vld [vmem:[#allocation4 + $0x5a8] sm:$0xff] }
 0x3cc   :  { %v6588_v40 = vadd.f32 %v13898_v10, %v6200_v30  ;;  %v3825_v53 = vmul.f32 %v15102_v59, %v3693_v7  ;;  %v4085_v41 = vmul.f32 %v8547_v55, %v15098_v63  ;;  %v4857_v23 = vmul.f32 %v15103_v44, %v3693_v7 }
 0x3cd   :  { %v7108_v25 = vadd.f32 %v14011_v36, %v6974_v58  ;;  %v5245_v45 = vmul.f32 %v8547_v55, %v15100_v49  ;;  %v6975_v61 = vadd.f32 %v6847_v50, %v6587_v32  ;;  %v6018_v10 = vmul.f32 %v15186_v48, %v3693_v7  ;;  %v3696_v7 = vld [vmem:[#allocation4 + $0x31f] sm:$0xff] }
 0x3ce   :  { %v6976_v39 = vadd.f32 %v13978_v60, %v6588_v40  ;;  %v6406_v0 = vmul.f32 %v8547_v55, %v15190_v12  ;;  %v14126_v14 = vadd.f32 %v4085_v41, %v3825_v53  ;;  %v4985_v42 = vadd.f32 %v4857_v23, %v13994_v54  ;;  %v4343_v53 = vld [vmem:[#allocation4 + $0x319] sm:$0xff] }
 0x3cf   :  { %v7236_v35 = vmax.f32 %v7108_v25, 0.0  ;;  %v3881_v37 = vmul.f32 %v15102_v59, %v3749_v1  ;;  %v7109_v5 = vadd.f32 %v14011_v36, %v6975_v61  ;;  %v6146_v60 = vadd.f32 %v6018_v10, %v14025_v29  ;;  %v7365_v29 = vld [vmem:[%s14942_s6 + $0x368] sm:$0xff] }
 0x3d0   :  { %v7110_v34 = vadd.f32 %v14011_v36, %v6976_v39  ;;  %v4141_v27 = vmul.f32 %v8548_v13, %v15098_v63  ;;  %v14138_v30 = vmul.f32 %v8546_v51, %v15190_v12  ;;  %v14140_v54 = vadd.f32 %v5245_v45, %v4985_v42  ;;  %v7366_v51 = vld [vmem:[%s14942_s6 + $0x370] sm:$0xff] }
 0x3d1   :  { %v7492_v57 = vadd.f32 %v7364_v28, %v7236_v35  ;;  %v4913_v50 = vmul.f32 %v15103_v44, %v3749_v1  ;;  %v7237_v22 = vmax.f32 %v7109_v5, 0.0  ;;  %v14143_v32 = vadd.f32 %v6406_v0, %v6146_v60  ;;  %v4344_v45 = vld [vmem:[#allocation4 + $0x321] sm:$0xff] }
 0x3d2   :  { %v7238_v58 = vmax.f32 %v7110_v34, 0.0  ;;  %v14145_v40 = vadd.f32 %v4141_v27, %v3881_v37  ;;  %v5301_v55 = vmul.f32 %v8548_v13, %v15100_v49  ;;  %v6074_v41 = vmul.f32 %v15186_v48, %v3749_v1  ;;  %v8549_v0 = vld [vmem:[#allocation4 + $0x320] sm:$0xff] }
 0x3d3   :  { %7620 = vst [vmem:[%s14942_s6 + $0x360] sm:$0xff] %v7492_v57  ;;  %v5041_v25 = vadd.f32 %v4913_v50, %v14053_v9  ;;  %v3828_v23 = vmul.f32 %v15102_v59, %v3696_v7  ;;  %v7493_v61 = vadd.f32 %v7365_v29, %v7237_v22  ;;  %v6462_v10 = vmul.f32 %v8548_v13, %v15190_v12  ;;  %v3752_v1 = vld [vmem:[#allocation4 + $0x5bf] sm:$0xff] }
 0x3d4   :  { %v7494_v39 = vadd.f32 %v7366_v51, %v7238_v58  ;;  %v4088_v35 = vmul.f32 %v8549_v0, %v15098_v63  ;;  %v6202_v37 = vadd.f32 %v6074_v41, %v14085_v16  ;;  %v14166_v9 = vmul.f32 %v15108_v46, %v4343_v53  ;;  %v4399_v22 = vld [vmem:[#allocation4 + $0x5b9] sm:$0xff]  ;;  %v4400_v58 = vld [vmem:[#allocation4 + $0x5c1] sm:$0xff] }
 0x3d5   :  { %v14162_v42 = vadd.f32 %v5301_v55, %v5041_v25  ;;  %v4860_v5 = vmul.f32 %v15103_v44, %v3696_v7  ;;  %7621 = vst [vmem:[%s14942_s6 + $0x368] sm:$0xff] %v7493_v61  ;;  %v4476_v28 = vmul.f32 %v15108_v46, %v4344_v45  ;;  %v5248_v60 = vmul.f32 %v8549_v0, %v15100_v49  ;;  %v8550_v61 = vld [vmem:[#allocation4 + $0x5c0] sm:$0xff] }
 0x3d6   :  { %15279 = vst [vmem:[#allocation9_spill] sm:$0xff] %v14166_v9  ;;  %7622 = vst [vmem:[%s14942_s6 + $0x370] sm:$0xff] %v7494_v39  ;;  %v4216_v34 = vadd.f32 %v4088_v35, %v3828_v23  ;;  %v14178_v16 = vmul.f32 %v15110_v3, %v4343_v53  ;;  %v14180_v13 = vadd.f32 %v6462_v10, %v6202_v37  ;;  %v3694_v35 = vld [vmem:[#allocation4 + $0x30f] sm:$0xff] }
 0x3d7   :  { %v4988_v27 = vadd.f32 %v4860_v5, %v13945_v15  ;;  %v5636_v57 = vmul.f32 %v15110_v3, %v4344_v45  ;;  %v6021_v50 = vmul.f32 %v15186_v48, %v3696_v7  ;;  %v6409_v51 = vmul.f32 %v8549_v0, %v15190_v12 }
 0x3d8   :  { %15280 = vst [vmem:[#allocation20_spill] sm:$0xff] %v14178_v16  ;;  %v14185_v29 = vadd.f32 %v4476_v28, %v4216_v34  ;;  %v14189_v25 = vmul.f32 %v13975_v52, %v4343_v53  ;;  %v3884_v55 = vmul.f32 %v15102_v59, %v3752_v1  ;;  %v6797_v15 = vmul.f32 %v13975_v52, %v4344_v45  ;;  %v3695_v45 = vld [vmem:[#allocation4 + $0x317] sm:$0xff] }
 0x3d9   :  { %v5376_v41 = vadd.f32 %v5248_v60, %v4988_v27  ;;  %v6149_v23 = vadd.f32 %v6021_v50, %v13961_v2  ;;  %v4144_v39 = vmul.f32 %v8550_v61, %v15098_v63  ;;  %v14196_v7 = vmul.f32 %v15108_v46, %v4399_v22 }
 0x3da   :  { %v4532_v10 = vmul.f32 %v15108_v46, %v4400_v58  ;;  %v4916_v0 = vmul.f32 %v15103_v44, %v3752_v1  ;;  %v5304_v53 = vmul.f32 %v8550_v61, %v15100_v49  ;;  %v14204_v2 = vmul.f32 %v15110_v3, %v4399_v22 }
 0x3db   :  { %15281 = vst [vmem:[#allocation48_spill] sm:$0xff] %v14196_v7  ;;  %v14201_v37 = vadd.f32 %v5636_v57, %v5376_v41  ;;  %v6537_v5 = vadd.f32 %v6409_v51, %v6149_v23  ;;  %v4272_v34 = vadd.f32 %v4144_v39, %v3884_v55  ;;  %v5692_v60 = vmul.f32 %v15110_v3, %v4400_v58  ;;  %v4341_v7 = vld [vmem:[#allocation4 + $0x309] sm:$0xff]  ;;  %v4342_v55 = vld [vmem:[#allocation4 + $0x311] sm:$0xff] }
 0x3dc   :  { %v5044_v28 = vadd.f32 %v4916_v0, %v13970_v8  ;;  %v6077_v27 = vmul.f32 %v15186_v48, %v3752_v1  ;;  %v6465_v50 = vmul.f32 %v8550_v61, %v15190_v12  ;;  %v14213_v57 = vmul.f32 %v13975_v52, %v4399_v22  ;;  %v8551_v39 = vld [vmem:[#allocation4 + $0x310] sm:$0xff] }
 0x3dd   :  { %v6925_v16 = vadd.f32 %v6797_v15, %v6537_v5  ;;  %v14210_v9 = vadd.f32 %v4532_v10, %v4272_v34  ;;  %v3826_v51 = vmul.f32 %v15102_v59, %v3694_v35  ;;  %v3827_v8 = vmul.f32 %v15102_v59, %v3695_v45 }
 0x3de   :  { %v5432_v41 = vadd.f32 %v5304_v53, %v5044_v28  ;;  %v6205_v23 = vadd.f32 %v6077_v27, %v14001_v24  ;;  %v4086_v1 = vmul.f32 %v8551_v39, %v15098_v63  ;;  %v6853_v15 = vmul.f32 %v13975_v52, %v4400_v58  ;;  %v7315_v27 = vld [vmem:[%s14942_s6 + $0x1d8] sm:$0xff] }
 0x3df   :  { %v7059_v61 = vadd.f32 %v14011_v36, %v6925_v16  ;;  %v4473_v10 = vmul.f32 %v15108_v46, %v4341_v7  ;;  %v4599_v22 = vadd.f32 %v13926_v19, %v13990_v11  ;;  %v14225_v53 = vadd.f32 %v14099_v26, %v3827_v8 }
 0x3e0   :  { %v6593_v0 = vadd.f32 %v6465_v50, %v6205_v23  ;;  %v4214_v5 = vadd.f32 %v4086_v1, %v3826_v51  ;;  %v4474_v24 = vmul.f32 %v15108_v46, %v4342_v55  ;;  %v4858_v16 = vmul.f32 %v15103_v44, %v3694_v35 }
 0x3e1   :  { %v7187_v34 = vmax.f32 %v7059_v61, 0.0  ;;  %v14229_v28 = vadd.f32 %v4473_v10, %v14126_v14  ;;  %v4859_v58 = vmul.f32 %v15103_v44, %v3695_v45  ;;  %v14236_v19 = vadd.f32 %v5692_v60, %v5432_v41  ;;  %v3750_v41 = vld [vmem:[#allocation4 + $0x5af] sm:$0xff] }
 0x3e2   :  { %v6981_v11 = vadd.f32 %v6853_v15, %v6593_v0  ;;  %v14238_v50 = vadd.f32 %v4474_v24, %v4214_v5  ;;  %v5246_v26 = vmul.f32 %v8551_v39, %v15100_v49  ;;  %v4986_v23 = vadd.f32 %v4858_v16, %v14003_v56  ;;  %v3751_v15 = vld [vmem:[#allocation4 + $0x5b7] sm:$0xff] }
 0x3e3   :  { %v7443_v51 = vadd.f32 %v7315_v27, %v7187_v34  ;;  %v4987_v14 = vadd.f32 %v4859_v58, %v4599_v22  ;;  %v5633_v8 = vmul.f32 %v15110_v3, %v4341_v7  ;;  %v5634_v61 = vmul.f32 %v15110_v3, %v4342_v55  ;;  %v4397_v34 = vld [vmem:[#allocation4 + $0x5a9] sm:$0xff]  ;;  %v4398_v16 = vld [vmem:[#allocation4 + $0x5b1] sm:$0xff] }
 0x3e4   :  { %v7115_v1 = vadd.f32 %v14011_v36, %v6981_v11  ;;  %v5759_v10 = vadd.f32 %v13938_v31, %v14022_v38  ;;  %v6019_v60 = vmul.f32 %v15186_v48, %v3694_v35  ;;  %v5374_v0 = vadd.f32 %v5246_v26, %v4986_v23  ;;  %v7371_v58 = vld [vmem:[%s14942_s6 + $0x398] sm:$0xff] }
 0x3e5   :  { %7571 = vst [vmem:[%s14942_s6 + $0x1d8] sm:$0xff] %v7443_v51  ;;  %v14252_v56 = vadd.f32 %v14106_v6, %v4987_v14  ;;  %v14255_v22 = vadd.f32 %v5633_v8, %v14140_v54  ;;  %v6020_v5 = vmul.f32 %v15186_v48, %v3695_v45  ;;  %v6407_v38 = vmul.f32 %v8551_v39, %v15190_v12  ;;  %v8552_v39 = vld [vmem:[#allocation4 + $0x5b0] sm:$0xff] }
 0x3e6   :  { %v7243_v24 = vmax.f32 %v7115_v1, 0.0  ;;  %v6147_v31 = vadd.f32 %v6019_v60, %v14067_v47  ;;  %v6794_v35 = vmul.f32 %v13975_v52, %v4341_v7  ;;  %v6795_v27 = vmul.f32 %v13975_v52, %v4342_v55 }
 0x3e7   :  { %v6148_v6 = vadd.f32 %v6020_v5, %v5759_v10  ;;  %v3882_v54 = vmul.f32 %v15102_v59, %v3750_v41  ;;  %v3883_v45 = vmul.f32 %v15102_v59, %v3751_v15  ;;  %v4142_v7 = vmul.f32 %v8552_v39, %v15098_v63 }
 0x3e8   :  { %v7499_v11 = vadd.f32 %v7371_v58, %v7243_v24  ;;  %v6535_v26 = vadd.f32 %v6407_v38, %v6147_v31  ;;  %v6922_v47 = vadd.f32 %v6794_v35, %v14143_v32  ;;  %v4529_v14 = vmul.f32 %v15108_v46, %v4397_v34 }
 0x3e9   :  { %v6536_v51 = vadd.f32 %v14109_v43, %v6148_v6  ;;  %v14271_v23 = vadd.f32 %v14112_v21, %v3883_v45  ;;  %v4530_v55 = vmul.f32 %v15108_v46, %v4398_v16  ;;  %v4270_v32 = vadd.f32 %v4142_v7, %v3882_v54 }
 0x3ea   :  { %7627 = vst [vmem:[%s14942_s6 + $0x398] sm:$0xff] %v7499_v11  ;;  %v6923_v8 = vadd.f32 %v6795_v27, %v6535_v26  ;;  %v7056_v1 = vadd.f32 %v14011_v36, %v6922_v47  ;;  %v4655_v10 = vadd.f32 %v13956_v33, %v14041_v17  ;;  %v14283_v21 = vadd.f32 %v4529_v14, %v14145_v40  ;;  %v7312_v33 = vld [vmem:[%s14942_s6 + $0x1c0] sm:$0xff]  ;;  %v7313_v26 = vld [vmem:[%s14942_s6 + $0x1c8] sm:$0xff] }
 0x3eb   :  { %v6924_v43 = vadd.f32 %v14189_v25, %v6536_v51  ;;  %v4914_v60 = vmul.f32 %v15103_v44, %v3750_v41  ;;  %v4915_v5 = vmul.f32 %v15103_v44, %v3751_v15  ;;  %v14288_v38 = vadd.f32 %v4530_v55, %v4270_v32 }
 0x3ec   :  { %v7057_v24 = vadd.f32 %v14011_v36, %v6923_v8  ;;  %v7184_v31 = vmax.f32 %v7056_v1, 0.0  ;;  %v5302_v35 = vmul.f32 %v8552_v39, %v15100_v49  ;;  %v5689_v25 = vmul.f32 %v15110_v3, %v4397_v34 }
 0x3ed   :  { %v7058_v58 = vadd.f32 %v14011_v36, %v6924_v43  ;;  %v5042_v17 = vadd.f32 %v4914_v60, %v14058_v62  ;;  %v5043_v40 = vadd.f32 %v4915_v5, %v4655_v10  ;;  %v14297_v6 = vadd.f32 %v5634_v61, %v5374_v0  ;;  %v15282_v62 = vld [vmem:[#allocation10_spill] sm:$0xff]  ;;  %v7314_v61 = vld [vmem:[%s14942_s6 + $0x1d0] sm:$0xff]  ;;  %v3697_v10 = vld [vmem:[#allocation4 + $0x337] sm:$0xff] }
 0x3ee   :  { %v7185_v27 = vmax.f32 %v7057_v24, 0.0  ;;  %v7440_v54 = vadd.f32 %v7312_v33, %v7184_v31  ;;  %v5690_v45 = vmul.f32 %v15110_v3, %v4398_v16  ;;  %v5815_v51 = vadd.f32 %v15282_v62, %v14074_v18  ;;  %v3753_v33 = vld [vmem:[#allocation4 + $0x5d7] sm:$0xff] }
 0x3ef   :  { %v7186_v11 = vmax.f32 %v7058_v58, 0.0  ;;  %v5430_v47 = vadd.f32 %v5302_v35, %v5042_v17  ;;  %v14304_v7 = vadd.f32 %v14116_v20, %v5043_v40  ;;  %v14315_v14 = vadd.f32 %v5689_v25, %v14162_v42  ;;  %v8555_v40 = vld [vmem:[#allocation4 + $0x338] sm:$0xff] }
 0x3f0   :  { %v7441_v0 = vadd.f32 %v7313_v26, %v7185_v27  ;;  %7568 = vst [vmem:[%s14942_s6 + $0x1c0] sm:$0xff] %v7440_v54  ;;  %v6075_v55 = vmul.f32 %v15186_v48, %v3750_v41  ;;  %v6076_v20 = vmul.f32 %v15186_v48, %v3751_v15  ;;  %v6463_v18 = vmul.f32 %v8552_v39, %v15190_v12  ;;  %v8553_v41 = vld [vmem:[#allocation4 + $0x348] sm:$0xff] }
 0x3f1   :  { %v7442_v8 = vadd.f32 %v7314_v61, %v7186_v11  ;;  %v14319_v1 = vadd.f32 %v5690_v45, %v5430_v47  ;;  %v6850_v32 = vmul.f32 %v13975_v52, %v4397_v34  ;;  %v6851_v60 = vmul.f32 %v13975_v52, %v4398_v16 }
 0x3f2   :  { %7569 = vst [vmem:[%s14942_s6 + $0x1c8] sm:$0xff] %v7441_v0  ;;  %v6203_v43 = vadd.f32 %v6075_v55, %v14089_v4  ;;  %v6204_v42 = vadd.f32 %v6076_v20, %v5815_v51  ;;  %v14329_v15 = vmul.f32 %v8553_v41, %v15098_v63  ;;  %v14336_v39 = vmul.f32 %v8553_v41, %v15100_v49  ;;  %v8554_v4 = vld [vmem:[#allocation4 + $0x5e8] sm:$0xff]  ;;  %v7368_v55 = vld [vmem:[%s14942_s6 + $0x380] sm:$0xff] }
 0x3f3   :  { %7570 = vst [vmem:[%s14942_s6 + $0x1d0] sm:$0xff] %v7442_v8  ;;  %v6978_v34 = vadd.f32 %v6850_v32, %v14180_v13  ;;  %v14339_v5 = vmul.f32 %v8553_v41, %v15190_v12  ;;  %v14342_v24 = vmul.f32 %v8554_v4, %v15098_v63  ;;  %v14346_v35 = vmul.f32 %v8554_v4, %v15100_v49  ;;  %v3700_v8 = vld [vmem:[#allocation4 + $0x34f] sm:$0xff] }
 0x3f4   :  { %v6591_v16 = vadd.f32 %v6463_v18, %v6203_v43  ;;  %v6592_v31 = vadd.f32 %v14138_v30, %v6204_v42  ;;  %v3829_v58 = vmul.f32 %v15102_v59, %v3697_v10  ;;  %v14351_v17 = vmul.f32 %v8554_v4, %v15190_v12  ;;  %v4347_v4 = vld [vmem:[#allocation4 + $0x349] sm:$0xff] }
 0x3f5   :  { %v7112_v13 = vadd.f32 %v14011_v36, %v6978_v34  ;;  %v4089_v25 = vmul.f32 %v8555_v40, %v15098_v63  ;;  %v4861_v27 = vmul.f32 %v15103_v44, %v3697_v10  ;;  %v5249_v30 = vmul.f32 %v8555_v40, %v15100_v49 }
 0x3f6   :  { %v6979_v54 = vadd.f32 %v6851_v60, %v6591_v16  ;;  %v6980_v45 = vadd.f32 %v14213_v57, %v6592_v31  ;;  %v6022_v11 = vmul.f32 %v15186_v48, %v3697_v10  ;;  %v6410_v62 = vmul.f32 %v8555_v40, %v15190_v12  ;;  %v7370_v16 = vld [vmem:[%s14942_s6 + $0x390] sm:$0xff] }
 0x3f7   :  { %v7240_v26 = vmax.f32 %v7112_v13, 0.0  ;;  %v4989_v47 = vadd.f32 %v4861_v27, %v14229_v28  ;;  %v3885_v51 = vmul.f32 %v15102_v59, %v3753_v33  ;;  %v14366_v57 = vadd.f32 %v4089_v25, %v3829_v58  ;;  %v8556_v28 = vld [vmem:[#allocation4 + $0x5d8] sm:$0xff] }
 0x3f8   :  { %v7113_v61 = vadd.f32 %v14011_v36, %v6979_v54  ;;  %v7114_v0 = vadd.f32 %v14011_v36, %v6980_v45  ;;  %v6150_v20 = vadd.f32 %v6022_v11, %v14255_v22  ;;  %v4145_v10 = vmul.f32 %v8556_v28, %v15098_v63  ;;  %v7369_v22 = vld [vmem:[%s14942_s6 + $0x388] sm:$0xff] }
 0x3f9   :  { %v7496_v18 = vadd.f32 %v7368_v55, %v7240_v26  ;;  %v14369_v32 = vadd.f32 %v5249_v30, %v4989_v47  ;;  %v4917_v43 = vmul.f32 %v15103_v44, %v3753_v33  ;;  %v5305_v34 = vmul.f32 %v8556_v28, %v15100_v49  ;;  %v4348_v25 = vld [vmem:[#allocation4 + $0x351] sm:$0xff] }
 0x3fa   :  { %v7241_v42 = vmax.f32 %v7113_v61, 0.0  ;;  %v7242_v60 = vmax.f32 %v7114_v0, 0.0  ;;  %v14373_v41 = vadd.f32 %v6410_v62, %v6150_v20  ;;  %v14385_v31 = vadd.f32 %v4145_v10, %v3885_v51  ;;  %v8557_v30 = vld [vmem:[#allocation4 + $0x350] sm:$0xff] }
 0x3fb   :  { %7624 = vst [vmem:[%s14942_s6 + $0x380] sm:$0xff] %v7496_v18  ;;  %v5045_v58 = vadd.f32 %v4917_v43, %v14283_v21  ;;  %v6078_v13 = vmul.f32 %v15186_v48, %v3753_v33  ;;  %v3832_v40 = vmul.f32 %v15102_v59, %v3700_v8  ;;  %v6466_v45 = vmul.f32 %v8556_v28, %v15190_v12  ;;  %v3756_v33 = vld [vmem:[#allocation4 + $0x5ef] sm:$0xff] }
 0x3fc   :  { %v7497_v27 = vadd.f32 %v7369_v22, %v7241_v42  ;;  %v7498_v54 = vadd.f32 %v7370_v16, %v7242_v60  ;;  %v4092_v11 = vmul.f32 %v8557_v30, %v15098_v63  ;;  %v14396_v62 = vmul.f32 %v15108_v46, %v4347_v4  ;;  %v4403_v10 = vld [vmem:[#allocation4 + $0x5e9] sm:$0xff]  ;;  %v4404_v43 = vld [vmem:[#allocation4 + $0x5f1] sm:$0xff] }
 0x3fd   :  { %v14392_v26 = vadd.f32 %v5305_v34, %v5045_v58  ;;  %v6206_v47 = vadd.f32 %v6078_v13, %v14315_v14  ;;  %v4864_v21 = vmul.f32 %v15103_v44, %v3700_v8  ;;  %v4480_v61 = vmul.f32 %v15108_v46, %v4348_v25  ;;  %v8558_v13 = vld [vmem:[#allocation4 + $0x5f0] sm:$0xff] }
 0x3fe   :  { %7625 = vst [vmem:[%s14942_s6 + $0x388] sm:$0xff] %v7497_v27  ;;  %7626 = vst [vmem:[%s14942_s6 + $0x390] sm:$0xff] %v7498_v54  ;;  %v4220_v51 = vadd.f32 %v4092_v11, %v3832_v40  ;;  %v5252_v0 = vmul.f32 %v8557_v30, %v15100_v49  ;;  %v14408_v14 = vmul.f32 %v15110_v3, %v4347_v4 }
 0x3ff   :  { %v14410_v55 = vadd.f32 %v6466_v45, %v6206_v47  ;;  %v4992_v20 = vadd.f32 %v4864_v21, %v14185_v29  ;;  %v5640_v18 = vmul.f32 %v15110_v3, %v4348_v25  ;;  %v6025_v28 = vmul.f32 %v15186_v48, %v3700_v8  ;;  %v3698_v45 = vld [vmem:[#allocation4 + $0x33f] sm:$0xff] }
 0x400   :  { %15283 = vst [vmem:[#allocation17_spill] sm:$0xff] %v14408_v14  ;;  %v14415_v42 = vadd.f32 %v4480_v61, %v4220_v51  ;;  %v6413_v60 = vmul.f32 %v8557_v30, %v15190_v12  ;;  %v14419_v34 = vmul.f32 %v13975_v52, %v4347_v4  ;;  %v3888_v22 = vmul.f32 %v15102_v59, %v3756_v33 }
 0x401   :  { %v5380_v16 = vadd.f32 %v5252_v0, %v4992_v20  ;;  %v6153_v58 = vadd.f32 %v6025_v28, %v14201_v37  ;;  %v6801_v29 = vmul.f32 %v13975_v52, %v4348_v25  ;;  %v4148_v40 = vmul.f32 %v8558_v13, %v15098_v63  ;;  %v3699_v25 = vld [vmem:[#allocation4 + $0x347] sm:$0xff]  ;;  %v4345_v20 = vld [vmem:[#allocation4 + $0x339] sm:$0xff] }
 0x402   :  { %v14426_v8 = vmul.f32 %v15108_v46, %v4403_v10  ;;  %v4536_v27 = vmul.f32 %v15108_v46, %v4404_v43  ;;  %v4920_v54 = vmul.f32 %v15103_v44, %v3756_v33  ;;  %v5308_v4 = vmul.f32 %v8558_v13, %v15100_v49 }
 0x403   :  { %v14431_v30 = vadd.f32 %v5640_v18, %v5380_v16  ;;  %v6541_v11 = vadd.f32 %v6413_v60, %v6153_v58  ;;  %v4276_v47 = vadd.f32 %v4148_v40, %v3888_v22  ;;  %v14434_v37 = vmul.f32 %v15110_v3, %v4403_v10  ;;  %v4346_v22 = vld [vmem:[#allocation4 + $0x341] sm:$0xff] }
 0x404   :  { %15284 = vst [vmem:[#allocation7_spill] sm:$0xff] %v14426_v8  ;;  %v5048_v21 = vadd.f32 %v4920_v54, %v14210_v9  ;;  %v5696_v51 = vmul.f32 %v15110_v3, %v4404_v43  ;;  %v6081_v61 = vmul.f32 %v15186_v48, %v3756_v33  ;;  %v6469_v0 = vmul.f32 %v8558_v13, %v15190_v12  ;;  %v8559_v40 = vld [vmem:[#allocation4 + $0x340] sm:$0xff] }
 0x405   :  { %15285 = vst [vmem:[#allocation50_spill] sm:$0xff] %v14434_v37  ;;  %v6929_v28 = vadd.f32 %v6801_v29, %v6541_v11  ;;  %v14440_v8 = vadd.f32 %v4536_v27, %v4276_v47  ;;  %v14443_v18 = vmul.f32 %v13975_v52, %v4403_v10  ;;  %v3830_v60 = vmul.f32 %v15102_v59, %v3698_v45  ;;  %v15286_v10 = vld [vmem:[#allocation9_spill] sm:$0xff] }
 0x406   :  { %v5436_v16 = vadd.f32 %v5308_v4, %v5048_v21  ;;  %v6209_v58 = vadd.f32 %v6081_v61, %v14236_v19  ;;  %v3831_v9 = vmul.f32 %v15102_v59, %v3699_v25  ;;  %v4090_v33 = vmul.f32 %v8559_v40, %v15098_v63 }
 0x407   :  { %v7063_v13 = vadd.f32 %v14011_v36, %v6929_v28  ;;  %v6857_v29 = vmul.f32 %v13975_v52, %v4404_v43  ;;  %v4477_v27 = vmul.f32 %v15108_v46, %v4345_v20  ;;  %v4603_v54 = vadd.f32 %v15286_v10, %v14225_v53  ;;  %v7319_v43 = vld [vmem:[%s14942_s6 + $0x1f8] sm:$0xff] }
 0x408   :  { %v14454_v11 = vadd.f32 %v5696_v51, %v5436_v16  ;;  %v6597_v47 = vadd.f32 %v6469_v0, %v6209_v58  ;;  %v4218_v4 = vadd.f32 %v4090_v33, %v3830_v60  ;;  %v4478_v19 = vmul.f32 %v15108_v46, %v4346_v22  ;;  %v3755_v10 = vld [vmem:[#allocation4 + $0x5e7] sm:$0xff] }
 0x409   :  { %v7191_v21 = vmax.f32 %v7063_v13, 0.0  ;;  %v14458_v61 = vadd.f32 %v14329_v15, %v3831_v9  ;;  %v4862_v37 = vmul.f32 %v15103_v44, %v3698_v45  ;;  %v4863_v28 = vmul.f32 %v15103_v44, %v3699_v25  ;;  %v15287_v13 = vld [vmem:[#allocation20_spill] sm:$0xff] }
 0x40a   :  { %v6985_v14 = vadd.f32 %v6857_v29, %v6597_v47  ;;  %v14466_v53 = vadd.f32 %v4477_v27, %v14366_v57  ;;  %v14468_v51 = vadd.f32 %v4478_v19, %v4218_v4  ;;  %v5250_v0 = vmul.f32 %v8559_v40, %v15100_v49  ;;  %v3754_v27 = vld [vmem:[#allocation4 + $0x5df] sm:$0xff] }
 0x40b   :  { %v7447_v60 = vadd.f32 %v7319_v43, %v7191_v21  ;;  %v4990_v15 = vadd.f32 %v4862_v37, %v14238_v50  ;;  %v4991_v16 = vadd.f32 %v4863_v28, %v4603_v54  ;;  %v5637_v58 = vmul.f32 %v15110_v3, %v4345_v20  ;;  %v4401_v19 = vld [vmem:[#allocation4 + $0x5d9] sm:$0xff]  ;;  %v4402_v21 = vld [vmem:[#allocation4 + $0x5e1] sm:$0xff] }
 0x40c   :  { %v7119_v9 = vadd.f32 %v14011_v36, %v6985_v14  ;;  %v5638_v33 = vmul.f32 %v15110_v3, %v4346_v22  ;;  %v5763_v29 = vadd.f32 %v15287_v13, %v14252_v56  ;;  %v6023_v57 = vmul.f32 %v15186_v48, %v3698_v45  ;;  %v7375_v28 = vld [vmem:[%s14942_s6 + $0x3b8] sm:$0xff] }
 0x40d   :  { %7575 = vst [vmem:[%s14942_s6 + $0x1f8] sm:$0xff] %v7447_v60  ;;  %v5378_v47 = vadd.f32 %v5250_v0, %v4990_v15  ;;  %v14482_v50 = vadd.f32 %v14336_v39, %v4991_v16  ;;  %v14485_v37 = vadd.f32 %v5637_v58, %v14369_v32  ;;  %v6024_v14 = vmul.f32 %v15186_v48, %v3699_v25 }
 0x40e   :  { %v7247_v54 = vmax.f32 %v7119_v9, 0.0  ;;  %v6151_v56 = vadd.f32 %v6023_v57, %v14297_v6  ;;  %v6411_v45 = vmul.f32 %v8559_v40, %v15190_v12  ;;  %v6798_v4 = vmul.f32 %v13975_v52, %v4345_v20  ;;  %v8560_v40 = vld [vmem:[#allocation4 + $0x5e0] sm:$0xff] }
 0x40f   :  { %v6152_v39 = vadd.f32 %v6024_v14, %v5763_v29  ;;  %v6799_v43 = vmul.f32 %v13975_v52, %v4346_v22  ;;  %v3886_v32 = vmul.f32 %v15102_v59, %v3754_v27  ;;  %v3887_v25 = vmul.f32 %v15102_v59, %v3755_v10 }
 0x410   :  { %v7503_v0 = vadd.f32 %v7375_v28, %v7247_v54  ;;  %v6539_v60 = vadd.f32 %v6411_v45, %v6151_v56  ;;  %v6926_v6 = vadd.f32 %v6798_v4, %v14373_v41  ;;  %v4146_v20 = vmul.f32 %v8560_v40, %v15098_v63  ;;  %v15288_v41 = vld [vmem:[#allocation48_spill] sm:$0xff] }
 0x411   :  { %v14499_v15 = vadd.f32 %v5638_v33, %v5378_v47  ;;  %v6540_v16 = vadd.f32 %v14339_v5, %v6152_v39  ;;  %v4533_v58 = vmul.f32 %v15108_v46, %v4401_v19  ;;  %v4534_v9 = vmul.f32 %v15108_v46, %v4402_v21 }
 0x412   :  { %7631 = vst [vmem:[%s14942_s6 + $0x3b8] sm:$0xff] %v7503_v0  ;;  %v6927_v22 = vadd.f32 %v6799_v43, %v6539_v60  ;;  %v7060_v13 = vadd.f32 %v14011_v36, %v6926_v6  ;;  %v4274_v29 = vadd.f32 %v4146_v20, %v3886_v32  ;;  %v4659_v57 = vadd.f32 %v15288_v41, %v14271_v23  ;;  %v7316_v23 = vld [vmem:[%s14942_s6 + $0x1e0] sm:$0xff]  ;;  %v7317_v60 = vld [vmem:[%s14942_s6 + $0x1e8] sm:$0xff]  ;;  %v3701_v41 = vld [vmem:[#allocation4 + $0x367] sm:$0xff] }
 0x413   :  { %v6928_v33 = vadd.f32 %v14419_v34, %v6540_v16  ;;  %v14512_v47 = vadd.f32 %v14342_v24, %v3887_v25  ;;  %v4918_v5 = vmul.f32 %v15103_v44, %v3754_v27  ;;  %v4919_v14 = vmul.f32 %v15103_v44, %v3755_v10  ;;  %v7318_v16 = vld [vmem:[%s14942_s6 + $0x1f0] sm:$0xff] }
 0x414   :  { %v7061_v54 = vadd.f32 %v14011_v36, %v6927_v22  ;;  %v7188_v56 = vmax.f32 %v7060_v13, 0.0  ;;  %v14518_v45 = vadd.f32 %v4533_v58, %v14385_v31  ;;  %v5306_v4 = vmul.f32 %v8560_v40, %v15100_v49 }
 0x415   :  { %v7062_v28 = vadd.f32 %v14011_v36, %v6928_v33  ;;  %v5046_v24 = vadd.f32 %v4918_v5, %v14288_v38  ;;  %v5047_v34 = vadd.f32 %v4919_v14, %v4659_v57  ;;  %v5693_v39 = vmul.f32 %v15110_v3, %v4401_v19 }
 0x416   :  { %v7189_v43 = vmax.f32 %v7061_v54, 0.0  ;;  %v7444_v32 = vadd.f32 %v7316_v23, %v7188_v56  ;;  %v14527_v25 = vadd.f32 %v4534_v9, %v4274_v29  ;;  %v5694_v31 = vmul.f32 %v15110_v3, %v4402_v21 }
 0x417   :  { %v7190_v0 = vmax.f32 %v7062_v28, 0.0  ;;  %v5434_v6 = vadd.f32 %v5306_v4, %v5046_v24  ;;  %v14534_v20 = vadd.f32 %v14346_v35, %v5047_v34  ;;  %v5819_v38 = vadd.f32 %v14204_v2, %v14304_v7  ;;  %v4789_v4 = vld [vmem:[#allocation4 + $0x607] sm:$0xff] }
 0x418   :  { %v7445_v58 = vadd.f32 %v7317_v60, %v7189_v43  ;;  %7572 = vst [vmem:[%s14942_s6 + $0x1e0] sm:$0xff] %v7444_v32  ;;  %v5821_v9 = vadd.f32 %v5693_v39, %v14392_v26  ;;  %v6079_v22 = vmul.f32 %v15186_v48, %v3754_v27  ;;  %v6080_v13 = vmul.f32 %v15186_v48, %v3755_v10  ;;  %v8561_v27 = vld [vmem:[#allocation4 + $0x378] sm:$0xff]  ;;  %v8563_v28 = vld [vmem:[#allocation4 + $0x368] sm:$0xff] }
 0x419   :  { %v7446_v35 = vadd.f32 %v7318_v16, %v7190_v0  ;;  %v14547_v29 = vadd.f32 %v5694_v31, %v5434_v6  ;;  %v6467_v2 = vmul.f32 %v8560_v40, %v15190_v12  ;;  %v6854_v7 = vmul.f32 %v13975_v52, %v4401_v19 }
 0x41a   :  { %7573 = vst [vmem:[%s14942_s6 + $0x1e8] sm:$0xff] %v7445_v58  ;;  %v6207_v57 = vadd.f32 %v6079_v22, %v14319_v1  ;;  %v6208_v33 = vadd.f32 %v6080_v13, %v5819_v38  ;;  %v6855_v26 = vmul.f32 %v13975_v52, %v4402_v21  ;;  %v14557_v10 = vmul.f32 %v8561_v27, %v15098_v63  ;;  %v8562_v1 = vld [vmem:[#allocation4 + $0x618] sm:$0xff]  ;;  %v7372_v58 = vld [vmem:[%s14942_s6 + $0x3a0] sm:$0xff] }
 0x41b   :  { %7574 = vst [vmem:[%s14942_s6 + $0x1f0] sm:$0xff] %v7446_v35  ;;  %v6982_v19 = vadd.f32 %v6854_v7, %v14410_v55  ;;  %v14564_v40 = vmul.f32 %v8561_v27, %v15100_v49  ;;  %v14567_v5 = vmul.f32 %v8561_v27, %v15190_v12  ;;  %v14570_v14 = vmul.f32 %v8562_v1, %v15100_v49  ;;  %v3704_v35 = vld [vmem:[#allocation4 + $0x37f] sm:$0xff] }
 0x41c   :  { %v6595_v52 = vadd.f32 %v6467_v2, %v6207_v57  ;;  %v6596_v21 = vadd.f32 %v14351_v17, %v6208_v33  ;;  %v14574_v54 = vmul.f32 %v8562_v1, %v15190_v12  ;;  %v3833_v56 = vmul.f32 %v15102_v59, %v3701_v41  ;;  %v4352_v27 = vld [vmem:[#allocation4 + $0x381] sm:$0xff] }
 0x41d   :  { %v7116_v55 = vadd.f32 %v14011_v36, %v6982_v19  ;;  %v4093_v23 = vmul.f32 %v8563_v28, %v15098_v63  ;;  %v4865_v24 = vmul.f32 %v15103_v44, %v3701_v41  ;;  %v6026_v34 = vmul.f32 %v15186_v48, %v3701_v41  ;;  %v4351_v41 = vld [vmem:[#allocation4 + $0x379] sm:$0xff] }
 0x41e   :  { %v6983_v39 = vadd.f32 %v6855_v26, %v6595_v52  ;;  %v6984_v43 = vadd.f32 %v14443_v18, %v6596_v21  ;;  %v5253_v17 = vmul.f32 %v8563_v28, %v15100_v49  ;;  %v6414_v32 = vmul.f32 %v8563_v28, %v15190_v12  ;;  %v8564_v18 = vld [vmem:[#allocation4 + $0x608] sm:$0xff]  ;;  %v7373_v19 = vld [vmem:[%s14942_s6 + $0x3a8] sm:$0xff]  ;;  %v7374_v1 = vld [vmem:[%s14942_s6 + $0x3b0] sm:$0xff] }
 0x41f   :  { %v7244_v31 = vmax.f32 %v7116_v55, 0.0  ;;  %v4993_v0 = vadd.f32 %v4865_v24, %v14466_v53  ;;  %v6154_v60 = vadd.f32 %v6026_v34, %v14485_v37  ;;  %v4921_v6 = vmul.f32 %v15103_v44, %v4789_v4  ;;  %v8565_v21 = vld [vmem:[#allocation4 + $0x380] sm:$0xff] }
 0x420   :  { %v7117_v38 = vadd.f32 %v14011_v36, %v6983_v39  ;;  %v7118_v16 = vadd.f32 %v14011_v36, %v6984_v43  ;;  %v5309_v22 = vmul.f32 %v8564_v18, %v15100_v49  ;;  %v6082_v13 = vmul.f32 %v15186_v48, %v4789_v4  ;;  %v4792_v39 = vld [vmem:[#allocation4 + $0x61f] sm:$0xff] }
 0x421   :  { %v7500_v2 = vadd.f32 %v7372_v58, %v7244_v31  ;;  %v14594_v53 = vadd.f32 %v5253_v17, %v4993_v0  ;;  %v14596_v37 = vadd.f32 %v6414_v32, %v6154_v60  ;;  %v5049_v7 = vadd.f32 %v4921_v6, %v14518_v45  ;;  %v14623_v32 = vld [vmem:[#allocation4 + $0x619] sm:$0xff]  ;;  %v14641_v58 = vld [vmem:[%s14938_s4 + $0x28] ss:$0 sm:$0xff] }
 0x422   :  { %v7245_v57 = vmax.f32 %v7117_v38, 0.0  ;;  %v7246_v36 = vmax.f32 %v7118_v16, 0.0  ;;  %v6210_v33 = vadd.f32 %v6082_v13, %v5821_v9  ;;  %v6470_v26 = vmul.f32 %v8564_v18, %v15190_v12  ;;  %v5568_v13 = vld [vmem:[#allocation4 + $0x621] sm:$0xff] }
 0x423   :  { %7628 = vst [vmem:[%s14942_s6 + $0x3a0] sm:$0xff] %v7500_v2  ;;  %v14609_v45 = vadd.f32 %v4093_v23, %v3833_v56  ;;  %v14611_v52 = vadd.f32 %v5309_v22, %v5049_v7  ;;  %v3836_v9 = vmul.f32 %v15102_v59, %v3704_v35  ;;  %v4096_v4 = vmul.f32 %v8565_v21, %v15098_v63  ;;  %v5957_v2 = vld [vmem:[#allocation4 + $0x64f] sm:$0xff] }
 0x424   :  { %v7501_v55 = vadd.f32 %v7373_v19, %v7245_v57  ;;  %v7502_v28 = vadd.f32 %v7374_v1, %v7246_v36  ;;  %v14615_v24 = vadd.f32 %v6470_v26, %v6210_v33  ;;  %v14618_v34 = vmul.f32 %v15108_v46, %v4351_v41  ;;  %v8567_v57 = vld [vmem:[#allocation4 + $0x620] sm:$0xff] }
 0x425   :  { %v4224_v43 = vadd.f32 %v4096_v4, %v3836_v9  ;;  %v4484_v17 = vmul.f32 %v15108_v46, %v4352_v27  ;;  %v4868_v56 = vmul.f32 %v15103_v44, %v3704_v35  ;;  %v5256_v23 = vmul.f32 %v8565_v21, %v15100_v49  ;;  %v15289_v33 = vld [vmem:[#allocation37_spill] sm:$0xff]  ;;  %v6733_v9 = vld [vmem:[#allocation4 + $0x651] sm:$0xff] }
 0x426   :  { %7629 = vst [vmem:[%s14942_s6 + $0x3a8] sm:$0xff] %v7501_v55  ;;  %7630 = vst [vmem:[%s14942_s6 + $0x3b0] sm:$0xff] %v7502_v28  ;;  %v14632_v31 = vmul.f32 %v15110_v3, %v4351_v41  ;;  %v5644_v0 = vmul.f32 %v15110_v3, %v4352_v27  ;;  %v6029_v60 = vmul.f32 %v15186_v48, %v3704_v35  ;;  %v15290_v55 = vld [vmem:[#allocation42_spill] sm:$0xff] }
 0x427   :  { %v6417_v6 = vmul.f32 %v8565_v21, %v15190_v12  ;;  %v4612_v38 = vadd.f32 %v4484_v17, %v4224_v43  ;;  %v4996_v16 = vadd.f32 %v4868_v56, %v14415_v42  ;;  %v14644_v18 = vmul.f32 %v14641_v58, %v4351_v41 }
 0x428   :  { %v4924_v22 = vmul.f32 %v15103_v44, %v4792_v39  ;;  %v6157_v7 = vadd.f32 %v6029_v60, %v14431_v30  ;;  %v6805_v35 = vmul.f32 %v14641_v58, %v4352_v27  ;;  %v5312_v36 = vmul.f32 %v8567_v57, %v15100_v49  ;;  %v14662_v60 = vld [vmem:[#allocation4 + $0x36f] sm:$0xff] }
 0x429   :  { %v14652_v42 = vmul.f32 %v15110_v3, %v14623_v32  ;;  %v5000_v26 = vadd.f32 %v15289_v33, %v4612_v38  ;;  %v5384_v19 = vadd.f32 %v5256_v23, %v4996_v16  ;;  %v6085_v1 = vmul.f32 %v15186_v48, %v4792_v39  ;;  %v14664_v23 = vld [vmem:[#allocation4 + $0x377] sm:$0xff] }
 0x42a   :  { %v5052_v41 = vadd.f32 %v4924_v22, %v14440_v8  ;;  %v6545_v21 = vadd.f32 %v6417_v6, %v6157_v7  ;;  %v5700_v30 = vmul.f32 %v15110_v3, %v5568_v13  ;;  %v6089_v27 = vmul.f32 %v15186_v48, %v5957_v2  ;;  %v8568_v39 = vld [vmem:[#allocation2 + $0x48] sm:$0xff]  ;;  %v15291_v22 = vld [vmem:[#allocation23_spill] sm:$0xff] }
 0x42b   :  { %v6473_v4 = vmul.f32 %v8567_v57, %v15190_v12  ;;  %v5388_v28 = vadd.f32 %v15290_v55, %v5000_v26  ;;  %v5772_v43 = vadd.f32 %v5644_v0, %v5384_v19  ;;  %v6213_v56 = vadd.f32 %v6085_v1, %v14454_v11  ;;  %v15292_v7 = vld [vmem:[#allocation39_spill] sm:$0xff]  ;;  %v15293_v1 = vld [vmem:[#allocation49_spill] sm:$0xff] }
 0x42c   :  { %v5440_v17 = vadd.f32 %v5312_v36, %v5052_v41  ;;  %v6933_v8 = vadd.f32 %v6805_v35, %v6545_v21  ;;  %v14667_v6 = vmul.f32 %v8568_v39, %v15190_v12  ;;  %v6861_v38 = vmul.f32 %v14641_v58, %v5568_v13  ;;  %v14673_v11 = vld [vmem:[#allocation4 + $0x369] sm:$0xff]  ;;  %v14678_v35 = vld [vmem:[%s14939_s5 + $0x2] ss:$0 sm:$0xff] }
 0x42d   :  { %v6865_v16 = vmul.f32 %v14641_v58, %v6733_v9  ;;  %v5776_v2 = vadd.f32 %v15291_v22, %v5388_v28  ;;  %v6161_v0 = vadd.f32 %v15292_v7, %v5772_v43  ;;  %v6601_v36 = vadd.f32 %v6473_v4, %v6213_v56  ;;  %v14685_v19 = vld [vmem:[#allocation4 + $0x370] sm:$0xff] }
 0x42e   :  { %v5828_v57 = vadd.f32 %v5700_v30, %v5440_v17  ;;  %v7067_v33 = vadd.f32 %v14678_v35, %v6933_v8  ;;  %v3834_v13 = vmul.f32 %v15102_v59, %v14662_v60  ;;  %v3835_v26 = vmul.f32 %v15102_v59, %v14664_v23  ;;  %v15294_v21 = vld [vmem:[#allocation31_spill] sm:$0xff] }
 0x42f   :  { %v4094_v41 = vmul.f32 %v14685_v19, %v15098_v63  ;;  %v6165_v9 = vadd.f32 %v15293_v1, %v5776_v2  ;;  %v6549_v30 = vadd.f32 %v15294_v21, %v6161_v0  ;;  %v6989_v55 = vadd.f32 %v6861_v38, %v6601_v36  ;;  %v14691_v28 = vld [vmem:[#allocation4 + $0x371] sm:$0xff]  ;;  %v7323_v63 = vld [vmem:[%s14942_s6 + $0x218] sm:$0xff] }
 0x430   :  { %v6217_v4 = vadd.f32 %v6089_v27, %v5828_v57  ;;  %v7195_v43 = vmax.f32 %v7067_v33, 0.0  ;;  %v4223_v56 = vadd.f32 %v14557_v10, %v3835_v26  ;;  %v4481_v59 = vmul.f32 %v15108_v46, %v14673_v11  ;;  %v15295_v8 = vld [vmem:[#allocation27_spill] sm:$0xff]  ;;  %v15297_v36 = vld [vmem:[#allocation14_spill] sm:$0xff] }
 0x431   :  { %v4222_v17 = vadd.f32 %v4094_v41, %v3834_v13  ;;  %v6553_v39 = vadd.f32 %v15295_v8, %v6165_v9  ;;  %v15296_v22 = vld [vmem:[#allocation35_spill] sm:$0xff]  ;;  %v7123_v38 = vadd.f32 %v14678_v35, %v6989_v55  ;;  %v4482_v0 = vmul.f32 %v15108_v46, %v14691_v28  ;;  %v7379_v1 = vld [vmem:[%s14942_s6 + $0x3d8] sm:$0xff] }
 0x432   :  { %v6937_v7 = vadd.f32 %v15296_v22, %v6549_v30  ;;  %v6605_v27 = vadd.f32 %v14667_v6, %v6217_v4  ;;  %v7451_v2 = vadd.f32 %v7323_v63, %v7195_v43  ;;  %v4607_v10 = vadd.f32 %v14396_v62, %v14458_v61  ;;  %v7327_v4 = vld [vmem:[%s14942_s6 + $0x238] sm:$0xff] }
 0x433   :  { %v4609_v57 = vadd.f32 %v4481_v59, %v14609_v45  ;;  %v6941_v33 = vadd.f32 %v15297_v36, %v6553_v39  ;;  %v7251_v41 = vmax.f32 %v7123_v38, 0.0  ;;  %v4610_v46 = vadd.f32 %v4482_v0, %v4222_v17  ;;  %v15301_v0 = vld [vmem:[#allocation29_spill] sm:$0xff] }
 0x434   :  { %v7071_v13 = vadd.f32 %v14678_v35, %v6937_v7  ;;  %v6993_v26 = vadd.f32 %v6865_v16, %v6605_v27  ;;  %7579 = vst [vmem:[%s14942_s6 + $0x218] sm:$0xff] %v7451_v2  ;;  %v4611_v9 = vadd.f32 %v14618_v34, %v4223_v56  ;;  %v4866_v62 = vmul.f32 %v15103_v44, %v14662_v60  ;;  %v15298_v34 = vld [vmem:[#allocation11_spill] sm:$0xff]  ;;  %v15299_v56 = vld [vmem:[#allocation38_spill] sm:$0xff]  ;;  %v15300_v7 = vld [vmem:[#allocation40_spill] sm:$0xff] }
 0x435   :  { %v4867_v61 = vmul.f32 %v15103_v44, %v14664_v23  ;;  %v7075_v45 = vadd.f32 %v14678_v35, %v6941_v33  ;;  %v7507_v30 = vadd.f32 %v7379_v1, %v7251_v41  ;;  %v4997_v17 = vadd.f32 %v15298_v34, %v4609_v57  ;;  %v7331_v27 = vld [vmem:[%s14942_s6 + $0x258] sm:$0xff] }
 0x436   :  { %v7199_v16 = vmax.f32 %v7071_v13, 0.0  ;;  %v7127_v21 = vadd.f32 %v14678_v35, %v6993_v26  ;;  %v4994_v55 = vadd.f32 %v4866_v62, %v14468_v51  ;;  %v4998_v59 = vadd.f32 %v15299_v56, %v4610_v46  ;;  %v7383_v51 = vld [vmem:[%s14942_s6 + $0x3f8] sm:$0xff]  ;;  %v15303_v26 = vld [vmem:[#allocation25_spill] sm:$0xff] }
 0x437   :  { %v4995_v43 = vadd.f32 %v4867_v61, %v4607_v10  ;;  %v7203_v8 = vmax.f32 %v7075_v45, 0.0  ;;  %7635 = vst [vmem:[%s14942_s6 + $0x3d8] sm:$0xff] %v7507_v30  ;;  %v4999_v63 = vadd.f32 %v15300_v7, %v4611_v9  ;;  %v5254_v38 = vmul.f32 %v14685_v19, %v15100_v49  ;;  %v15302_v57 = vld [vmem:[#allocation18_spill] sm:$0xff]  ;;  %v15306_v30 = vld [vmem:[#allocation33_spill] sm:$0xff] }
 0x438   :  { %v7455_v39 = vadd.f32 %v7327_v4, %v7199_v16  ;;  %v7255_v22 = vmax.f32 %v7127_v21, 0.0  ;;  %v5385_v10 = vadd.f32 %v15301_v0, %v4997_v17  ;;  %v5386_v36 = vadd.f32 %v15302_v57, %v4998_v59  ;;  %v15305_v16 = vld [vmem:[#allocation34_spill] sm:$0xff]  ;;  %v15308_v17 = vld [vmem:[#allocation19_spill] sm:$0xff]  ;;  %v15309_v59 = vld [vmem:[#allocation8_spill] sm:$0xff] }
 0x439   :  { %v5383_v2 = vadd.f32 %v14564_v40, %v4995_v43  ;;  %v7459_v33 = vadd.f32 %v7331_v27, %v7203_v8  ;;  %v5387_v41 = vadd.f32 %v15303_v26, %v4999_v63  ;;  %v5641_v1 = vmul.f32 %v15110_v3, %v14673_v11  ;;  %v15304_v40 = vld [vmem:[#allocation17_spill] sm:$0xff]  ;;  %v15312_v63 = vld [vmem:[#allocation44_spill] sm:$0xff]  ;;  %v15315_v57 = vld [vmem:[#allocation26_spill] sm:$0xff] }
 0x43a   :  { %7583 = vst [vmem:[%s14942_s6 + $0x238] sm:$0xff] %v7455_v39  ;;  %v7511_v13 = vadd.f32 %v7383_v51, %v7255_v22  ;;  %v5382_v46 = vadd.f32 %v5254_v38, %v4994_v55  ;;  %v5642_v9 = vmul.f32 %v15110_v3, %v14691_v28  ;;  %v5767_v62 = vadd.f32 %v15304_v40, %v14482_v50  ;;  %v15307_v55 = vld [vmem:[#allocation30_spill] sm:$0xff]  ;;  %v15310_v39 = vld [vmem:[#allocation5_spill] sm:$0xff] }
 0x43b   :  { %v5771_v61 = vadd.f32 %v14632_v31, %v5383_v2  ;;  %7587 = vst [vmem:[%s14942_s6 + $0x258] sm:$0xff] %v7459_v33  ;;  %v5769_v45 = vadd.f32 %v5641_v1, %v14594_v53  ;;  %v5773_v21 = vadd.f32 %v15305_v16, %v5385_v10  ;;  %v5774_v4 = vadd.f32 %v15306_v30, %v5386_v36  ;;  %v15311_v53 = vld [vmem:[#allocation51_spill] sm:$0xff]  ;;  %v15313_v2 = vld [vmem:[#allocation24_spill] sm:$0xff]  ;;  %v15316_v33 = vld [vmem:[#allocation6_spill] sm:$0xff] }
 0x43c   :  { %7639 = vst [vmem:[%s14942_s6 + $0x3f8] sm:$0xff] %v7511_v13  ;;  %v5775_v43 = vadd.f32 %v15307_v55, %v5387_v41  ;;  %v5770_v34 = vadd.f32 %v5642_v9, %v5382_v46  ;;  %v6027_v50 = vmul.f32 %v15186_v48, %v14662_v60  ;;  %v6028_v31 = vmul.f32 %v15186_v48, %v14664_v23  ;;  %v15314_v10 = vld [vmem:[#allocation12_spill] sm:$0xff]  ;;  %v15317_v26 = vld [vmem:[#allocation46_spill] sm:$0xff]  ;;  %v15318_v9 = vld [vmem:[#allocation43_spill] sm:$0xff] }
 0x43d   :  { %v6160_v56 = vadd.f32 %v15308_v17, %v5771_v61  ;;  %v6158_v8 = vadd.f32 %v15309_v59, %v5769_v45  ;;  %v6162_v22 = vadd.f32 %v15310_v39, %v5773_v21  ;;  %v6163_v7 = vadd.f32 %v15311_v53, %v5774_v4  ;;  %v15320_v45 = vld [vmem:[#allocation36_spill] sm:$0xff]  ;;  %v15321_v21 = vld [vmem:[#allocation45_spill] sm:$0xff] }
 0x43e   :  { %v6164_v27 = vadd.f32 %v15312_v63, %v5775_v43  ;;  %v6155_v51 = vadd.f32 %v6027_v50, %v14499_v15  ;;  %v6156_v38 = vadd.f32 %v6028_v31, %v5767_v62  ;;  %v6159_v0 = vadd.f32 %v15313_v2, %v5770_v34  ;;  %v15319_v15 = vld [vmem:[#allocation16_spill] sm:$0xff]  ;;  %v15322_v55 = vld [vmem:[#allocation41_spill] sm:$0xff]  ;;  %v15324_v50 = vld [vmem:[#allocation47_spill] sm:$0xff] }
 0x43f   :  { %v6415_v60 = vmul.f32 %v14685_v19, %v15190_v12  ;;  %v6546_v23 = vadd.f32 %v15314_v10, %v6158_v8  ;;  %v6548_v36 = vadd.f32 %v15315_v57, %v6160_v56  ;;  %v6550_v13 = vadd.f32 %v15316_v33, %v6162_v22  ;;  %v15323_v34 = vld [vmem:[#allocation28_spill] sm:$0xff]  ;;  %v15325_v59 = vld [vmem:[#allocation13_spill] sm:$0xff]  ;;  %v7320_v10 = vld [vmem:[%s14942_s6 + $0x200] sm:$0xff] }
 0x440   :  { %v6551_v41 = vadd.f32 %v15317_v26, %v6163_v7  ;;  %v6544_v46 = vadd.f32 %v14567_v5, %v6156_v38  ;;  %v6547_v40 = vadd.f32 %v15318_v9, %v6159_v0  ;;  %v6552_v62 = vadd.f32 %v15319_v15, %v6164_v27  ;;  %v7322_v27 = vld [vmem:[%s14942_s6 + $0x210] sm:$0xff]  ;;  %v7325_v57 = vld [vmem:[%s14942_s6 + $0x228] sm:$0xff] }
 0x441   :  { %v6543_v1 = vadd.f32 %v6415_v60, %v6155_v51  ;;  %v6802_v61 = vmul.f32 %v14641_v58, %v14673_v11  ;;  %v6803_v19 = vmul.f32 %v14641_v58, %v14691_v28  ;;  %v6934_v16 = vadd.f32 %v15320_v45, %v6546_v23  ;;  %v7324_v51 = vld [vmem:[%s14942_s6 + $0x220] sm:$0xff]  ;;  %v7321_v23 = vld [vmem:[%s14942_s6 + $0x208] sm:$0xff] }
 0x442   :  { %v6936_v30 = vadd.f32 %v15321_v21, %v6548_v36  ;;  %v6932_v4 = vadd.f32 %v14644_v18, %v6544_v46  ;;  %v6935_v43 = vadd.f32 %v15322_v55, %v6547_v40  ;;  %v6938_v5 = vadd.f32 %v15323_v34, %v6550_v13  ;;  %v7326_v36 = vld [vmem:[%s14942_s6 + $0x230] sm:$0xff]  ;;  %v4790_v46 = vld [vmem:[#allocation4 + $0x60f] sm:$0xff] }
 0x443   :  { %v6939_v31 = vadd.f32 %v15324_v50, %v6551_v41  ;;  %v6930_v17 = vadd.f32 %v6802_v61, %v14596_v37  ;;  %v6931_v56 = vadd.f32 %v6803_v19, %v6543_v1  ;;  %v6940_v11 = vadd.f32 %v15325_v59, %v6552_v62  ;;  %v7328_v1 = vld [vmem:[%s14942_s6 + $0x240] sm:$0xff]  ;;  %v7330_v21 = vld [vmem:[%s14942_s6 + $0x250] sm:$0xff] }
 0x444   :  { %v7068_v8 = vadd.f32 %v14678_v35, %v6934_v16  ;;  %v7066_v28 = vadd.f32 %v14678_v35, %v6932_v4  ;;  %v7069_v39 = vadd.f32 %v14678_v35, %v6935_v43  ;;  %v7070_v22 = vadd.f32 %v14678_v35, %v6936_v30  ;;  %v4791_v61 = vld [vmem:[#allocation4 + $0x617] sm:$0xff]  ;;  %v5565_v19 = vld [vmem:[#allocation4 + $0x609] sm:$0xff]  ;;  %v5955_v59 = vld [vmem:[#allocation4 + $0x63f] sm:$0xff] }
 0x445   :  { %v7072_v18 = vadd.f32 %v14678_v35, %v6938_v5  ;;  %v7064_v53 = vadd.f32 %v14678_v35, %v6930_v17  ;;  %v7065_v7 = vadd.f32 %v14678_v35, %v6931_v56  ;;  %v7073_v63 = vadd.f32 %v14678_v35, %v6939_v31  ;;  %v5566_v45 = vld [vmem:[#allocation4 + $0x611] sm:$0xff] }
 0x446   :  { %v7074_v37 = vadd.f32 %v14678_v35, %v6940_v11  ;;  %v7194_v38 = vmax.f32 %v7066_v28, 0.0  ;;  %v7196_v2 = vmax.f32 %v7068_v8, 0.0  ;;  %v7197_v0 = vmax.f32 %v7069_v39, 0.0  ;;  %v7329_v16 = vld [vmem:[%s14942_s6 + $0x248] sm:$0xff]  ;;  %v15326_v50 = vld [vmem:[#allocation7_spill] sm:$0xff] }
 0x447   :  { %v7198_v60 = vmax.f32 %v7070_v22, 0.0  ;;  %v7192_v33 = vmax.f32 %v7064_v53, 0.0  ;;  %v7193_v13 = vmax.f32 %v7065_v7, 0.0  ;;  %v7200_v26 = vmax.f32 %v7072_v18, 0.0  ;;  %v5954_v56 = vld [vmem:[#allocation4 + $0x637] sm:$0xff]  ;;  %v5956_v22 = vld [vmem:[#allocation4 + $0x647] sm:$0xff] }
 0x448   :  { %v7201_v41 = vmax.f32 %v7073_v63, 0.0  ;;  %v7202_v9 = vmax.f32 %v7074_v37, 0.0  ;;  %v7450_v40 = vadd.f32 %v7322_v27, %v7194_v38  ;;  %v7452_v15 = vadd.f32 %v7324_v51, %v7196_v2  ;;  %v8571_v11 = vld [vmem:[#allocation4 + $0x610] sm:$0xff]  ;;  %v6730_v51 = vld [vmem:[#allocation4 + $0x639] sm:$0xff] }
 0x449   :  { %v7453_v62 = vadd.f32 %v7325_v57, %v7197_v0  ;;  %v7448_v30 = vadd.f32 %v7320_v10, %v7192_v33  ;;  %v7449_v4 = vadd.f32 %v7321_v23, %v7193_v13  ;;  %v7454_v55 = vadd.f32 %v7326_v36, %v7198_v60  ;;  %v6731_v23 = vld [vmem:[#allocation4 + $0x641] sm:$0xff]  ;;  %v6732_v13 = vld [vmem:[#allocation4 + $0x649] sm:$0xff] }
 0x44a   :  { %v7456_v43 = vadd.f32 %v7328_v1, %v7200_v26  ;;  %v7457_v34 = vadd.f32 %v7329_v16, %v7201_v41  ;;  %v7458_v5 = vadd.f32 %v7330_v21, %v7202_v9  ;;  %7578 = vst [vmem:[%s14942_s6 + $0x210] sm:$0xff] %v7450_v40  ;;  %7580 = vst [vmem:[%s14942_s6 + $0x220] sm:$0xff] %v7452_v15 }
 0x44b   :  { %7581 = vst [vmem:[%s14942_s6 + $0x228] sm:$0xff] %v7453_v62  ;;  %v4663_v31 = vadd.f32 %v15326_v50, %v14512_v47  ;;  %v4922_v17 = vmul.f32 %v15103_v44, %v4790_v46  ;;  %7576 = vst [vmem:[%s14942_s6 + $0x200] sm:$0xff] %v7448_v30  ;;  %v4923_v47 = vmul.f32 %v15103_v44, %v4791_v61  ;;  %v15327_v44 = vld [vmem:[#allocation50_spill] sm:$0xff]  ;;  %v7380_v50 = vld [vmem:[%s14942_s6 + $0x3e0] sm:$0xff] }
 0x44c   :  { %7577 = vst [vmem:[%s14942_s6 + $0x208] sm:$0xff] %v7449_v4  ;;  %7582 = vst [vmem:[%s14942_s6 + $0x230] sm:$0xff] %v7454_v55  ;;  %v5310_v8 = vmul.f32 %v8571_v11, %v15100_v49  ;;  %v5697_v28 = vmul.f32 %v15110_v3, %v5565_v19  ;;  %v5698_v39 = vmul.f32 %v15110_v3, %v5566_v45 }
 0x44d   :  { %7584 = vst [vmem:[%s14942_s6 + $0x240] sm:$0xff] %v7456_v43  ;;  %7585 = vst [vmem:[%s14942_s6 + $0x248] sm:$0xff] %v7457_v34  ;;  %v5050_v18 = vadd.f32 %v4922_v17, %v14527_v25  ;;  %v5823_v53 = vadd.f32 %v15327_v44, %v14534_v20  ;;  %v6083_v49 = vmul.f32 %v15186_v48, %v4790_v46  ;;  %v7376_v43 = vld [vmem:[%s14942_s6 + $0x3c0] sm:$0xff]  ;;  %v7378_v34 = vld [vmem:[%s14942_s6 + $0x3d0] sm:$0xff] }
 0x44e   :  { %7586 = vst [vmem:[%s14942_s6 + $0x250] sm:$0xff] %v7458_v5  ;;  %v6084_v7 = vmul.f32 %v15186_v48, %v4791_v61  ;;  %v5051_v63 = vadd.f32 %v4923_v47, %v4663_v31  ;;  %v5825_v3 = vadd.f32 %v5697_v28, %v14611_v52  ;;  %v6086_v37 = vmul.f32 %v15186_v48, %v5954_v56  ;;  %v7377_v5 = vld [vmem:[%s14942_s6 + $0x3c8] sm:$0xff] }
 0x44f   :  { %v6087_v27 = vmul.f32 %v15186_v48, %v5955_v59  ;;  %v5438_v38 = vadd.f32 %v5310_v8, %v5050_v18  ;;  %v6088_v2 = vmul.f32 %v15186_v48, %v5956_v22  ;;  %v6211_v25 = vadd.f32 %v6083_v49, %v14547_v29  ;;  %v7381_v28 = vld [vmem:[%s14942_s6 + $0x3e8] sm:$0xff] }
 0x450   :  { %v6212_v0 = vadd.f32 %v6084_v7, %v5823_v53  ;;  %v5439_v20 = vadd.f32 %v14570_v14, %v5051_v63  ;;  %v6214_v60 = vadd.f32 %v6086_v37, %v5825_v3  ;;  %v6471_v10 = vmul.f32 %v8571_v11, %v15190_v12 }
 0x451   :  { %v6858_v57 = vmul.f32 %v14641_v58, %v5565_v19  ;;  %v6860_v52 = vmul.f32 %v14641_v58, %v14623_v32  ;;  %v5826_v36 = vadd.f32 %v5698_v39, %v5438_v38  ;;  %v6862_v48 = vmul.f32 %v14641_v58, %v6730_v51 }
 0x452   :  { %v6600_v33 = vadd.f32 %v14574_v54, %v6212_v0  ;;  %v5827_v29 = vadd.f32 %v14652_v42, %v5439_v20  ;;  %v6599_v26 = vadd.f32 %v6471_v10, %v6211_v25  ;;  %v6602_v14 = vadd.f32 %v14667_v6, %v6214_v60 }
 0x453   :  { %v6859_v41 = vmul.f32 %v14641_v58, %v5566_v45  ;;  %v6215_v12 = vadd.f32 %v6087_v27, %v5826_v36  ;;  %v6863_v1 = vmul.f32 %v14641_v58, %v6731_v23  ;;  %v6986_v46 = vadd.f32 %v6858_v57, %v14615_v24 }
 0x454   :  { %v6988_v9 = vadd.f32 %v6860_v52, %v6600_v33  ;;  %v6216_v32 = vadd.f32 %v6088_v2, %v5827_v29  ;;  %v6864_v40 = vmul.f32 %v14641_v58, %v6732_v13  ;;  %v6990_v15 = vadd.f32 %v6862_v48, %v6602_v14 }
 0x455   :  { %v6987_v54 = vadd.f32 %v6859_v41, %v6599_v26  ;;  %v6603_v62 = vadd.f32 %v14667_v6, %v6215_v12  ;;  %v7120_v42 = vadd.f32 %v14678_v35, %v6986_v46 }
 0x456   :  { %v7122_v61 = vadd.f32 %v14678_v35, %v6988_v9  ;;  %v6604_v19 = vadd.f32 %v14667_v6, %v6216_v32  ;;  %v7124_v16 = vadd.f32 %v14678_v35, %v6990_v15 }
 0x457   :  { %v7121_v45 = vadd.f32 %v14678_v35, %v6987_v54  ;;  %v6991_v21 = vadd.f32 %v6863_v1, %v6603_v62  ;;  %v7248_v24 = vmax.f32 %v7120_v42, 0.0 }
 0x458   :  { %v7250_v30 = vmax.f32 %v7122_v61, 0.0  ;;  %v6992_v4 = vadd.f32 %v6864_v40, %v6604_v19  ;;  %v7252_v58 = vmax.f32 %v7124_v16, 0.0 }
 0x459   :  { %v7249_v55 = vmax.f32 %v7121_v45, 0.0  ;;  %v7125_v6 = vadd.f32 %v14678_v35, %v6991_v21  ;;  %v7504_v31 = vadd.f32 %v7376_v43, %v7248_v24 }
 0x45a   :  { %v7506_v17 = vadd.f32 %v7378_v34, %v7250_v30  ;;  %v7126_v56 = vadd.f32 %v14678_v35, %v6992_v4  ;;  %v7508_v47 = vadd.f32 %v7380_v50, %v7252_v58  ;;  %v7382_v35 = vld [vmem:[%s14942_s6 + $0x3f0] sm:$0xff] }
 0x45b   :  { %v7505_v59 = vadd.f32 %v7377_v5, %v7249_v55  ;;  %v7253_v11 = vmax.f32 %v7125_v6, 0.0  ;;  %7632 = vst [vmem:[%s14942_s6 + $0x3c0] sm:$0xff] %v7504_v31 }
 0x45c   :  { %7634 = vst [vmem:[%s14942_s6 + $0x3d0] sm:$0xff] %v7506_v17  ;;  %v7254_v8 = vmax.f32 %v7126_v56, 0.0  ;;  %7636 = vst [vmem:[%s14942_s6 + $0x3e0] sm:$0xff] %v7508_v47 }
 0x45d   :  { %7633 = vst [vmem:[%s14942_s6 + $0x3c8] sm:$0xff] %v7505_v59  ;;  %v7509_v39 = vadd.f32 %v7381_v28, %v7253_v11 }
 0x45e   :  { %v7510_v22 = vadd.f32 %v7382_v35, %v7254_v8 }
 0x45f   :  { %7637 = vst [vmem:[%s14942_s6 + $0x3e8] sm:$0xff] %v7509_v39 }
 0x460   :  { %7638 = vst [vmem:[%s14942_s6 + $0x3f0] sm:$0xff] %v7510_v22 }

</bundles_post_ra>
